<compile_context>
chip_gen: v7x
topology: tpu7x:2x2x1
jax: 0.10.0
libtpu: 0.0.40
codegen_flags: <defaults>
</compile_context>

<pallas_src>
import math
import functools

import numpy as np
import jax
import jax.numpy as jnp
from jax.experimental import pallas as pl
from jax.experimental.pallas import tpu as pltpu

HEADS = 2          # config.attention_heads
KSIZE = 7          # depthwise conv kernel size
LN_EPS = 1e-5      # torch.nn.LayerNorm default
NEG = -1e30
F32 = jnp.float32
LANE = 128

_DN0 = (((0,), (0,)), ((), ()))   # contract dim 0 of both operands
_DN1 = (((1,), (1,)), ((), ()))   # contract dim 1 of both operands


def _round_up(n, m):
    return ((n + m - 1) // m) * m


# ----------------------------------------------------------------------------
# In-kernel helpers
# ----------------------------------------------------------------------------
def _ln(x, g, b):
    """LayerNorm over the channel axis (axis 0 of a (C, N) tile)."""
    mean = jnp.mean(x, axis=0, keepdims=True)
    var = jnp.mean((x - mean) ** 2, axis=0, keepdims=True)
    return (x - mean) * jax.lax.rsqrt(var + LN_EPS) * g + b


def _softmax_lane(x):
    m = jnp.max(x, axis=-1, keepdims=True)
    e = jnp.exp(x - m)
    return e * pl.reciprocal(jnp.sum(e, axis=-1, keepdims=True), approx=True)


def _softmax_sublane(x):
    m = jnp.max(x, axis=0, keepdims=True)
    e = jnp.exp(x - m)
    return e * pl.reciprocal(jnp.sum(e, axis=0, keepdims=True), approx=True)


def _att_bias(seg_col, seg_row, kv_row):
    """(N,N) additive bias from (N,1)/(1,N) segment ids and (1,N) key-valid."""
    ok = jnp.logical_and(seg_col == seg_row, kv_row > 0.5)
    return jnp.where(ok, 0.0, NEG)


def _enc_block(x, pos, attbias, dwv_bcast, sq, dw, vec, *, n_conv, heads, k):
    """One QANet EncoderBlock (eval) on a channel-major (C, N) tile.

    sq : (n_conv+5, C, C)  [pointwise x n_conv, K, V, Q, ffn1, ffn2]
    dw : (n_conv, C, k)    depthwise weights
    vec: (C, 3*n_conv+6)   [ln_g x n, ln_b x n, pw_b x n, att_g, att_b,
                            ffn_g, ffn_b, b1, b2]
    dwv_bcast: list of k (C, N) validity masks (pre-broadcast, hoisted)
    """
    cch, n = x.shape
    d = cch // heads
    pad = k // 2

    def col(idx):
        return vec[:, idx:idx + 1]

    out = x + pos                                              # PosEncoder

    # conv sub-blocks: LN -> depthwise (rolled shifts) -> pointwise+relu -> +res
    for i in range(n_conv):
        res = out
        y = _ln(out, col(i), col(n_conv + i))
        dwi = dw[i]                                            # (C, k)
        acc = jnp.zeros((cch, n), F32)
        for j in range(k):
            shifted = pltpu.roll(y, (pad - j) % n, axis=1) * dwv_bcast[j]
            acc = acc + dwi[:, j:j + 1] * shifted
        z = jnp.dot(sq[i], acc, preferred_element_type=F32) + col(2 * n_conv + i)
        out = jnp.maximum(z, 0.0) + res

    # self-attention sub-block (per-head 2D dots, heads static & small)
    res = out
    y = _ln(out, col(3 * n_conv), col(3 * n_conv + 1))
    scale = d ** (-0.5)
    q = jnp.dot(sq[n_conv + 2], y, preferred_element_type=F32) * scale
    kk = jnp.dot(sq[n_conv], y, preferred_element_type=F32)
    vv = jnp.dot(sq[n_conv + 1], y, preferred_element_type=F32)
    heads_out = []
    for h in range(heads):
        qh = q[h * d:(h + 1) * d, :]
        kh = kk[h * d:(h + 1) * d, :]
        vh = vv[h * d:(h + 1) * d, :]
        logits = jax.lax.dot_general(qh, kh, _DN0, preferred_element_type=F32)
        w = _softmax_lane(logits + attbias)
        heads_out.append(
            jax.lax.dot_general(vh, w, _DN1, preferred_element_type=F32))
    out = jnp.concatenate(heads_out, axis=0) + res

    # FFN sub-block
    res = out
    y = _ln(out, col(3 * n_conv + 2), col(3 * n_conv + 3))
    h1 = jnp.maximum(
        jnp.dot(sq[n_conv + 3], y, preferred_element_type=F32)
        + col(3 * n_conv + 4), 0.0)
    z = jnp.dot(sq[n_conv + 4], h1, preferred_element_type=F32) + col(3 * n_conv + 5)
    return z + res


# ----------------------------------------------------------------------------
# Kernel 1: highway x2 + projection + embedding-encoder block, grid=(2 streams)
# ----------------------------------------------------------------------------
def _embed_enc_kernel(emb_ref, pos_ref, segc_ref, segr_ref, kv_ref, dwv_ref,
                      gw_ref, gb_ref, lw_ref, lb_ref, pw_ref, pb_ref,
                      sq_ref, dw_ref, vec_ref, o_ref,
                      *, n_hw, n_conv, heads, k):
    x = emb_ref[0]                                             # (D, N)
    for i in range(n_hw):
        g = jax.nn.sigmoid(
            jnp.dot(gw_ref[i], x, preferred_element_type=F32) + gb_ref[i])
        nl = jnp.dot(lw_ref[i], x, preferred_element_type=F32) + lb_ref[i]
        x = g * nl + (1.0 - g) * x
    x = jnp.maximum(
        jnp.dot(pw_ref[...], x, preferred_element_type=F32) + pb_ref[...], 0.0)

    cch, n = x.shape
    attbias = _att_bias(segc_ref[0], segr_ref[0], kv_ref[0])
    dwv = dwv_ref[0]
    dwv_b = [jnp.broadcast_to(dwv[j:j + 1, :], (cch, n)) for j in range(k)]
    o_ref[0] = _enc_block(x, pos_ref[0], attbias, dwv_b,
                          sq_ref[...], dw_ref[...], vec_ref[...],
                          n_conv=n_conv, heads=heads, k=k)


def embed_encoder_call(emb2, kv2, st, wp):
    n_streams, D, N = emb2.shape
    encf = wp['proj_w'].shape[0]
    n_hw = wp['hw_gw'].shape[0]
    n_conv = wp['emb_sq'].shape[0] - 5
    k = KSIZE

    def cmap(shape):
        return pl.BlockSpec(shape, lambda s, n=len(shape): (0,) * n)

    kernel = functools.partial(_embed_enc_kernel, n_hw=n_hw, n_conv=n_conv,
                               heads=HEADS, k=k)
    return pl.pallas_call(
        kernel,
        out_shape=jax.ShapeDtypeStruct((n_streams, encf, N), F32),
        grid=(n_streams,),
        in_specs=[
            pl.BlockSpec((1, D, N), lambda s: (s, 0, 0)),       # raw embedding
            pl.BlockSpec((1, encf, N), lambda s: (s, 0, 0)),    # pos signal
            pl.BlockSpec((1, N, 1), lambda s: (s, 0, 0)),       # seg ids (col)
            pl.BlockSpec((1, 1, N), lambda s: (s, 0, 0)),       # seg ids (row)
            pl.BlockSpec((1, 1, N), lambda s: (s, 0, 0)),       # key valid
            pl.BlockSpec((1, k, N), lambda s: (s, 0, 0)),       # dw validity
            cmap(wp['hw_gw'].shape), cmap(wp['hw_gb'].shape),
            cmap(wp['hw_lw'].shape), cmap(wp['hw_lb'].shape),
            cmap(wp['proj_w'].shape), cmap(wp['proj_b'].shape),
            cmap(wp['emb_sq'].shape), cmap(wp['emb_dw'].shape),
            cmap(wp['emb_vec'].shape),
        ],
        out_specs=pl.BlockSpec((1, encf, N), lambda s: (s, 0, 0)),
        compiler_params=pltpu.CompilerParams(
            dimension_semantics=("parallel",)),
    )(emb2, st['pos2'], st['segc2'], st['segr2'], kv2, st['dwv2'],
      wp['hw_gw'], wp['hw_gb'], wp['hw_lw'], wp['hw_lb'],
      wp['proj_w'], wp['proj_b'],
      wp['emb_sq'], wp['emb_dw'], wp['emb_vec'])


# ----------------------------------------------------------------------------
# Kernel 2: CQ attention (block-diagonal over batch) fused with cq_resizer
# ----------------------------------------------------------------------------
def _cq_kernel(x_ref, w4c_ref, w4q_ref, w4m_ref, cqb_ref,
               bc_ref, bq_ref, mc_ref, mq_ref, rw_ref, o_ref):
    Ca = x_ref[0]                                              # (ENC, N)
    Qa = x_ref[1]                                              # (ENC, N)
    s0 = jax.lax.dot_general(Ca, w4c_ref[...], _DN0,
                             preferred_element_type=F32)       # (N, 1)
    s1 = jnp.sum(Qa * w4q_ref[...], axis=0, keepdims=True)     # (1, N)  VPU
    s2 = jax.lax.dot_general(Ca * w4m_ref[...], Qa, _DN0,
                             preferred_element_type=F32)       # (N, N)
    S = s0 + s1 + s2 + cqb_ref[...]

    same = bc_ref[...] == bq_ref[...]                          # (N, N)
    qbias = jnp.where(jnp.logical_and(same, mq_ref[...] > 0.5), 0.0, NEG)
    cbias = jnp.where(jnp.logical_and(same, mc_ref[...] > 0.5), 0.0, NEG)
    S1 = _softmax_lane(S + qbias)
    S2 = _softmax_sublane(S + cbias)

    A = jax.lax.dot_general(Qa, S1, _DN1, preferred_element_type=F32)   # (ENC,N)
    T = jax.lax.dot_general(S1, S2, _DN1, preferred_element_type=F32)   # (N,N)
    Bm = jax.lax.dot_general(Ca, T, _DN1, preferred_element_type=F32)   # (ENC,N)

    rw = rw_ref[...]                                           # (4, ENC, ENC)
    o_ref[...] = (jnp.dot(rw[0], Ca, preferred_element_type=F32)
                  + jnp.dot(rw[1], A, preferred_element_type=F32)
                  + jnp.dot(rw[2], Ca * A, preferred_element_type=F32)
                  + jnp.dot(rw[3], Ca * Bm, preferred_element_type=F32))


def cq_resize_call(enc2, mc_col, mq_row, st, wp):
    encf, N = enc2.shape[1], enc2.shape[2]
    return pl.pallas_call(
        _cq_kernel,
        out_shape=jax.ShapeDtypeStruct((encf, N), F32),
    )(enc2, wp['w4c'], wp['w4q'], wp['w4m'], wp['cq_bias'],
      st['bc_col'], st['bq_row'], mc_col, mq_row, wp['rw4'])


# ----------------------------------------------------------------------------
# Kernel 3: model-encoder stack (3 passes x 7 blocks) + attention-pool head.
# Activation carried across grid steps in VMEM scratch; per-pass pooled
# features accumulated in scratch; the final linear runs in the last grid step.
# ----------------------------------------------------------------------------
def _model_head_kernel(x_ref, pos_ref, segc_ref, segr_ref, kv_ref, dwv_ref,
                       padseg_ref, sq_ref, dw_ref, vec_ref, zw_ref, ow_ref,
                       ob_ref, z_ref, state_ref, feat_ref, bias_ref,
                       *, n_conv, heads, k, n_passes):
    p = pl.program_id(0)
    b = pl.program_id(1)
    nb = pl.num_programs(1)
    cch, n = state_ref.shape

    @pl.when(jnp.logical_and(p == 0, b == 0))
    def _():
        state_ref[...] = x_ref[...]
        bias_ref[...] = _att_bias(segc_ref[...], segr_ref[...], kv_ref[...])
        z_ref[...] = jnp.zeros_like(z_ref)

    dwv = dwv_ref[...]
    dwv_b = [jnp.broadcast_to(dwv[j:j + 1, :], (cch, n)) for j in range(k)]

    out = _enc_block(state_ref[...], pos_ref[...], bias_ref[...], dwv_b,
                     sq_ref[0], dw_ref[0], vec_ref[0],
                     n_conv=n_conv, heads=heads, k=k)
    state_ref[...] = out

    # end of a pass: masked attention pooling of M_p with this pass's z weight
    @pl.when(b == nb - 1)
    def _():
        logits = jnp.sum(zw_ref[0] * out, axis=0, keepdims=True)   # (1, N)
        pr = _softmax_lane(logits + padseg_ref[...])               # (B, N)
        pooled = jax.lax.dot_general(out, pr, _DN1,
                                     preferred_element_type=F32)   # (ENC, B)
        feat_ref[p] = pooled

        @pl.when(p == n_passes - 1)
        def _():
            acc = jnp.zeros(z_ref.shape, F32) + ob_ref[...]
            feats = [feat_ref[i] for i in range(n_passes - 1)] + [pooled]
            for i in range(n_passes):
                fi = jnp.maximum(feats[i], 0.0)                    # relu
                acc = acc + jnp.sum(ow_ref[i] * fi, axis=0, keepdims=True)
            z_ref[...] = acc


def model_head_call(M0, kv_c, padseg, st, wp):
    encf, N = M0.shape
    nb, n_sq = wp['mdl_sq'].shape[0], wp['mdl_sq'].shape[1]
    n_conv = n_sq - 5
    n_vec = wp['mdl_vec'].shape[2]
    n_passes = wp['zw'].shape[0]
    B = padseg.shape[0]
    k = KSIZE

    def c2(shape):
        return pl.BlockSpec(shape, lambda p, b, n=len(shape): (0,) * n)

    kernel = functools.partial(_model_head_kernel, n_conv=n_conv, heads=HEADS,
                               k=k, n_passes=n_passes)
    return pl.pallas_call(
        kernel,
        out_shape=jax.ShapeDtypeStruct((1, B), F32),
        grid=(n_passes, nb),
        in_specs=[
            c2((encf, N)),                                        # M0
            c2((encf, N)),                                        # pos signal
            c2((N, 1)),                                           # seg ids col
            c2((1, N)),                                           # seg ids row
            c2((1, N)),                                           # key valid
            c2((k, N)),                                           # dw validity
            c2((B, N)),                                           # pool bias
            pl.BlockSpec((1, n_sq, encf, encf), lambda p, b: (b, 0, 0, 0)),
            pl.BlockSpec((1, n_conv, encf, k), lambda p, b: (b, 0, 0, 0)),
            pl.BlockSpec((1, encf, n_vec), lambda p, b: (b, 0, 0)),
            pl.BlockSpec((1, encf, 1), lambda p, b: (p, 0, 0)),   # z_w per pass
            c2((n_passes, encf, 1)),                              # out_z slabs
            c2((1, 1)),                                           # out_z bias
        ],
        out_specs=pl.BlockSpec((1, B), lambda p, b: (0, 0)),
        scratch_shapes=[pltpu.VMEM((encf, N), F32),
                        pltpu.VMEM((n_passes, encf, B), F32),
                        pltpu.VMEM((N, N), F32)],
        compiler_params=pltpu.CompilerParams(
            dimension_semantics=("arbitrary", "arbitrary")),
    )(M0, st['pos_c'], st['segc_c'], st['segr_c'], kv_c, st['dwv_c'],
      padseg, wp['mdl_sq'], wp['mdl_dw'], wp['mdl_vec'],
      wp['zw'], wp['ow'], wp['ob'])


# ----------------------------------------------------------------------------
# Host-side precompute (weights packing + shape-only statics, hoisted from jit)
# ----------------------------------------------------------------------------
def _timing_signal(length, channels):
    pos = np.arange(length, dtype=np.float32)
    n_ts = channels // 2
    log_inc = math.log(10000.0) / (n_ts - 1)
    inv = np.exp(np.arange(n_ts, dtype=np.float32) * (-log_inc))
    scaled = pos[:, None] * inv[None, :]
    sig = np.concatenate([np.sin(scaled), np.cos(scaled)], axis=1)
    return sig.T.astype(np.float32)                            # (C, L)


def _pack_block(blk):
    cch = blk['att']['q_w'].shape[0]
    n_conv = len(blk['convs'])
    mem_w = blk['att']['mem_w']
    sq = jnp.stack([blk['convs'][i]['pw_w'] for i in range(n_conv)]
                   + [mem_w[:cch], mem_w[cch:], blk['att']['q_w'],
                      blk['ffn']['w1'], blk['ffn']['w2']])
    dw = jnp.stack([blk['convs'][i]['dw_w'] for i in range(n_conv)])
    vec = jnp.concatenate(
        [blk['convs'][i]['ln_g'] for i in range(n_conv)]
        + [blk['convs'][i]['ln_b'] for i in range(n_conv)]
        + [blk['convs'][i]['pw_b'] for i in range(n_conv)]
        + [blk['att']['ln_g'], blk['att']['ln_b'],
           blk['ffn']['ln_g'], blk['ffn']['ln_b'],
           blk['ffn']['b1'], blk['ffn']['b2']], axis=1)
    return sq, dw, vec


def prepare(params, B, Lc, Lq, ENC, k=KSIZE):
    N = max(LANE, _round_up(max(B * Lc, B * Lq), LANE))

    hw = params['emb']['hw']
    wp = dict(
        hw_gw=jnp.stack([h['gw'] for h in hw]),
        hw_gb=jnp.stack([h['gb'] for h in hw]),
        hw_lw=jnp.stack([h['lw'] for h in hw]),
        hw_lb=jnp.stack([h['lb'] for h in hw]),
        proj_w=params['emb']['proj_w'], proj_b=params['emb']['proj_b'],
    )
    sq, dw, vec = _pack_block(params['emb_enc'])
    wp['emb_sq'], wp['emb_dw'], wp['emb_vec'] = sq, dw, vec
    packed = [_pack_block(b) for b in params['model_blks']]
    wp['mdl_sq'] = jnp.stack([p[0] for p in packed])
    wp['mdl_dw'] = jnp.stack([p[1] for p in packed])
    wp['mdl_vec'] = jnp.stack([p[2] for p in packed])
    wp['w4c'], wp['w4q'] = params['cq']['w4c'], params['cq']['w4q']
    wp['w4m'], wp['cq_bias'] = params['cq']['w4m'], params['cq']['bias']
    wp['rw4'] = params['cq_resizer_w']                         # (4, ENC, ENC)
    wp['zw'] = jnp.stack([params['z_w1'], params['z_w2'], params['z_w3']])
    wp['ow'] = params['out_z_w']                               # (3, ENC, 1)
    wp['ob'] = params['out_z_b']                               # (1, 1)

    def seg_ids(n_seq, L):
        ids = np.full((N,), -1.0, np.float32)
        ids[:n_seq * L] = np.repeat(np.arange(n_seq), L)
        return ids

    def dw_valid(n_seq, L):
        pos = np.tile(np.arange(L), n_seq)
        offs = np.arange(k) - k // 2
        tgt = pos[None, :] + offs[:, None]
        m = ((tgt >= 0) & (tgt < L)).astype(np.float32)
        out = np.zeros((k, N), np.float32)
        out[:, :n_seq * L] = m
        return out

    def pos_signal(L, n_seq):
        sig = _timing_signal(L, ENC)
        out = np.zeros((ENC, N), np.float32)
        out[:, :n_seq * L] = np.tile(sig, (1, n_seq))
        return out

    segC, segQ = seg_ids(B, Lc), seg_ids(B, Lq)
    st = dict(
        pos2=jnp.asarray(np.stack([pos_signal(Lc, B), pos_signal(Lq, B)])),
        segr2=jnp.asarray(np.stack([segC.reshape(1, N), segQ.reshape(1, N)])),
        segc2=jnp.asarray(np.stack([segC.reshape(N, 1), segQ.reshape(N, 1)])),
        dwv2=jnp.asarray(np.stack([dw_valid(B, Lc), dw_valid(B, Lq)])),
        pos_c=jnp.asarray(pos_signal(Lc, B)),
        segr_c=jnp.asarray(segC.reshape(1, N)),
        segc_c=jnp.asarray(segC.reshape(N, 1)),
        dwv_c=jnp.asarray(dw_valid(B, Lc)),
        bc_col=jnp.asarray(segC.reshape(N, 1)),
        bq_row=jnp.asarray(segQ.reshape(1, N)),
    )
    return dict(w=wp, s=st,
                word_mat=params['word_mat'], char_mat=params['char_mat'])


# ----------------------------------------------------------------------------
# Forward (jitted): gathers + layout + 3 pallas_calls
# ----------------------------------------------------------------------------
def qanet_v3_forward(prep, Cwid, Ccid, Qwid, Qcid):
    wp, st = prep['w'], prep['s']
    B, Lc = Cwid.shape
    Lq = Qwid.shape[1]
    N = st['pos_c'].shape[-1]

    maskC = (Cwid != 0).astype(F32)
    maskQ = (Qwid != 0).astype(F32)

    def raw_emb(cids, wids):
        ce = jnp.max(prep['char_mat'][cids], axis=2)           # char max-pool
        return jnp.concatenate([ce, prep['word_mat'][wids]], axis=-1)

    def to_cm_pad(x):                                          # (B,L,D)->(D,N)
        b, l, d = x.shape
        cm = jnp.transpose(x, (2, 0, 1)).reshape(d, b * l)
        return jnp.pad(cm, ((0, 0), (0, N - b * l)))

    emb2 = jnp.stack([to_cm_pad(raw_emb(Ccid, Cwid)),
                      to_cm_pad(raw_emb(Qcid, Qwid))])         # (2, D, N)

    def pad_row(m):
        flat = m.reshape(1, -1)
        return jnp.pad(flat, ((0, 0), (0, N - flat.shape[1])))

    kvC, kvQ = pad_row(maskC), pad_row(maskQ)
    kv2 = jnp.stack([kvC, kvQ])                                # (2, 1, N)

    # 1) highway + projection + embedding-encoder block (per-stream grid)
    enc2 = embed_encoder_call(emb2, kv2, st, wp)               # (2, ENC, N)

    # 2) CQ attention + cq_resizer (masks generated in-kernel)
    M0 = cq_resize_call(enc2, kvC.reshape(N, 1), kvQ, st, wp)  # (ENC, N)

    # 3) model-encoder stack (3x7) + attention-pool head + final linear
    bidx = jnp.arange(B, dtype=F32).reshape(B, 1)
    seg1h = jnp.logical_and(st['segr_c'] == bidx, kvC > 0.5)   # (B, N)
    padseg = jnp.where(seg1h, 0.0, NEG)
    z = model_head_call(M0, kvC, padseg, st, wp)[0]            # (B,)

    # NOTE: the base-QANet Pointer head is dead code in QANetV3.forward
    # (its outputs are overwritten), so it is omitted here.
    return jnp.zeros_like(z), jnp.zeros_like(z), z


# ----------------------------------------------------------------------------
# Deterministic parameter initialization
# ----------------------------------------------------------------------------
class ParamGen:
    def __init__(self, key):
        self.key = key

    def _next(self):
        self.key, k = jax.random.split(self.key)
        return k

    def normal(self, shape, scale=0.1):
        return scale * jax.random.normal(self._next(), shape, F32)


def init_enc_block(gen, C, conv_num, k=KSIZE):
    convs = [dict(ln_g=jnp.ones((C, 1), F32), ln_b=jnp.zeros((C, 1), F32),
                  dw_w=gen.normal((C, k), 0.3),
                  pw_w=gen.normal((C, C), 0.2), pw_b=gen.normal((C, 1), 0.05))
             for _ in range(conv_num)]
    att = dict(ln_g=jnp.ones((C, 1), F32), ln_b=jnp.zeros((C, 1), F32),
               mem_w=gen.normal((2 * C, C), 0.2), q_w=gen.normal((C, C), 0.2))
    ffn = dict(ln_g=jnp.ones((C, 1), F32), ln_b=jnp.zeros((C, 1), F32),
               w1=gen.normal((C, C), 0.2), b1=gen.normal((C, 1), 0.05),
               w2=gen.normal((C, C), 0.2), b2=gen.normal((C, 1), 0.05))
    return dict(convs=convs, att=att, ffn=ffn)


def init_embedding(gen, D, enc):
    hw = [dict(gw=gen.normal((D, D), 0.2), gb=gen.normal((D, 1), 0.05),
               lw=gen.normal((D, D), 0.2), lb=gen.normal((D, 1), 0.05))
          for _ in range(2)]
    return dict(hw=hw, proj_w=gen.normal((enc, D), 0.2),
                proj_b=gen.normal((enc, 1), 0.05))


# ----------------------------------------------------------------------------
# Main
# ----------------------------------------------------------------------------
if __name__ == "__main__":
    # small config: para_limit=16, ques_limit=8, char_limit=4,
    # word_emb_dim=16, char_emb_dim=8, enc_filters=16, attention_heads=2
    B, Lc, Lq, CL = 2, 16, 8, 4
    WD, CD, ENC = 16, 8, 16
    VOCAB_W, VOCAB_C = 50, 30

    master = jax.random.PRNGKey(0)
    k_params, k_in = jax.random.split(master)
    gen = ParamGen(k_params)

    word_mat = gen.normal((VOCAB_W, WD), 0.5).at[0].set(0.0)
    char_mat = gen.normal((VOCAB_C, CD), 0.5).at[0].set(0.0)

    params = dict(
        word_mat=word_mat, char_mat=char_mat,
        emb=init_embedding(gen, WD + CD, ENC),
        emb_enc=init_enc_block(gen, ENC, 4),
        cq=dict(w4c=gen.normal((ENC, 1), 0.2), w4q=gen.normal((ENC, 1), 0.2),
                w4m=gen.normal((ENC, 1), 0.2), bias=jnp.zeros((1, 1), F32)),
        cq_resizer_w=gen.normal((4, ENC, ENC), 0.1),
        model_blks=[init_enc_block(gen, ENC, 2) for _ in range(7)],
        z_w1=gen.normal((ENC, 1), 0.2), z_w2=gen.normal((ENC, 1), 0.2),
        z_w3=gen.normal((ENC, 1), 0.2),
        out_z_w=gen.normal((3, ENC, 1), 0.2),
        out_z_b=jnp.zeros((1, 1), F32),
    )

    prep = prepare(params, B, Lc, Lq, ENC)

    k1, k2, k3, k4 = jax.random.split(k_in, 4)
    Cwid = jax.random.randint(k1, (B, Lc), 1, VOCAB_W).at[:, -3:].set(0)
    Qwid = jax.random.randint(k2, (B, Lq), 1, VOCAB_W).at[:, -2:].set(0)
    Ccid = jax.random.randint(k3, (B, Lc, CL), 0, VOCAB_C)
    Qcid = jax.random.randint(k4, (B, Lq, CL), 0, VOCAB_C)

    fwd = jax.jit(qanet_v3_forward)
    p1, p2, z = fwd(prep, Cwid, Ccid, Qwid, Qcid)
    jax.block_until_ready((p1, p2, z))
    assert z.shape == (B,) and p1.shape == (B,) and p2.shape == (B,)
    assert bool(jnp.all(jnp.isfinite(z)))
    print("KERNEL_OK")
</pallas_src>

<mosaic_0001>
module attributes {stable_mosaic.version = 11 : i64} {
  func.func @_cq_kernel(%arg0: memref<2x16x128xf32, #tpu.memory_space<vmem>>, %arg1: memref<16x1xf32, #tpu.memory_space<vmem>>, %arg2: memref<16x1xf32, #tpu.memory_space<vmem>>, %arg3: memref<16x1xf32, #tpu.memory_space<vmem>>, %arg4: memref<1x1xf32, #tpu.memory_space<vmem>>, %arg5: memref<128x1xf32, #tpu.memory_space<vmem>>, %arg6: memref<1x128xf32, #tpu.memory_space<vmem>>, %arg7: memref<128x1xf32, #tpu.memory_space<vmem>>, %arg8: memref<1x128xf32, #tpu.memory_space<vmem>>, %arg9: memref<4x16x16xf32, #tpu.memory_space<vmem>>, %arg10: memref<16x128xf32, #tpu.memory_space<vmem>>) attributes {dimension_semantics = [], scalar_prefetch = 0 : i64, scratch_operands = 0 : i64, tpu.core_type = #tpu.core_type<tc>} {
    %c0 = arith.constant 0 : index
    %c0_0 = arith.constant 0 : index
    %c0_1 = arith.constant 0 : index
    %0 = vector.load %arg0[%c0, %c0_0, %c0_1] : memref<2x16x128xf32, #tpu.memory_space<vmem>>, vector<1x16x128xf32>
    %1 = vector.shape_cast %0 : vector<1x16x128xf32> to vector<16x128xf32>
    %c1 = arith.constant 1 : index
    %c0_2 = arith.constant 0 : index
    %c0_3 = arith.constant 0 : index
    %2 = vector.load %arg0[%c1, %c0_2, %c0_3] : memref<2x16x128xf32, #tpu.memory_space<vmem>>, vector<1x16x128xf32>
    %3 = vector.shape_cast %2 : vector<1x16x128xf32> to vector<16x128xf32>
    %c0_4 = arith.constant 0 : index
    %c0_5 = arith.constant 0 : index
    %4 = vector.load %arg1[%c0_4, %c0_5] : memref<16x1xf32, #tpu.memory_space<vmem>>, vector<16x1xf32>
    %cst = arith.constant dense<0.000000e+00> : vector<128x1xf32>
    %5 = tpu.matmul %1, %4, %cst {dimension_numbers = #tpu.dot_dimension_numbers<[0], [0], [1], [1], [0, 1, 1, 1], [], []>} : vector<16x128xf32>, vector<16x1xf32>, vector<128x1xf32> -> vector<128x1xf32>
    %c0_6 = arith.constant 0 : index
    %c0_7 = arith.constant 0 : index
    %6 = vector.load %arg2[%c0_6, %c0_7] : memref<16x1xf32, #tpu.memory_space<vmem>>, vector<16x1xf32>
    %7 = vector.broadcast %6 : vector<16x1xf32> to vector<16x128xf32>
    %8 = arith.mulf %3, %7 : vector<16x128xf32>
    %cst_8 = arith.constant dense<0.000000e+00> : vector<128xf32>
    %9 = vector.multi_reduction <add>, %8, %cst_8 [0] : vector<16x128xf32> to vector<128xf32>
    %10 = vector.shape_cast %9 : vector<128xf32> to vector<1x128xf32>
    %c0_9 = arith.constant 0 : index
    %c0_10 = arith.constant 0 : index
    %11 = vector.load %arg3[%c0_9, %c0_10] : memref<16x1xf32, #tpu.memory_space<vmem>>, vector<16x1xf32>
    %12 = vector.broadcast %11 : vector<16x1xf32> to vector<16x128xf32>
    %13 = arith.mulf %1, %12 : vector<16x128xf32>
    %cst_11 = arith.constant dense<0.000000e+00> : vector<128x128xf32>
    %14 = tpu.matmul %13, %3, %cst_11 {dimension_numbers = #tpu.dot_dimension_numbers<[0], [0], [1], [1], [0, 1, 1, 1], [], []>} : vector<16x128xf32>, vector<16x128xf32>, vector<128x128xf32> -> vector<128x128xf32>
    %15 = vector.broadcast %5 : vector<128x1xf32> to vector<128x128xf32>
    %16 = vector.broadcast %10 : vector<1x128xf32> to vector<128x128xf32>
    %17 = arith.addf %15, %16 : vector<128x128xf32>
    %18 = arith.addf %17, %14 : vector<128x128xf32>
    %c0_12 = arith.constant 0 : index
    %c0_13 = arith.constant 0 : index
    %19 = vector.load %arg4[%c0_12, %c0_13] : memref<1x1xf32, #tpu.memory_space<vmem>>, vector<1x1xf32>
    %20 = vector.broadcast %19 : vector<1x1xf32> to vector<128x128xf32>
    %21 = arith.addf %18, %20 : vector<128x128xf32>
    %c0_14 = arith.constant 0 : index
    %c0_15 = arith.constant 0 : index
    %22 = vector.load %arg5[%c0_14, %c0_15] : memref<128x1xf32, #tpu.memory_space<vmem>>, vector<128x1xf32>
    %c0_16 = arith.constant 0 : index
    %c0_17 = arith.constant 0 : index
    %23 = vector.load %arg6[%c0_16, %c0_17] : memref<1x128xf32, #tpu.memory_space<vmem>>, vector<1x128xf32>
    %24 = vector.broadcast %22 : vector<128x1xf32> to vector<128x128xf32>
    %25 = vector.broadcast %23 : vector<1x128xf32> to vector<128x128xf32>
    %26 = arith.cmpf oeq, %24, %25 : vector<128x128xf32>
    %c0_18 = arith.constant 0 : index
    %c0_19 = arith.constant 0 : index
    %27 = vector.load %arg8[%c0_18, %c0_19] : memref<1x128xf32, #tpu.memory_space<vmem>>, vector<1x128xf32>
    %cst_20 = arith.constant 5.000000e-01 : f32
    %28 = vector.broadcast %cst_20 : f32 to vector<1x128xf32>
    %29 = arith.cmpf ogt, %27, %28 : vector<1x128xf32>
    %30 = vector.broadcast %29 : vector<1x128xi1> to vector<128x128xi1>
    %31 = arith.andi %26, %30 : vector<128x128xi1>
    %cst_21 = arith.constant 0.000000e+00 : f32
    %cst_22 = arith.constant -1.000000e+30 : f32
    %32 = vector.broadcast %cst_21 : f32 to vector<128x128xf32>
    %33 = vector.broadcast %cst_22 : f32 to vector<128x128xf32>
    %34 = arith.select %31, %32, %33 : vector<128x128xi1>, vector<128x128xf32>
    %c0_23 = arith.constant 0 : index
    %c0_24 = arith.constant 0 : index
    %35 = vector.load %arg7[%c0_23, %c0_24] : memref<128x1xf32, #tpu.memory_space<vmem>>, vector<128x1xf32>
    %cst_25 = arith.constant 5.000000e-01 : f32
    %36 = vector.broadcast %cst_25 : f32 to vector<128x1xf32>
    %37 = arith.cmpf ogt, %35, %36 : vector<128x1xf32>
    %38 = vector.broadcast %37 : vector<128x1xi1> to vector<128x128xi1>
    %39 = arith.andi %26, %38 : vector<128x128xi1>
    %cst_26 = arith.constant 0.000000e+00 : f32
    %cst_27 = arith.constant -1.000000e+30 : f32
    %40 = vector.broadcast %cst_26 : f32 to vector<128x128xf32>
    %41 = vector.broadcast %cst_27 : f32 to vector<128x128xf32>
    %42 = arith.select %39, %40, %41 : vector<128x128xi1>, vector<128x128xf32>
    %43 = arith.addf %21, %34 : vector<128x128xf32>
    %cst_28 = arith.constant dense<0xFF800000> : vector<128xf32>
    %44 = vector.multi_reduction <maximumf>, %43, %cst_28 [1] : vector<128x128xf32> to vector<128xf32>
    %45 = vector.shape_cast %44 : vector<128xf32> to vector<128x1xf32>
    %46 = vector.broadcast %45 : vector<128x1xf32> to vector<128x128xf32>
    %47 = arith.subf %43, %46 : vector<128x128xf32>
    %48 = math.exp %47 : vector<128x128xf32>
    %cst_29 = arith.constant dense<0.000000e+00> : vector<128xf32>
    %49 = vector.multi_reduction <add>, %48, %cst_29 [1] : vector<128x128xf32> to vector<128xf32>
    %50 = vector.shape_cast %49 : vector<128xf32> to vector<128x1xf32>
    %51 = tpu.reciprocal %50 {approx = true} : vector<128x1xf32> -> vector<128x1xf32>
    %52 = vector.broadcast %51 : vector<128x1xf32> to vector<128x128xf32>
    %53 = arith.mulf %48, %52 : vector<128x128xf32>
    %54 = arith.addf %21, %42 : vector<128x128xf32>
    %cst_30 = arith.constant dense<0xFF800000> : vector<128xf32>
    %55 = vector.multi_reduction <maximumf>, %54, %cst_30 [0] : vector<128x128xf32> to vector<128xf32>
    %56 = vector.shape_cast %55 : vector<128xf32> to vector<1x128xf32>
    %57 = vector.broadcast %56 : vector<1x128xf32> to vector<128x128xf32>
    %58 = arith.subf %54, %57 : vector<128x128xf32>
    %59 = math.exp %58 : vector<128x128xf32>
    %cst_31 = arith.constant dense<0.000000e+00> : vector<128xf32>
    %60 = vector.multi_reduction <add>, %59, %cst_31 [0] : vector<128x128xf32> to vector<128xf32>
    %61 = vector.shape_cast %60 : vector<128xf32> to vector<1x128xf32>
    %62 = tpu.reciprocal %61 {approx = true} : vector<1x128xf32> -> vector<1x128xf32>
    %63 = vector.broadcast %62 : vector<1x128xf32> to vector<128x128xf32>
    %64 = arith.mulf %59, %63 : vector<128x128xf32>
    %cst_32 = arith.constant dense<0.000000e+00> : vector<16x128xf32>
    %65 = tpu.matmul %3, %53, %cst_32 {dimension_numbers = #tpu.dot_dimension_numbers<[1], [1], [0], [0], [0, 0, 1, 0], [], []>} : vector<16x128xf32>, vector<128x128xf32>, vector<16x128xf32> -> vector<16x128xf32>
    %cst_33 = arith.constant dense<0.000000e+00> : vector<128x128xf32>
    %66 = tpu.matmul %53, %64, %cst_33 {dimension_numbers = #tpu.dot_dimension_numbers<[1], [1], [0], [0], [0, 0, 1, 0], [], []>} : vector<128x128xf32>, vector<128x128xf32>, vector<128x128xf32> -> vector<128x128xf32>
    %cst_34 = arith.constant dense<0.000000e+00> : vector<16x128xf32>
    %67 = tpu.matmul %1, %66, %cst_34 {dimension_numbers = #tpu.dot_dimension_numbers<[1], [1], [0], [0], [0, 0, 1, 0], [], []>} : vector<16x128xf32>, vector<128x128xf32>, vector<16x128xf32> -> vector<16x128xf32>
    %c0_35 = arith.constant 0 : index
    %c0_36 = arith.constant 0 : index
    %c0_37 = arith.constant 0 : index
    %68 = vector.load %arg9[%c0_35, %c0_36, %c0_37] : memref<4x16x16xf32, #tpu.memory_space<vmem>>, vector<4x16x16xf32>
    %69 = vector.extract_strided_slice %68 {offsets = [0, 0, 0], sizes = [1, 16, 16], strides = [1, 1, 1]} : vector<4x16x16xf32> to vector<1x16x16xf32>
    %70 = vector.shape_cast %69 : vector<1x16x16xf32> to vector<16x16xf32>
    %cst_38 = arith.constant dense<0.000000e+00> : vector<16x128xf32>
    %71 = tpu.matmul %70, %1, %cst_38 {dimension_numbers = #tpu.dot_dimension_numbers<[1], [0], [0], [1], [0, 0, 1, 1], [], []>} : vector<16x16xf32>, vector<16x128xf32>, vector<16x128xf32> -> vector<16x128xf32>
    %72 = vector.extract_strided_slice %68 {offsets = [1, 0, 0], sizes = [1, 16, 16], strides = [1, 1, 1]} : vector<4x16x16xf32> to vector<1x16x16xf32>
    %73 = vector.shape_cast %72 : vector<1x16x16xf32> to vector<16x16xf32>
    %cst_39 = arith.constant dense<0.000000e+00> : vector<16x128xf32>
    %74 = tpu.matmul %73, %65, %cst_39 {dimension_numbers = #tpu.dot_dimension_numbers<[1], [0], [0], [1], [0, 0, 1, 1], [], []>} : vector<16x16xf32>, vector<16x128xf32>, vector<16x128xf32> -> vector<16x128xf32>
    %75 = arith.addf %71, %74 : vector<16x128xf32>
    %76 = vector.extract_strided_slice %68 {offsets = [2, 0, 0], sizes = [1, 16, 16], strides = [1, 1, 1]} : vector<4x16x16xf32> to vector<1x16x16xf32>
    %77 = vector.shape_cast %76 : vector<1x16x16xf32> to vector<16x16xf32>
    %78 = arith.mulf %1, %65 : vector<16x128xf32>
    %cst_40 = arith.constant dense<0.000000e+00> : vector<16x128xf32>
    %79 = tpu.matmul %77, %78, %cst_40 {dimension_numbers = #tpu.dot_dimension_numbers<[1], [0], [0], [1], [0, 0, 1, 1], [], []>} : vector<16x16xf32>, vector<16x128xf32>, vector<16x128xf32> -> vector<16x128xf32>
    %80 = arith.addf %75, %79 : vector<16x128xf32>
    %81 = vector.extract_strided_slice %68 {offsets = [3, 0, 0], sizes = [1, 16, 16], strides = [1, 1, 1]} : vector<4x16x16xf32> to vector<1x16x16xf32>
    %82 = vector.shape_cast %81 : vector<1x16x16xf32> to vector<16x16xf32>
    %83 = arith.mulf %1, %67 : vector<16x128xf32>
    %cst_41 = arith.constant dense<0.000000e+00> : vector<16x128xf32>
    %84 = tpu.matmul %82, %83, %cst_41 {dimension_numbers = #tpu.dot_dimension_numbers<[1], [0], [0], [1], [0, 0, 1, 1], [], []>} : vector<16x16xf32>, vector<16x128xf32>, vector<16x128xf32> -> vector<16x128xf32>
    %85 = arith.addf %80, %84 : vector<16x128xf32>
    %c0_42 = arith.constant 0 : index
    %c0_43 = arith.constant 0 : index
    %86 = vector.load %arg10[%c0_42, %c0_43] : memref<16x128xf32, #tpu.memory_space<vmem>>, vector<16x128xf32>
    tpu.vector_store %arg10[%c0_42, %c0_43], %85 {strides = array<i32>} : memref<16x128xf32, #tpu.memory_space<vmem>>, vector<16x128xf32>,
    return
  }
}

module attributes {stable_mosaic.version = 11 : i64} {
  func.func @_embed_enc_kernel(%arg0: i32, %arg1: memref<1x24x128xf32, #tpu.memory_space<vmem>>, %arg2: memref<1x16x128xf32, #tpu.memory_space<vmem>>, %arg3: memref<1x128x1xf32, #tpu.memory_space<vmem>>, %arg4: memref<1x1x128xf32, #tpu.memory_space<vmem>>, %arg5: memref<1x1x128xf32, #tpu.memory_space<vmem>>, %arg6: memref<1x7x128xf32, #tpu.memory_space<vmem>>, %arg7: memref<2x24x24xf32, #tpu.memory_space<vmem>>, %arg8: memref<2x24x1xf32, #tpu.memory_space<vmem>>, %arg9: memref<2x24x24xf32, #tpu.memory_space<vmem>>, %arg10: memref<2x24x1xf32, #tpu.memory_space<vmem>>, %arg11: memref<16x24xf32, #tpu.memory_space<vmem>>, %arg12: memref<16x1xf32, #tpu.memory_space<vmem>>, %arg13: memref<9x16x16xf32, #tpu.memory_space<vmem>>, %arg14: memref<4x16x7xf32, #tpu.memory_space<vmem>>, %arg15: memref<16x18xf32, #tpu.memory_space<vmem>>, %arg16: memref<1x16x128xf32, #tpu.memory_space<vmem>>) attributes {dimension_semantics = [#tpu.dimension_semantics<parallel>], iteration_bounds = array<i64: 2>, scalar_prefetch = 0 : i64, scratch_operands = 0 : i64, tpu.core_type = #tpu.core_type<tc>, window_params = [{transform_indices = @transform_0, window_bounds = array<i64: 1, 24, 128>}, {transform_indices = @transform_1, window_bounds = array<i64: 1, 16, 128>}, {transform_indices = @transform_2, window_bounds = array<i64: 1, 128, 1>}, {transform_indices = @transform_3, window_bounds = array<i64: 1, 1, 128>}, {transform_indices = @transform_4, window_bounds = array<i64: 1, 1, 128>}, {transform_indices = @transform_5, window_bounds = array<i64: 1, 7, 128>}, {pipeline_mode = #tpu.pipeline_mode<synchronous>, transform_indices = @transform_6, window_bounds = array<i64: 2, 24, 24>}, {pipeline_mode = #tpu.pipeline_mode<synchronous>, transform_indices = @transform_7, window_bounds = array<i64: 2, 24, 1>}, {pipeline_mode = #tpu.pipeline_mode<synchronous>, transform_indices = @transform_8, window_bounds = array<i64: 2, 24, 24>}, {pipeline_mode = #tpu.pipeline_mode<synchronous>, transform_indices = @transform_9, window_bounds = array<i64: 2, 24, 1>}, {pipeline_mode = #tpu.pipeline_mode<synchronous>, transform_indices = @transform_10, window_bounds = array<i64: 16, 24>}, {pipeline_mode = #tpu.pipeline_mode<synchronous>, transform_indices = @transform_11, window_bounds = array<i64: 16, 1>}, {pipeline_mode = #tpu.pipeline_mode<synchronous>, transform_indices = @transform_12, window_bounds = array<i64: 9, 16, 16>}, {pipeline_mode = #tpu.pipeline_mode<synchronous>, transform_indices = @transform_13, window_bounds = array<i64: 4, 16, 7>}, {pipeline_mode = #tpu.pipeline_mode<synchronous>, transform_indices = @transform_14, window_bounds = array<i64: 16, 18>}, {transform_indices = @transform_15, window_bounds = array<i64: 1, 16, 128>}]} {
    %c0 = arith.constant 0 : index
    %c0_0 = arith.constant 0 : index
    %c0_1 = arith.constant 0 : index
    %0 = vector.load %arg1[%c0, %c0_0, %c0_1] : memref<1x24x128xf32, #tpu.memory_space<vmem>>, vector<1x24x128xf32>
    %1 = vector.shape_cast %0 : vector<1x24x128xf32> to vector<24x128xf32>
    %c0_2 = arith.constant 0 : index
    %c0_3 = arith.constant 0 : index
    %c0_4 = arith.constant 0 : index
    %2 = vector.load %arg7[%c0_2, %c0_3, %c0_4] : memref<2x24x24xf32, #tpu.memory_space<vmem>>, vector<1x24x24xf32>
    %3 = vector.shape_cast %2 : vector<1x24x24xf32> to vector<24x24xf32>
    %cst = arith.constant dense<0.000000e+00> : vector<24x128xf32>
    %4 = tpu.matmul %3, %1, %cst {dimension_numbers = #tpu.dot_dimension_numbers<[1], [0], [0], [1], [0, 0, 1, 1], [], []>} : vector<24x24xf32>, vector<24x128xf32>, vector<24x128xf32> -> vector<24x128xf32>
    %c0_5 = arith.constant 0 : index
    %c0_6 = arith.constant 0 : index
    %c0_7 = arith.constant 0 : index
    %5 = vector.load %arg8[%c0_5, %c0_6, %c0_7] : memref<2x24x1xf32, #tpu.memory_space<vmem>>, vector<1x24x1xf32>
    %6 = vector.shape_cast %5 : vector<1x24x1xf32> to vector<24x1xf32>
    %7 = vector.broadcast %6 : vector<24x1xf32> to vector<24x128xf32>
    %8 = arith.addf %4, %7 : vector<24x128xf32>
    %9 = arith.negf %8 : vector<24x128xf32>
    %10 = math.exp %9 : vector<24x128xf32>
    %cst_8 = arith.constant 1.000000e+00 : f32
    %11 = vector.broadcast %cst_8 : f32 to vector<24x128xf32>
    %12 = arith.addf %11, %10 : vector<24x128xf32>
    %13 = arith.divf %11, %12 : vector<24x128xf32>
    %c0_9 = arith.constant 0 : index
    %c0_10 = arith.constant 0 : index
    %c0_11 = arith.constant 0 : index
    %14 = vector.load %arg9[%c0_9, %c0_10, %c0_11] : memref<2x24x24xf32, #tpu.memory_space<vmem>>, vector<1x24x24xf32>
    %15 = vector.shape_cast %14 : vector<1x24x24xf32> to vector<24x24xf32>
    %cst_12 = arith.constant dense<0.000000e+00> : vector<24x128xf32>
    %16 = tpu.matmul %15, %1, %cst_12 {dimension_numbers = #tpu.dot_dimension_numbers<[1], [0], [0], [1], [0, 0, 1, 1], [], []>} : vector<24x24xf32>, vector<24x128xf32>, vector<24x128xf32> -> vector<24x128xf32>
    %c0_13 = arith.constant 0 : index
    %c0_14 = arith.constant 0 : index
    %c0_15 = arith.constant 0 : index
    %17 = vector.load %arg10[%c0_13, %c0_14, %c0_15] : memref<2x24x1xf32, #tpu.memory_space<vmem>>, vector<1x24x1xf32>
    %18 = vector.shape_cast %17 : vector<1x24x1xf32> to vector<24x1xf32>
    %19 = vector.broadcast %18 : vector<24x1xf32> to vector<24x128xf32>
    %20 = arith.addf %16, %19 : vector<24x128xf32>
    %21 = arith.mulf %13, %20 : vector<24x128xf32>
    %cst_16 = arith.constant 1.000000e+00 : f32
    %22 = vector.broadcast %cst_16 : f32 to vector<24x128xf32>
    %23 = arith.subf %22, %13 : vector<24x128xf32>
    %24 = arith.mulf %23, %1 : vector<24x128xf32>
    %25 = arith.addf %21, %24 : vector<24x128xf32>
    %c1 = arith.constant 1 : index
    %c0_17 = arith.constant 0 : index
    %c0_18 = arith.constant 0 : index
    %26 = vector.load %arg7[%c1, %c0_17, %c0_18] : memref<2x24x24xf32, #tpu.memory_space<vmem>>, vector<1x24x24xf32>
    %27 = vector.shape_cast %26 : vector<1x24x24xf32> to vector<24x24xf32>
    %cst_19 = arith.constant dense<0.000000e+00> : vector<24x128xf32>
    %28 = tpu.matmul %27, %25, %cst_19 {dimension_numbers = #tpu.dot_dimension_numbers<[1], [0], [0], [1], [0, 0, 1, 1], [], []>} : vector<24x24xf32>, vector<24x128xf32>, vector<24x128xf32> -> vector<24x128xf32>
    %c1_20 = arith.constant 1 : index
    %c0_21 = arith.constant 0 : index
    %c0_22 = arith.constant 0 : index
    %29 = vector.load %arg8[%c1_20, %c0_21, %c0_22] : memref<2x24x1xf32, #tpu.memory_space<vmem>>, vector<1x24x1xf32>
    %30 = vector.shape_cast %29 : vector<1x24x1xf32> to vector<24x1xf32>
    %31 = vector.broadcast %30 : vector<24x1xf32> to vector<24x128xf32>
    %32 = arith.addf %28, %31 : vector<24x128xf32>
    %33 = arith.negf %32 : vector<24x128xf32>
    %34 = math.exp %33 : vector<24x128xf32>
    %cst_23 = arith.constant 1.000000e+00 : f32
    %35 = vector.broadcast %cst_23 : f32 to vector<24x128xf32>
    %36 = arith.addf %35, %34 : vector<24x128xf32>
    %37 = arith.divf %35, %36 : vector<24x128xf32>
    %c1_24 = arith.constant 1 : index
    %c0_25 = arith.constant 0 : index
    %c0_26 = arith.constant 0 : index
    %38 = vector.load %arg9[%c1_24, %c0_25, %c0_26] : memref<2x24x24xf32, #tpu.memory_space<vmem>>, vector<1x24x24xf32>
    %39 = vector.shape_cast %38 : vector<1x24x24xf32> to vector<24x24xf32>
    %cst_27 = arith.constant dense<0.000000e+00> : vector<24x128xf32>
    %40 = tpu.matmul %39, %25, %cst_27 {dimension_numbers = #tpu.dot_dimension_numbers<[1], [0], [0], [1], [0, 0, 1, 1], [], []>} : vector<24x24xf32>, vector<24x128xf32>, vector<24x128xf32> -> vector<24x128xf32>
    %c1_28 = arith.constant 1 : index
    %c0_29 = arith.constant 0 : index
    %c0_30 = arith.constant 0 : index
    %41 = vector.load %arg10[%c1_28, %c0_29, %c0_30] : memref<2x24x1xf32, #tpu.memory_space<vmem>>, vector<1x24x1xf32>
    %42 = vector.shape_cast %41 : vector<1x24x1xf32> to vector<24x1xf32>
    %43 = vector.broadcast %42 : vector<24x1xf32> to vector<24x128xf32>
    %44 = arith.addf %40, %43 : vector<24x128xf32>
    %45 = arith.mulf %37, %44 : vector<24x128xf32>
    %cst_31 = arith.constant 1.000000e+00 : f32
    %46 = vector.broadcast %cst_31 : f32 to vector<24x128xf32>
    %47 = arith.subf %46, %37 : vector<24x128xf32>
    %48 = arith.mulf %47, %25 : vector<24x128xf32>
    %49 = arith.addf %45, %48 : vector<24x128xf32>
    %c0_32 = arith.constant 0 : index
    %c0_33 = arith.constant 0 : index
    %50 = vector.load %arg11[%c0_32, %c0_33] : memref<16x24xf32, #tpu.memory_space<vmem>>, vector<16x24xf32>
    %cst_34 = arith.constant dense<0.000000e+00> : vector<16x128xf32>
    %51 = tpu.matmul %50, %49, %cst_34 {dimension_numbers = #tpu.dot_dimension_numbers<[1], [0], [0], [1], [0, 0, 1, 1], [], []>} : vector<16x24xf32>, vector<24x128xf32>, vector<16x128xf32> -> vector<16x128xf32>
    %c0_35 = arith.constant 0 : index
    %c0_36 = arith.constant 0 : index
    %52 = vector.load %arg12[%c0_35, %c0_36] : memref<16x1xf32, #tpu.memory_space<vmem>>, vector<16x1xf32>
    %53 = vector.broadcast %52 : vector<16x1xf32> to vector<16x128xf32>
    %54 = arith.addf %51, %53 : vector<16x128xf32>
    %cst_37 = arith.constant 0.000000e+00 : f32
    %55 = vector.broadcast %cst_37 : f32 to vector<16x128xf32>
    %56 = arith.maximumf %54, %55 : vector<16x128xf32>
    %c0_38 = arith.constant 0 : index
    %c0_39 = arith.constant 0 : index
    %c0_40 = arith.constant 0 : index
    %57 = vector.load %arg3[%c0_38, %c0_39, %c0_40] : memref<1x128x1xf32, #tpu.memory_space<vmem>>, vector<1x128x1xf32>
    %58 = vector.shape_cast %57 : vector<1x128x1xf32> to vector<128x1xf32>
    %c0_41 = arith.constant 0 : index
    %c0_42 = arith.constant 0 : index
    %c0_43 = arith.constant 0 : index
    %59 = vector.load %arg4[%c0_41, %c0_42, %c0_43] : memref<1x1x128xf32, #tpu.memory_space<vmem>>, vector<1x1x128xf32>
    %60 = vector.shape_cast %59 : vector<1x1x128xf32> to vector<1x128xf32>
    %c0_44 = arith.constant 0 : index
    %c0_45 = arith.constant 0 : index
    %c0_46 = arith.constant 0 : index
    %61 = vector.load %arg5[%c0_44, %c0_45, %c0_46] : memref<1x1x128xf32, #tpu.memory_space<vmem>>, vector<1x1x128xf32>
    %62 = vector.shape_cast %61 : vector<1x1x128xf32> to vector<1x128xf32>
    %63 = vector.broadcast %58 : vector<128x1xf32> to vector<128x128xf32>
    %64 = vector.broadcast %60 : vector<1x128xf32> to vector<128x128xf32>
    %65 = arith.cmpf oeq, %63, %64 : vector<128x128xf32>
    %cst_47 = arith.constant 5.000000e-01 : f32
    %66 = vector.broadcast %cst_47 : f32 to vector<1x128xf32>
    %67 = arith.cmpf ogt, %62, %66 : vector<1x128xf32>
    %68 = vector.broadcast %67 : vector<1x128xi1> to vector<128x128xi1>
    %69 = arith.andi %65, %68 : vector<128x128xi1>
    %cst_48 = arith.constant 0.000000e+00 : f32
    %cst_49 = arith.constant -1.000000e+30 : f32
    %70 = vector.broadcast %cst_48 : f32 to vector<128x128xf32>
    %71 = vector.broadcast %cst_49 : f32 to vector<128x128xf32>
    %72 = arith.select %69, %70, %71 : vector<128x128xi1>, vector<128x128xf32>
    %c0_50 = arith.constant 0 : index
    %c0_51 = arith.constant 0 : index
    %c0_52 = arith.constant 0 : index
    %73 = vector.load %arg6[%c0_50, %c0_51, %c0_52] : memref<1x7x128xf32, #tpu.memory_space<vmem>>, vector<1x7x128xf32>
    %74 = vector.shape_cast %73 : vector<1x7x128xf32> to vector<7x128xf32>
    %75 = vector.extract_strided_slice %74 {offsets = [0, 0], sizes = [1, 128], strides = [1, 1]} : vector<7x128xf32> to vector<1x128xf32>
    %76 = vector.shape_cast %75 : vector<1x128xf32> to vector<1x128xf32>
    %77 = vector.broadcast %76 : vector<1x128xf32> to vector<16x128xf32>
    %78 = vector.extract_strided_slice %74 {offsets = [1, 0], sizes = [1, 128], strides = [1, 1]} : vector<7x128xf32> to vector<1x128xf32>
    %79 = vector.shape_cast %78 : vector<1x128xf32> to vector<1x128xf32>
    %80 = vector.broadcast %79 : vector<1x128xf32> to vector<16x128xf32>
    %81 = vector.extract_strided_slice %74 {offsets = [2, 0], sizes = [1, 128], strides = [1, 1]} : vector<7x128xf32> to vector<1x128xf32>
    %82 = vector.shape_cast %81 : vector<1x128xf32> to vector<1x128xf32>
    %83 = vector.broadcast %82 : vector<1x128xf32> to vector<16x128xf32>
    %84 = vector.extract_strided_slice %74 {offsets = [3, 0], sizes = [1, 128], strides = [1, 1]} : vector<7x128xf32> to vector<1x128xf32>
    %85 = vector.shape_cast %84 : vector<1x128xf32> to vector<1x128xf32>
    %86 = vector.broadcast %85 : vector<1x128xf32> to vector<16x128xf32>
    %87 = vector.extract_strided_slice %74 {offsets = [4, 0], sizes = [1, 128], strides = [1, 1]} : vector<7x128xf32> to vector<1x128xf32>
    %88 = vector.shape_cast %87 : vector<1x128xf32> to vector<1x128xf32>
    %89 = vector.broadcast %88 : vector<1x128xf32> to vector<16x128xf32>
    %90 = vector.extract_strided_slice %74 {offsets = [5, 0], sizes = [1, 128], strides = [1, 1]} : vector<7x128xf32> to vector<1x128xf32>
    %91 = vector.shape_cast %90 : vector<1x128xf32> to vector<1x128xf32>
    %92 = vector.broadcast %91 : vector<1x128xf32> to vector<16x128xf32>
    %93 = vector.extract_strided_slice %74 {offsets = [6, 0], sizes = [1, 128], strides = [1, 1]} : vector<7x128xf32> to vector<1x128xf32>
    %94 = vector.shape_cast %93 : vector<1x128xf32> to vector<1x128xf32>
    %95 = vector.broadcast %94 : vector<1x128xf32> to vector<16x128xf32>
    %c0_53 = arith.constant 0 : index
    %c0_54 = arith.constant 0 : index
    %c0_55 = arith.constant 0 : index
    %96 = vector.load %arg2[%c0_53, %c0_54, %c0_55] : memref<1x16x128xf32, #tpu.memory_space<vmem>>, vector<1x16x128xf32>
    %97 = vector.shape_cast %96 : vector<1x16x128xf32> to vector<16x128xf32>
    %c0_56 = arith.constant 0 : index
    %c0_57 = arith.constant 0 : index
    %c0_58 = arith.constant 0 : index
    %98 = vector.load %arg13[%c0_56, %c0_57, %c0_58] : memref<9x16x16xf32, #tpu.memory_space<vmem>>, vector<9x16x16xf32>
    %c0_59 = arith.constant 0 : index
    %c0_60 = arith.constant 0 : index
    %c0_61 = arith.constant 0 : index
    %99 = vector.load %arg14[%c0_59, %c0_60, %c0_61] : memref<4x16x7xf32, #tpu.memory_space<vmem>>, vector<4x16x7xf32>
    %c0_62 = arith.constant 0 : index
    %c0_63 = arith.constant 0 : index
    %100 = vector.load %arg15[%c0_62, %c0_63] : memref<16x18xf32, #tpu.memory_space<vmem>>, vector<16x18xf32>
    %101 = arith.addf %56, %97 : vector<16x128xf32>
    %102 = vector.extract_strided_slice %100 {offsets = [0, 0], sizes = [16, 1], strides = [1, 1]} : vector<16x18xf32> to vector<16x1xf32>
    %103 = vector.extract_strided_slice %100 {offsets = [0, 4], sizes = [16, 1], strides = [1, 1]} : vector<16x18xf32> to vector<16x1xf32>
    %cst_64 = arith.constant dense<0.000000e+00> : vector<128xf32>
    %104 = vector.multi_reduction <add>, %101, %cst_64 [0] : vector<16x128xf32> to vector<128xf32>
    %105 = vector.shape_cast %104 : vector<128xf32> to vector<1x128xf32>
    %cst_65 = arith.constant 1.600000e+01 : f32
    %106 = vector.broadcast %cst_65 : f32 to vector<1x128xf32>
    %107 = arith.divf %105, %106 : vector<1x128xf32>
    %108 = vector.broadcast %107 : vector<1x128xf32> to vector<16x128xf32>
    %109 = arith.subf %101, %108 : vector<16x128xf32>
    %110 = arith.mulf %109, %109 : vector<16x128xf32>
    %cst_66 = arith.constant dense<0.000000e+00> : vector<128xf32>
    %111 = vector.multi_reduction <add>, %110, %cst_66 [0] : vector<16x128xf32> to vector<128xf32>
    %112 = vector.shape_cast %111 : vector<128xf32> to vector<1x128xf32>
    %cst_67 = arith.constant 1.600000e+01 : f32
    %113 = vector.broadcast %cst_67 : f32 to vector<1x128xf32>
    %114 = arith.divf %112, %113 : vector<1x128xf32>
    %115 = vector.broadcast %107 : vector<1x128xf32> to vector<16x128xf32>
    %116 = arith.subf %101, %115 : vector<16x128xf32>
    %cst_68 = arith.constant 9.99999974E-6 : f32
    %117 = vector.broadcast %cst_68 : f32 to vector<1x128xf32>
    %118 = arith.addf %114, %117 : vector<1x128xf32>
    %119 = math.rsqrt %118 : vector<1x128xf32>
    %120 = vector.broadcast %119 : vector<1x128xf32> to vector<16x128xf32>
    %121 = arith.mulf %116, %120 : vector<16x128xf32>
    %122 = vector.broadcast %102 : vector<16x1xf32> to vector<16x128xf32>
    %123 = arith.mulf %121, %122 : vector<16x128xf32>
    %124 = vector.broadcast %103 : vector<16x1xf32> to vector<16x128xf32>
    %125 = arith.addf %123, %124 : vector<16x128xf32>
    %126 = vector.extract_strided_slice %99 {offsets = [0, 0, 0], sizes = [1, 16, 7], strides = [1, 1, 1]} : vector<4x16x7xf32> to vector<1x16x7xf32>
    %127 = vector.shape_cast %126 : vector<1x16x7xf32> to vector<16x7xf32>
    %cst_69 = arith.constant 0.000000e+00 : f32
    %128 = vector.broadcast %cst_69 : f32 to vector<16x128xf32>
    %c3_i32 = arith.constant 3 : i32
    %129 = tpu.dynamic_rotate %125 by %c3_i32 dim 1 : vector<16x128xf32>, i32 -> vector<16x128xf32>
    %130 = arith.mulf %129, %77 : vector<16x128xf32>
    %131 = vector.extract_strided_slice %127 {offsets = [0, 0], sizes = [16, 1], strides = [1, 1]} : vector<16x7xf32> to vector<16x1xf32>
    %132 = vector.broadcast %131 : vector<16x1xf32> to vector<16x128xf32>
    %133 = arith.mulf %132, %130 : vector<16x128xf32>
    %134 = arith.addf %128, %133 : vector<16x128xf32>
    %c2_i32 = arith.constant 2 : i32
    %135 = tpu.dynamic_rotate %125 by %c2_i32 dim 1 : vector<16x128xf32>, i32 -> vector<16x128xf32>
    %136 = arith.mulf %135, %80 : vector<16x128xf32>
    %137 = vector.extract_strided_slice %127 {offsets = [0, 1], sizes = [16, 1], strides = [1, 1]} : vector<16x7xf32> to vector<16x1xf32>
    %138 = vector.broadcast %137 : vector<16x1xf32> to vector<16x128xf32>
    %139 = arith.mulf %138, %136 : vector<16x128xf32>
    %140 = arith.addf %134, %139 : vector<16x128xf32>
    %c1_i32 = arith.constant 1 : i32
    %141 = tpu.dynamic_rotate %125 by %c1_i32 dim 1 : vector<16x128xf32>, i32 -> vector<16x128xf32>
    %142 = arith.mulf %141, %83 : vector<16x128xf32>
    %143 = vector.extract_strided_slice %127 {offsets = [0, 2], sizes = [16, 1], strides = [1, 1]} : vector<16x7xf32> to vector<16x1xf32>
    %144 = vector.broadcast %143 : vector<16x1xf32> to vector<16x128xf32>
    %145 = arith.mulf %144, %142 : vector<16x128xf32>
    %146 = arith.addf %140, %145 : vector<16x128xf32>
    %c0_i32 = arith.constant 0 : i32
    %147 = tpu.dynamic_rotate %125 by %c0_i32 dim 1 : vector<16x128xf32>, i32 -> vector<16x128xf32>
    %148 = arith.mulf %147, %86 : vector<16x128xf32>
    %149 = vector.extract_strided_slice %127 {offsets = [0, 3], sizes = [16, 1], strides = [1, 1]} : vector<16x7xf32> to vector<16x1xf32>
    %150 = vector.broadcast %149 : vector<16x1xf32> to vector<16x128xf32>
    %151 = arith.mulf %150, %148 : vector<16x128xf32>
    %152 = arith.addf %146, %151 : vector<16x128xf32>
    %c127_i32 = arith.constant 127 : i32
    %153 = tpu.dynamic_rotate %125 by %c127_i32 dim 1 : vector<16x128xf32>, i32 -> vector<16x128xf32>
    %154 = arith.mulf %153, %89 : vector<16x128xf32>
    %155 = vector.extract_strided_slice %127 {offsets = [0, 4], sizes = [16, 1], strides = [1, 1]} : vector<16x7xf32> to vector<16x1xf32>
    %156 = vector.broadcast %155 : vector<16x1xf32> to vector<16x128xf32>
    %157 = arith.mulf %156, %154 : vector<16x128xf32>
    %158 = arith.addf %152, %157 : vector<16x128xf32>
    %c126_i32 = arith.constant 126 : i32
    %159 = tpu.dynamic_rotate %125 by %c126_i32 dim 1 : vector<16x128xf32>, i32 -> vector<16x128xf32>
    %160 = arith.mulf %159, %92 : vector<16x128xf32>
    %161 = vector.extract_strided_slice %127 {offsets = [0, 5], sizes = [16, 1], strides = [1, 1]} : vector<16x7xf32> to vector<16x1xf32>
    %162 = vector.broadcast %161 : vector<16x1xf32> to vector<16x128xf32>
    %163 = arith.mulf %162, %160 : vector<16x128xf32>
    %164 = arith.addf %158, %163 : vector<16x128xf32>
    %c125_i32 = arith.constant 125 : i32
    %165 = tpu.dynamic_rotate %125 by %c125_i32 dim 1 : vector<16x128xf32>, i32 -> vector<16x128xf32>
    %166 = arith.mulf %165, %95 : vector<16x128xf32>
    %167 = vector.extract_strided_slice %127 {offsets = [0, 6], sizes = [16, 1], strides = [1, 1]} : vector<16x7xf32> to vector<16x1xf32>
    %168 = vector.broadcast %167 : vector<16x1xf32> to vector<16x128xf32>
    %169 = arith.mulf %168, %166 : vector<16x128xf32>
    %170 = arith.addf %164, %169 : vector<16x128xf32>
    %171 = vector.extract_strided_slice %98 {offsets = [0, 0, 0], sizes = [1, 16, 16], strides = [1, 1, 1]} : vector<9x16x16xf32> to vector<1x16x16xf32>
    %172 = vector.shape_cast %171 : vector<1x16x16xf32> to vector<16x16xf32>
    %cst_70 = arith.constant dense<0.000000e+00> : vector<16x128xf32>
    %173 = tpu.matmul %172, %170, %cst_70 {dimension_numbers = #tpu.dot_dimension_numbers<[1], [0], [0], [1], [0, 0, 1, 1], [], []>} : vector<16x16xf32>, vector<16x128xf32>, vector<16x128xf32> -> vector<16x128xf32>
    %174 = vector.extract_strided_slice %100 {offsets = [0, 8], sizes = [16, 1], strides = [1, 1]} : vector<16x18xf32> to vector<16x1xf32>
    %175 = vector.broadcast %174 : vector<16x1xf32> to vector<16x128xf32>
    %176 = arith.addf %173, %175 : vector<16x128xf32>
    %cst_71 = arith.constant 0.000000e+00 : f32
    %177 = vector.broadcast %cst_71 : f32 to vector<16x128xf32>
    %178 = arith.maximumf %176, %177 : vector<16x128xf32>
    %179 = arith.addf %178, %101 : vector<16x128xf32>
    %180 = vector.extract_strided_slice %100 {offsets = [0, 1], sizes = [16, 1], strides = [1, 1]} : vector<16x18xf32> to vector<16x1xf32>
    %181 = vector.extract_strided_slice %100 {offsets = [0, 5], sizes = [16, 1], strides = [1, 1]} : vector<16x18xf32> to vector<16x1xf32>
    %cst_72 = arith.constant dense<0.000000e+00> : vector<128xf32>
    %182 = vector.multi_reduction <add>, %179, %cst_72 [0] : vector<16x128xf32> to vector<128xf32>
    %183 = vector.shape_cast %182 : vector<128xf32> to vector<1x128xf32>
    %cst_73 = arith.constant 1.600000e+01 : f32
    %184 = vector.broadcast %cst_73 : f32 to vector<1x128xf32>
    %185 = arith.divf %183, %184 : vector<1x128xf32>
    %186 = vector.broadcast %185 : vector<1x128xf32> to vector<16x128xf32>
    %187 = arith.subf %179, %186 : vector<16x128xf32>
    %188 = arith.mulf %187, %187 : vector<16x128xf32>
    %cst_74 = arith.constant dense<0.000000e+00> : vector<128xf32>
    %189 = vector.multi_reduction <add>, %188, %cst_74 [0] : vector<16x128xf32> to vector<128xf32>
    %190 = vector.shape_cast %189 : vector<128xf32> to vector<1x128xf32>
    %cst_75 = arith.constant 1.600000e+01 : f32
    %191 = vector.broadcast %cst_75 : f32 to vector<1x128xf32>
    %192 = arith.divf %190, %191 : vector<1x128xf32>
    %193 = vector.broadcast %185 : vector<1x128xf32> to vector<16x128xf32>
    %194 = arith.subf %179, %193 : vector<16x128xf32>
    %cst_76 = arith.constant 9.99999974E-6 : f32
    %195 = vector.broadcast %cst_76 : f32 to vector<1x128xf32>
    %196 = arith.addf %192, %195 : vector<1x128xf32>
    %197 = math.rsqrt %196 : vector<1x128xf32>
    %198 = vector.broadcast %197 : vector<1x128xf32> to vector<16x128xf32>
    %199 = arith.mulf %194, %198 : vector<16x128xf32>
    %200 = vector.broadcast %180 : vector<16x1xf32> to vector<16x128xf32>
    %201 = arith.mulf %199, %200 : vector<16x128xf32>
    %202 = vector.broadcast %181 : vector<16x1xf32> to vector<16x128xf32>
    %203 = arith.addf %201, %202 : vector<16x128xf32>
    %204 = vector.extract_strided_slice %99 {offsets = [1, 0, 0], sizes = [1, 16, 7], strides = [1, 1, 1]} : vector<4x16x7xf32> to vector<1x16x7xf32>
    %205 = vector.shape_cast %204 : vector<1x16x7xf32> to vector<16x7xf32>
    %cst_77 = arith.constant 0.000000e+00 : f32
    %206 = vector.broadcast %cst_77 : f32 to vector<16x128xf32>
    %c3_i32_78 = arith.constant 3 : i32
    %207 = tpu.dynamic_rotate %203 by %c3_i32_78 dim 1 : vector<16x128xf32>, i32 -> vector<16x128xf32>
    %208 = arith.mulf %207, %77 : vector<16x128xf32>
    %209 = vector.extract_strided_slice %205 {offsets = [0, 0], sizes = [16, 1], strides = [1, 1]} : vector<16x7xf32> to vector<16x1xf32>
    %210 = vector.broadcast %209 : vector<16x1xf32> to vector<16x128xf32>
    %211 = arith.mulf %210, %208 : vector<16x128xf32>
    %212 = arith.addf %206, %211 : vector<16x128xf32>
    %c2_i32_79 = arith.constant 2 : i32
    %213 = tpu.dynamic_rotate %203 by %c2_i32_79 dim 1 : vector<16x128xf32>, i32 -> vector<16x128xf32>
    %214 = arith.mulf %213, %80 : vector<16x128xf32>
    %215 = vector.extract_strided_slice %205 {offsets = [0, 1], sizes = [16, 1], strides = [1, 1]} : vector<16x7xf32> to vector<16x1xf32>
    %216 = vector.broadcast %215 : vector<16x1xf32> to vector<16x128xf32>
    %217 = arith.mulf %216, %214 : vector<16x128xf32>
    %218 = arith.addf %212, %217 : vector<16x128xf32>
    %c1_i32_80 = arith.constant 1 : i32
    %219 = tpu.dynamic_rotate %203 by %c1_i32_80 dim 1 : vector<16x128xf32>, i32 -> vector<16x128xf32>
    %220 = arith.mulf %219, %83 : vector<16x128xf32>
    %221 = vector.extract_strided_slice %205 {offsets = [0, 2], sizes = [16, 1], strides = [1, 1]} : vector<16x7xf32> to vector<16x1xf32>
    %222 = vector.broadcast %221 : vector<16x1xf32> to vector<16x128xf32>
    %223 = arith.mulf %222, %220 : vector<16x128xf32>
    %224 = arith.addf %218, %223 : vector<16x128xf32>
    %c0_i32_81 = arith.constant 0 : i32
    %225 = tpu.dynamic_rotate %203 by %c0_i32_81 dim 1 : vector<16x128xf32>, i32 -> vector<16x128xf32>
    %226 = arith.mulf %225, %86 : vector<16x128xf32>
    %227 = vector.extract_strided_slice %205 {offsets = [0, 3], sizes = [16, 1], strides = [1, 1]} : vector<16x7xf32> to vector<16x1xf32>
    %228 = vector.broadcast %227 : vector<16x1xf32> to vector<16x128xf32>
    %229 = arith.mulf %228, %226 : vector<16x128xf32>
    %230 = arith.addf %224, %229 : vector<16x128xf32>
    %c127_i32_82 = arith.constant 127 : i32
    %231 = tpu.dynamic_rotate %203 by %c127_i32_82 dim 1 : vector<16x128xf32>, i32 -> vector<16x128xf32>
    %232 = arith.mulf %231, %89 : vector<16x128xf32>
    %233 = vector.extract_strided_slice %205 {offsets = [0, 4], sizes = [16, 1], strides = [1, 1]} : vector<16x7xf32> to vector<16x1xf32>
    %234 = vector.broadcast %233 : vector<16x1xf32> to vector<16x128xf32>
    %235 = arith.mulf %234, %232 : vector<16x128xf32>
    %236 = arith.addf %230, %235 : vector<16x128xf32>
    %c126_i32_83 = arith.constant 126 : i32
    %237 = tpu.dynamic_rotate %203 by %c126_i32_83 dim 1 : vector<16x128xf32>, i32 -> vector<16x128xf32>
    %238 = arith.mulf %237, %92 : vector<16x128xf32>
    %239 = vector.extract_strided_slice %205 {offsets = [0, 5], sizes = [16, 1], strides = [1, 1]} : vector<16x7xf32> to vector<16x1xf32>
    %240 = vector.broadcast %239 : vector<16x1xf32> to vector<16x128xf32>
    %241 = arith.mulf %240, %238 : vector<16x128xf32>
    %242 = arith.addf %236, %241 : vector<16x128xf32>
    %c125_i32_84 = arith.constant 125 : i32
    %243 = tpu.dynamic_rotate %203 by %c125_i32_84 dim 1 : vector<16x128xf32>, i32 -> vector<16x128xf32>
    %244 = arith.mulf %243, %95 : vector<16x128xf32>
    %245 = vector.extract_strided_slice %205 {offsets = [0, 6], sizes = [16, 1], strides = [1, 1]} : vector<16x7xf32> to vector<16x1xf32>
    %246 = vector.broadcast %245 : vector<16x1xf32> to vector<16x128xf32>
    %247 = arith.mulf %246, %244 : vector<16x128xf32>
    %248 = arith.addf %242, %247 : vector<16x128xf32>
    %249 = vector.extract_strided_slice %98 {offsets = [1, 0, 0], sizes = [1, 16, 16], strides = [1, 1, 1]} : vector<9x16x16xf32> to vector<1x16x16xf32>
    %250 = vector.shape_cast %249 : vector<1x16x16xf32> to vector<16x16xf32>
    %cst_85 = arith.constant dense<0.000000e+00> : vector<16x128xf32>
    %251 = tpu.matmul %250, %248, %cst_85 {dimension_numbers = #tpu.dot_dimension_numbers<[1], [0], [0], [1], [0, 0, 1, 1], [], []>} : vector<16x16xf32>, vector<16x128xf32>, vector<16x128xf32> -> vector<16x128xf32>
    %252 = vector.extract_strided_slice %100 {offsets = [0, 9], sizes = [16, 1], strides = [1, 1]} : vector<16x18xf32> to vector<16x1xf32>
    %253 = vector.broadcast %252 : vector<16x1xf32> to vector<16x128xf32>
    %254 = arith.addf %251, %253 : vector<16x128xf32>
    %cst_86 = arith.constant 0.000000e+00 : f32
    %255 = vector.broadcast %cst_86 : f32 to vector<16x128xf32>
    %256 = arith.maximumf %254, %255 : vector<16x128xf32>
    %257 = arith.addf %256, %179 : vector<16x128xf32>
    %258 = vector.extract_strided_slice %100 {offsets = [0, 2], sizes = [16, 1], strides = [1, 1]} : vector<16x18xf32> to vector<16x1xf32>
    %259 = vector.extract_strided_slice %100 {offsets = [0, 6], sizes = [16, 1], strides = [1, 1]} : vector<16x18xf32> to vector<16x1xf32>
    %cst_87 = arith.constant dense<0.000000e+00> : vector<128xf32>
    %260 = vector.multi_reduction <add>, %257, %cst_87 [0] : vector<16x128xf32> to vector<128xf32>
    %261 = vector.shape_cast %260 : vector<128xf32> to vector<1x128xf32>
    %cst_88 = arith.constant 1.600000e+01 : f32
    %262 = vector.broadcast %cst_88 : f32 to vector<1x128xf32>
    %263 = arith.divf %261, %262 : vector<1x128xf32>
    %264 = vector.broadcast %263 : vector<1x128xf32> to vector<16x128xf32>
    %265 = arith.subf %257, %264 : vector<16x128xf32>
    %266 = arith.mulf %265, %265 : vector<16x128xf32>
    %cst_89 = arith.constant dense<0.000000e+00> : vector<128xf32>
    %267 = vector.multi_reduction <add>, %266, %cst_89 [0] : vector<16x128xf32> to vector<128xf32>
    %268 = vector.shape_cast %267 : vector<128xf32> to vector<1x128xf32>
    %cst_90 = arith.constant 1.600000e+01 : f32
    %269 = vector.broadcast %cst_90 : f32 to vector<1x128xf32>
    %270 = arith.divf %268, %269 : vector<1x128xf32>
    %271 = vector.broadcast %263 : vector<1x128xf32> to vector<16x128xf32>
    %272 = arith.subf %257, %271 : vector<16x128xf32>
    %cst_91 = arith.constant 9.99999974E-6 : f32
    %273 = vector.broadcast %cst_91 : f32 to vector<1x128xf32>
    %274 = arith.addf %270, %273 : vector<1x128xf32>
    %275 = math.rsqrt %274 : vector<1x128xf32>
    %276 = vector.broadcast %275 : vector<1x128xf32> to vector<16x128xf32>
    %277 = arith.mulf %272, %276 : vector<16x128xf32>
    %278 = vector.broadcast %258 : vector<16x1xf32> to vector<16x128xf32>
    %279 = arith.mulf %277, %278 : vector<16x128xf32>
    %280 = vector.broadcast %259 : vector<16x1xf32> to vector<16x128xf32>
    %281 = arith.addf %279, %280 : vector<16x128xf32>
    %282 = vector.extract_strided_slice %99 {offsets = [2, 0, 0], sizes = [1, 16, 7], strides = [1, 1, 1]} : vector<4x16x7xf32> to vector<1x16x7xf32>
    %283 = vector.shape_cast %282 : vector<1x16x7xf32> to vector<16x7xf32>
    %cst_92 = arith.constant 0.000000e+00 : f32
    %284 = vector.broadcast %cst_92 : f32 to vector<16x128xf32>
    %c3_i32_93 = arith.constant 3 : i32
    %285 = tpu.dynamic_rotate %281 by %c3_i32_93 dim 1 : vector<16x128xf32>, i32 -> vector<16x128xf32>
    %286 = arith.mulf %285, %77 : vector<16x128xf32>
    %287 = vector.extract_strided_slice %283 {offsets = [0, 0], sizes = [16, 1], strides = [1, 1]} : vector<16x7xf32> to vector<16x1xf32>
    %288 = vector.broadcast %287 : vector<16x1xf32> to vector<16x128xf32>
    %289 = arith.mulf %288, %286 : vector<16x128xf32>
    %290 = arith.addf %284, %289 : vector<16x128xf32>
    %c2_i32_94 = arith.constant 2 : i32
    %291 = tpu.dynamic_rotate %281 by %c2_i32_94 dim 1 : vector<16x128xf32>, i32 -> vector<16x128xf32>
    %292 = arith.mulf %291, %80 : vector<16x128xf32>
    %293 = vector.extract_strided_slice %283 {offsets = [0, 1], sizes = [16, 1], strides = [1, 1]} : vector<16x7xf32> to vector<16x1xf32>
    %294 = vector.broadcast %293 : vector<16x1xf32> to vector<16x128xf32>
    %295 = arith.mulf %294, %292 : vector<16x128xf32>
    %296 = arith.addf %290, %295 : vector<16x128xf32>
    %c1_i32_95 = arith.constant 1 : i32
    %297 = tpu.dynamic_rotate %281 by %c1_i32_95 dim 1 : vector<16x128xf32>, i32 -> vector<16x128xf32>
    %298 = arith.mulf %297, %83 : vector<16x128xf32>
    %299 = vector.extract_strided_slice %283 {offsets = [0, 2], sizes = [16, 1], strides = [1, 1]} : vector<16x7xf32> to vector<16x1xf32>
    %300 = vector.broadcast %299 : vector<16x1xf32> to vector<16x128xf32>
    %301 = arith.mulf %300, %298 : vector<16x128xf32>
    %302 = arith.addf %296, %301 : vector<16x128xf32>
    %c0_i32_96 = arith.constant 0 : i32
    %303 = tpu.dynamic_rotate %281 by %c0_i32_96 dim 1 : vector<16x128xf32>, i32 -> vector<16x128xf32>
    %304 = arith.mulf %303, %86 : vector<16x128xf32>
    %305 = vector.extract_strided_slice %283 {offsets = [0, 3], sizes = [16, 1], strides = [1, 1]} : vector<16x7xf32> to vector<16x1xf32>
    %306 = vector.broadcast %305 : vector<16x1xf32> to vector<16x128xf32>
    %307 = arith.mulf %306, %304 : vector<16x128xf32>
    %308 = arith.addf %302, %307 : vector<16x128xf32>
    %c127_i32_97 = arith.constant 127 : i32
    %309 = tpu.dynamic_rotate %281 by %c127_i32_97 dim 1 : vector<16x128xf32>, i32 -> vector<16x128xf32>
    %310 = arith.mulf %309, %89 : vector<16x128xf32>
    %311 = vector.extract_strided_slice %283 {offsets = [0, 4], sizes = [16, 1], strides = [1, 1]} : vector<16x7xf32> to vector<16x1xf32>
    %312 = vector.broadcast %311 : vector<16x1xf32> to vector<16x128xf32>
    %313 = arith.mulf %312, %310 : vector<16x128xf32>
    %314 = arith.addf %308, %313 : vector<16x128xf32>
    %c126_i32_98 = arith.constant 126 : i32
    %315 = tpu.dynamic_rotate %281 by %c126_i32_98 dim 1 : vector<16x128xf32>, i32 -> vector<16x128xf32>
    %316 = arith.mulf %315, %92 : vector<16x128xf32>
    %317 = vector.extract_strided_slice %283 {offsets = [0, 5], sizes = [16, 1], strides = [1, 1]} : vector<16x7xf32> to vector<16x1xf32>
    %318 = vector.broadcast %317 : vector<16x1xf32> to vector<16x128xf32>
    %319 = arith.mulf %318, %316 : vector<16x128xf32>
    %320 = arith.addf %314, %319 : vector<16x128xf32>
    %c125_i32_99 = arith.constant 125 : i32
    %321 = tpu.dynamic_rotate %281 by %c125_i32_99 dim 1 : vector<16x128xf32>, i32 -> vector<16x128xf32>
    %322 = arith.mulf %321, %95 : vector<16x128xf32>
    %323 = vector.extract_strided_slice %283 {offsets = [0, 6], sizes = [16, 1], strides = [1, 1]} : vector<16x7xf32> to vector<16x1xf32>
    %324 = vector.broadcast %323 : vector<16x1xf32> to vector<16x128xf32>
    %325 = arith.mulf %324, %322 : vector<16x128xf32>
    %326 = arith.addf %320, %325 : vector<16x128xf32>
    %327 = vector.extract_strided_slice %98 {offsets = [2, 0, 0], sizes = [1, 16, 16], strides = [1, 1, 1]} : vector<9x16x16xf32> to vector<1x16x16xf32>
    %328 = vector.shape_cast %327 : vector<1x16x16xf32> to vector<16x16xf32>
    %cst_100 = arith.constant dense<0.000000e+00> : vector<16x128xf32>
    %329 = tpu.matmul %328, %326, %cst_100 {dimension_numbers = #tpu.dot_dimension_numbers<[1], [0], [0], [1], [0, 0, 1, 1], [], []>} : vector<16x16xf32>, vector<16x128xf32>, vector<16x128xf32> -> vector<16x128xf32>
    %330 = vector.extract_strided_slice %100 {offsets = [0, 10], sizes = [16, 1], strides = [1, 1]} : vector<16x18xf32> to vector<16x1xf32>
    %331 = vector.broadcast %330 : vector<16x1xf32> to vector<16x128xf32>
    %332 = arith.addf %329, %331 : vector<16x128xf32>
    %cst_101 = arith.constant 0.000000e+00 : f32
    %333 = vector.broadcast %cst_101 : f32 to vector<16x128xf32>
    %334 = arith.maximumf %332, %333 : vector<16x128xf32>
    %335 = arith.addf %334, %257 : vector<16x128xf32>
    %336 = vector.extract_strided_slice %100 {offsets = [0, 3], sizes = [16, 1], strides = [1, 1]} : vector<16x18xf32> to vector<16x1xf32>
    %337 = vector.extract_strided_slice %100 {offsets = [0, 7], sizes = [16, 1], strides = [1, 1]} : vector<16x18xf32> to vector<16x1xf32>
    %cst_102 = arith.constant dense<0.000000e+00> : vector<128xf32>
    %338 = vector.multi_reduction <add>, %335, %cst_102 [0] : vector<16x128xf32> to vector<128xf32>
    %339 = vector.shape_cast %338 : vector<128xf32> to vector<1x128xf32>
    %cst_103 = arith.constant 1.600000e+01 : f32
    %340 = vector.broadcast %cst_103 : f32 to vector<1x128xf32>
    %341 = arith.divf %339, %340 : vector<1x128xf32>
    %342 = vector.broadcast %341 : vector<1x128xf32> to vector<16x128xf32>
    %343 = arith.subf %335, %342 : vector<16x128xf32>
    %344 = arith.mulf %343, %343 : vector<16x128xf32>
    %cst_104 = arith.constant dense<0.000000e+00> : vector<128xf32>
    %345 = vector.multi_reduction <add>, %344, %cst_104 [0] : vector<16x128xf32> to vector<128xf32>
    %346 = vector.shape_cast %345 : vector<128xf32> to vector<1x128xf32>
    %cst_105 = arith.constant 1.600000e+01 : f32
    %347 = vector.broadcast %cst_105 : f32 to vector<1x128xf32>
    %348 = arith.divf %346, %347 : vector<1x128xf32>
    %349 = vector.broadcast %341 : vector<1x128xf32> to vector<16x128xf32>
    %350 = arith.subf %335, %349 : vector<16x128xf32>
    %cst_106 = arith.constant 9.99999974E-6 : f32
    %351 = vector.broadcast %cst_106 : f32 to vector<1x128xf32>
    %352 = arith.addf %348, %351 : vector<1x128xf32>
    %353 = math.rsqrt %352 : vector<1x128xf32>
    %354 = vector.broadcast %353 : vector<1x128xf32> to vector<16x128xf32>
    %355 = arith.mulf %350, %354 : vector<16x128xf32>
    %356 = vector.broadcast %336 : vector<16x1xf32> to vector<16x128xf32>
    %357 = arith.mulf %355, %356 : vector<16x128xf32>
    %358 = vector.broadcast %337 : vector<16x1xf32> to vector<16x128xf32>
    %359 = arith.addf %357, %358 : vector<16x128xf32>
    %360 = vector.extract_strided_slice %99 {offsets = [3, 0, 0], sizes = [1, 16, 7], strides = [1, 1, 1]} : vector<4x16x7xf32> to vector<1x16x7xf32>
    %361 = vector.shape_cast %360 : vector<1x16x7xf32> to vector<16x7xf32>
    %cst_107 = arith.constant 0.000000e+00 : f32
    %362 = vector.broadcast %cst_107 : f32 to vector<16x128xf32>
    %c3_i32_108 = arith.constant 3 : i32
    %363 = tpu.dynamic_rotate %359 by %c3_i32_108 dim 1 : vector<16x128xf32>, i32 -> vector<16x128xf32>
    %364 = arith.mulf %363, %77 : vector<16x128xf32>
    %365 = vector.extract_strided_slice %361 {offsets = [0, 0], sizes = [16, 1], strides = [1, 1]} : vector<16x7xf32> to vector<16x1xf32>
    %366 = vector.broadcast %365 : vector<16x1xf32> to vector<16x128xf32>
    %367 = arith.mulf %366, %364 : vector<16x128xf32>
    %368 = arith.addf %362, %367 : vector<16x128xf32>
    %c2_i32_109 = arith.constant 2 : i32
    %369 = tpu.dynamic_rotate %359 by %c2_i32_109 dim 1 : vector<16x128xf32>, i32 -> vector<16x128xf32>
    %370 = arith.mulf %369, %80 : vector<16x128xf32>
    %371 = vector.extract_strided_slice %361 {offsets = [0, 1], sizes = [16, 1], strides = [1, 1]} : vector<16x7xf32> to vector<16x1xf32>
    %372 = vector.broadcast %371 : vector<16x1xf32> to vector<16x128xf32>
    %373 = arith.mulf %372, %370 : vector<16x128xf32>
    %374 = arith.addf %368, %373 : vector<16x128xf32>
    %c1_i32_110 = arith.constant 1 : i32
    %375 = tpu.dynamic_rotate %359 by %c1_i32_110 dim 1 : vector<16x128xf32>, i32 -> vector<16x128xf32>
    %376 = arith.mulf %375, %83 : vector<16x128xf32>
    %377 = vector.extract_strided_slice %361 {offsets = [0, 2], sizes = [16, 1], strides = [1, 1]} : vector<16x7xf32> to vector<16x1xf32>
    %378 = vector.broadcast %377 : vector<16x1xf32> to vector<16x128xf32>
    %379 = arith.mulf %378, %376 : vector<16x128xf32>
    %380 = arith.addf %374, %379 : vector<16x128xf32>
    %c0_i32_111 = arith.constant 0 : i32
    %381 = tpu.dynamic_rotate %359 by %c0_i32_111 dim 1 : vector<16x128xf32>, i32 -> vector<16x128xf32>
    %382 = arith.mulf %381, %86 : vector<16x128xf32>
    %383 = vector.extract_strided_slice %361 {offsets = [0, 3], sizes = [16, 1], strides = [1, 1]} : vector<16x7xf32> to vector<16x1xf32>
    %384 = vector.broadcast %383 : vector<16x1xf32> to vector<16x128xf32>
    %385 = arith.mulf %384, %382 : vector<16x128xf32>
    %386 = arith.addf %380, %385 : vector<16x128xf32>
    %c127_i32_112 = arith.constant 127 : i32
    %387 = tpu.dynamic_rotate %359 by %c127_i32_112 dim 1 : vector<16x128xf32>, i32 -> vector<16x128xf32>
    %388 = arith.mulf %387, %89 : vector<16x128xf32>
    %389 = vector.extract_strided_slice %361 {offsets = [0, 4], sizes = [16, 1], strides = [1, 1]} : vector<16x7xf32> to vector<16x1xf32>
    %390 = vector.broadcast %389 : vector<16x1xf32> to vector<16x128xf32>
    %391 = arith.mulf %390, %388 : vector<16x128xf32>
    %392 = arith.addf %386, %391 : vector<16x128xf32>
    %c126_i32_113 = arith.constant 126 : i32
    %393 = tpu.dynamic_rotate %359 by %c126_i32_113 dim 1 : vector<16x128xf32>, i32 -> vector<16x128xf32>
    %394 = arith.mulf %393, %92 : vector<16x128xf32>
    %395 = vector.extract_strided_slice %361 {offsets = [0, 5], sizes = [16, 1], strides = [1, 1]} : vector<16x7xf32> to vector<16x1xf32>
    %396 = vector.broadcast %395 : vector<16x1xf32> to vector<16x128xf32>
    %397 = arith.mulf %396, %394 : vector<16x128xf32>
    %398 = arith.addf %392, %397 : vector<16x128xf32>
    %c125_i32_114 = arith.constant 125 : i32
    %399 = tpu.dynamic_rotate %359 by %c125_i32_114 dim 1 : vector<16x128xf32>, i32 -> vector<16x128xf32>
    %400 = arith.mulf %399, %95 : vector<16x128xf32>
    %401 = vector.extract_strided_slice %361 {offsets = [0, 6], sizes = [16, 1], strides = [1, 1]} : vector<16x7xf32> to vector<16x1xf32>
    %402 = vector.broadcast %401 : vector<16x1xf32> to vector<16x128xf32>
    %403 = arith.mulf %402, %400 : vector<16x128xf32>
    %404 = arith.addf %398, %403 : vector<16x128xf32>
    %405 = vector.extract_strided_slice %98 {offsets = [3, 0, 0], sizes = [1, 16, 16], strides = [1, 1, 1]} : vector<9x16x16xf32> to vector<1x16x16xf32>
    %406 = vector.shape_cast %405 : vector<1x16x16xf32> to vector<16x16xf32>
    %cst_115 = arith.constant dense<0.000000e+00> : vector<16x128xf32>
    %407 = tpu.matmul %406, %404, %cst_115 {dimension_numbers = #tpu.dot_dimension_numbers<[1], [0], [0], [1], [0, 0, 1, 1], [], []>} : vector<16x16xf32>, vector<16x128xf32>, vector<16x128xf32> -> vector<16x128xf32>
    %408 = vector.extract_strided_slice %100 {offsets = [0, 11], sizes = [16, 1], strides = [1, 1]} : vector<16x18xf32> to vector<16x1xf32>
    %409 = vector.broadcast %408 : vector<16x1xf32> to vector<16x128xf32>
    %410 = arith.addf %407, %409 : vector<16x128xf32>
    %cst_116 = arith.constant 0.000000e+00 : f32
    %411 = vector.broadcast %cst_116 : f32 to vector<16x128xf32>
    %412 = arith.maximumf %410, %411 : vector<16x128xf32>
    %413 = arith.addf %412, %335 : vector<16x128xf32>
    %414 = vector.extract_strided_slice %100 {offsets = [0, 12], sizes = [16, 1], strides = [1, 1]} : vector<16x18xf32> to vector<16x1xf32>
    %415 = vector.extract_strided_slice %100 {offsets = [0, 13], sizes = [16, 1], strides = [1, 1]} : vector<16x18xf32> to vector<16x1xf32>
    %cst_117 = arith.constant dense<0.000000e+00> : vector<128xf32>
    %416 = vector.multi_reduction <add>, %413, %cst_117 [0] : vector<16x128xf32> to vector<128xf32>
    %417 = vector.shape_cast %416 : vector<128xf32> to vector<1x128xf32>
    %cst_118 = arith.constant 1.600000e+01 : f32
    %418 = vector.broadcast %cst_118 : f32 to vector<1x128xf32>
    %419 = arith.divf %417, %418 : vector<1x128xf32>
    %420 = vector.broadcast %419 : vector<1x128xf32> to vector<16x128xf32>
    %421 = arith.subf %413, %420 : vector<16x128xf32>
    %422 = arith.mulf %421, %421 : vector<16x128xf32>
    %cst_119 = arith.constant dense<0.000000e+00> : vector<128xf32>
    %423 = vector.multi_reduction <add>, %422, %cst_119 [0] : vector<16x128xf32> to vector<128xf32>
    %424 = vector.shape_cast %423 : vector<128xf32> to vector<1x128xf32>
    %cst_120 = arith.constant 1.600000e+01 : f32
    %425 = vector.broadcast %cst_120 : f32 to vector<1x128xf32>
    %426 = arith.divf %424, %425 : vector<1x128xf32>
    %427 = vector.broadcast %419 : vector<1x128xf32> to vector<16x128xf32>
    %428 = arith.subf %413, %427 : vector<16x128xf32>
    %cst_121 = arith.constant 9.99999974E-6 : f32
    %429 = vector.broadcast %cst_121 : f32 to vector<1x128xf32>
    %430 = arith.addf %426, %429 : vector<1x128xf32>
    %431 = math.rsqrt %430 : vector<1x128xf32>
    %432 = vector.broadcast %431 : vector<1x128xf32> to vector<16x128xf32>
    %433 = arith.mulf %428, %432 : vector<16x128xf32>
    %434 = vector.broadcast %414 : vector<16x1xf32> to vector<16x128xf32>
    %435 = arith.mulf %433, %434 : vector<16x128xf32>
    %436 = vector.broadcast %415 : vector<16x1xf32> to vector<16x128xf32>
    %437 = arith.addf %435, %436 : vector<16x128xf32>
    %438 = vector.extract_strided_slice %98 {offsets = [6, 0, 0], sizes = [1, 16, 16], strides = [1, 1, 1]} : vector<9x16x16xf32> to vector<1x16x16xf32>
    %439 = vector.shape_cast %438 : vector<1x16x16xf32> to vector<16x16xf32>
    %cst_122 = arith.constant dense<0.000000e+00> : vector<16x128xf32>
    %440 = tpu.matmul %439, %437, %cst_122 {dimension_numbers = #tpu.dot_dimension_numbers<[1], [0], [0], [1], [0, 0, 1, 1], [], []>} : vector<16x16xf32>, vector<16x128xf32>, vector<16x128xf32> -> vector<16x128xf32>
    %cst_123 = arith.constant 0.353553385 : f32
    %441 = vector.broadcast %cst_123 : f32 to vector<16x128xf32>
    %442 = arith.mulf %440, %441 : vector<16x128xf32>
    %443 = vector.extract_strided_slice %98 {offsets = [4, 0, 0], sizes = [1, 16, 16], strides = [1, 1, 1]} : vector<9x16x16xf32> to vector<1x16x16xf32>
    %444 = vector.shape_cast %443 : vector<1x16x16xf32> to vector<16x16xf32>
    %cst_124 = arith.constant dense<0.000000e+00> : vector<16x128xf32>
    %445 = tpu.matmul %444, %437, %cst_124 {dimension_numbers = #tpu.dot_dimension_numbers<[1], [0], [0], [1], [0, 0, 1, 1], [], []>} : vector<16x16xf32>, vector<16x128xf32>, vector<16x128xf32> -> vector<16x128xf32>
    %446 = vector.extract_strided_slice %98 {offsets = [5, 0, 0], sizes = [1, 16, 16], strides = [1, 1, 1]} : vector<9x16x16xf32> to vector<1x16x16xf32>
    %447 = vector.shape_cast %446 : vector<1x16x16xf32> to vector<16x16xf32>
    %cst_125 = arith.constant dense<0.000000e+00> : vector<16x128xf32>
    %448 = tpu.matmul %447, %437, %cst_125 {dimension_numbers = #tpu.dot_dimension_numbers<[1], [0], [0], [1], [0, 0, 1, 1], [], []>} : vector<16x16xf32>, vector<16x128xf32>, vector<16x128xf32> -> vector<16x128xf32>
    %449 = vector.extract_strided_slice %442 {offsets = [0, 0], sizes = [8, 128], strides = [1, 1]} : vector<16x128xf32> to vector<8x128xf32>
    %450 = vector.extract_strided_slice %445 {offsets = [0, 0], sizes = [8, 128], strides = [1, 1]} : vector<16x128xf32> to vector<8x128xf32>
    %451 = vector.extract_strided_slice %448 {offsets = [0, 0], sizes = [8, 128], strides = [1, 1]} : vector<16x128xf32> to vector<8x128xf32>
    %cst_126 = arith.constant dense<0.000000e+00> : vector<128x128xf32>
    %452 = tpu.matmul %449, %450, %cst_126 {dimension_numbers = #tpu.dot_dimension_numbers<[0], [0], [1], [1], [0, 1, 1, 1], [], []>} : vector<8x128xf32>, vector<8x128xf32>, vector<128x128xf32> -> vector<128x128xf32>
    %453 = arith.addf %452, %72 : vector<128x128xf32>
    %cst_127 = arith.constant dense<0xFF800000> : vector<128xf32>
    %454 = vector.multi_reduction <maximumf>, %453, %cst_127 [1] : vector<128x128xf32> to vector<128xf32>
    %455 = vector.shape_cast %454 : vector<128xf32> to vector<128x1xf32>
    %456 = vector.broadcast %455 : vector<128x1xf32> to vector<128x128xf32>
    %457 = arith.subf %453, %456 : vector<128x128xf32>
    %458 = math.exp %457 : vector<128x128xf32>
    %cst_128 = arith.constant dense<0.000000e+00> : vector<128xf32>
    %459 = vector.multi_reduction <add>, %458, %cst_128 [1] : vector<128x128xf32> to vector<128xf32>
    %460 = vector.shape_cast %459 : vector<128xf32> to vector<128x1xf32>
    %461 = tpu.reciprocal %460 {approx = true} : vector<128x1xf32> -> vector<128x1xf32>
    %462 = vector.broadcast %461 : vector<128x1xf32> to vector<128x128xf32>
    %463 = arith.mulf %458, %462 : vector<128x128xf32>
    %cst_129 = arith.constant dense<0.000000e+00> : vector<8x128xf32>
    %464 = tpu.matmul %451, %463, %cst_129 {dimension_numbers = #tpu.dot_dimension_numbers<[1], [1], [0], [0], [0, 0, 1, 0], [], []>} : vector<8x128xf32>, vector<128x128xf32>, vector<8x128xf32> -> vector<8x128xf32>
    %465 = vector.extract_strided_slice %442 {offsets = [8, 0], sizes = [8, 128], strides = [1, 1]} : vector<16x128xf32> to vector<8x128xf32>
    %466 = vector.extract_strided_slice %445 {offsets = [8, 0], sizes = [8, 128], strides = [1, 1]} : vector<16x128xf32> to vector<8x128xf32>
    %467 = vector.extract_strided_slice %448 {offsets = [8, 0], sizes = [8, 128], strides = [1, 1]} : vector<16x128xf32> to vector<8x128xf32>
    %cst_130 = arith.constant dense<0.000000e+00> : vector<128x128xf32>
    %468 = tpu.matmul %465, %466, %cst_130 {dimension_numbers = #tpu.dot_dimension_numbers<[0], [0], [1], [1], [0, 1, 1, 1], [], []>} : vector<8x128xf32>, vector<8x128xf32>, vector<128x128xf32> -> vector<128x128xf32>
    %469 = arith.addf %468, %72 : vector<128x128xf32>
    %cst_131 = arith.constant dense<0xFF800000> : vector<128xf32>
    %470 = vector.multi_reduction <maximumf>, %469, %cst_131 [1] : vector<128x128xf32> to vector<128xf32>
    %471 = vector.shape_cast %470 : vector<128xf32> to vector<128x1xf32>
    %472 = vector.broadcast %471 : vector<128x1xf32> to vector<128x128xf32>
    %473 = arith.subf %469, %472 : vector<128x128xf32>
    %474 = math.exp %473 : vector<128x128xf32>
    %cst_132 = arith.constant dense<0.000000e+00> : vector<128xf32>
    %475 = vector.multi_reduction <add>, %474, %cst_132 [1] : vector<128x128xf32> to vector<128xf32>
    %476 = vector.shape_cast %475 : vector<128xf32> to vector<128x1xf32>
    %477 = tpu.reciprocal %476 {approx = true} : vector<128x1xf32> -> vector<128x1xf32>
    %478 = vector.broadcast %477 : vector<128x1xf32> to vector<128x128xf32>
    %479 = arith.mulf %474, %478 : vector<128x128xf32>
    %cst_133 = arith.constant dense<0.000000e+00> : vector<8x128xf32>
    %480 = tpu.matmul %467, %479, %cst_133 {dimension_numbers = #tpu.dot_dimension_numbers<[1], [1], [0], [0], [0, 0, 1, 0], [], []>} : vector<8x128xf32>, vector<128x128xf32>, vector<8x128xf32> -> vector<8x128xf32>
    %481 = tpu.concatenate %464, %480 in 0 : vector<8x128xf32>, vector<8x128xf32> -> vector<16x128xf32>
    %482 = arith.addf %481, %413 : vector<16x128xf32>
    %483 = vector.extract_strided_slice %100 {offsets = [0, 14], sizes = [16, 1], strides = [1, 1]} : vector<16x18xf32> to vector<16x1xf32>
    %484 = vector.extract_strided_slice %100 {offsets = [0, 15], sizes = [16, 1], strides = [1, 1]} : vector<16x18xf32> to vector<16x1xf32>
    %cst_134 = arith.constant dense<0.000000e+00> : vector<128xf32>
    %485 = vector.multi_reduction <add>, %482, %cst_134 [0] : vector<16x128xf32> to vector<128xf32>
    %486 = vector.shape_cast %485 : vector<128xf32> to vector<1x128xf32>
    %cst_135 = arith.constant 1.600000e+01 : f32
    %487 = vector.broadcast %cst_135 : f32 to vector<1x128xf32>
    %488 = arith.divf %486, %487 : vector<1x128xf32>
    %489 = vector.broadcast %488 : vector<1x128xf32> to vector<16x128xf32>
    %490 = arith.subf %482, %489 : vector<16x128xf32>
    %491 = arith.mulf %490, %490 : vector<16x128xf32>
    %cst_136 = arith.constant dense<0.000000e+00> : vector<128xf32>
    %492 = vector.multi_reduction <add>, %491, %cst_136 [0] : vector<16x128xf32> to vector<128xf32>
    %493 = vector.shape_cast %492 : vector<128xf32> to vector<1x128xf32>
    %cst_137 = arith.constant 1.600000e+01 : f32
    %494 = vector.broadcast %cst_137 : f32 to vector<1x128xf32>
    %495 = arith.divf %493, %494 : vector<1x128xf32>
    %496 = vector.broadcast %488 : vector<1x128xf32> to vector<16x128xf32>
    %497 = arith.subf %482, %496 : vector<16x128xf32>
    %cst_138 = arith.constant 9.99999974E-6 : f32
    %498 = vector.broadcast %cst_138 : f32 to vector<1x128xf32>
    %499 = arith.addf %495, %498 : vector<1x128xf32>
    %500 = math.rsqrt %499 : vector<1x128xf32>
    %501 = vector.broadcast %500 : vector<1x128xf32> to vector<16x128xf32>
    %502 = arith.mulf %497, %501 : vector<16x128xf32>
    %503 = vector.broadcast %483 : vector<16x1xf32> to vector<16x128xf32>
    %504 = arith.mulf %502, %503 : vector<16x128xf32>
    %505 = vector.broadcast %484 : vector<16x1xf32> to vector<16x128xf32>
    %506 = arith.addf %504, %505 : vector<16x128xf32>
    %507 = vector.extract_strided_slice %98 {offsets = [7, 0, 0], sizes = [1, 16, 16], strides = [1, 1, 1]} : vector<9x16x16xf32> to vector<1x16x16xf32>
    %508 = vector.shape_cast %507 : vector<1x16x16xf32> to vector<16x16xf32>
    %cst_139 = arith.constant dense<0.000000e+00> : vector<16x128xf32>
    %509 = tpu.matmul %508, %506, %cst_139 {dimension_numbers = #tpu.dot_dimension_numbers<[1], [0], [0], [1], [0, 0, 1, 1], [], []>} : vector<16x16xf32>, vector<16x128xf32>, vector<16x128xf32> -> vector<16x128xf32>
    %510 = vector.extract_strided_slice %100 {offsets = [0, 16], sizes = [16, 1], strides = [1, 1]} : vector<16x18xf32> to vector<16x1xf32>
    %511 = vector.broadcast %510 : vector<16x1xf32> to vector<16x128xf32>
    %512 = arith.addf %509, %511 : vector<16x128xf32>
    %cst_140 = arith.constant 0.000000e+00 : f32
    %513 = vector.broadcast %cst_140 : f32 to vector<16x128xf32>
    %514 = arith.maximumf %512, %513 : vector<16x128xf32>
    %515 = vector.extract_strided_slice %98 {offsets = [8, 0, 0], sizes = [1, 16, 16], strides = [1, 1, 1]} : vector<9x16x16xf32> to vector<1x16x16xf32>
    %516 = vector.shape_cast %515 : vector<1x16x16xf32> to vector<16x16xf32>
    %cst_141 = arith.constant dense<0.000000e+00> : vector<16x128xf32>
    %517 = tpu.matmul %516, %514, %cst_141 {dimension_numbers = #tpu.dot_dimension_numbers<[1], [0], [0], [1], [0, 0, 1, 1], [], []>} : vector<16x16xf32>, vector<16x128xf32>, vector<16x128xf32> -> vector<16x128xf32>
    %518 = vector.extract_strided_slice %100 {offsets = [0, 17], sizes = [16, 1], strides = [1, 1]} : vector<16x18xf32> to vector<16x1xf32>
    %519 = vector.broadcast %518 : vector<16x1xf32> to vector<16x128xf32>
    %520 = arith.addf %517, %519 : vector<16x128xf32>
    %521 = arith.addf %520, %482 : vector<16x128xf32>
    %c0_142 = arith.constant 0 : index
    %c0_143 = arith.constant 0 : index
    %c0_144 = arith.constant 0 : index
    %522 = vector.load %arg16[%c0_142, %c0_143, %c0_144] : memref<1x16x128xf32, #tpu.memory_space<vmem>>, vector<1x16x128xf32>
    %523 = vector.shape_cast %522 : vector<1x16x128xf32> to vector<16x128xf32>
    %524 = vector.shape_cast %521 : vector<16x128xf32> to vector<1x16x128xf32>
    tpu.vector_store %arg16[%c0_142, %c0_143, %c0_144], %524 {strides = array<i32>} : memref<1x16x128xf32, #tpu.memory_space<vmem>>, vector<1x16x128xf32>,
    return
  }
  func.func @transform_0(%arg0: i32) -> (i32, i32, i32) {
    %c0_i32 = arith.constant 0 : i32
    %c0_i32_0 = arith.constant 0 : i32
    %c0_i32_1 = arith.constant 0 : i32
    return %arg0, %c0_i32, %c0_i32_0 : i32, i32, i32
  }
  func.func @transform_1(%arg0: i32) -> (i32, i32, i32) {
    %c0_i32 = arith.constant 0 : i32
    %c0_i32_0 = arith.constant 0 : i32
    %c0_i32_1 = arith.constant 0 : i32
    return %arg0, %c0_i32, %c0_i32_0 : i32, i32, i32
  }
  func.func @transform_2(%arg0: i32) -> (i32, i32, i32) {
    %c0_i32 = arith.constant 0 : i32
    %c0_i32_0 = arith.constant 0 : i32
    %c0_i32_1 = arith.constant 0 : i32
    return %arg0, %c0_i32, %c0_i32_0 : i32, i32, i32
  }
  func.func @transform_3(%arg0: i32) -> (i32, i32, i32) {
    %c0_i32 = arith.constant 0 : i32
    %c0_i32_0 = arith.constant 0 : i32
    %c0_i32_1 = arith.constant 0 : i32
    return %arg0, %c0_i32, %c0_i32_0 : i32, i32, i32
  }
  func.func @transform_4(%arg0: i32) -> (i32, i32, i32) {
    %c0_i32 = arith.constant 0 : i32
    %c0_i32_0 = arith.constant 0 : i32
    %c0_i32_1 = arith.constant 0 : i32
    return %arg0, %c0_i32, %c0_i32_0 : i32, i32, i32
  }
  func.func @transform_5(%arg0: i32) -> (i32, i32, i32) {
    %c0_i32 = arith.constant 0 : i32
    %c0_i32_0 = arith.constant 0 : i32
    %c0_i32_1 = arith.constant 0 : i32
    return %arg0, %c0_i32, %c0_i32_0 : i32, i32, i32
  }
  func.func @transform_6(%arg0: i32) -> (i32, i32, i32) {
    %c0_i32 = arith.constant 0 : i32
    %c0_i32_0 = arith.constant 0 : i32
    %c0_i32_1 = arith.constant 0 : i32
    %c0_i32_2 = arith.constant 0 : i32
    return %c0_i32, %c0_i32_0, %c0_i32_1 : i32, i32, i32
  }
  func.func @transform_7(%arg0: i32) -> (i32, i32, i32) {
    %c0_i32 = arith.constant 0 : i32
    %c0_i32_0 = arith.constant 0 : i32
    %c0_i32_1 = arith.constant 0 : i32
    %c0_i32_2 = arith.constant 0 : i32
    return %c0_i32, %c0_i32_0, %c0_i32_1 : i32, i32, i32
  }
  func.func @transform_8(%arg0: i32) -> (i32, i32, i32) {
    %c0_i32 = arith.constant 0 : i32
    %c0_i32_0 = arith.constant 0 : i32
    %c0_i32_1 = arith.constant 0 : i32
    %c0_i32_2 = arith.constant 0 : i32
    return %c0_i32, %c0_i32_0, %c0_i32_1 : i32, i32, i32
  }
  func.func @transform_9(%arg0: i32) -> (i32, i32, i32) {
    %c0_i32 = arith.constant 0 : i32
    %c0_i32_0 = arith.constant 0 : i32
    %c0_i32_1 = arith.constant 0 : i32
    %c0_i32_2 = arith.constant 0 : i32
    return %c0_i32, %c0_i32_0, %c0_i32_1 : i32, i32, i32
  }
  func.func @transform_10(%arg0: i32) -> (i32, i32) {
    %c0_i32 = arith.constant 0 : i32
    %c0_i32_0 = arith.constant 0 : i32
    %c0_i32_1 = arith.constant 0 : i32
    return %c0_i32, %c0_i32_0 : i32, i32
  }
  func.func @transform_11(%arg0: i32) -> (i32, i32) {
    %c0_i32 = arith.constant 0 : i32
    %c0_i32_0 = arith.constant 0 : i32
    %c0_i32_1 = arith.constant 0 : i32
    return %c0_i32, %c0_i32_0 : i32, i32
  }
  func.func @transform_12(%arg0: i32) -> (i32, i32, i32) {
    %c0_i32 = arith.constant 0 : i32
    %c0_i32_0 = arith.constant 0 : i32
    %c0_i32_1 = arith.constant 0 : i32
    %c0_i32_2 = arith.constant 0 : i32
    return %c0_i32, %c0_i32_0, %c0_i32_1 : i32, i32, i32
  }
  func.func @transform_13(%arg0: i32) -> (i32, i32, i32) {
    %c0_i32 = arith.constant 0 : i32
    %c0_i32_0 = arith.constant 0 : i32
    %c0_i32_1 = arith.constant 0 : i32
    %c0_i32_2 = arith.constant 0 : i32
    return %c0_i32, %c0_i32_0, %c0_i32_1 : i32, i32, i32
  }
  func.func @transform_14(%arg0: i32) -> (i32, i32) {
    %c0_i32 = arith.constant 0 : i32
    %c0_i32_0 = arith.constant 0 : i32
    %c0_i32_1 = arith.constant 0 : i32
    return %c0_i32, %c0_i32_0 : i32, i32
  }
  func.func @transform_15(%arg0: i32) -> (i32, i32, i32) {
    %c0_i32 = arith.constant 0 : i32
    %c0_i32_0 = arith.constant 0 : i32
    %c0_i32_1 = arith.constant 0 : i32
    return %arg0, %c0_i32, %c0_i32_0 : i32, i32, i32
  }
}

module attributes {stable_mosaic.version = 11 : i64} {
  func.func @_model_head_kernel(%arg0: i32, %arg1: i32, %arg2: memref<16x128xf32, #tpu.memory_space<vmem>>, %arg3: memref<16x128xf32, #tpu.memory_space<vmem>>, %arg4: memref<128x1xf32, #tpu.memory_space<vmem>>, %arg5: memref<1x128xf32, #tpu.memory_space<vmem>>, %arg6: memref<1x128xf32, #tpu.memory_space<vmem>>, %arg7: memref<7x128xf32, #tpu.memory_space<vmem>>, %arg8: memref<2x128xf32, #tpu.memory_space<vmem>>, %arg9: memref<1x7x16x16xf32, #tpu.memory_space<vmem>>, %arg10: memref<1x2x16x7xf32, #tpu.memory_space<vmem>>, %arg11: memref<1x16x12xf32, #tpu.memory_space<vmem>>, %arg12: memref<1x16x1xf32, #tpu.memory_space<vmem>>, %arg13: memref<3x16x1xf32, #tpu.memory_space<vmem>>, %arg14: memref<1x1xf32, #tpu.memory_space<vmem>>, %arg15: memref<1x2xf32, #tpu.memory_space<vmem>>, %arg16: memref<16x128xf32, #tpu.memory_space<vmem>>, %arg17: memref<3x16x2xf32, #tpu.memory_space<vmem>>, %arg18: memref<128x128xf32, #tpu.memory_space<vmem>>) attributes {dimension_semantics = [#tpu.dimension_semantics<arbitrary>, #tpu.dimension_semantics<arbitrary>], iteration_bounds = array<i64: 3, 7>, scalar_prefetch = 0 : i64, scratch_operands = 3 : i64, tpu.core_type = #tpu.core_type<tc>, window_params = [{pipeline_mode = #tpu.pipeline_mode<synchronous>, transform_indices = @transform_0, window_bounds = array<i64: 16, 128>}, {pipeline_mode = #tpu.pipeline_mode<synchronous>, transform_indices = @transform_1, window_bounds = array<i64: 16, 128>}, {pipeline_mode = #tpu.pipeline_mode<synchronous>, transform_indices = @transform_2, window_bounds = array<i64: 128, 1>}, {pipeline_mode = #tpu.pipeline_mode<synchronous>, transform_indices = @transform_3, window_bounds = array<i64: 1, 128>}, {pipeline_mode = #tpu.pipeline_mode<synchronous>, transform_indices = @transform_4, window_bounds = array<i64: 1, 128>}, {pipeline_mode = #tpu.pipeline_mode<synchronous>, transform_indices = @transform_5, window_bounds = array<i64: 7, 128>}, {pipeline_mode = #tpu.pipeline_mode<synchronous>, transform_indices = @transform_6, window_bounds = array<i64: 2, 128>}, {transform_indices = @transform_7, window_bounds = array<i64: 1, 7, 16, 16>}, {transform_indices = @transform_8, window_bounds = array<i64: 1, 2, 16, 7>}, {transform_indices = @transform_9, window_bounds = array<i64: 1, 16, 12>}, {transform_indices = @transform_10, window_bounds = array<i64: 1, 16, 1>}, {pipeline_mode = #tpu.pipeline_mode<synchronous>, transform_indices = @transform_11, window_bounds = array<i64: 3, 16, 1>}, {pipeline_mode = #tpu.pipeline_mode<synchronous>, transform_indices = @transform_12, window_bounds = array<i64: 1, 1>}, {pipeline_mode = #tpu.pipeline_mode<synchronous>, transform_indices = @transform_13, window_bounds = array<i64: 1, 2>}]} {
    %c0_i32 = arith.constant 0 : i32
    %0 = arith.cmpi eq, %arg0, %c0_i32 : i32
    %c0_i32_0 = arith.constant 0 : i32
    %1 = arith.cmpi eq, %arg1, %c0_i32_0 : i32
    %2 = arith.andi %0, %1 : i1
    %3 = arith.extui %2 : i1 to i32
    %c0_i32_1 = arith.constant 0 : i32
    %4 = arith.cmpi ne, %3, %c0_i32_1 : i32
    scf.if %4 {
      %c0_71 = arith.constant 0 : index
      %c0_72 = arith.constant 0 : index
      %305 = vector.load %arg2[%c0_71, %c0_72] : memref<16x128xf32, #tpu.memory_space<vmem>>, vector<16x128xf32>
      %c0_73 = arith.constant 0 : index
      %c0_74 = arith.constant 0 : index
      %306 = vector.load %arg16[%c0_73, %c0_74] : memref<16x128xf32, #tpu.memory_space<vmem>>, vector<16x128xf32>
      tpu.vector_store %arg16[%c0_73, %c0_74], %305 {strides = array<i32>} : memref<16x128xf32, #tpu.memory_space<vmem>>, vector<16x128xf32>,
      %c0_75 = arith.constant 0 : index
      %c0_76 = arith.constant 0 : index
      %307 = vector.load %arg4[%c0_75, %c0_76] : memref<128x1xf32, #tpu.memory_space<vmem>>, vector<128x1xf32>
      %c0_77 = arith.constant 0 : index
      %c0_78 = arith.constant 0 : index
      %308 = vector.load %arg5[%c0_77, %c0_78] : memref<1x128xf32, #tpu.memory_space<vmem>>, vector<1x128xf32>
      %c0_79 = arith.constant 0 : index
      %c0_80 = arith.constant 0 : index
      %309 = vector.load %arg6[%c0_79, %c0_80] : memref<1x128xf32, #tpu.memory_space<vmem>>, vector<1x128xf32>
      %310 = vector.broadcast %307 : vector<128x1xf32> to vector<128x128xf32>
      %311 = vector.broadcast %308 : vector<1x128xf32> to vector<128x128xf32>
      %312 = arith.cmpf oeq, %310, %311 : vector<128x128xf32>
      %cst_81 = arith.constant 5.000000e-01 : f32
      %313 = vector.broadcast %cst_81 : f32 to vector<1x128xf32>
      %314 = arith.cmpf ogt, %309, %313 : vector<1x128xf32>
      %315 = vector.broadcast %314 : vector<1x128xi1> to vector<128x128xi1>
      %316 = arith.andi %312, %315 : vector<128x128xi1>
      %cst_82 = arith.constant 0.000000e+00 : f32
      %cst_83 = arith.constant -1.000000e+30 : f32
      %317 = vector.broadcast %cst_82 : f32 to vector<128x128xf32>
      %318 = vector.broadcast %cst_83 : f32 to vector<128x128xf32>
      %319 = arith.select %316, %317, %318 : vector<128x128xi1>, vector<128x128xf32>
      %c0_84 = arith.constant 0 : index
      %c0_85 = arith.constant 0 : index
      %320 = vector.load %arg18[%c0_84, %c0_85] : memref<128x128xf32, #tpu.memory_space<vmem>>, vector<128x128xf32>
      tpu.vector_store %arg18[%c0_84, %c0_85], %319 {strides = array<i32>} : memref<128x128xf32, #tpu.memory_space<vmem>>, vector<128x128xf32>,
      %cst_86 = arith.constant 0.000000e+00 : f32
      %321 = vector.broadcast %cst_86 : f32 to vector<1x2xf32>
      %c0_87 = arith.constant 0 : index
      %c0_88 = arith.constant 0 : index
      %322 = vector.load %arg15[%c0_87, %c0_88] : memref<1x2xf32, #tpu.memory_space<vmem>>, vector<1x2xf32>
      tpu.vector_store %arg15[%c0_87, %c0_88], %321 {strides = array<i32>} : memref<1x2xf32, #tpu.memory_space<vmem>>, vector<1x2xf32>,
    } else {
    }
    %c0 = arith.constant 0 : index
    %c0_2 = arith.constant 0 : index
    %5 = vector.load %arg7[%c0, %c0_2] : memref<7x128xf32, #tpu.memory_space<vmem>>, vector<7x128xf32>
    %6 = vector.extract_strided_slice %5 {offsets = [0, 0], sizes = [1, 128], strides = [1, 1]} : vector<7x128xf32> to vector<1x128xf32>
    %7 = vector.shape_cast %6 : vector<1x128xf32> to vector<1x128xf32>
    %8 = vector.broadcast %7 : vector<1x128xf32> to vector<16x128xf32>
    %9 = vector.extract_strided_slice %5 {offsets = [1, 0], sizes = [1, 128], strides = [1, 1]} : vector<7x128xf32> to vector<1x128xf32>
    %10 = vector.shape_cast %9 : vector<1x128xf32> to vector<1x128xf32>
    %11 = vector.broadcast %10 : vector<1x128xf32> to vector<16x128xf32>
    %12 = vector.extract_strided_slice %5 {offsets = [2, 0], sizes = [1, 128], strides = [1, 1]} : vector<7x128xf32> to vector<1x128xf32>
    %13 = vector.shape_cast %12 : vector<1x128xf32> to vector<1x128xf32>
    %14 = vector.broadcast %13 : vector<1x128xf32> to vector<16x128xf32>
    %15 = vector.extract_strided_slice %5 {offsets = [3, 0], sizes = [1, 128], strides = [1, 1]} : vector<7x128xf32> to vector<1x128xf32>
    %16 = vector.shape_cast %15 : vector<1x128xf32> to vector<1x128xf32>
    %17 = vector.broadcast %16 : vector<1x128xf32> to vector<16x128xf32>
    %18 = vector.extract_strided_slice %5 {offsets = [4, 0], sizes = [1, 128], strides = [1, 1]} : vector<7x128xf32> to vector<1x128xf32>
    %19 = vector.shape_cast %18 : vector<1x128xf32> to vector<1x128xf32>
    %20 = vector.broadcast %19 : vector<1x128xf32> to vector<16x128xf32>
    %21 = vector.extract_strided_slice %5 {offsets = [5, 0], sizes = [1, 128], strides = [1, 1]} : vector<7x128xf32> to vector<1x128xf32>
    %22 = vector.shape_cast %21 : vector<1x128xf32> to vector<1x128xf32>
    %23 = vector.broadcast %22 : vector<1x128xf32> to vector<16x128xf32>
    %24 = vector.extract_strided_slice %5 {offsets = [6, 0], sizes = [1, 128], strides = [1, 1]} : vector<7x128xf32> to vector<1x128xf32>
    %25 = vector.shape_cast %24 : vector<1x128xf32> to vector<1x128xf32>
    %26 = vector.broadcast %25 : vector<1x128xf32> to vector<16x128xf32>
    %c0_3 = arith.constant 0 : index
    %c0_4 = arith.constant 0 : index
    %27 = vector.load %arg16[%c0_3, %c0_4] : memref<16x128xf32, #tpu.memory_space<vmem>>, vector<16x128xf32>
    %c0_5 = arith.constant 0 : index
    %c0_6 = arith.constant 0 : index
    %28 = vector.load %arg3[%c0_5, %c0_6] : memref<16x128xf32, #tpu.memory_space<vmem>>, vector<16x128xf32>
    %c0_7 = arith.constant 0 : index
    %c0_8 = arith.constant 0 : index
    %29 = vector.load %arg18[%c0_7, %c0_8] : memref<128x128xf32, #tpu.memory_space<vmem>>, vector<128x128xf32>
    %c0_9 = arith.constant 0 : index
    %c0_10 = arith.constant 0 : index
    %c0_11 = arith.constant 0 : index
    %c0_12 = arith.constant 0 : index
    %30 = vector.load %arg9[%c0_9, %c0_10, %c0_11, %c0_12] : memref<1x7x16x16xf32, #tpu.memory_space<vmem>>, vector<1x7x16x16xf32>
    %31 = vector.shape_cast %30 : vector<1x7x16x16xf32> to vector<7x16x16xf32>
    %c0_13 = arith.constant 0 : index
    %c0_14 = arith.constant 0 : index
    %c0_15 = arith.constant 0 : index
    %c0_16 = arith.constant 0 : index
    %32 = vector.load %arg10[%c0_13, %c0_14, %c0_15, %c0_16] : memref<1x2x16x7xf32, #tpu.memory_space<vmem>>, vector<1x2x16x7xf32>
    %33 = vector.shape_cast %32 : vector<1x2x16x7xf32> to vector<2x16x7xf32>
    %c0_17 = arith.constant 0 : index
    %c0_18 = arith.constant 0 : index
    %c0_19 = arith.constant 0 : index
    %34 = vector.load %arg11[%c0_17, %c0_18, %c0_19] : memref<1x16x12xf32, #tpu.memory_space<vmem>>, vector<1x16x12xf32>
    %35 = vector.shape_cast %34 : vector<1x16x12xf32> to vector<16x12xf32>
    %36 = arith.addf %27, %28 : vector<16x128xf32>
    %37 = vector.extract_strided_slice %35 {offsets = [0, 0], sizes = [16, 1], strides = [1, 1]} : vector<16x12xf32> to vector<16x1xf32>
    %38 = vector.extract_strided_slice %35 {offsets = [0, 2], sizes = [16, 1], strides = [1, 1]} : vector<16x12xf32> to vector<16x1xf32>
    %cst = arith.constant dense<0.000000e+00> : vector<128xf32>
    %39 = vector.multi_reduction <add>, %36, %cst [0] : vector<16x128xf32> to vector<128xf32>
    %40 = vector.shape_cast %39 : vector<128xf32> to vector<1x128xf32>
    %cst_20 = arith.constant 1.600000e+01 : f32
    %41 = vector.broadcast %cst_20 : f32 to vector<1x128xf32>
    %42 = arith.divf %40, %41 : vector<1x128xf32>
    %43 = vector.broadcast %42 : vector<1x128xf32> to vector<16x128xf32>
    %44 = arith.subf %36, %43 : vector<16x128xf32>
    %45 = arith.mulf %44, %44 : vector<16x128xf32>
    %cst_21 = arith.constant dense<0.000000e+00> : vector<128xf32>
    %46 = vector.multi_reduction <add>, %45, %cst_21 [0] : vector<16x128xf32> to vector<128xf32>
    %47 = vector.shape_cast %46 : vector<128xf32> to vector<1x128xf32>
    %cst_22 = arith.constant 1.600000e+01 : f32
    %48 = vector.broadcast %cst_22 : f32 to vector<1x128xf32>
    %49 = arith.divf %47, %48 : vector<1x128xf32>
    %50 = vector.broadcast %42 : vector<1x128xf32> to vector<16x128xf32>
    %51 = arith.subf %36, %50 : vector<16x128xf32>
    %cst_23 = arith.constant 9.99999974E-6 : f32
    %52 = vector.broadcast %cst_23 : f32 to vector<1x128xf32>
    %53 = arith.addf %49, %52 : vector<1x128xf32>
    %54 = math.rsqrt %53 : vector<1x128xf32>
    %55 = vector.broadcast %54 : vector<1x128xf32> to vector<16x128xf32>
    %56 = arith.mulf %51, %55 : vector<16x128xf32>
    %57 = vector.broadcast %37 : vector<16x1xf32> to vector<16x128xf32>
    %58 = arith.mulf %56, %57 : vector<16x128xf32>
    %59 = vector.broadcast %38 : vector<16x1xf32> to vector<16x128xf32>
    %60 = arith.addf %58, %59 : vector<16x128xf32>
    %61 = vector.extract_strided_slice %33 {offsets = [0, 0, 0], sizes = [1, 16, 7], strides = [1, 1, 1]} : vector<2x16x7xf32> to vector<1x16x7xf32>
    %62 = vector.shape_cast %61 : vector<1x16x7xf32> to vector<16x7xf32>
    %cst_24 = arith.constant 0.000000e+00 : f32
    %63 = vector.broadcast %cst_24 : f32 to vector<16x128xf32>
    %c3_i32 = arith.constant 3 : i32
    %64 = tpu.dynamic_rotate %60 by %c3_i32 dim 1 : vector<16x128xf32>, i32 -> vector<16x128xf32>
    %65 = arith.mulf %64, %8 : vector<16x128xf32>
    %66 = vector.extract_strided_slice %62 {offsets = [0, 0], sizes = [16, 1], strides = [1, 1]} : vector<16x7xf32> to vector<16x1xf32>
    %67 = vector.broadcast %66 : vector<16x1xf32> to vector<16x128xf32>
    %68 = arith.mulf %67, %65 : vector<16x128xf32>
    %69 = arith.addf %63, %68 : vector<16x128xf32>
    %c2_i32 = arith.constant 2 : i32
    %70 = tpu.dynamic_rotate %60 by %c2_i32 dim 1 : vector<16x128xf32>, i32 -> vector<16x128xf32>
    %71 = arith.mulf %70, %11 : vector<16x128xf32>
    %72 = vector.extract_strided_slice %62 {offsets = [0, 1], sizes = [16, 1], strides = [1, 1]} : vector<16x7xf32> to vector<16x1xf32>
    %73 = vector.broadcast %72 : vector<16x1xf32> to vector<16x128xf32>
    %74 = arith.mulf %73, %71 : vector<16x128xf32>
    %75 = arith.addf %69, %74 : vector<16x128xf32>
    %c1_i32 = arith.constant 1 : i32
    %76 = tpu.dynamic_rotate %60 by %c1_i32 dim 1 : vector<16x128xf32>, i32 -> vector<16x128xf32>
    %77 = arith.mulf %76, %14 : vector<16x128xf32>
    %78 = vector.extract_strided_slice %62 {offsets = [0, 2], sizes = [16, 1], strides = [1, 1]} : vector<16x7xf32> to vector<16x1xf32>
    %79 = vector.broadcast %78 : vector<16x1xf32> to vector<16x128xf32>
    %80 = arith.mulf %79, %77 : vector<16x128xf32>
    %81 = arith.addf %75, %80 : vector<16x128xf32>
    %c0_i32_25 = arith.constant 0 : i32
    %82 = tpu.dynamic_rotate %60 by %c0_i32_25 dim 1 : vector<16x128xf32>, i32 -> vector<16x128xf32>
    %83 = arith.mulf %82, %17 : vector<16x128xf32>
    %84 = vector.extract_strided_slice %62 {offsets = [0, 3], sizes = [16, 1], strides = [1, 1]} : vector<16x7xf32> to vector<16x1xf32>
    %85 = vector.broadcast %84 : vector<16x1xf32> to vector<16x128xf32>
    %86 = arith.mulf %85, %83 : vector<16x128xf32>
    %87 = arith.addf %81, %86 : vector<16x128xf32>
    %c127_i32 = arith.constant 127 : i32
    %88 = tpu.dynamic_rotate %60 by %c127_i32 dim 1 : vector<16x128xf32>, i32 -> vector<16x128xf32>
    %89 = arith.mulf %88, %20 : vector<16x128xf32>
    %90 = vector.extract_strided_slice %62 {offsets = [0, 4], sizes = [16, 1], strides = [1, 1]} : vector<16x7xf32> to vector<16x1xf32>
    %91 = vector.broadcast %90 : vector<16x1xf32> to vector<16x128xf32>
    %92 = arith.mulf %91, %89 : vector<16x128xf32>
    %93 = arith.addf %87, %92 : vector<16x128xf32>
    %c126_i32 = arith.constant 126 : i32
    %94 = tpu.dynamic_rotate %60 by %c126_i32 dim 1 : vector<16x128xf32>, i32 -> vector<16x128xf32>
    %95 = arith.mulf %94, %23 : vector<16x128xf32>
    %96 = vector.extract_strided_slice %62 {offsets = [0, 5], sizes = [16, 1], strides = [1, 1]} : vector<16x7xf32> to vector<16x1xf32>
    %97 = vector.broadcast %96 : vector<16x1xf32> to vector<16x128xf32>
    %98 = arith.mulf %97, %95 : vector<16x128xf32>
    %99 = arith.addf %93, %98 : vector<16x128xf32>
    %c125_i32 = arith.constant 125 : i32
    %100 = tpu.dynamic_rotate %60 by %c125_i32 dim 1 : vector<16x128xf32>, i32 -> vector<16x128xf32>
    %101 = arith.mulf %100, %26 : vector<16x128xf32>
    %102 = vector.extract_strided_slice %62 {offsets = [0, 6], sizes = [16, 1], strides = [1, 1]} : vector<16x7xf32> to vector<16x1xf32>
    %103 = vector.broadcast %102 : vector<16x1xf32> to vector<16x128xf32>
    %104 = arith.mulf %103, %101 : vector<16x128xf32>
    %105 = arith.addf %99, %104 : vector<16x128xf32>
    %106 = vector.extract_strided_slice %31 {offsets = [0, 0, 0], sizes = [1, 16, 16], strides = [1, 1, 1]} : vector<7x16x16xf32> to vector<1x16x16xf32>
    %107 = vector.shape_cast %106 : vector<1x16x16xf32> to vector<16x16xf32>
    %cst_26 = arith.constant dense<0.000000e+00> : vector<16x128xf32>
    %108 = tpu.matmul %107, %105, %cst_26 {dimension_numbers = #tpu.dot_dimension_numbers<[1], [0], [0], [1], [0, 0, 1, 1], [], []>} : vector<16x16xf32>, vector<16x128xf32>, vector<16x128xf32> -> vector<16x128xf32>
    %109 = vector.extract_strided_slice %35 {offsets = [0, 4], sizes = [16, 1], strides = [1, 1]} : vector<16x12xf32> to vector<16x1xf32>
    %110 = vector.broadcast %109 : vector<16x1xf32> to vector<16x128xf32>
    %111 = arith.addf %108, %110 : vector<16x128xf32>
    %cst_27 = arith.constant 0.000000e+00 : f32
    %112 = vector.broadcast %cst_27 : f32 to vector<16x128xf32>
    %113 = arith.maximumf %111, %112 : vector<16x128xf32>
    %114 = arith.addf %113, %36 : vector<16x128xf32>
    %115 = vector.extract_strided_slice %35 {offsets = [0, 1], sizes = [16, 1], strides = [1, 1]} : vector<16x12xf32> to vector<16x1xf32>
    %116 = vector.extract_strided_slice %35 {offsets = [0, 3], sizes = [16, 1], strides = [1, 1]} : vector<16x12xf32> to vector<16x1xf32>
    %cst_28 = arith.constant dense<0.000000e+00> : vector<128xf32>
    %117 = vector.multi_reduction <add>, %114, %cst_28 [0] : vector<16x128xf32> to vector<128xf32>
    %118 = vector.shape_cast %117 : vector<128xf32> to vector<1x128xf32>
    %cst_29 = arith.constant 1.600000e+01 : f32
    %119 = vector.broadcast %cst_29 : f32 to vector<1x128xf32>
    %120 = arith.divf %118, %119 : vector<1x128xf32>
    %121 = vector.broadcast %120 : vector<1x128xf32> to vector<16x128xf32>
    %122 = arith.subf %114, %121 : vector<16x128xf32>
    %123 = arith.mulf %122, %122 : vector<16x128xf32>
    %cst_30 = arith.constant dense<0.000000e+00> : vector<128xf32>
    %124 = vector.multi_reduction <add>, %123, %cst_30 [0] : vector<16x128xf32> to vector<128xf32>
    %125 = vector.shape_cast %124 : vector<128xf32> to vector<1x128xf32>
    %cst_31 = arith.constant 1.600000e+01 : f32
    %126 = vector.broadcast %cst_31 : f32 to vector<1x128xf32>
    %127 = arith.divf %125, %126 : vector<1x128xf32>
    %128 = vector.broadcast %120 : vector<1x128xf32> to vector<16x128xf32>
    %129 = arith.subf %114, %128 : vector<16x128xf32>
    %cst_32 = arith.constant 9.99999974E-6 : f32
    %130 = vector.broadcast %cst_32 : f32 to vector<1x128xf32>
    %131 = arith.addf %127, %130 : vector<1x128xf32>
    %132 = math.rsqrt %131 : vector<1x128xf32>
    %133 = vector.broadcast %132 : vector<1x128xf32> to vector<16x128xf32>
    %134 = arith.mulf %129, %133 : vector<16x128xf32>
    %135 = vector.broadcast %115 : vector<16x1xf32> to vector<16x128xf32>
    %136 = arith.mulf %134, %135 : vector<16x128xf32>
    %137 = vector.broadcast %116 : vector<16x1xf32> to vector<16x128xf32>
    %138 = arith.addf %136, %137 : vector<16x128xf32>
    %139 = vector.extract_strided_slice %33 {offsets = [1, 0, 0], sizes = [1, 16, 7], strides = [1, 1, 1]} : vector<2x16x7xf32> to vector<1x16x7xf32>
    %140 = vector.shape_cast %139 : vector<1x16x7xf32> to vector<16x7xf32>
    %cst_33 = arith.constant 0.000000e+00 : f32
    %141 = vector.broadcast %cst_33 : f32 to vector<16x128xf32>
    %c3_i32_34 = arith.constant 3 : i32
    %142 = tpu.dynamic_rotate %138 by %c3_i32_34 dim 1 : vector<16x128xf32>, i32 -> vector<16x128xf32>
    %143 = arith.mulf %142, %8 : vector<16x128xf32>
    %144 = vector.extract_strided_slice %140 {offsets = [0, 0], sizes = [16, 1], strides = [1, 1]} : vector<16x7xf32> to vector<16x1xf32>
    %145 = vector.broadcast %144 : vector<16x1xf32> to vector<16x128xf32>
    %146 = arith.mulf %145, %143 : vector<16x128xf32>
    %147 = arith.addf %141, %146 : vector<16x128xf32>
    %c2_i32_35 = arith.constant 2 : i32
    %148 = tpu.dynamic_rotate %138 by %c2_i32_35 dim 1 : vector<16x128xf32>, i32 -> vector<16x128xf32>
    %149 = arith.mulf %148, %11 : vector<16x128xf32>
    %150 = vector.extract_strided_slice %140 {offsets = [0, 1], sizes = [16, 1], strides = [1, 1]} : vector<16x7xf32> to vector<16x1xf32>
    %151 = vector.broadcast %150 : vector<16x1xf32> to vector<16x128xf32>
    %152 = arith.mulf %151, %149 : vector<16x128xf32>
    %153 = arith.addf %147, %152 : vector<16x128xf32>
    %c1_i32_36 = arith.constant 1 : i32
    %154 = tpu.dynamic_rotate %138 by %c1_i32_36 dim 1 : vector<16x128xf32>, i32 -> vector<16x128xf32>
    %155 = arith.mulf %154, %14 : vector<16x128xf32>
    %156 = vector.extract_strided_slice %140 {offsets = [0, 2], sizes = [16, 1], strides = [1, 1]} : vector<16x7xf32> to vector<16x1xf32>
    %157 = vector.broadcast %156 : vector<16x1xf32> to vector<16x128xf32>
    %158 = arith.mulf %157, %155 : vector<16x128xf32>
    %159 = arith.addf %153, %158 : vector<16x128xf32>
    %c0_i32_37 = arith.constant 0 : i32
    %160 = tpu.dynamic_rotate %138 by %c0_i32_37 dim 1 : vector<16x128xf32>, i32 -> vector<16x128xf32>
    %161 = arith.mulf %160, %17 : vector<16x128xf32>
    %162 = vector.extract_strided_slice %140 {offsets = [0, 3], sizes = [16, 1], strides = [1, 1]} : vector<16x7xf32> to vector<16x1xf32>
    %163 = vector.broadcast %162 : vector<16x1xf32> to vector<16x128xf32>
    %164 = arith.mulf %163, %161 : vector<16x128xf32>
    %165 = arith.addf %159, %164 : vector<16x128xf32>
    %c127_i32_38 = arith.constant 127 : i32
    %166 = tpu.dynamic_rotate %138 by %c127_i32_38 dim 1 : vector<16x128xf32>, i32 -> vector<16x128xf32>
    %167 = arith.mulf %166, %20 : vector<16x128xf32>
    %168 = vector.extract_strided_slice %140 {offsets = [0, 4], sizes = [16, 1], strides = [1, 1]} : vector<16x7xf32> to vector<16x1xf32>
    %169 = vector.broadcast %168 : vector<16x1xf32> to vector<16x128xf32>
    %170 = arith.mulf %169, %167 : vector<16x128xf32>
    %171 = arith.addf %165, %170 : vector<16x128xf32>
    %c126_i32_39 = arith.constant 126 : i32
    %172 = tpu.dynamic_rotate %138 by %c126_i32_39 dim 1 : vector<16x128xf32>, i32 -> vector<16x128xf32>
    %173 = arith.mulf %172, %23 : vector<16x128xf32>
    %174 = vector.extract_strided_slice %140 {offsets = [0, 5], sizes = [16, 1], strides = [1, 1]} : vector<16x7xf32> to vector<16x1xf32>
    %175 = vector.broadcast %174 : vector<16x1xf32> to vector<16x128xf32>
    %176 = arith.mulf %175, %173 : vector<16x128xf32>
    %177 = arith.addf %171, %176 : vector<16x128xf32>
    %c125_i32_40 = arith.constant 125 : i32
    %178 = tpu.dynamic_rotate %138 by %c125_i32_40 dim 1 : vector<16x128xf32>, i32 -> vector<16x128xf32>
    %179 = arith.mulf %178, %26 : vector<16x128xf32>
    %180 = vector.extract_strided_slice %140 {offsets = [0, 6], sizes = [16, 1], strides = [1, 1]} : vector<16x7xf32> to vector<16x1xf32>
    %181 = vector.broadcast %180 : vector<16x1xf32> to vector<16x128xf32>
    %182 = arith.mulf %181, %179 : vector<16x128xf32>
    %183 = arith.addf %177, %182 : vector<16x128xf32>
    %184 = vector.extract_strided_slice %31 {offsets = [1, 0, 0], sizes = [1, 16, 16], strides = [1, 1, 1]} : vector<7x16x16xf32> to vector<1x16x16xf32>
    %185 = vector.shape_cast %184 : vector<1x16x16xf32> to vector<16x16xf32>
    %cst_41 = arith.constant dense<0.000000e+00> : vector<16x128xf32>
    %186 = tpu.matmul %185, %183, %cst_41 {dimension_numbers = #tpu.dot_dimension_numbers<[1], [0], [0], [1], [0, 0, 1, 1], [], []>} : vector<16x16xf32>, vector<16x128xf32>, vector<16x128xf32> -> vector<16x128xf32>
    %187 = vector.extract_strided_slice %35 {offsets = [0, 5], sizes = [16, 1], strides = [1, 1]} : vector<16x12xf32> to vector<16x1xf32>
    %188 = vector.broadcast %187 : vector<16x1xf32> to vector<16x128xf32>
    %189 = arith.addf %186, %188 : vector<16x128xf32>
    %cst_42 = arith.constant 0.000000e+00 : f32
    %190 = vector.broadcast %cst_42 : f32 to vector<16x128xf32>
    %191 = arith.maximumf %189, %190 : vector<16x128xf32>
    %192 = arith.addf %191, %114 : vector<16x128xf32>
    %193 = vector.extract_strided_slice %35 {offsets = [0, 6], sizes = [16, 1], strides = [1, 1]} : vector<16x12xf32> to vector<16x1xf32>
    %194 = vector.extract_strided_slice %35 {offsets = [0, 7], sizes = [16, 1], strides = [1, 1]} : vector<16x12xf32> to vector<16x1xf32>
    %cst_43 = arith.constant dense<0.000000e+00> : vector<128xf32>
    %195 = vector.multi_reduction <add>, %192, %cst_43 [0] : vector<16x128xf32> to vector<128xf32>
    %196 = vector.shape_cast %195 : vector<128xf32> to vector<1x128xf32>
    %cst_44 = arith.constant 1.600000e+01 : f32
    %197 = vector.broadcast %cst_44 : f32 to vector<1x128xf32>
    %198 = arith.divf %196, %197 : vector<1x128xf32>
    %199 = vector.broadcast %198 : vector<1x128xf32> to vector<16x128xf32>
    %200 = arith.subf %192, %199 : vector<16x128xf32>
    %201 = arith.mulf %200, %200 : vector<16x128xf32>
    %cst_45 = arith.constant dense<0.000000e+00> : vector<128xf32>
    %202 = vector.multi_reduction <add>, %201, %cst_45 [0] : vector<16x128xf32> to vector<128xf32>
    %203 = vector.shape_cast %202 : vector<128xf32> to vector<1x128xf32>
    %cst_46 = arith.constant 1.600000e+01 : f32
    %204 = vector.broadcast %cst_46 : f32 to vector<1x128xf32>
    %205 = arith.divf %203, %204 : vector<1x128xf32>
    %206 = vector.broadcast %198 : vector<1x128xf32> to vector<16x128xf32>
    %207 = arith.subf %192, %206 : vector<16x128xf32>
    %cst_47 = arith.constant 9.99999974E-6 : f32
    %208 = vector.broadcast %cst_47 : f32 to vector<1x128xf32>
    %209 = arith.addf %205, %208 : vector<1x128xf32>
    %210 = math.rsqrt %209 : vector<1x128xf32>
    %211 = vector.broadcast %210 : vector<1x128xf32> to vector<16x128xf32>
    %212 = arith.mulf %207, %211 : vector<16x128xf32>
    %213 = vector.broadcast %193 : vector<16x1xf32> to vector<16x128xf32>
    %214 = arith.mulf %212, %213 : vector<16x128xf32>
    %215 = vector.broadcast %194 : vector<16x1xf32> to vector<16x128xf32>
    %216 = arith.addf %214, %215 : vector<16x128xf32>
    %217 = vector.extract_strided_slice %31 {offsets = [4, 0, 0], sizes = [1, 16, 16], strides = [1, 1, 1]} : vector<7x16x16xf32> to vector<1x16x16xf32>
    %218 = vector.shape_cast %217 : vector<1x16x16xf32> to vector<16x16xf32>
    %cst_48 = arith.constant dense<0.000000e+00> : vector<16x128xf32>
    %219 = tpu.matmul %218, %216, %cst_48 {dimension_numbers = #tpu.dot_dimension_numbers<[1], [0], [0], [1], [0, 0, 1, 1], [], []>} : vector<16x16xf32>, vector<16x128xf32>, vector<16x128xf32> -> vector<16x128xf32>
    %cst_49 = arith.constant 0.353553385 : f32
    %220 = vector.broadcast %cst_49 : f32 to vector<16x128xf32>
    %221 = arith.mulf %219, %220 : vector<16x128xf32>
    %222 = vector.extract_strided_slice %31 {offsets = [2, 0, 0], sizes = [1, 16, 16], strides = [1, 1, 1]} : vector<7x16x16xf32> to vector<1x16x16xf32>
    %223 = vector.shape_cast %222 : vector<1x16x16xf32> to vector<16x16xf32>
    %cst_50 = arith.constant dense<0.000000e+00> : vector<16x128xf32>
    %224 = tpu.matmul %223, %216, %cst_50 {dimension_numbers = #tpu.dot_dimension_numbers<[1], [0], [0], [1], [0, 0, 1, 1], [], []>} : vector<16x16xf32>, vector<16x128xf32>, vector<16x128xf32> -> vector<16x128xf32>
    %225 = vector.extract_strided_slice %31 {offsets = [3, 0, 0], sizes = [1, 16, 16], strides = [1, 1, 1]} : vector<7x16x16xf32> to vector<1x16x16xf32>
    %226 = vector.shape_cast %225 : vector<1x16x16xf32> to vector<16x16xf32>
    %cst_51 = arith.constant dense<0.000000e+00> : vector<16x128xf32>
    %227 = tpu.matmul %226, %216, %cst_51 {dimension_numbers = #tpu.dot_dimension_numbers<[1], [0], [0], [1], [0, 0, 1, 1], [], []>} : vector<16x16xf32>, vector<16x128xf32>, vector<16x128xf32> -> vector<16x128xf32>
    %228 = vector.extract_strided_slice %221 {offsets = [0, 0], sizes = [8, 128], strides = [1, 1]} : vector<16x128xf32> to vector<8x128xf32>
    %229 = vector.extract_strided_slice %224 {offsets = [0, 0], sizes = [8, 128], strides = [1, 1]} : vector<16x128xf32> to vector<8x128xf32>
    %230 = vector.extract_strided_slice %227 {offsets = [0, 0], sizes = [8, 128], strides = [1, 1]} : vector<16x128xf32> to vector<8x128xf32>
    %cst_52 = arith.constant dense<0.000000e+00> : vector<128x128xf32>
    %231 = tpu.matmul %228, %229, %cst_52 {dimension_numbers = #tpu.dot_dimension_numbers<[0], [0], [1], [1], [0, 1, 1, 1], [], []>} : vector<8x128xf32>, vector<8x128xf32>, vector<128x128xf32> -> vector<128x128xf32>
    %232 = arith.addf %231, %29 : vector<128x128xf32>
    %cst_53 = arith.constant dense<0xFF800000> : vector<128xf32>
    %233 = vector.multi_reduction <maximumf>, %232, %cst_53 [1] : vector<128x128xf32> to vector<128xf32>
    %234 = vector.shape_cast %233 : vector<128xf32> to vector<128x1xf32>
    %235 = vector.broadcast %234 : vector<128x1xf32> to vector<128x128xf32>
    %236 = arith.subf %232, %235 : vector<128x128xf32>
    %237 = math.exp %236 : vector<128x128xf32>
    %cst_54 = arith.constant dense<0.000000e+00> : vector<128xf32>
    %238 = vector.multi_reduction <add>, %237, %cst_54 [1] : vector<128x128xf32> to vector<128xf32>
    %239 = vector.shape_cast %238 : vector<128xf32> to vector<128x1xf32>
    %240 = tpu.reciprocal %239 {approx = true} : vector<128x1xf32> -> vector<128x1xf32>
    %241 = vector.broadcast %240 : vector<128x1xf32> to vector<128x128xf32>
    %242 = arith.mulf %237, %241 : vector<128x128xf32>
    %cst_55 = arith.constant dense<0.000000e+00> : vector<8x128xf32>
    %243 = tpu.matmul %230, %242, %cst_55 {dimension_numbers = #tpu.dot_dimension_numbers<[1], [1], [0], [0], [0, 0, 1, 0], [], []>} : vector<8x128xf32>, vector<128x128xf32>, vector<8x128xf32> -> vector<8x128xf32>
    %244 = vector.extract_strided_slice %221 {offsets = [8, 0], sizes = [8, 128], strides = [1, 1]} : vector<16x128xf32> to vector<8x128xf32>
    %245 = vector.extract_strided_slice %224 {offsets = [8, 0], sizes = [8, 128], strides = [1, 1]} : vector<16x128xf32> to vector<8x128xf32>
    %246 = vector.extract_strided_slice %227 {offsets = [8, 0], sizes = [8, 128], strides = [1, 1]} : vector<16x128xf32> to vector<8x128xf32>
    %cst_56 = arith.constant dense<0.000000e+00> : vector<128x128xf32>
    %247 = tpu.matmul %244, %245, %cst_56 {dimension_numbers = #tpu.dot_dimension_numbers<[0], [0], [1], [1], [0, 1, 1, 1], [], []>} : vector<8x128xf32>, vector<8x128xf32>, vector<128x128xf32> -> vector<128x128xf32>
    %248 = arith.addf %247, %29 : vector<128x128xf32>
    %cst_57 = arith.constant dense<0xFF800000> : vector<128xf32>
    %249 = vector.multi_reduction <maximumf>, %248, %cst_57 [1] : vector<128x128xf32> to vector<128xf32>
    %250 = vector.shape_cast %249 : vector<128xf32> to vector<128x1xf32>
    %251 = vector.broadcast %250 : vector<128x1xf32> to vector<128x128xf32>
    %252 = arith.subf %248, %251 : vector<128x128xf32>
    %253 = math.exp %252 : vector<128x128xf32>
    %cst_58 = arith.constant dense<0.000000e+00> : vector<128xf32>
    %254 = vector.multi_reduction <add>, %253, %cst_58 [1] : vector<128x128xf32> to vector<128xf32>
    %255 = vector.shape_cast %254 : vector<128xf32> to vector<128x1xf32>
    %256 = tpu.reciprocal %255 {approx = true} : vector<128x1xf32> -> vector<128x1xf32>
    %257 = vector.broadcast %256 : vector<128x1xf32> to vector<128x128xf32>
    %258 = arith.mulf %253, %257 : vector<128x128xf32>
    %cst_59 = arith.constant dense<0.000000e+00> : vector<8x128xf32>
    %259 = tpu.matmul %246, %258, %cst_59 {dimension_numbers = #tpu.dot_dimension_numbers<[1], [1], [0], [0], [0, 0, 1, 0], [], []>} : vector<8x128xf32>, vector<128x128xf32>, vector<8x128xf32> -> vector<8x128xf32>
    %260 = tpu.concatenate %243, %259 in 0 : vector<8x128xf32>, vector<8x128xf32> -> vector<16x128xf32>
    %261 = arith.addf %260, %192 : vector<16x128xf32>
    %262 = vector.extract_strided_slice %35 {offsets = [0, 8], sizes = [16, 1], strides = [1, 1]} : vector<16x12xf32> to vector<16x1xf32>
    %263 = vector.extract_strided_slice %35 {offsets = [0, 9], sizes = [16, 1], strides = [1, 1]} : vector<16x12xf32> to vector<16x1xf32>
    %cst_60 = arith.constant dense<0.000000e+00> : vector<128xf32>
    %264 = vector.multi_reduction <add>, %261, %cst_60 [0] : vector<16x128xf32> to vector<128xf32>
    %265 = vector.shape_cast %264 : vector<128xf32> to vector<1x128xf32>
    %cst_61 = arith.constant 1.600000e+01 : f32
    %266 = vector.broadcast %cst_61 : f32 to vector<1x128xf32>
    %267 = arith.divf %265, %266 : vector<1x128xf32>
    %268 = vector.broadcast %267 : vector<1x128xf32> to vector<16x128xf32>
    %269 = arith.subf %261, %268 : vector<16x128xf32>
    %270 = arith.mulf %269, %269 : vector<16x128xf32>
    %cst_62 = arith.constant dense<0.000000e+00> : vector<128xf32>
    %271 = vector.multi_reduction <add>, %270, %cst_62 [0] : vector<16x128xf32> to vector<128xf32>
    %272 = vector.shape_cast %271 : vector<128xf32> to vector<1x128xf32>
    %cst_63 = arith.constant 1.600000e+01 : f32
    %273 = vector.broadcast %cst_63 : f32 to vector<1x128xf32>
    %274 = arith.divf %272, %273 : vector<1x128xf32>
    %275 = vector.broadcast %267 : vector<1x128xf32> to vector<16x128xf32>
    %276 = arith.subf %261, %275 : vector<16x128xf32>
    %cst_64 = arith.constant 9.99999974E-6 : f32
    %277 = vector.broadcast %cst_64 : f32 to vector<1x128xf32>
    %278 = arith.addf %274, %277 : vector<1x128xf32>
    %279 = math.rsqrt %278 : vector<1x128xf32>
    %280 = vector.broadcast %279 : vector<1x128xf32> to vector<16x128xf32>
    %281 = arith.mulf %276, %280 : vector<16x128xf32>
    %282 = vector.broadcast %262 : vector<16x1xf32> to vector<16x128xf32>
    %283 = arith.mulf %281, %282 : vector<16x128xf32>
    %284 = vector.broadcast %263 : vector<16x1xf32> to vector<16x128xf32>
    %285 = arith.addf %283, %284 : vector<16x128xf32>
    %286 = vector.extract_strided_slice %31 {offsets = [5, 0, 0], sizes = [1, 16, 16], strides = [1, 1, 1]} : vector<7x16x16xf32> to vector<1x16x16xf32>
    %287 = vector.shape_cast %286 : vector<1x16x16xf32> to vector<16x16xf32>
    %cst_65 = arith.constant dense<0.000000e+00> : vector<16x128xf32>
    %288 = tpu.matmul %287, %285, %cst_65 {dimension_numbers = #tpu.dot_dimension_numbers<[1], [0], [0], [1], [0, 0, 1, 1], [], []>} : vector<16x16xf32>, vector<16x128xf32>, vector<16x128xf32> -> vector<16x128xf32>
    %289 = vector.extract_strided_slice %35 {offsets = [0, 10], sizes = [16, 1], strides = [1, 1]} : vector<16x12xf32> to vector<16x1xf32>
    %290 = vector.broadcast %289 : vector<16x1xf32> to vector<16x128xf32>
    %291 = arith.addf %288, %290 : vector<16x128xf32>
    %cst_66 = arith.constant 0.000000e+00 : f32
    %292 = vector.broadcast %cst_66 : f32 to vector<16x128xf32>
    %293 = arith.maximumf %291, %292 : vector<16x128xf32>
    %294 = vector.extract_strided_slice %31 {offsets = [6, 0, 0], sizes = [1, 16, 16], strides = [1, 1, 1]} : vector<7x16x16xf32> to vector<1x16x16xf32>
    %295 = vector.shape_cast %294 : vector<1x16x16xf32> to vector<16x16xf32>
    %cst_67 = arith.constant dense<0.000000e+00> : vector<16x128xf32>
    %296 = tpu.matmul %295, %293, %cst_67 {dimension_numbers = #tpu.dot_dimension_numbers<[1], [0], [0], [1], [0, 0, 1, 1], [], []>} : vector<16x16xf32>, vector<16x128xf32>, vector<16x128xf32> -> vector<16x128xf32>
    %297 = vector.extract_strided_slice %35 {offsets = [0, 11], sizes = [16, 1], strides = [1, 1]} : vector<16x12xf32> to vector<16x1xf32>
    %298 = vector.broadcast %297 : vector<16x1xf32> to vector<16x128xf32>
    %299 = arith.addf %296, %298 : vector<16x128xf32>
    %300 = arith.addf %299, %261 : vector<16x128xf32>
    %c0_68 = arith.constant 0 : index
    %c0_69 = arith.constant 0 : index
    %301 = vector.load %arg16[%c0_68, %c0_69] : memref<16x128xf32, #tpu.memory_space<vmem>>, vector<16x128xf32>
    tpu.vector_store %arg16[%c0_68, %c0_69], %300 {strides = array<i32>} : memref<16x128xf32, #tpu.memory_space<vmem>>, vector<16x128xf32>,
    %c6_i32 = arith.constant 6 : i32
    %302 = arith.cmpi eq, %arg1, %c6_i32 : i32
    %303 = arith.extui %302 : i1 to i32
    %c0_i32_70 = arith.constant 0 : i32
    %304 = arith.cmpi ne, %303, %c0_i32_70 : i32
    scf.if %304 {
      %c0_71 = arith.constant 0 : index
      %c0_72 = arith.constant 0 : index
      %c0_73 = arith.constant 0 : index
      %305 = vector.load %arg12[%c0_71, %c0_72, %c0_73] : memref<1x16x1xf32, #tpu.memory_space<vmem>>, vector<1x16x1xf32>
      %306 = vector.shape_cast %305 : vector<1x16x1xf32> to vector<16x1xf32>
      %307 = vector.broadcast %306 : vector<16x1xf32> to vector<16x128xf32>
      %308 = arith.mulf %307, %300 : vector<16x128xf32>
      %cst_74 = arith.constant dense<0.000000e+00> : vector<128xf32>
      %309 = vector.multi_reduction <add>, %308, %cst_74 [0] : vector<16x128xf32> to vector<128xf32>
      %310 = vector.shape_cast %309 : vector<128xf32> to vector<1x128xf32>
      %c0_75 = arith.constant 0 : index
      %c0_76 = arith.constant 0 : index
      %311 = vector.load %arg8[%c0_75, %c0_76] : memref<2x128xf32, #tpu.memory_space<vmem>>, vector<2x128xf32>
      %312 = vector.shape_cast %311 : vector<2x128xf32> to vector<2x128xf32>
      %313 = vector.broadcast %310 : vector<1x128xf32> to vector<2x128xf32>
      %314 = arith.addf %313, %312 : vector<2x128xf32>
      %cst_77 = arith.constant dense<0xFF800000> : vector<2xf32>
      %315 = vector.multi_reduction <maximumf>, %314, %cst_77 [1] : vector<2x128xf32> to vector<2xf32>
      %316 = vector.shape_cast %315 : vector<2xf32> to vector<2x1xf32>
      %317 = vector.broadcast %316 : vector<2x1xf32> to vector<2x128xf32>
      %318 = arith.subf %314, %317 : vector<2x128xf32>
      %319 = math.exp %318 : vector<2x128xf32>
      %cst_78 = arith.constant dense<0.000000e+00> : vector<2xf32>
      %320 = vector.multi_reduction <add>, %319, %cst_78 [1] : vector<2x128xf32> to vector<2xf32>
      %321 = vector.shape_cast %320 : vector<2xf32> to vector<2x1xf32>
      %322 = tpu.reciprocal %321 {approx = true} : vector<2x1xf32> -> vector<2x1xf32>
      %323 = vector.broadcast %322 : vector<2x1xf32> to vector<2x128xf32>
      %324 = arith.mulf %319, %323 : vector<2x128xf32>
      %cst_79 = arith.constant dense<0.000000e+00> : vector<16x2xf32>
      %325 = tpu.matmul %300, %324, %cst_79 {dimension_numbers = #tpu.dot_dimension_numbers<[1], [1], [0], [0], [0, 0, 1, 0], [], []>} : vector<16x128xf32>, vector<2x128xf32>, vector<16x2xf32> -> vector<16x2xf32>
      %326 = arith.index_cast %arg0 : i32 to index
      %c0_80 = arith.constant 0 : index
      %c0_81 = arith.constant 0 : index
      %327 = vector.load %arg17[%326, %c0_80, %c0_81] : memref<3x16x2xf32, #tpu.memory_space<vmem>>, vector<1x16x2xf32>
      %328 = vector.shape_cast %327 : vector<1x16x2xf32> to vector<16x2xf32>
      %329 = vector.shape_cast %325 : vector<16x2xf32> to vector<1x16x2xf32>
      tpu.vector_store %arg17[%326, %c0_80, %c0_81], %329 {strides = array<i32>} : memref<3x16x2xf32, #tpu.memory_space<vmem>>, vector<1x16x2xf32>,
      %c2_i32_82 = arith.constant 2 : i32
      %330 = arith.cmpi eq, %arg0, %c2_i32_82 : i32
      %331 = arith.extui %330 : i1 to i32
      %c0_i32_83 = arith.constant 0 : i32
      %332 = arith.cmpi ne, %331, %c0_i32_83 : i32
      scf.if %332 {
        %cst_84 = arith.constant 0.000000e+00 : f32
        %333 = vector.broadcast %cst_84 : f32 to vector<1x2xf32>
        %c0_85 = arith.constant 0 : index
        %c0_86 = arith.constant 0 : index
        %334 = vector.load %arg14[%c0_85, %c0_86] : memref<1x1xf32, #tpu.memory_space<vmem>>, vector<1x1xf32>
        %335 = vector.broadcast %334 : vector<1x1xf32> to vector<1x2xf32>
        %336 = arith.addf %333, %335 : vector<1x2xf32>
        %c0_87 = arith.constant 0 : index
        %c0_88 = arith.constant 0 : index
        %c0_89 = arith.constant 0 : index
        %337 = vector.load %arg17[%c0_87, %c0_88, %c0_89] : memref<3x16x2xf32, #tpu.memory_space<vmem>>, vector<1x16x2xf32>
        %338 = vector.shape_cast %337 : vector<1x16x2xf32> to vector<16x2xf32>
        %c1 = arith.constant 1 : index
        %c0_90 = arith.constant 0 : index
        %c0_91 = arith.constant 0 : index
        %339 = vector.load %arg17[%c1, %c0_90, %c0_91] : memref<3x16x2xf32, #tpu.memory_space<vmem>>, vector<1x16x2xf32>
        %340 = vector.shape_cast %339 : vector<1x16x2xf32> to vector<16x2xf32>
        %cst_92 = arith.constant 0.000000e+00 : f32
        %341 = vector.broadcast %cst_92 : f32 to vector<16x2xf32>
        %342 = arith.maximumf %338, %341 : vector<16x2xf32>
        %c0_93 = arith.constant 0 : index
        %c0_94 = arith.constant 0 : index
        %c0_95 = arith.constant 0 : index
        %343 = vector.load %arg13[%c0_93, %c0_94, %c0_95] : memref<3x16x1xf32, #tpu.memory_space<vmem>>, vector<1x16x1xf32>
        %344 = vector.shape_cast %343 : vector<1x16x1xf32> to vector<16x1xf32>
        %345 = vector.broadcast %344 : vector<16x1xf32> to vector<16x2xf32>
        %346 = arith.mulf %345, %342 : vector<16x2xf32>
        %cst_96 = arith.constant dense<0.000000e+00> : vector<2xf32>
        %347 = vector.multi_reduction <add>, %346, %cst_96 [0] : vector<16x2xf32> to vector<2xf32>
        %348 = vector.shape_cast %347 : vector<2xf32> to vector<1x2xf32>
        %349 = arith.addf %336, %348 : vector<1x2xf32>
        %cst_97 = arith.constant 0.000000e+00 : f32
        %350 = vector.broadcast %cst_97 : f32 to vector<16x2xf32>
        %351 = arith.maximumf %340, %350 : vector<16x2xf32>
        %c1_98 = arith.constant 1 : index
        %c0_99 = arith.constant 0 : index
        %c0_100 = arith.constant 0 : index
        %352 = vector.load %arg13[%c1_98, %c0_99, %c0_100] : memref<3x16x1xf32, #tpu.memory_space<vmem>>, vector<1x16x1xf32>
        %353 = vector.shape_cast %352 : vector<1x16x1xf32> to vector<16x1xf32>
        %354 = vector.broadcast %353 : vector<16x1xf32> to vector<16x2xf32>
        %355 = arith.mulf %354, %351 : vector<16x2xf32>
        %cst_101 = arith.constant dense<0.000000e+00> : vector<2xf32>
        %356 = vector.multi_reduction <add>, %355, %cst_101 [0] : vector<16x2xf32> to vector<2xf32>
        %357 = vector.shape_cast %356 : vector<2xf32> to vector<1x2xf32>
        %358 = arith.addf %349, %357 : vector<1x2xf32>
        %cst_102 = arith.constant 0.000000e+00 : f32
        %359 = vector.broadcast %cst_102 : f32 to vector<16x2xf32>
        %360 = arith.maximumf %325, %359 : vector<16x2xf32>
        %c2 = arith.constant 2 : index
        %c0_103 = arith.constant 0 : index
        %c0_104 = arith.constant 0 : index
        %361 = vector.load %arg13[%c2, %c0_103, %c0_104] : memref<3x16x1xf32, #tpu.memory_space<vmem>>, vector<1x16x1xf32>
        %362 = vector.shape_cast %361 : vector<1x16x1xf32> to vector<16x1xf32>
        %363 = vector.broadcast %362 : vector<16x1xf32> to vector<16x2xf32>
        %364 = arith.mulf %363, %360 : vector<16x2xf32>
        %cst_105 = arith.constant dense<0.000000e+00> : vector<2xf32>
        %365 = vector.multi_reduction <add>, %364, %cst_105 [0] : vector<16x2xf32> to vector<2xf32>
        %366 = vector.shape_cast %365 : vector<2xf32> to vector<1x2xf32>
        %367 = arith.addf %358, %366 : vector<1x2xf32>
        %c0_106 = arith.constant 0 : index
        %c0_107 = arith.constant 0 : index
        %368 = vector.load %arg15[%c0_106, %c0_107] : memref<1x2xf32, #tpu.memory_space<vmem>>, vector<1x2xf32>
        tpu.vector_store %arg15[%c0_106, %c0_107], %367 {strides = array<i32>} : memref<1x2xf32, #tpu.memory_space<vmem>>, vector<1x2xf32>,
      } else {
      }
    } else {
    }
    return
  }
  func.func @transform_0(%arg0: i32, %arg1: i32) -> (i32, i32) {
    %c0_i32 = arith.constant 0 : i32
    %c0_i32_0 = arith.constant 0 : i32
    %c0_i32_1 = arith.constant 0 : i32
    return %c0_i32, %c0_i32_0 : i32, i32
  }
  func.func @transform_1(%arg0: i32, %arg1: i32) -> (i32, i32) {
    %c0_i32 = arith.constant 0 : i32
    %c0_i32_0 = arith.constant 0 : i32
    %c0_i32_1 = arith.constant 0 : i32
    return %c0_i32, %c0_i32_0 : i32, i32
  }
  func.func @transform_2(%arg0: i32, %arg1: i32) -> (i32, i32) {
    %c0_i32 = arith.constant 0 : i32
    %c0_i32_0 = arith.constant 0 : i32
    %c0_i32_1 = arith.constant 0 : i32
    return %c0_i32, %c0_i32_0 : i32, i32
  }
  func.func @transform_3(%arg0: i32, %arg1: i32) -> (i32, i32) {
    %c0_i32 = arith.constant 0 : i32
    %c0_i32_0 = arith.constant 0 : i32
    %c0_i32_1 = arith.constant 0 : i32
    return %c0_i32, %c0_i32_0 : i32, i32
  }
  func.func @transform_4(%arg0: i32, %arg1: i32) -> (i32, i32) {
    %c0_i32 = arith.constant 0 : i32
    %c0_i32_0 = arith.constant 0 : i32
    %c0_i32_1 = arith.constant 0 : i32
    return %c0_i32, %c0_i32_0 : i32, i32
  }
  func.func @transform_5(%arg0: i32, %arg1: i32) -> (i32, i32) {
    %c0_i32 = arith.constant 0 : i32
    %c0_i32_0 = arith.constant 0 : i32
    %c0_i32_1 = arith.constant 0 : i32
    return %c0_i32, %c0_i32_0 : i32, i32
  }
  func.func @transform_6(%arg0: i32, %arg1: i32) -> (i32, i32) {
    %c0_i32 = arith.constant 0 : i32
    %c0_i32_0 = arith.constant 0 : i32
    %c0_i32_1 = arith.constant 0 : i32
    return %c0_i32, %c0_i32_0 : i32, i32
  }
  func.func @transform_7(%arg0: i32, %arg1: i32) -> (i32, i32, i32, i32) {
    %c0_i32 = arith.constant 0 : i32
    %c0_i32_0 = arith.constant 0 : i32
    %c0_i32_1 = arith.constant 0 : i32
    %c0_i32_2 = arith.constant 0 : i32
    return %arg1, %c0_i32, %c0_i32_0, %c0_i32_1 : i32, i32, i32, i32
  }
  func.func @transform_8(%arg0: i32, %arg1: i32) -> (i32, i32, i32, i32) {
    %c0_i32 = arith.constant 0 : i32
    %c0_i32_0 = arith.constant 0 : i32
    %c0_i32_1 = arith.constant 0 : i32
    %c0_i32_2 = arith.constant 0 : i32
    return %arg1, %c0_i32, %c0_i32_0, %c0_i32_1 : i32, i32, i32, i32
  }
  func.func @transform_9(%arg0: i32, %arg1: i32) -> (i32, i32, i32) {
    %c0_i32 = arith.constant 0 : i32
    %c0_i32_0 = arith.constant 0 : i32
    %c0_i32_1 = arith.constant 0 : i32
    return %arg1, %c0_i32, %c0_i32_0 : i32, i32, i32
  }
  func.func @transform_10(%arg0: i32, %arg1: i32) -> (i32, i32, i32) {
    %c0_i32 = arith.constant 0 : i32
    %c0_i32_0 = arith.constant 0 : i32
    %c0_i32_1 = arith.constant 0 : i32
    return %arg0, %c0_i32, %c0_i32_0 : i32, i32, i32
  }
  func.func @transform_11(%arg0: i32, %arg1: i32) -> (i32, i32, i32) {
    %c0_i32 = arith.constant 0 : i32
    %c0_i32_0 = arith.constant 0 : i32
    %c0_i32_1 = arith.constant 0 : i32
    %c0_i32_2 = arith.constant 0 : i32
    return %c0_i32, %c0_i32_0, %c0_i32_1 : i32, i32, i32
  }
  func.func @transform_12(%arg0: i32, %arg1: i32) -> (i32, i32) {
    %c0_i32 = arith.constant 0 : i32
    %c0_i32_0 = arith.constant 0 : i32
    %c0_i32_1 = arith.constant 0 : i32
    return %c0_i32, %c0_i32_0 : i32, i32
  }
  func.func @transform_13(%arg0: i32, %arg1: i32) -> (i32, i32) {
    %c0_i32 = arith.constant 0 : i32
    %c0_i32_0 = arith.constant 0 : i32
    %c0_i32_1 = arith.constant 0 : i32
    return %c0_i32, %c0_i32_0 : i32, i32
  }
}

</mosaic_0001>

<bundles_post_ra>
// kernel: qanet_v3_forward.4
= control target key start
LH: loop header
LB: loop body
LE: loop exit
PB: predicated region body
PF: predicated region fallthrough
CT: control target
= control target key end

     0   :  { %v2501_v0 = vmov 0   ;;  %vm3417_vm2 = vcmask 130048   ;;  %s3406_s3 = inlined_call_operand.vmem [shape: f32[16,1], index: 3, kind: input, shape index: {}]   ;;  %s3407_s0 = inlined_call_operand.vmem [shape: f32[2,16,128], index: 0, kind: input, shape index: {}]   ;;  %s3408_s1 = inlined_call_operand.vmem [shape: f32[16,1], index: 1, kind: input, shape index: {}]   ;;  %s3409_s4 = inlined_call_operand.<no memory space> [shape: f32[1,1], index: 4, kind: input, shape index: {}]   ;;  %s3410_s2 = inlined_call_operand.vmem [shape: f32[16,1], index: 2, kind: input, shape index: {}]   ;;  %s3411_s5 = inlined_call_operand.vmem [shape: f32[128,1], index: 5, kind: input, shape index: {}]   ;;  %s3412_s7 = inlined_call_operand.vmem [shape: f32[128,1], index: 7, kind: input, shape index: {}]   ;;  %s3413_s6 = inlined_call_operand.vmem [shape: f32[1,128], index: 6, kind: input, shape index: {}]   ;;  %s3414_s8 = inlined_call_operand.vmem [shape: f32[1,128], index: 8, kind: input, shape index: {}]   ;;  %s3415_s9 = inlined_call_operand.vmem [shape: f32[4,16,16], index: 9, kind: input, shape index: {}]   ;;  %s3416_s10 = inlined_call_operand.vmem [shape: f32[16,128], index: 10, kind: output, shape index: {}]  }
   0x1   :  { %2398 = vset.pattern.permute.xlu0 %v2501_v0  ;;  %v291_v1 = vld [vmem:[%s3406_s3] sm:$0xff]  ;;  %2399 = vset.pattern.permute.xlu1 %v2501_v0  ;;  %v292_v2 = vld [vmem:[%s3406_s3 + $0x8] sm:$0xff]  ;;  %v15_v8 = vstv %s3409_s4  ;;  %v671_v16 = vld [vmem:[%s3411_s5 + $0x18] sm:$0xff] }
   0x2   :  { %295 = vperm.xlu0 %2398, %v291_v1   ;;  %300 = vperm.xlu1 %2399, %v292_v2   ;;  %v37_v3 = vld [vmem:[%s3407_s0] sm:$0xff]  ;;  %v43_v5 = vld [vmem:[%s3408_s1 + $0x8] sm:$0xff]  ;;  %16 = vst [vmem:[#allocation2] sm:$0x1] %v15_v8  ;;  %v675_v19 = vld [vmem:[%s3411_s5 + $0x38] sm:$0xff] }
   0x3   :  { %v42_v4 = vld [vmem:[%s3408_s1] sm:$0xff]  ;;  %v38_v7 = vld [vmem:[%s3407_s0 + $0x8] sm:$0xff]  ;;  %v830_v20 = vld [vmem:[%s3412_s7 + $0x18] sm:$0xff] }
   0x4   :  { %v2269_v6 = vpack.c.bf16 %v43_v5, %v42_v4  ;;  %v270_v12 = vld [vmem:[%s3410_s2] sm:$0xff]  ;;  %v669_v15 = vld [vmem:[%s3411_s5 + $0x8] sm:$0xff]  ;;  %vm846_vm1 = vcmp.gt.f32.partialorder %v830_v20, 0.5  ;;  %v2613_v24 = vld [vmem:[%s3407_s0 + $0x10] sm:$0xff] }
   0x5   :  { %v668_v14 = vld [vmem:[%s3411_s5] sm:$0xff]  ;;  %v673_v17 = vld [vmem:[%s3411_s5 + $0x28] sm:$0xff]  ;;  %v862_v23 = vsel %vm846_vm1, 1, %v2501_v0  ;;  %v2618_v25 = vld [vmem:[%s3407_s0 + $0x18] sm:$0xff] }
   0x6   :  { %2270 = vmatprep.subr.bf16.mxu0 %v2269_v6  ;;  %v828_v18 = vld [vmem:[%s3412_s7 + $0x8] sm:$0xff]  ;;  %v834_v27 = vld [vmem:[%s3412_s7 + $0x38] sm:$0xff]  ;;  %v2273_v28 = vpack.c.bf16 %v2618_v25, %v2613_v24  ;;  %v670_v58 = vld [vmem:[%s3411_s5 + $0x10] sm:$0xff] }
   0x7   :  { %2272 = vmatpush3.bf16.msra.mxu0 %v2269_v6  ;;  %vm844_vm0 = vcmp.gt.f32.partialorder %v828_v18, 0.5  ;;  %v832_v22 = vld [vmem:[%s3412_s7 + $0x28] sm:$0xff]  ;;  %vm850_vm4 = vcmp.gt.f32.partialorder %v834_v27, 0.5  ;;  %v679_v36 = vld [vmem:[%s3411_s5 + $0x58] sm:$0xff]  ;;  %v672_v59 = vld [vmem:[%s3411_s5 + $0x20] sm:$0xff] }
   0x8   :  { %v860_v21 = vsel %vm844_vm0, 1, %v2501_v0  ;;  %vm848_vm3 = vcmp.gt.f32.partialorder %v832_v22, 0.5  ;;  %2274 = vmatprep.subr.bf16.mxu1 %v2273_v28  ;;  %v866_v31 = vsel %vm850_vm4, 1, %v2501_v0  ;;  %v677_v33 = vld [vmem:[%s3411_s5 + $0x48] sm:$0xff]  ;;  %v838_v38 = vld [vmem:[%s3412_s7 + $0x58] sm:$0xff]  ;;  %v827_v60 = vld [vmem:[%s3412_s7] sm:$0xff] }
   0x9   :  { %v864_v29 = vsel %vm848_vm3, 1, %v2501_v0  ;;  %2276 = vmatpush3.bf16.msra.mxu1 %v2273_v28  ;;  %v836_v35 = vld [vmem:[%s3412_s7 + $0x48] sm:$0xff]  ;;  %vm854_vm6 = vcmp.gt.f32.partialorder %v838_v38, 0.5  ;;  %v683_v46 = vld [vmem:[%s3411_s5 + $0x78] sm:$0xff]  ;;  %v1929_v57 = vld [vmem:[#allocation2] ss:$0 sm:$0xff] }
   0xa   :  { %vm852_vm5 = vcmp.gt.f32.partialorder %v836_v35, 0.5  ;;  %v870_v41 = vsel %vm854_vm6, 1, %v2501_v0  ;;  %v681_v43 = vld [vmem:[%s3411_s5 + $0x68] sm:$0xff]  ;;  %v674_v61 = vld [vmem:[%s3411_s5 + $0x30] sm:$0xff]  ;;  %vm843_vm8 = vcmp.gt.f32.partialorder %v827_v60, 0.5  ;;  %v831_v1 = vld [vmem:[%s3412_s7 + $0x20] sm:$0xff] }
   0xb   :  { %v868_v39 = vsel %vm852_vm5, 1, %v2501_v0  ;;  %v840_v45 = vld [vmem:[%s3412_s7 + $0x68] sm:$0xff]  ;;  %v829_v62 = vld [vmem:[%s3412_s7 + $0x10] sm:$0xff]  ;;  %v859_v63 = vsel %vm843_vm8, 1, %v2501_v0  ;;  %vm847_vm10 = vcmp.gt.f32.partialorder %v831_v1, 0.5  ;;  %v676_v6 = vld [vmem:[%s3411_s5 + $0x40] sm:$0xff] }
   0xc   :  { %vm856_vm7 = vcmp.gt.f32.partialorder %v840_v45, 0.5  ;;  %v271_v55 = vld [vmem:[%s3410_s2 + $0x8] sm:$0xff]  ;;  %vm845_vm9 = vcmp.gt.f32.partialorder %v829_v62, 0.5  ;;  %v863_v4 = vsel %vm847_vm10, 1, %v2501_v0  ;;  %v678_v8 = vld [vmem:[%s3411_s5 + $0x50] sm:$0xff]  ;;  %v680_v18 = vld [vmem:[%s3411_s5 + $0x60] sm:$0xff] }
   0xd   :  { %v872_v48 = vsel %vm856_vm7, 1, %v2501_v0  ;;  %v861_v2 = vsel %vm845_vm9, 1, %v2501_v0  ;;  %v682_v22 = vld [vmem:[%s3411_s5 + $0x70] sm:$0xff] }
  0x20   :  { %44 = vxpose.xlu0.b32.start [1/2] (short) %v37_v3, 128 }
  0x24   :  { %45 = vxpose.xlu0.b32.end [2/2] (short) %v38_v7, 128 }
  0x81   :  { %v296_v9 = vpop.permute.xlu0 %295  ;;  %v301_v10 = vpop.permute.xlu1 %300 }
  0x82   :  { %v303_v11 = vmul.f32 %v296_v9, %v37_v3  ;;  %v304_v13 = vmul.f32 %v301_v10, %v38_v7  ;;  %v833_v3 = vld [vmem:[%s3412_s7 + $0x30] sm:$0xff]  ;;  %v835_v7 = vld [vmem:[%s3412_s7 + $0x40] sm:$0xff] }
  0x83   :  { %vm849_vm11 = vcmp.gt.f32.partialorder %v833_v3, 0.5  ;;  %vm851_vm12 = vcmp.gt.f32.partialorder %v835_v7, 0.5 }
  0x84   :  { %305 = vxpose.xlu1.b32.start [1/2] (short) %v303_v11, 128  ;;  %v865_v5 = vsel %vm849_vm11, 1, %v2501_v0  ;;  %v837_v11 = vld [vmem:[%s3412_s7 + $0x50] sm:$0xff] }
  0x85   :  { %274 = vperm.xlu0 %2398, %v270_v12   ;;  %v867_v12 = vsel %vm851_vm12, 1, %v2501_v0  ;;  %vm853_vm13 = vcmp.gt.f32.partialorder %v837_v11, 0.5 }
  0x88   :  { %306 = vxpose.xlu1.b32.end [2/2] (short) %v304_v13, 128 }
  0x89   :  { %687 = vperm.xlu0 %2398, %v668_v14  }
  0x8d   :  { %692 = vperm.xlu0 %2398, %v669_v15   ;;  %v869_v15 = vsel %vm853_vm13, 1, %v2501_v0 }
  0x91   :  { %702 = vperm.xlu0 %2398, %v671_v16  }
  0x95   :  { %712 = vperm.xlu0 %2398, %v673_v17  }
  0x99   :  { %722 = vperm.xlu0 %2398, %v675_v19  }
  0x9d   :  { %879 = vperm.xlu0 %2398, %v860_v21   ;;  %v839_v21 = vld [vmem:[%s3412_s7 + $0x60] sm:$0xff] }
  0x9e   :  { %vm855_vm14 = vcmp.gt.f32.partialorder %v839_v21, 0.5 }
  0x9f   :  { %v871_v27 = vsel %vm855_vm14, 1, %v2501_v0 }
  0xa0   :  { %v60_v26 = vpop.trf.xlu0 }
  0xa1   :  { %885 = vperm.xlu0 %2398, %v862_v23   ;;  %2063 = vmatprep.mubr.msk.f32.mxu0 %vm3417_vm2, %v60_v26 }
  0xa4   :  { %v61_v30 = vpop.trf.xlu0 }
  0xa5   :  { %891 = vperm.xlu0 %2398, %v864_v29   ;;  %2064 = vmatmul.mubr.msk.f32.vlgmr.msra.gmra.mrb[0].mxu0 %vm3417_vm2, %v61_v30 }
  0xa8   :  { %v62_v32 = vpop.trf.xlu0 }
  0xa9   :  { %897 = vperm.xlu0 %2398, %v866_v31   ;;  %2066 = vmatprep.mubr.msk.f32.mxu0 %vm3417_vm2, %v62_v32  ;;  %v2744_v32 = vld [vmem:[%s3413_s6] ss:$0 sm:$0xff] }
  0xac   :  { %v63_v34 = vpop.trf.xlu0 }
  0xad   :  { %732 = vperm.xlu0 %2398, %v677_v33   ;;  %2067 = vmatmul.mubr.msk.f32.gmra.mrb[2].mxu0 %vm3417_vm2, %v63_v34 }
  0xb0   :  { %v64_v37 = vpop.trf.xlu0 }
  0xb1   :  { %742 = vperm.xlu0 %2398, %v679_v36   ;;  %2069 = vmatprep.mubr.msk.f32.mxu0 %vm3417_vm2, %v64_v37 }
  0xb4   :  { %v65_v40 = vpop.trf.xlu0 }
  0xb5   :  { %903 = vperm.xlu0 %2398, %v868_v39   ;;  %2070 = vmatmul.mubr.msk.f32.gmra.mrb[4].mxu0 %vm3417_vm2, %v65_v40 }
  0xb8   :  { %v66_v42 = vpop.trf.xlu0 }
  0xb9   :  { %909 = vperm.xlu0 %2398, %v870_v41   ;;  %2072 = vmatprep.mubr.msk.f32.mxu0 %vm3417_vm2, %v66_v42 }
  0xbc   :  { %v67_v44 = vpop.trf.xlu0 }
  0xbd   :  { %752 = vperm.xlu0 %2398, %v681_v43   ;;  %2073 = vmatmul.mubr.msk.f32.gmra.mrb[6].mxu0 %vm3417_vm2, %v67_v44 }
  0xc0   :  { %v68_v47 = vpop.trf.xlu0 }
  0xc1   :  { %762 = vperm.xlu0 %2398, %v683_v46   ;;  %2075 = vmatprep.mubr.msk.f32.mxu0 %vm3417_vm2, %v68_v47 }
  0xc4   :  { %v69_v49 = vpop.trf.xlu0 }
  0xc5   :  { %915 = vperm.xlu0 %2398, %v872_v48   ;;  %2076 = vmatmul.mubr.msk.f32.gmra.mrb[8].mxu0 %vm3417_vm2, %v69_v49 }
  0xc8   :  { %v70_v50 = vpop.trf.xlu0 }
  0xc9   :  { %2078 = vmatprep.mubr.msk.f32.mxu0 %vm3417_vm2, %v70_v50 }
  0xcc   :  { %v71_v51 = vpop.trf.xlu0 }
  0xcd   :  { %2079 = vmatmul.mubr.msk.f32.gmra.mrb[10].mxu0 %vm3417_vm2, %v71_v51 }
  0xd0   :  { %v72_v52 = vpop.trf.xlu0 }
  0xd1   :  { %2081 = vmatprep.mubr.msk.f32.mxu0 %vm3417_vm2, %v72_v52 }
  0xd4   :  { %v73_v53 = vpop.trf.xlu0 }
  0xd5   :  { %2082 = vmatmul.mubr.msk.f32.gmra.mrb[12].mxu0 %vm3417_vm2, %v73_v53 }
  0xd8   :  { %v74_v54 = vpop.trf.xlu0 }
  0xd9   :  { %2084 = vmatprep.mubr.msk.f32.mxu0 %vm3417_vm2, %v74_v54 }
  0xdc   :  { %v75_v56 = vpop.trf.xlu0 }
  0xdd   :  { %2085 = vmatmul.mubr.msk.f32.gmra.mrb[14].mxu0 %vm3417_vm2, %v75_v56 }
  0xde   :  { %279 = vperm.xlu1 %2399, %v271_v55   ;;  %2147 = vmatprep.mubr.f32.mxu0 %v2613_v24 }
  0xe2   :  { %649 = vperm.xlu1 %2399, %v1929_v57  }
  0xe6   :  { %697 = vperm.xlu1 %2399, %v670_v58  }
  0xea   :  { %707 = vperm.xlu1 %2399, %v672_v59  }
  0xee   :  { %717 = vperm.xlu1 %2399, %v674_v61  }
  0xf2   :  { %876 = vperm.xlu1 %2399, %v859_v63  }
  0xf6   :  { %882 = vperm.xlu1 %2399, %v861_v2  }
  0xfa   :  { %888 = vperm.xlu1 %2399, %v863_v4  }
  0xfe   :  { %894 = vperm.xlu1 %2399, %v865_v5  }
 0x102   :  { %727 = vperm.xlu1 %2399, %v676_v6  }
 0x104   :  { %v2705_v9 = vpop.permute.xlu0 %274  ;;  %v321_v10 = vpop.trf.xlu1 }
 0x105   :  { %2091 = vmatprep.mubr.msk.f32.mxu1 %vm3417_vm2, %v321_v10 }
 0x106   :  { %737 = vperm.xlu1 %2399, %v678_v8  }
 0x108   :  { %v2712_v13 = vpop.permute.xlu0 %687  ;;  %v322_v14 = vpop.trf.xlu1 }
 0x109   :  { %2092 = vmatmul.mubr.msk.f32.vlgmr.msra.gmra.mrb[0].mxu1 %vm3417_vm2, %v322_v14  ;;  %vm771_vm12 = vcmp.eq.f32.partialorder %v2712_v13, %v2744_v32 }
 0x10a   :  { %900 = vperm.xlu1 %2399, %v867_v12  }
 0x10c   :  { %v2716_v16 = vpop.permute.xlu0 %692  ;;  %v323_v17 = vpop.trf.xlu1 }
 0x10d   :  { %2094 = vmatprep.mubr.msk.f32.mxu1 %vm3417_vm2, %v323_v17  ;;  %v3445_v17 = vmov 0 }
 0x10e   :  { %906 = vperm.xlu1 %2399, %v869_v15  }
 0x110   :  { %v2722_v19 = vpop.permute.xlu0 %702  ;;  %v324_v20 = vpop.trf.xlu1 }
 0x111   :  { %2095 = vmatmul.mubr.msk.f32.gmra.mrb[2].mxu1 %vm3417_vm2, %v324_v20  ;;  %vm3426_vm15 = vcmp.eq.f32.partialorder %v2722_v19, %v2744_v32 }
 0x112   :  { %747 = vperm.xlu1 %2399, %v680_v18  }
 0x114   :  { %v2731_v23 = vpop.permute.xlu0 %712  ;;  %v325_v26 = vpop.trf.xlu1 }
 0x115   :  { %2097 = vmatprep.mubr.msk.f32.mxu1 %vm3417_vm2, %v325_v26  ;;  %vm3422_vm3 = vcmp.eq.f32.partialorder %v2731_v23, %v2744_v32 }
 0x116   :  { %757 = vperm.xlu1 %2399, %v682_v22  }
 0x118   :  { %v2735_v28 = vpop.permute.xlu0 %722  ;;  %v326_v29 = vpop.trf.xlu1 }
 0x119   :  { %2098 = vmatmul.mubr.msk.f32.gmra.mrb[4].mxu1 %vm3417_vm2, %v326_v29  ;;  %vm3419_vm6 = vcmp.eq.f32.partialorder %v2735_v28, %v2744_v32 }
 0x11a   :  { %912 = vperm.xlu1 %2399, %v871_v27  }
 0x11c   :  { %v2738_v30 = vpop.permute.xlu0 %879  ;;  %v327_v31 = vpop.trf.xlu1 }
 0x11d   :  { %2100 = vmatprep.mubr.msk.f32.mxu1 %vm3417_vm2, %v327_v31 }
 0x120   :  { %v886_v33 = vpop.permute.xlu0 %885  ;;  %v328_v34 = vpop.trf.xlu1 }
 0x121   :  { %vm926_vm0 = vcmp.eq.s32.totalorder %v886_v33, 1  ;;  %2101 = vmatmul.mubr.msk.f32.gmra.mrb[6].mxu1 %vm3417_vm2, %v328_v34  ;;  %v842_v33 = vld [vmem:[%s3412_s7 + $0x78] sm:$0xff]  ;;  %v841_v34 = vld [vmem:[%s3412_s7 + $0x70] sm:$0xff] }
 0x122   :  { %vm2752_vm1 = vmand %vm3426_vm15, %vm926_vm0 }
 0x124   :  { %v892_v36 = vpop.permute.xlu0 %891  ;;  %v329_v37 = vpop.trf.xlu1 }
 0x125   :  { %vm928_vm4 = vcmp.eq.s32.totalorder %v892_v36, 1  ;;  %2103 = vmatprep.mubr.msk.f32.mxu1 %vm3417_vm2, %v329_v37 }
 0x126   :  { %vm2762_vm5 = vmand %vm3422_vm3, %vm928_vm4 }
 0x128   :  { %v898_v39 = vpop.permute.xlu0 %897  ;;  %v330_v40 = vpop.trf.xlu1 }
 0x129   :  { %vm930_vm7 = vcmp.eq.s32.totalorder %v898_v39, 1  ;;  %2104 = vmatmul.mubr.msk.f32.gmra.mrb[8].mxu1 %vm3417_vm2, %v330_v40 }
 0x12a   :  { %vm2772_vm8 = vmand %vm3419_vm6, %vm930_vm7 }
 0x12c   :  { %v2776_v42 = vpop.permute.xlu0 %732  ;;  %v331_v43 = vpop.trf.xlu1 }
 0x12d   :  { %2106 = vmatprep.mubr.msk.f32.mxu1 %vm3417_vm2, %v331_v43 }
 0x130   :  { %v2779_v44 = vpop.permute.xlu0 %742  ;;  %v332_v45 = vpop.trf.xlu1 }
 0x131   :  { %2107 = vmatmul.mubr.msk.f32.gmra.mrb[10].mxu1 %vm3417_vm2, %v332_v45  ;;  %vm3418_vm9 = vcmp.eq.f32.partialorder %v2779_v44, %v2744_v32 }
 0x134   :  { %v2782_v46 = vpop.permute.xlu0 %903  ;;  %v333_v47 = vpop.trf.xlu1 }
 0x135   :  { %2109 = vmatprep.mubr.msk.f32.mxu1 %vm3417_vm2, %v333_v47  ;;  %v282_v47 = vmul.f32 %v2613_v24, %v2705_v9 }
 0x138   :  { %v910_v48 = vpop.permute.xlu0 %909  ;;  %v334_v49 = vpop.trf.xlu1 }
 0x139   :  { %vm934_vm10 = vcmp.eq.s32.totalorder %v910_v48, 1  ;;  %2110 = vmatmul.mubr.msk.f32.gmra.mrb[12].mxu1 %vm3417_vm2, %v334_v49 }
 0x13a   :  { %vm2791_vm11 = vmand %vm3418_vm9, %vm934_vm10 }
 0x13c   :  { %v335_v51 = vpop.trf.xlu1 }
 0x13d   :  { %2112 = vmatprep.mubr.msk.f32.mxu1 %vm3417_vm2, %v335_v51 }
 0x140   :  { %v336_v52 = vpop.trf.xlu1 }
 0x141   :  { %2113 = vmatmul.mubr.msk.f32.gmra.mrb[14].mxu1 %vm3417_vm2, %v336_v52 }
 0x15d   :  { %v2797_v53 = vpop.permute.xlu1 %279 }
 0x15e   :  { %v283_v43 = vmul.f32 %v2618_v25, %v2797_v53  ;;  %v787_v25 = vld [vmem:[%s3414_s8] sm:$0x1] }
 0x160   :  { %v284_v49 = vadd.f32 %v283_v43, %v282_v47 }
 0x161   :  { %v2799_v54 = vpop.permute.xlu1 %649 }
 0x162   :  { %v285_v51 = vrot.slane %v284_v49, 4 }
 0x165   :  { %v2801_v55 = vpop.permute.xlu1 %697 }
 0x166   :  { %vm3423_vm0 = vcmp.eq.f32.partialorder %v2801_v55, %v2744_v32 }
 0x169   :  { %v2803_v56 = vpop.permute.xlu1 %707 }
 0x16a   :  { %vm3420_vm10 = vcmp.eq.f32.partialorder %v2803_v56, %v2744_v32 }
 0x16d   :  { %v2805_v57 = vpop.permute.xlu1 %717 }
 0x171   :  { %v877_v58 = vpop.permute.xlu1 %876 }
 0x172   :  { %vm923_vm13 = vcmp.eq.s32.totalorder %v877_v58, 1 }
 0x173   :  { %vm2812_vm14 = vmand %vm771_vm12, %vm923_vm13 }
 0x175   :  { %v883_v60 = vpop.permute.xlu1 %882 }
 0x176   :  { %vm925_vm4 = vcmp.eq.s32.totalorder %v883_v60, 1  ;;  %v286_v60 = vadd.f32 %v285_v51, %v284_v49 }
 0x177   :  { %vm2821_vm7 = vmand %vm3423_vm0, %vm925_vm4  ;;  %vm3421_vm4 = vcmp.eq.f32.partialorder %v2805_v57, %v2744_v32 }
 0x178   :  { %v2065_v62 = vpop.f32.mrb[0].mxu0 }
 0x179   :  { %v191_v63 = vpop.f32.mrb[1].mxu0  ;;  %537 = vperm.xlu1 %2399, %v2065_v62   ;;  %v889_v1 = vpop.permute.xlu1 %888 }
 0x17a   :  { %vm927_vm13 = vcmp.eq.s32.totalorder %v889_v1, 1  ;;  %532 = vperm.xlu0 %2398, %v191_v63   ;;  %v790_v63 = vlaneseq  ;;  %v2879_v1 = vpop.permute.xlu0 %752 }
 0x17b   :  { %vm2830_vm2 = vmand %vm3420_vm10, %vm927_vm13 }
 0x17d   :  { %v895_v3 = vpop.permute.xlu1 %894 }
 0x17e   :  { %vm929_vm9 = vcmp.eq.s32.totalorder %v895_v3, 1  ;;  %v287_v3 = vrot.slane %v286_v60, 2 }
 0x17f   :  { %vm2839_vm6 = vmand %vm3421_vm4, %vm929_vm9 }
 0x180   :  { %v2068_v5 = vpop.f32.mrb[2].mxu0 }
 0x181   :  { %547 = vperm.xlu0 %2398, %v2068_v5   ;;  %v201_v6 = vpop.f32.mrb[3].mxu0  ;;  %v2843_v7 = vpop.permute.xlu1 %727  ;;  %v791_v5 = vshrl.u32 %v790_v63, 7 }
 0x182   :  { %542 = vperm.xlu1 %2399, %v201_v6   ;;  %vm3425_vm13 = vcmp.eq.f32.partialorder %v2843_v7, %v2744_v32  ;;  %v2890_v6 = vpop.permute.xlu0 %762 }
 0x185   :  { %v2845_v8 = vpop.permute.xlu1 %737 }
 0x186   :  { %vm3424_vm4 = vcmp.eq.f32.partialorder %v2845_v8, %v2744_v32 }
 0x188   :  { %v2071_v10 = vpop.f32.mrb[4].mxu0 }
 0x189   :  { %557 = vperm.xlu0 %2398, %v2071_v10   ;;  %v211_v11 = vpop.f32.mrb[5].mxu0  ;;  %v901_v12 = vpop.permute.xlu1 %900  ;;  %v288_v10 = vadd.f32 %v287_v3, %v286_v60 }
 0x18a   :  { %vm931_vm10 = vcmp.eq.s32.totalorder %v901_v12, 1  ;;  %552 = vperm.xlu1 %2399, %v211_v11   ;;  %v792_v11 = vsub.s32 0, %v791_v5 }
 0x18b   :  { %vm2852_vm9 = vmand %vm3425_vm13, %vm931_vm10  ;;  %vm857_vm10 = vcmp.gt.f32.partialorder %v841_v34, 0.5 }
 0x18c   :  { %v873_v40 = vsel %vm857_vm10, 1, %v2501_v0  ;;  %vm772_vm10 = vcmp.eq.f32.partialorder %v2716_v16, %v2744_v32 }
 0x18d   :  { %v907_v15 = vpop.permute.xlu1 %906 }
 0x18e   :  { %vm933_vm3 = vcmp.eq.s32.totalorder %v907_v15, 1  ;;  %v289_v15 = vrot.slane %v288_v10, 1 }
 0x18f   :  { %vm2861_vm0 = vmand %vm3424_vm4, %vm933_vm3  ;;  %vm858_vm3 = vcmp.gt.f32.partialorder %v842_v33, 0.5  ;;  %vm924_vm4 = vcmp.eq.s32.totalorder %v2738_v30, 1 }
 0x190   :  { %v3446_v17 = vsel %vm2861_vm0, 4294967295, %v3445_v17  ;;  %v2074_v18 = vpop.f32.mrb[6].mxu0  ;;  %v874_v39 = vsel %vm858_vm3, 1, %v2501_v0  ;;  %vm788_vm3 = vcmp.gt.f32.partialorder %v787_v25, 0.5  ;;  %vm940_vm15 = vmand %vm772_vm10, %vm924_vm4  ;;  %vm3450_vm4 = vcmp.eq.f32.partialorder %v2803_v56, %v2744_v32 }
 0x191   :  { %567 = vperm.xlu0 %2398, %v2074_v18   ;;  %v221_v20 = vpop.f32.mrb[7].mxu0  ;;  %v2877_v62 = vpop.permute.xlu1 %747  ;;  %v789_v12 = vsel %vm788_vm3, 1, %v2501_v0 }
 0x192   :  { %562 = vperm.xlu1 %2399, %v221_v20  }
 0x195   :  { %v2888_v9 = vpop.permute.xlu1 %757 }
 0x198   :  { %v2077_v21 = vpop.f32.mrb[8].mxu0 }
 0x199   :  { %577 = vperm.xlu0 %2398, %v2077_v21   ;;  %v231_v22 = vpop.f32.mrb[9].mxu0  ;;  %v2893_v18 = vpop.permute.xlu1 %912  ;;  %v2897_v21 = vrot.slane %v789_v12, %v792_v11 }
 0x19a   :  { %572 = vperm.xlu1 %2399, %v231_v22   ;;  %v2899_v22 = vpop.permute.xlu0 %915 }
 0x19b   :  { %vm794_vm3 = vcmp.eq.s32.totalorder %v2897_v21, 1 }
 0x19c   :  { %vm796_vm13 = vmand %vm772_vm10, %vm794_vm3  ;;  %vm3452_vm10 = vcmp.eq.f32.partialorder %v2805_v57, %v2744_v32 }
 0x19d   :  { %vm795_vm0 = vmand %vm771_vm12, %vm794_vm3 }
 0x1a0   :  { %v2080_v26 = vpop.f32.mrb[10].mxu0 }
 0x1a1   :  { %587 = vperm.xlu0 %2398, %v2080_v26   ;;  %v241_v27 = vpop.f32.mrb[11].mxu0 }
 0x1a2   :  { %582 = vperm.xlu1 %2399, %v241_v27   ;;  %v2905_v27 = vadd.f32 %v289_v15, %v288_v10 }
 0x1a8   :  { %v2083_v29 = vpop.f32.mrb[12].mxu0 }
 0x1a9   :  { %597 = vperm.xlu0 %2398, %v2083_v29   ;;  %v251_v31 = vpop.f32.mrb[13].mxu0 }
 0x1aa   :  { %592 = vperm.xlu1 %2399, %v251_v31  }
 0x1b0   :  { %v2086_v36 = vpop.f32.mrb[14].mxu0 }
 0x1b1   :  { %607 = vperm.xlu0 %2398, %v2086_v36   ;;  %v261_v37 = vpop.f32.mrb[15].mxu0 }
 0x1b2   :  { %602 = vperm.xlu1 %2399, %v261_v37  }
 0x1b5   :  { %921 = vperm.xlu0 %2398, %v874_v39   ;;  %v2502_v39 = vmov -1e+30  }
 0x1b6   :  { %918 = vperm.xlu1 %2399, %v873_v40   ;;  %v956_v40 = vsel %vm940_vm15, 0.0, %v2502_v39  ;;  %v955_v47 = vsel %vm2812_vm14, 0.0, %v2502_v39  ;;  %v811_v49 = vsel %vm795_vm0, 0.0, %v2502_v39  ;;  %vm3447_vm15 = vcmp.eq.f32.partialorder %v2722_v19, %v2744_v32 }
 0x1b7   :  { %vm798_vm12 = vmand %vm3447_vm15, %vm794_vm3  ;;  %vm3448_vm14 = vcmp.eq.f32.partialorder %v2801_v55, %v2744_v32  ;;  %v957_v55 = vsel %vm2821_vm7, 0.0, %v2502_v39  ;;  %v959_v56 = vsel %vm2830_vm2, 0.0, %v2502_v39  ;;  %vm3451_vm2 = vcmp.eq.f32.partialorder %v2735_v28, %v2744_v32 }
 0x1b8   :  { %vm797_vm0 = vmand %vm3448_vm14, %vm794_vm3  ;;  %v962_v28 = vsel %vm2772_vm8, 0.0, %v2502_v39  ;;  %vm932_vm14 = vcmp.eq.s32.totalorder %v2782_v46, 1 }
 0x1b9   :  { %vm801_vm15 = vmand %vm3452_vm10, %vm794_vm3  ;;  %vm3456_vm10 = vnez %v3446_v17 }
 0x1dc   :  { %v2093_v45 = vpop.f32.mrb[0].mxu1 }
 0x1dd   :  { %v451_v48 = vpop.f32.mrb[1].mxu1 }
 0x1e4   :  { %v2096_v52 = vpop.f32.mrb[2].mxu1 }
 0x1e5   :  { %v461_v58 = vpop.f32.mrb[3].mxu1 }
 0x1ec   :  { %v2884_v53 = vpop.f32.mrb[4].mxu1 }
 0x1ed   :  { %v2886_v24 = vpop.f32.mrb[5].mxu1 }
 0x1f4   :  { %v2895_v20 = vpop.f32.mrb[6].mxu1 }
 0x1f5   :  { %v2901_v26 = vpop.f32.mrb[7].mxu1 }
 0x1f8   :  { %v538_v29 = vpop.permute.xlu1 %537 }
 0x1f9   :  { %v611_v0 = vadd.f32 %v538_v29, %v2905_v27  ;;  %v533_v31 = vpop.permute.xlu0 %532  ;;  %v958_v29 = vsel %vm2752_vm1, 0.0, %v2502_v39  ;;  %vm3449_vm1 = vcmp.eq.f32.partialorder %v2731_v23, %v2744_v32  ;;  %v960_v23 = vsel %vm2762_vm5, 0.0, %v2502_v39  ;;  %vm802_vm5 = vmand %vm3451_vm2, %vm794_vm3 }
 0x1fa   :  { %v610_v33 = vadd.f32 %v533_v31, %v2905_v27  ;;  %v813_v31 = vsel %vm797_vm0, 0.0, %v2502_v39  ;;  %vm800_vm7 = vmand %vm3449_vm1, %vm794_vm3  ;;  %v818_v57 = vsel %vm802_vm5, 0.0, %v2502_v39  ;;  %vm3453_vm0 = vcmp.eq.f32.partialorder %v2843_v7, %v2744_v32 }
 0x1fb   :  { %v627_v34 = vadd.f32 %v2093_v45, %v611_v0  ;;  %v812_v45 = vsel %vm796_vm13, 0.0, %v2502_v39  ;;  %vm799_vm13 = vmand %vm3450_vm4, %vm794_vm3  ;;  %vm3455_vm4 = vcmp.eq.f32.partialorder %v2845_v8, %v2744_v32  ;;  %vm784_vm2 = vcmp.eq.f32.partialorder %v2879_v1, %v2744_v32 }
 0x1fc   :  { %v626_v16 = vadd.f32 %v610_v33, %v451_v48  ;;  %v2918_v30 = vpop.f32.mrb[8].mxu1  ;;  %vm803_vm1 = vmand %vm3453_vm0, %vm794_vm3  ;;  %vm936_vm5 = vcmp.eq.s32.totalorder %v2899_v22, 1  ;;  %v965_v8 = vsel %vm3456_vm10, 0.0, %v2502_v39  ;;  %vm786_vm0 = vcmp.eq.f32.partialorder %v2890_v6, %v2744_v32 }
 0x1fd   :  { %v653_v36 = vadd.f32 %v2799_v54, %v627_v34  ;;  %v2921_v37 = vpop.f32.mrb[9].mxu1  ;;  %v819_v7 = vsel %vm803_vm1, 0.0, %v2502_v39  ;;  %vm785_vm1 = vcmp.eq.f32.partialorder %v2888_v9, %v2744_v32 }
 0x1fe   :  { %v652_v43 = vadd.f32 %v2799_v54, %v626_v16 }
 0x1ff   :  { %v2929_v13 = vadd.f32 %v956_v40, %v653_v36  ;;  %v2931_v48 = vadd.f32 %v812_v45, %v653_v36 }
 0x200   :  { %v2934_v51 = vadd.f32 %v955_v47, %v652_v43  ;;  %v548_v60 = vpop.permute.xlu0 %547  ;;  %v2936_v63 = vadd.f32 %v811_v49, %v652_v43 }
 0x201   :  { %v613_v3 = vadd.f32 %v548_v60, %v2905_v27  ;;  %989 = vmax.xlane.f32.xlu0 %v2931_v48  ;;  %v543_v25 = vpop.permute.xlu1 %542  ;;  %v816_v60 = vsel %vm800_vm7, 0.0, %v2502_v39 }
 0x202   :  { %v612_v5 = vadd.f32 %v543_v25, %v2905_v27  ;;  %987 = vmax.xlane.f32.xlu1 %v2936_v63  ;;  %v815_v25 = vsel %vm799_vm13, 0.0, %v2502_v39  ;;  %vm805_vm13 = vmand %vm3455_vm4, %vm794_vm3 }
 0x203   :  { %v629_v59 = vadd.f32 %v2096_v52, %v613_v3  ;;  %v814_v52 = vsel %vm798_vm12, 0.0, %v2502_v39  ;;  %vm780_vm12 = vcmp.eq.f32.partialorder %v2776_v42, %v2744_v32  ;;  %v963_v42 = vsel %vm2852_vm9, 0.0, %v2502_v39 }
 0x204   :  { %v628_v10 = vadd.f32 %v612_v5, %v461_v58  ;;  %v2952_v11 = vpop.f32.mrb[10].mxu1  ;;  %vm948_vm8 = vmand %vm780_vm12, %vm932_vm14  ;;  %vm3454_vm9 = vcmp.eq.f32.partialorder %v2779_v44, %v2744_v32 }
 0x205   :  { %v655_v12 = vadd.f32 %v2799_v54, %v629_v59  ;;  %v2955_v15 = vpop.f32.mrb[11].mxu1  ;;  %vm806_vm7 = vmand %vm3454_vm9, %vm794_vm3 }
 0x206   :  { %v654_v19 = vadd.f32 %v2799_v54, %v628_v10  ;;  %v822_v44 = vsel %vm806_vm7, 0.0, %v2502_v39  ;;  %vm952_vm14 = vmand %vm784_vm2, %vm936_vm5  ;;  %vm3459_vm5 = vcmask 130048  }
 0x207   :  { %v2965_v0 = vadd.f32 %v958_v29, %v655_v12  ;;  %v2967_v58 = vadd.f32 %v814_v52, %v655_v12  ;;  %vm810_vm9 = vmand %vm786_vm0, %vm794_vm3 }
 0x208   :  { %v2970_v33 = vadd.f32 %v957_v55, %v654_v19  ;;  %v558_v34 = vpop.permute.xlu0 %557  ;;  %v2972_v16 = vadd.f32 %v813_v31, %v654_v19  ;;  %vm809_vm7 = vmand %vm785_vm1, %vm794_vm3 }
 0x209   :  { %v615_v35 = vadd.f32 %v558_v34, %v2905_v27  ;;  %993 = vmax.xlane.f32.xlu1 %v2967_v58  ;;  %v553_v36 = vpop.permute.xlu1 %552  ;;  %v825_v21 = vsel %vm809_vm7, 0.0, %v2502_v39  ;;  %vm3460_vm10 = vmmov %vm3459_vm5 }
 0x20a   :  { %v614_v40 = vadd.f32 %v553_v36, %v2905_v27  ;;  %991 = vmax.xlane.f32.xlu0 %v2972_v16 }
 0x20b   :  { %v631_v61 = vadd.f32 %v2884_v53, %v615_v35 }
 0x20c   :  { %v630_v43 = vadd.f32 %v614_v40, %v2886_v24  ;;  %v2990_v45 = vpop.f32.mrb[12].mxu1 }
 0x20d   :  { %v657_v47 = vadd.f32 %v2799_v54, %v631_v61  ;;  %v2993_v49 = vpop.f32.mrb[13].mxu1  ;;  %v817_v61 = vsel %vm801_vm15, 0.0, %v2502_v39  ;;  %vm3144_vm15 = vmand %vm784_vm2, %vm794_vm3 }
 0x20e   :  { %v656_v53 = vadd.f32 %v2799_v54, %v630_v43 }
 0x20f   :  { %v3003_v3 = vadd.f32 %v960_v23, %v657_v47  ;;  %v3005_v24 = vadd.f32 %v816_v60, %v657_v47 }
 0x210   :  { %v3008_v5 = vadd.f32 %v959_v56, %v656_v53  ;;  %v568_v59 = vpop.permute.xlu0 %567  ;;  %v3010_v10 = vadd.f32 %v815_v25, %v656_v53 }
 0x211   :  { %v1148_v38 = vmax.f32 %v2929_v13, %v3003_v3  ;;  %v617_v12 = vadd.f32 %v568_v59, %v2905_v27  ;;  %997 = vmax.xlane.f32.xlu1 %v3005_v24  ;;  %v563_v2 = vpop.permute.xlu1 %562 }
 0x212   :  { %v1147_v29 = vmax.f32 %v2934_v51, %v3008_v5  ;;  %v616_v19 = vadd.f32 %v563_v2, %v2905_v27  ;;  %995 = vmax.xlane.f32.xlu0 %v3010_v10 }
 0x213   :  { %v633_v52 = vadd.f32 %v2895_v20, %v617_v12  ;;  %v964_v12 = vsel %vm948_vm8, 0.0, %v2502_v39 }
 0x214   :  { %v632_v55 = vadd.f32 %v616_v19, %v2901_v26  ;;  %v3032_v31 = vpop.f32.mrb[14].mxu1  ;;  %v961_v26 = vsel %vm2839_vm6, 0.0, %v2502_v39  ;;  %vm804_vm6 = vmand %vm780_vm12, %vm794_vm3  ;;  %vm935_vm12 = vcmp.eq.s32.totalorder %v2893_v18, 1 }
 0x215   :  { %v659_v34 = vadd.f32 %v2799_v54, %v633_v52  ;;  %v3035_v35 = vpop.f32.mrb[15].mxu1  ;;  %v820_v19 = vsel %vm804_vm6, 0.0, %v2502_v39 }
 0x216   :  { %v658_v20 = vadd.f32 %v2799_v54, %v632_v55 }
 0x217   :  { %v3047_v36 = vadd.f32 %v962_v28, %v659_v34  ;;  %v3049_v40 = vadd.f32 %v818_v57, %v659_v34 }
 0x218   :  { %v3053_v41 = vadd.f32 %v961_v26, %v658_v20  ;;  %v578_v43 = vpop.permute.xlu0 %577  ;;  %v3055_v47 = vadd.f32 %v817_v61, %v658_v20 }
 0x219   :  { %v1150_v23 = vmax.f32 %v2965_v0, %v3047_v36  ;;  %v619_v53 = vadd.f32 %v578_v43, %v2905_v27  ;;  %1001 = vmax.xlane.f32.xlu1 %v3049_v40  ;;  %v573_v4 = vpop.permute.xlu1 %572 }
 0x21a   :  { %v1149_v46 = vmax.f32 %v2970_v33, %v3053_v41  ;;  %v618_v60 = vadd.f32 %v573_v4, %v2905_v27  ;;  %999 = vmax.xlane.f32.xlu0 %v3055_v47  ;;  %v821_v4 = vsel %vm805_vm13, 0.0, %v2502_v39 }
 0x21b   :  { %v635_v56 = vadd.f32 %v2918_v30, %v619_v53 }
 0x21c   :  { %v634_v25 = vadd.f32 %v618_v60, %v2921_v37 }
 0x21d   :  { %v661_v59 = vadd.f32 %v2799_v54, %v635_v56 }
 0x21e   :  { %v660_v2 = vadd.f32 %v2799_v54, %v634_v25 }
 0x21f   :  { %v3087_v30 = vadd.f32 %v964_v12, %v661_v59  ;;  %v3089_v52 = vadd.f32 %v820_v19, %v661_v59 }
 0x220   :  { %v3092_v55 = vadd.f32 %v963_v42, %v660_v2  ;;  %v588_v37 = vpop.permute.xlu0 %587  ;;  %v3094_v34 = vadd.f32 %v819_v7, %v660_v2  ;;  %v824_v42 = vsel %vm3144_vm15, 0.0, %v2502_v39  ;;  %vm3462_vm15 = vmmov %vm3459_vm5 }
 0x221   :  { %v3097_v28 = vmax.f32 %v1148_v38, %v3087_v30  ;;  %v621_v20 = vadd.f32 %v588_v37, %v2905_v27  ;;  %1005 = vmax.xlane.f32.xlu1 %v3089_v52  ;;  %v583_v14 = vpop.permute.xlu1 %582 }
 0x222   :  { %v1151_v57 = vmax.f32 %v1147_v29, %v3092_v55  ;;  %v620_v26 = vadd.f32 %v583_v14, %v2905_v27  ;;  %1003 = vmax.xlane.f32.xlu0 %v3094_v34  ;;  %v966_v29 = vsel %vm2791_vm11, 0.0, %v2502_v39  ;;  %vm783_vm11 = vcmp.eq.f32.partialorder %v2877_v62, %v2744_v32 }
 0x223   :  { %v637_v38 = vadd.f32 %v2952_v11, %v621_v20  ;;  %vm807_vm6 = vmand %vm783_vm11, %vm794_vm3 }
 0x224   :  { %v636_v61 = vadd.f32 %v620_v26, %v2955_v15  ;;  %vm951_vm8 = vmand %vm783_vm11, %vm935_vm12  ;;  %v823_v7 = vsel %vm807_vm6, 0.0, %v2502_v39 }
 0x225   :  { %v663_v43 = vadd.f32 %v2799_v54, %v637_v38  ;;  %vm3461_vm11 = vmmov %vm3459_vm5 }
 0x226   :  { %v662_v11 = vadd.f32 %v2799_v54, %v636_v61  ;;  %vm3463_vm12 = vmmov %vm3459_vm5 }
 0x227   :  { %v3128_v15 = vadd.f32 %v966_v29, %v663_v43  ;;  %v3130_v53 = vadd.f32 %v822_v44, %v663_v43  ;;  %vm3465_vm6 = vmmov %vm3459_vm5 }
 0x228   :  { %v3135_v50 = vadd.f32 %v965_v8, %v662_v11  ;;  %v598_v60 = vpop.permute.xlu0 %597  ;;  %v3137_v56 = vadd.f32 %v821_v4, %v662_v11  ;;  %v826_v4 = vsel %vm810_vm9, 0.0, %v2502_v39 }
 0x229   :  { %v1154_v25 = vmax.f32 %v1150_v23, %v3128_v15  ;;  %v623_v59 = vadd.f32 %v598_v60, %v2905_v27  ;;  %1009 = vmax.xlane.f32.xlu1 %v3130_v53  ;;  %v593_v12 = vpop.permute.xlu1 %592  ;;  %v968_v23 = vsel %vm952_vm14, 0.0, %v2502_v39  ;;  %vm3464_vm14 = vmmov %vm3459_vm5 }
 0x22a   :  { %v1153_v2 = vmax.f32 %v1149_v46, %v3135_v50  ;;  %v622_v19 = vadd.f32 %v593_v12, %v2905_v27  ;;  %1007 = vmax.xlane.f32.xlu0 %v3137_v56 }
 0x22b   :  { %v639_v18 = vadd.f32 %v2990_v45, %v623_v59  ;;  %v967_v45 = vsel %vm951_vm8, 0.0, %v2502_v39  ;;  %vm3466_vm8 = vmmov %vm3459_vm5 }
 0x22c   :  { %v638_v1 = vadd.f32 %v622_v19, %v2993_v49 }
 0x22d   :  { %v665_v22 = vadd.f32 %v2799_v54, %v639_v18 }
 0x22e   :  { %v664_v46 = vadd.f32 %v2799_v54, %v638_v1 }
 0x22f   :  { %v3178_v37 = vadd.f32 %v968_v23, %v665_v22  ;;  %v3180_v62 = vadd.f32 %v824_v42, %v665_v22 }
 0x230   :  { %v3184_v49 = vadd.f32 %v967_v45, %v664_v46  ;;  %v608_v20 = vpop.permute.xlu0 %607  ;;  %v3186_v14 = vadd.f32 %v823_v7, %v664_v46 }
 0x231   :  { %v1156_v26 = vmax.f32 %v3097_v28, %v3178_v37  ;;  %v625_v38 = vadd.f32 %v608_v20, %v2905_v27  ;;  %1013 = vmax.xlane.f32.xlu1 %v3180_v62  ;;  %v603_v61 = vpop.permute.xlu1 %602 }
 0x232   :  { %v1155_v43 = vmax.f32 %v1151_v57, %v3184_v49  ;;  %v624_v44 = vadd.f32 %v603_v61, %v2905_v27  ;;  %1011 = vmax.xlane.f32.xlu0 %v3186_v14 }
 0x233   :  { %v641_v29 = vadd.f32 %v3032_v31, %v625_v38 }
 0x234   :  { %v1159_v28 = vmax.f32 %v1155_v43, %v1156_v26  ;;  %v640_v57 = vadd.f32 %v624_v44, %v3035_v35  ;;  %v922_v27 = vpop.permute.xlu0 %921 }
 0x235   :  { %v667_v11 = vadd.f32 %v2799_v54, %v641_v29  ;;  %vm938_vm4 = vcmp.eq.s32.totalorder %v922_v27, 1  ;;  %v919_v8 = vpop.permute.xlu1 %918 }
 0x236   :  { %v666_v60 = vadd.f32 %v2799_v54, %v640_v57  ;;  %vm954_vm13 = vmand %vm786_vm0, %vm938_vm4  ;;  %vm937_vm2 = vcmp.eq.s32.totalorder %v919_v8, 1 }
 0x237   :  { %v970_v31 = vsel %vm954_vm13, 0.0, %v2502_v39  ;;  %vm953_vm3 = vmand %vm785_vm1, %vm937_vm2  ;;  %v3220_v35 = vadd.f32 %v826_v4, %v667_v11 }
 0x238   :  { %v3222_v17 = vadd.f32 %v970_v31, %v667_v11  ;;  %v969_v59 = vsel %vm953_vm3, 0.0, %v2502_v39  ;;  %v3225_v54 = vadd.f32 %v825_v21, %v666_v60 }
 0x239   :  { %v3227_v12 = vadd.f32 %v969_v59, %v666_v60  ;;  %1017 = vmax.xlane.f32.xlu1 %v3220_v35 }
 0x23a   :  { %v1158_v6 = vmax.f32 %v1154_v25, %v3222_v17  ;;  %1015 = vmax.xlane.f32.xlu0 %v3225_v54 }
 0x23b   :  { %v1157_v19 = vmax.f32 %v1153_v2, %v3227_v12 }
 0x23d   :  { %v1160_v32 = vmax.f32 %v1157_v19, %v1158_v6 }
 0x23f   :  { %v1161_v9 = vmax.f32 %v1159_v28, %v1160_v32 }
 0x241   :  { %v1162_v18 = vrot.slane %v1161_v9, 4 }
 0x243   :  { %v1163_v1 = vmax.f32 %v1161_v9, %v1162_v18 }
 0x245   :  { %v1164_v22 = vrot.slane %v1163_v1, 2 }
 0x247   :  { %v1165_v23 = vmax.f32 %v1163_v1, %v1164_v22 }
 0x249   :  { %v1166_v46 = vrot.slane %v1165_v23, 1 }
 0x24b   :  { %v1167_v39 = vmax.f32 %v1165_v23, %v1166_v46 }
 0x24d   :  { %v1182_v42 = vsub.f32 %v3227_v12, %v1167_v39  ;;  %v1168_v7 = vsub.f32 %v2934_v51, %v1167_v39  ;;  %v1169_v45 = vsub.f32 %v2929_v13, %v1167_v39  ;;  %v1170_v25 = vsub.f32 %v2970_v33, %v1167_v39 }
 0x24e   :  { %v1171_v20 = vsub.f32 %v2965_v0, %v1167_v39  ;;  %v1172_v2 = vsub.f32 %v3008_v5, %v1167_v39  ;;  %v1173_v26 = vsub.f32 %v3003_v3, %v1167_v39  ;;  %v1174_v38 = vsub.f32 %v3053_v41, %v1167_v39 }
 0x24f   :  { %v1175_v61 = vsub.f32 %v3047_v36, %v1167_v39  ;;  %v1176_v43 = vsub.f32 %v3092_v55, %v1167_v39  ;;  %v1177_v44 = vsub.f32 %v3087_v30, %v1167_v39  ;;  %v1178_v51 = vsub.f32 %v3135_v50, %v1167_v39 }
 0x250   :  { %v1179_v13 = vsub.f32 %v3128_v15, %v1167_v39  ;;  %v1180_v33 = vsub.f32 %v3184_v49, %v1167_v39  ;;  %v1181_v0 = vsub.f32 %v3178_v37, %v1167_v39  ;;  %v1183_v5 = vsub.f32 %v3222_v17, %v1167_v39 }
 0x251   :  { %v1184_v29 = vmul.f32 1.442695, %v1168_v7  ;;  %v1186_v3 = vmul.f32 1.442695, %v1169_v45  ;;  %v1188_v28 = vmul.f32 1.442695, %v1170_v25 }
 0x252   :  { %v1190_v36 = vmul.f32 1.442695, %v1171_v20  ;;  %v1192_v41 = vmul.f32 1.442695, %v1172_v2  ;;  %v1194_v30 = vmul.f32 1.442695, %v1173_v26 }
 0x253   :  { %2400 = vpow2.f32 %v1184_v29  ;;  %v1196_v55 = vmul.f32 1.442695, %v1174_v38  ;;  %v1198_v15 = vmul.f32 1.442695, %v1175_v61  ;;  %v1200_v37 = vmul.f32 1.442695, %v1176_v43 }
 0x254   :  { %2402 = vpow2.f32 %v1186_v3  ;;  %v1202_v11 = vmul.f32 1.442695, %v1177_v44  ;;  %v1204_v60 = vmul.f32 1.442695, %v1178_v51  ;;  %v1206_v17 = vmul.f32 1.442695, %v1179_v13 }
 0x255   :  { %2404 = vpow2.f32 %v1188_v28  ;;  %v1208_v6 = vmul.f32 1.442695, %v1180_v33  ;;  %v1210_v9 = vmul.f32 1.442695, %v1181_v0  ;;  %v1212_v22 = vmul.f32 1.442695, %v1182_v42 }
 0x256   :  { %2406 = vpow2.f32 %v1190_v36  ;;  %v1214_v39 = vmul.f32 1.442695, %v1183_v5 }
 0x257   :  { %2408 = vpow2.f32 %v1192_v41 }
 0x258   :  { %2410 = vpow2.f32 %v1194_v30 }
 0x259   :  { %2412 = vpow2.f32 %v1196_v55 }
 0x25a   :  { %2414 = vpow2.f32 %v1198_v15 }
 0x25b   :  { %2416 = vpow2.f32 %v1200_v37 }
 0x25c   :  { %2418 = vpow2.f32 %v1202_v11 }
 0x25d   :  { %v3249_v50 = vpop.eup %2400  ;;  %2420 = vpow2.f32 %v1204_v60 }
 0x25e   :  { %v3251_v49 = vpop.eup %2402  ;;  %2422 = vpow2.f32 %v1206_v17 }
 0x25f   :  { %v1216_v57 = vadd.f32 %v3251_v49, %v3249_v50  ;;  %v2405_v27 = vpop.eup %2404  ;;  %2424 = vpow2.f32 %v1208_v6 }
 0x260   :  { %v2407_v4 = vpop.eup %2406  ;;  %2426 = vpow2.f32 %v1210_v9 }
 0x261   :  { %v1217_v8 = vadd.f32 %v2405_v27, %v1216_v57  ;;  %v2409_v31 = vpop.eup %2408  ;;  %2428 = vpow2.f32 %v1212_v22 }
 0x262   :  { %v2411_v12 = vpop.eup %2410  ;;  %2430 = vpow2.f32 %v1214_v39 }
 0x263   :  { %v1218_v21 = vadd.f32 %v2407_v4, %v1217_v8  ;;  %v2413_v32 = vpop.eup %2412 }
 0x264   :  { %v2415_v1 = vpop.eup %2414 }
 0x265   :  { %v1219_v59 = vadd.f32 %v2409_v31, %v1218_v21  ;;  %v2417_v46 = vpop.eup %2416 }
 0x266   :  { %v2419_v45 = vpop.eup %2418 }
 0x267   :  { %v1220_v19 = vadd.f32 %v2411_v12, %v1219_v59  ;;  %v2421_v20 = vpop.eup %2420 }
 0x268   :  { %v2423_v26 = vpop.eup %2422 }
 0x269   :  { %v1221_v18 = vadd.f32 %v2413_v32, %v1220_v19  ;;  %v2425_v61 = vpop.eup %2424 }
 0x26a   :  { %v2427_v44 = vpop.eup %2426 }
 0x26b   :  { %v1222_v23 = vadd.f32 %v2415_v1, %v1221_v18  ;;  %v2429_v13 = vpop.eup %2428 }
 0x26c   :  { %v2431_v33 = vpop.eup %2430 }
 0x26d   :  { %v1223_v7 = vadd.f32 %v2417_v46, %v1222_v23 }
 0x26f   :  { %v1224_v25 = vadd.f32 %v2419_v45, %v1223_v7 }
 0x271   :  { %v1225_v2 = vadd.f32 %v2421_v20, %v1224_v25 }
 0x273   :  { %v1226_v38 = vadd.f32 %v2423_v26, %v1225_v2 }
 0x275   :  { %v1227_v43 = vadd.f32 %v2425_v61, %v1226_v38 }
 0x277   :  { %v1228_v51 = vadd.f32 %v2427_v44, %v1227_v43 }
 0x279   :  { %v1229_v42 = vadd.f32 %v2429_v13, %v1228_v51 }
 0x27b   :  { %v1230_v0 = vadd.f32 %v2431_v33, %v1229_v42 }
 0x27d   :  { %v1231_v29 = vrot.slane %v1230_v0, 4 }
 0x27f   :  { %v1232_v3 = vadd.f32 %v1231_v29, %v1230_v0 }
 0x281   :  { %v1233_v5 = vrot.slane %v1232_v3, 2 }
 0x283   :  { %v1234_v28 = vadd.f32 %v1233_v5, %v1232_v3 }
 0x285   :  { %v1235_v36 = vrot.slane %v1234_v28, 1 }
 0x287   :  { %v1236_v41 = vadd.f32 %v1235_v36, %v1234_v28 }
 0x289   :  { %2432 = vrcp.f32 %v1236_v41 }
 0x28e   :  { %v990_v30 = vpop.xlane.xlu0 %989 }
 0x28f   :  { %v1020_v55 = vsub.f32 %v2931_v48, %v990_v30  ;;  %v988_v15 = vpop.xlane.xlu1 %987 }
 0x290   :  { %v1019_v37 = vsub.f32 %v2936_v63, %v988_v15 }
 0x291   :  { %v1037_v57 = vmul.f32 1.442695, %v1020_v55 }
 0x292   :  { %v1035_v11 = vmul.f32 1.442695, %v1019_v37 }
 0x293   :  { %v2433_v8 = vpop.eup %2432  ;;  %2434 = vpow2.f32 %v1037_v57 }
 0x294   :  { %2436 = vpow2.f32 %v1035_v11  ;;  %v1238_v60 = vmul.f32 %v2433_v8, %v3249_v50  ;;  %v1239_v21 = vmul.f32 %v2433_v8, %v3251_v49  ;;  %v1240_v17 = vmul.f32 %v2433_v8, %v2405_v27 }
 0x295   :  { %v1241_v59 = vmul.f32 %v2433_v8, %v2407_v4  ;;  %v1242_v6 = vmul.f32 %v2433_v8, %v2409_v31  ;;  %v1243_v19 = vmul.f32 %v2433_v8, %v2411_v12  ;;  %v1244_v9 = vmul.f32 %v2433_v8, %v2413_v32 }
 0x296   :  { %v2309_v18 = vpack.c.bf16 %v1239_v21, %v1238_v60  ;;  %v994_v22 = vpop.xlane.xlu1 %993  ;;  %v1245_v48 = vmul.f32 %v2433_v8, %v2415_v1  ;;  %v1246_v23 = vmul.f32 %v2433_v8, %v2417_v46  ;;  %v1247_v39 = vmul.f32 %v2433_v8, %v2419_v45 }
 0x297   :  { %v1022_v63 = vsub.f32 %v2967_v58, %v994_v22  ;;  %v992_v7 = vpop.xlane.xlu0 %991  ;;  %v2313_v25 = vpack.c.bf16 %v1241_v59, %v1240_v17  ;;  %v2317_v2 = vpack.c.bf16 %v1243_v19, %v1242_v6  ;;  %v1248_v38 = vmul.f32 %v2433_v8, %v2421_v20 }
 0x298   :  { %2310 = vmatprep.subr.bf16.mxu1 %v2309_v18  ;;  %v1021_v50 = vsub.f32 %v2972_v16, %v992_v7  ;;  %v2321_v49 = vpack.c.bf16 %v1245_v48, %v1244_v9  ;;  %v3261_v27 = vpack.c.bf16 %v1247_v39, %v1246_v23  ;;  %v1249_v4 = vmul.f32 %v2433_v8, %v2423_v26 }
 0x299   :  { %2312 = vmatpush3.bf16.xpose.msra.mxu1 %v2309_v18  ;;  %v1041_v31 = vmul.f32 1.442695, %v1022_v63  ;;  %v1250_v12 = vmul.f32 %v2433_v8, %v2425_v61  ;;  %v1251_v32 = vmul.f32 %v2433_v8, %v2427_v44  ;;  %v1252_v1 = vmul.f32 %v2433_v8, %v2429_v13 }
 0x29a   :  { %v1039_v46 = vmul.f32 1.442695, %v1021_v50  ;;  %2314 = vmatprep.subr.bf16.mxu1 %v2313_v25  ;;  %v3263_v45 = vpack.c.bf16 %v1249_v4, %v1248_v38  ;;  %v1253_v58 = vmul.f32 %v2433_v8, %v2431_v33 }
 0x29b   :  { %2438 = vpow2.f32 %v1041_v31  ;;  %v3265_v43 = vpack.c.bf16 %v1251_v32, %v1250_v12 }
 0x29c   :  { %2440 = vpow2.f32 %v1039_v46  ;;  %v3267_v20 = vpack.c.bf16 %v1253_v58, %v1252_v1 }
 0x29d   :  { %v3269_v16 = vpop.eup %2434 }
 0x29e   :  { %v3271_v51 = vpop.eup %2436  ;;  %1069 = vadd.xlane.f32.xlu1 %v3269_v16  ;;  %v998_v26 = vpop.xlane.xlu1 %997 }
 0x29f   :  { %v1024_v61 = vsub.f32 %v3005_v24, %v998_v26  ;;  %v996_v44 = vpop.xlane.xlu0 %995  ;;  %1067 = vadd.xlane.f32.xlu0 %v3271_v51 }
 0x2a0   :  { %v1023_v13 = vsub.f32 %v3010_v10, %v996_v44 }
 0x2a1   :  { %2316 = vmatpush3.bf16.xpose.msra.mxu1 %v2313_v25  ;;  %v1045_v42 = vmul.f32 1.442695, %v1024_v61 }
 0x2a2   :  { %v1043_v33 = vmul.f32 1.442695, %v1023_v13  ;;  %2318 = vmatprep.subr.bf16.mxu1 %v2317_v2 }
 0x2a3   :  { %2442 = vpow2.f32 %v1045_v42 }
 0x2a4   :  { %2444 = vpow2.f32 %v1043_v33 }
 0x2a5   :  { %v3277_v0 = vpop.eup %2438 }
 0x2a6   :  { %v3279_v29 = vpop.eup %2440  ;;  %1073 = vadd.xlane.f32.xlu1 %v3277_v0  ;;  %v1002_v3 = vpop.xlane.xlu1 %1001 }
 0x2a7   :  { %v1026_v24 = vsub.f32 %v3049_v40, %v1002_v3  ;;  %v1000_v5 = vpop.xlane.xlu0 %999  ;;  %1071 = vadd.xlane.f32.xlu0 %v3279_v29 }
 0x2a8   :  { %v1025_v10 = vsub.f32 %v3055_v47, %v1000_v5 }
 0x2a9   :  { %2320 = vmatpush3.bf16.xpose.msra.mxu1 %v2317_v2  ;;  %v1049_v28 = vmul.f32 1.442695, %v1026_v24 }
 0x2aa   :  { %v1047_v36 = vmul.f32 1.442695, %v1025_v10  ;;  %2322 = vmatprep.subr.bf16.mxu1 %v2321_v49 }
 0x2ab   :  { %2446 = vpow2.f32 %v1049_v28 }
 0x2ac   :  { %2448 = vpow2.f32 %v1047_v36 }
 0x2ad   :  { %v3285_v41 = vpop.eup %2442 }
 0x2ae   :  { %v3287_v30 = vpop.eup %2444  ;;  %1077 = vadd.xlane.f32.xlu1 %v3285_v41  ;;  %v1006_v55 = vpop.xlane.xlu1 %1005 }
 0x2af   :  { %v1028_v40 = vsub.f32 %v3089_v52, %v1006_v55  ;;  %v1004_v15 = vpop.xlane.xlu0 %1003  ;;  %1075 = vadd.xlane.f32.xlu0 %v3287_v30 }
 0x2b0   :  { %v1027_v47 = vsub.f32 %v3094_v34, %v1004_v15 }
 0x2b1   :  { %2324 = vmatpush3.bf16.xpose.msra.mxu1 %v2321_v49  ;;  %v1053_v37 = vmul.f32 1.442695, %v1028_v40 }
 0x2b2   :  { %v1051_v57 = vmul.f32 1.442695, %v1027_v47  ;;  %2326 = vmatprep.subr.bf16.mxu1 %v3261_v27 }
 0x2b3   :  { %2450 = vpow2.f32 %v1053_v37 }
 0x2b4   :  { %2452 = vpow2.f32 %v1051_v57 }
 0x2b5   :  { %v3294_v11 = vpop.eup %2446 }
 0x2b6   :  { %v3296_v8 = vpop.eup %2448  ;;  %1081 = vadd.xlane.f32.xlu1 %v3294_v11  ;;  %v1010_v60 = vpop.xlane.xlu1 %1009 }
 0x2b7   :  { %v1030_v52 = vsub.f32 %v3130_v53, %v1010_v60  ;;  %v1008_v21 = vpop.xlane.xlu0 %1007  ;;  %1079 = vadd.xlane.f32.xlu0 %v3296_v8 }
 0x2b8   :  { %v1029_v34 = vsub.f32 %v3137_v56, %v1008_v21 }
 0x2b9   :  { %2328 = vmatpush3.bf16.xpose.msra.mxu1 %v3261_v27  ;;  %v1057_v17 = vmul.f32 1.442695, %v1030_v52 }
 0x2ba   :  { %v1055_v59 = vmul.f32 1.442695, %v1029_v34  ;;  %2330 = vmatprep.subr.bf16.mxu1 %v3263_v45 }
 0x2bb   :  { %2454 = vpow2.f32 %v1057_v17 }
 0x2bc   :  { %2456 = vpow2.f32 %v1055_v59 }
 0x2bd   :  { %v3304_v6 = vpop.eup %2450 }
 0x2be   :  { %v3306_v19 = vpop.eup %2452  ;;  %1085 = vadd.xlane.f32.xlu1 %v3304_v6  ;;  %v1014_v53 = vpop.xlane.xlu1 %1013 }
 0x2bf   :  { %v1032_v9 = vsub.f32 %v3180_v62, %v1014_v53  ;;  %v1012_v18 = vpop.xlane.xlu0 %1011  ;;  %1083 = vadd.xlane.f32.xlu0 %v3306_v19 }
 0x2c0   :  { %v1031_v56 = vsub.f32 %v3186_v14, %v1012_v18 }
 0x2c1   :  { %2332 = vmatpush3.bf16.xpose.msra.mxu1 %v3263_v45  ;;  %v1061_v22 = vmul.f32 1.442695, %v1032_v9 }
 0x2c2   :  { %v1059_v48 = vmul.f32 1.442695, %v1031_v56  ;;  %2334 = vmatprep.subr.bf16.mxu1 %v3265_v43 }
 0x2c3   :  { %2458 = vpow2.f32 %v1061_v22 }
 0x2c4   :  { %2460 = vpow2.f32 %v1059_v48 }
 0x2c5   :  { %v3314_v23 = vpop.eup %2454 }
 0x2c6   :  { %v3316_v39 = vpop.eup %2456  ;;  %1089 = vadd.xlane.f32.xlu1 %v3314_v23  ;;  %v1018_v62 = vpop.xlane.xlu1 %1017 }
 0x2c7   :  { %v1034_v63 = vsub.f32 %v3220_v35, %v1018_v62  ;;  %v1016_v7 = vpop.xlane.xlu0 %1015  ;;  %1087 = vadd.xlane.f32.xlu0 %v3316_v39 }
 0x2c8   :  { %v1033_v14 = vsub.f32 %v3225_v54, %v1016_v7  ;;  %v2498_v7 = vld [vmem:[%s3407_s0 + $0x18] sm:$0xff] }
 0x2c9   :  { %2336 = vmatpush3.bf16.xpose.msra.mxu1 %v3265_v43  ;;  %v1065_v25 = vmul.f32 1.442695, %v1034_v63 }
 0x2ca   :  { %v1063_v2 = vmul.f32 1.442695, %v1033_v14  ;;  %2338 = vmatprep.subr.bf16.mxu1 %v3267_v20  ;;  %v3359_v14 = vld [vmem:[%s3407_s0] sm:$0xff] }
 0x2cb   :  { %2462 = vpow2.f32 %v1065_v25  ;;  %v1551_v25 = vld [vmem:[%s3415_s9 + $0x10] sm:$0xff] }
 0x2cc   :  { %2464 = vpow2.f32 %v1063_v2 }
 0x2cd   :  { %v3324_v38 = vpop.eup %2458 }
 0x2ce   :  { %v3326_v50 = vpop.eup %2460  ;;  %1093 = vadd.xlane.f32.xlu1 %v3324_v38 }
 0x2cf   :  { %1091 = vadd.xlane.f32.xlu0 %v3326_v50 }
 0x2d1   :  { %2340 = vmatpush3.bf16.xpose.msra.mxu1 %v3267_v20 }
 0x2d5   :  { %v3331_v35 = vpop.eup %2462 }
 0x2d6   :  { %v3333_v54 = vpop.eup %2464  ;;  %1097 = vadd.xlane.f32.xlu1 %v3331_v35 }
 0x2d7   :  { %1095 = vadd.xlane.f32.xlu0 %v3333_v54 }
 0x32b   :  { %v1070_v49 = vpop.xlane.xlu1 %1069 }
 0x32c   :  { %2466 = vrcp.f32 %v1070_v49  ;;  %v1068_v27 = vpop.xlane.xlu0 %1067 }
 0x32d   :  { %2468 = vrcp.f32 %v1068_v27 }
 0x333   :  { %v1074_v4 = vpop.xlane.xlu1 %1073 }
 0x334   :  { %2470 = vrcp.f32 %v1074_v4  ;;  %v1072_v31 = vpop.xlane.xlu0 %1071 }
 0x335   :  { %2472 = vrcp.f32 %v1072_v31 }
 0x336   :  { %v2467_v12 = vpop.eup %2466 }
 0x337   :  { %v2469_v32 = vpop.eup %2468  ;;  %v1116_v1 = vmul.f32 %v2467_v12, %v3269_v16 }
 0x338   :  { %v1115_v46 = vmul.f32 %v2469_v32, %v3271_v51 }
 0x33a   :  { %2182 = vmatprep.mubr.f32.mxu1 %v1115_v46  ;;  %v2277_v45 = vpack.c.bf16 %v1116_v1, %v1115_v46 }
 0x33b   :  { %2183 = vmatmul.mubr.f32.vlgmr.msra.gmra.mrb[16].mxu1 %v1116_v1  ;;  %v1078_v58 = vpop.xlane.xlu1 %1077 }
 0x33c   :  { %2474 = vrcp.f32 %v1078_v58  ;;  %v1076_v43 = vpop.xlane.xlu0 %1075  ;;  %2278 = vmatprep.subr.bf16.mxu0 %v2277_v45 }
 0x33d   :  { %2476 = vrcp.f32 %v1076_v43  ;;  %2280 = vmatpush3.bf16.xpose.msra.mxu0 %v2277_v45 }
 0x33e   :  { %v2471_v20 = vpop.eup %2470 }
 0x33f   :  { %v2473_v26 = vpop.eup %2472  ;;  %v1118_v61 = vmul.f32 %v2471_v20, %v3277_v0 }
 0x340   :  { %v1117_v44 = vmul.f32 %v2473_v26, %v3279_v29 }
 0x342   :  { %2185 = vmatprep.mubr.f32.mxu1 %v1117_v44  ;;  %v2281_v13 = vpack.c.bf16 %v1118_v61, %v1117_v44 }
 0x343   :  { %2186 = vmatmul.mubr.f32.gmra.mrb[18].mxu1 %v1118_v61  ;;  %v1082_v16 = vpop.xlane.xlu1 %1081 }
 0x344   :  { %2478 = vrcp.f32 %v1082_v16  ;;  %v1080_v51 = vpop.xlane.xlu0 %1079  ;;  %2282 = vmatprep.subr.bf16.mxu0 %v2281_v13 }
 0x345   :  { %2480 = vrcp.f32 %v1080_v51  ;;  %2284 = vmatpush3.bf16.xpose.msra.mxu0 %v2281_v13 }
 0x346   :  { %v2475_v42 = vpop.eup %2474 }
 0x347   :  { %v2477_v33 = vpop.eup %2476  ;;  %v1120_v3 = vmul.f32 %v2475_v42, %v3285_v41 }
 0x348   :  { %v1119_v24 = vmul.f32 %v2477_v33, %v3287_v30 }
 0x34a   :  { %2188 = vmatprep.mubr.f32.mxu1 %v1119_v24  ;;  %v2285_v5 = vpack.c.bf16 %v1120_v3, %v1119_v24 }
 0x34b   :  { %2189 = vmatmul.mubr.f32.gmra.mrb[20].mxu1 %v1120_v3  ;;  %v1086_v0 = vpop.xlane.xlu1 %1085  ;;  %v2500_v3 = vld [vmem:[%s3407_s0 + $0x8] sm:$0xff] }
 0x34c   :  { %2482 = vrcp.f32 %v1086_v0  ;;  %v1084_v29 = vpop.xlane.xlu0 %1083  ;;  %2286 = vmatprep.subr.bf16.mxu0 %v2285_v5 }
 0x34d   :  { %2484 = vrcp.f32 %v1084_v29  ;;  %2288 = vmatpush3.bf16.xpose.msra.mxu0 %v2285_v5 }
 0x34e   :  { %v2479_v10 = vpop.eup %2478 }
 0x34f   :  { %v2481_v28 = vpop.eup %2480  ;;  %v1122_v36 = vmul.f32 %v2479_v10, %v3294_v11  ;;  %v2377_v10 = vpack.c.bf16 %v2500_v3, %v3359_v14 }
 0x350   :  { %v1121_v55 = vmul.f32 %v2481_v28, %v3296_v8 }
 0x352   :  { %2191 = vmatprep.mubr.f32.mxu1 %v1121_v55  ;;  %v2289_v40 = vpack.c.bf16 %v1122_v36, %v1121_v55  ;;  %v1549_v55 = vld [vmem:[%s3415_s9] sm:$0xff] }
 0x353   :  { %2192 = vmatmul.mubr.f32.gmra.mrb[22].mxu1 %v1122_v36  ;;  %v1090_v41 = vpop.xlane.xlu1 %1089  ;;  %v1552_v36 = vld [vmem:[%s3415_s9 + $0x18] sm:$0xff] }
 0x354   :  { %2486 = vrcp.f32 %v1090_v41  ;;  %v1088_v30 = vpop.xlane.xlu0 %1087  ;;  %2290 = vmatprep.subr.bf16.mxu0 %v2289_v40  ;;  %v1553_v41 = vld [vmem:[%s3415_s9 + $0x20] sm:$0xff] }
 0x355   :  { %2488 = vrcp.f32 %v1088_v30  ;;  %2292 = vmatpush3.bf16.xpose.msra.mxu0 %v2289_v40  ;;  %v1550_v40 = vld [vmem:[%s3415_s9 + $0x8] sm:$0xff] }
 0x356   :  { %v2483_v15 = vpop.eup %2482  ;;  %v1554_v30 = vld [vmem:[%s3415_s9 + $0x28] sm:$0xff] }
 0x357   :  { %v2485_v47 = vpop.eup %2484  ;;  %v1124_v37 = vmul.f32 %v2483_v15, %v3304_v6  ;;  %v1555_v15 = vld [vmem:[%s3415_s9 + $0x30] sm:$0xff] }
 0x358   :  { %v1123_v57 = vmul.f32 %v2485_v47, %v3306_v19 }
 0x35a   :  { %2194 = vmatprep.mubr.f32.mxu1 %v1123_v57  ;;  %v2293_v60 = vpack.c.bf16 %v1124_v37, %v1123_v57 }
 0x35b   :  { %2195 = vmatmul.mubr.f32.gmra.mrb[24].mxu1 %v1124_v37  ;;  %v1094_v11 = vpop.xlane.xlu1 %1093 }
 0x35c   :  { %2490 = vrcp.f32 %v1094_v11  ;;  %v1092_v8 = vpop.xlane.xlu0 %1091  ;;  %2294 = vmatprep.subr.bf16.mxu0 %v2293_v60 }
 0x35d   :  { %2492 = vrcp.f32 %v1092_v8  ;;  %2296 = vmatpush3.bf16.xpose.msra.mxu0 %v2293_v60  ;;  %v1556_v8 = vld [vmem:[%s3415_s9 + $0x38] sm:$0xff] }
 0x35e   :  { %v2487_v52 = vpop.eup %2486 }
 0x35f   :  { %v2489_v21 = vpop.eup %2488  ;;  %v1126_v34 = vmul.f32 %v2487_v52, %v3314_v23 }
 0x360   :  { %v1125_v17 = vmul.f32 %v2489_v21, %v3316_v39 }
 0x362   :  { %2197 = vmatprep.mubr.f32.mxu1 %v1125_v17  ;;  %v2297_v59 = vpack.c.bf16 %v1126_v34, %v1125_v17 }
 0x363   :  { %2198 = vmatmul.mubr.f32.gmra.mrb[26].mxu1 %v1126_v34  ;;  %v1098_v6 = vpop.xlane.xlu1 %1097 }
 0x364   :  { %2494 = vrcp.f32 %v1098_v6  ;;  %v1096_v19 = vpop.xlane.xlu0 %1095  ;;  %2298 = vmatprep.subr.bf16.mxu0 %v2297_v59 }
 0x365   :  { %2496 = vrcp.f32 %v1096_v19  ;;  %2300 = vmatpush3.bf16.xpose.msra.mxu0 %v2297_v59 }
 0x366   :  { %v2491_v53 = vpop.eup %2490 }
 0x367   :  { %v2493_v9 = vpop.eup %2492  ;;  %v1128_v18 = vmul.f32 %v2491_v53, %v3324_v38 }
 0x368   :  { %v1127_v56 = vmul.f32 %v2493_v9, %v3326_v50 }
 0x36a   :  { %2200 = vmatprep.mubr.f32.mxu1 %v1127_v56  ;;  %v2301_v22 = vpack.c.bf16 %v1128_v18, %v1127_v56 }
 0x36b   :  { %2201 = vmatmul.mubr.f32.gmra.mrb[28].mxu1 %v1128_v18 }
 0x36c   :  { %2302 = vmatprep.subr.bf16.mxu0 %v2301_v22 }
 0x36d   :  { %2304 = vmatpush3.bf16.xpose.msra.mxu0 %v2301_v22 }
 0x36e   :  { %v2495_v48 = vpop.eup %2494 }
 0x36f   :  { %v2497_v23 = vpop.eup %2496  ;;  %v1130_v39 = vmul.f32 %v2495_v48, %v3331_v35 }
 0x370   :  { %v1129_v62 = vmul.f32 %v2497_v23, %v3333_v54 }
 0x372   :  { %2203 = vmatprep.mubr.f32.mxu1 %v1129_v62  ;;  %v2305_v63 = vpack.c.bf16 %v1130_v39, %v1129_v62 }
 0x373   :  { %2204 = vmatmul.mubr.f32.gmra.mrb[30].mxu1 %v1130_v39 }
 0x374   :  { %2306 = vmatprep.subr.bf16.mxu0 %v2305_v63  ;;  %2245 = vmatprep.mubr.msk.f32.mxu1 %vm3459_vm5, %v1551_v25 }
 0x375   :  { %2308 = vmatpush3.bf16.xpose.msra.mxu0 %v2305_v63 }
 0x37c   :  { %2148 = vmatmul.mubr.f32.vlgmr.msra.gmra.mrb[16].mxu0 %v2498_v7 }
 0x37d   :  { %2238 = vmatprep.mubr.f32.mxu0 %v3359_v14 }
 0x40e   :  { %v2184_v2 = vpop.f32.mrb[16].mxu1 }
 0x40f   :  { %v1395_v38 = vpop.f32.mrb[17].mxu1 }
 0x410   :  { %v2341_v50 = vpack.c.bf16 %v2184_v2, %v1395_v38 }
 0x412   :  { %2342 = vmatprep.subr.bf16.mxu0 %v2341_v50 }
 0x413   :  { %2344 = vmatpush3.bf16.xpose.msra.mxu0 %v2341_v50 }
 0x416   :  { %v2187_v35 = vpop.f32.mrb[18].mxu1 }
 0x417   :  { %v1405_v54 = vpop.f32.mrb[19].mxu1 }
 0x418   :  { %v2345_v49 = vpack.c.bf16 %v2187_v35, %v1405_v54 }
 0x41a   :  { %2346 = vmatprep.subr.bf16.mxu0 %v2345_v49 }
 0x41b   :  { %2348 = vmatpush3.bf16.xpose.msra.mxu0 %v2345_v49 }
 0x41e   :  { %v2190_v27 = vpop.f32.mrb[20].mxu1 }
 0x41f   :  { %v1415_v4 = vpop.f32.mrb[21].mxu1 }
 0x420   :  { %v2349_v31 = vpack.c.bf16 %v2190_v27, %v1415_v4 }
 0x422   :  { %2350 = vmatprep.subr.bf16.mxu0 %v2349_v31 }
 0x423   :  { %2352 = vmatpush3.bf16.xpose.msra.mxu0 %v2349_v31 }
 0x426   :  { %v2193_v12 = vpop.f32.mrb[22].mxu1 }
 0x427   :  { %v1425_v32 = vpop.f32.mrb[23].mxu1 }
 0x428   :  { %v2353_v1 = vpack.c.bf16 %v2193_v12, %v1425_v32 }
 0x42a   :  { %2354 = vmatprep.subr.bf16.mxu0 %v2353_v1 }
 0x42b   :  { %2356 = vmatpush3.bf16.xpose.msra.mxu0 %v2353_v1 }
 0x42e   :  { %v2196_v46 = vpop.f32.mrb[24].mxu1 }
 0x42f   :  { %v1435_v45 = vpop.f32.mrb[25].mxu1 }
 0x430   :  { %v2357_v58 = vpack.c.bf16 %v2196_v46, %v1435_v45 }
 0x432   :  { %2358 = vmatprep.subr.bf16.mxu0 %v2357_v58 }
 0x433   :  { %2360 = vmatpush3.bf16.xpose.msra.mxu0 %v2357_v58 }
 0x436   :  { %v2199_v43 = vpop.f32.mrb[26].mxu1 }
 0x437   :  { %v1445_v20 = vpop.f32.mrb[27].mxu1 }
 0x438   :  { %v2361_v26 = vpack.c.bf16 %v2199_v43, %v1445_v20 }
 0x43a   :  { %2362 = vmatprep.subr.bf16.mxu0 %v2361_v26 }
 0x43b   :  { %2364 = vmatpush3.bf16.xpose.msra.mxu0 %v2361_v26 }
 0x43e   :  { %v2202_v61 = vpop.f32.mrb[28].mxu1 }
 0x43f   :  { %v1455_v44 = vpop.f32.mrb[29].mxu1 }
 0x440   :  { %v2365_v13 = vpack.c.bf16 %v2202_v61, %v1455_v44 }
 0x442   :  { %2366 = vmatprep.subr.bf16.mxu0 %v2365_v13 }
 0x443   :  { %2368 = vmatpush3.bf16.xpose.msra.mxu0 %v2365_v13 }
 0x446   :  { %v2205_v16 = vpop.f32.mrb[30].mxu1 }
 0x447   :  { %v1465_v51 = vpop.f32.mrb[31].mxu1 }
 0x448   :  { %v2369_v42 = vpack.c.bf16 %v2205_v16, %v1465_v51 }
 0x44a   :  { %2370 = vmatprep.subr.bf16.mxu0 %v2369_v42 }
 0x44b   :  { %2372 = vmatpush3.bf16.xpose.msra.mxu0 %v2369_v42 }
 0x44f   :  { %v2149_v33 = vpop.f32.mrb[16].mxu0 }
 0x450   :  { %v1720_v24 = vmul.f32 %v2500_v3, %v2149_v33  ;;  %v1320_v5 = vpop.f32.mrb[17].mxu0 }
 0x451   :  { %v2373_v0 = vpack.c.bf16 %v2149_v33, %v1320_v5  ;;  %v1719_v29 = vmul.f32 %v3359_v14, %v1320_v5 }
 0x452   :  { %2239 = vmatmul.mubr.f32.vlgmr.msra.gmra.mrb[18].mxu0 %v2500_v3 }
 0x453   :  { %v2381_v28 = vpack.c.bf16 %v1720_v24, %v1719_v29  ;;  %2374 = vmatprep.subr.bf16.mxu1 %v2373_v0 }
 0x454   :  { %2376 = vmatpush3.bf16.msra.mxu1 %v2373_v0 }
 0x455   :  { %2378 = vmatprep.subr.bf16.mxu1 %v2377_v10 }
 0x457   :  { %2246 = vmatmul.mubr.msk.f32.vlgmr.msra.gmra.mrb[32].mxu1 %vm3460_vm10, %v1552_v36 }
 0x458   :  { %2380 = vmatpush3.bf16.msra.mxu1 %v2377_v10  ;;  %2252 = vmatprep.mubr.msk.f32.mxu1 %vm3461_vm11, %v1549_v55 }
 0x459   :  { %2382 = vmatprep.subr.bf16.mxu1 %v2381_v28 }
 0x45f   :  { %2253 = vmatmul.mubr.msk.f32.vlgmr.msra.gmra.mrb[32].mxu1 %vm3462_vm15, %v1550_v40 }
 0x460   :  { %2384 = vmatpush3.bf16.msra.mxu1 %v2381_v28  ;;  %2259 = vmatprep.mubr.msk.f32.mxu1 %vm3463_vm12, %v1553_v41 }
 0x467   :  { %2260 = vmatmul.mubr.msk.f32.vlgmr.msra.gmra.mrb[32].mxu1 %vm3464_vm14, %v1554_v30 }
 0x468   :  { %2266 = vmatprep.mubr.msk.f32.mxu1 %vm3465_vm6, %v1555_v15 }
 0x525   :  { %v2240_v47 = vpop.f32.mrb[18].mxu0 }
 0x526   :  { %v1805_v37 = vmul.f32 %v2500_v3, %v2240_v47  ;;  %v1540_v57 = vpop.f32.mrb[19].mxu0 }
 0x527   :  { %v1804_v60 = vmul.f32 %v3359_v14, %v1540_v57 }
 0x529   :  { %v2385_v11 = vpack.c.bf16 %v1805_v37, %v1804_v60 }
 0x52b   :  { %2386 = vmatprep.subr.bf16.mxu1 %v2385_v11 }
 0x52c   :  { %2388 = vmatpush3.bf16.msra.mxu1 %v2385_v11 }
 0x52f   :  { %2267 = vmatmul.mubr.msk.f32.vlgmr.msra.gmra.mrb[32].mxu1 %vm3466_vm8, %v1556_v8 }
 0x602   :  { %v2268_v52 = vpop.f32.mrb[32].mxu1 }
 0x603   :  { %1890 = vst [vmem:[%s3416_s10 + $0x8] sm:$0xff] %v2268_v52  ;;  %v1878_v21 = vpop.f32.mrb[33].mxu1 }
 0x604   :  { %1889 = vst [vmem:[%s3416_s10] sm:$0xff] %v1878_v21 }

// kernel: qanet_v3_forward.5
= control target key start
LH: loop header
LB: loop body
LE: loop exit
PB: predicated region body
PF: predicated region fallthrough
CT: control target
= control target key end

     0   :  { %s4708_s0 = inlined_call_operand.vmem [shape: f32[16,128], index: 0, kind: input, shape index: {}]   ;;  %s4709_s1 = inlined_call_operand.vmem [shape: f32[16,128], index: 1, kind: input, shape index: {}]   ;;  %s4710_s2 = inlined_call_operand.vmem [shape: f32[128,1], index: 2, kind: input, shape index: {}]   ;;  %s4711_s3 = inlined_call_operand.vmem [shape: f32[1,128], index: 3, kind: input, shape index: {}]   ;;  %s4712_s4 = inlined_call_operand.vmem [shape: f32[1,128], index: 4, kind: input, shape index: {}]   ;;  %s4713_s5 = inlined_call_operand.vmem [shape: f32[7,128], index: 5, kind: input, shape index: {}]   ;;  %s4714_s6 = inlined_call_operand.vmem [shape: f32[2,128], index: 6, kind: input, shape index: {}]   ;;  %s4715_s7 = inlined_call_operand.vmem [shape: f32[7,7,16,16], index: 7, kind: input, shape index: {}]   ;;  %s4716_s8 = inlined_call_operand.vmem [shape: f32[7,2,16,7], index: 8, kind: input, shape index: {}]   ;;  %s4717_s9 = inlined_call_operand.vmem [shape: f32[7,16,12], index: 9, kind: input, shape index: {}]   ;;  %s4718_s10 = inlined_call_operand.vmem [shape: f32[3,16,1], index: 10, kind: input, shape index: {}]   ;;  %s4719_s11 = inlined_call_operand.vmem [shape: f32[3,16,1], index: 11, kind: input, shape index: {}]   ;;  %s4720_s12 = inlined_call_operand.<no memory space> [shape: f32[1,1], index: 12, kind: input, shape index: {}]   ;;  %s4721_s13 = inlined_call_operand.hbm [shape: f32[1,2], index: 13, kind: output, shape index: {}]  }
   0x1   :  { %4727 = sst [smem:[#allocation14_spill]] %s4719_s11  ;;  %v18_v0 = vstv %s4720_s12 }
   0x2   :  { %4728 = sst [smem:[#allocation15_spill]] %s4721_s13  ;;  %19 = vst [vmem:[#allocation5] sm:$0x1] %v18_v0 }
   0x3   :  { %20 = vsyncpa [#allocation7], 0  ;;  %s3854_s27 = smov 0   ;;  %s3856_s28 = smov 0  }
   0x4   :  { %s3858_s29 = smov 0   ;;  %s3860_s30 = smov 0  }
   0x5   :  { %s3862_s14 = smov 0  }
   0x6 LB: > { %4729 = sst [smem:[#allocation9_spill]] %s3744_s29  ;;  %s35_s15 = sadd.s32 1, %s3744_s29  ;;  %s3752_s14 = sphi %s3862_s14, %s26_s14   ;;  %s3748_s30 = sphi %s3860_s30, %s4743_s30   ;;  %s3744_s29 = sphi %s3858_s29, %s4742_s29   ;;  %s3740_s28 = sphi %s3856_s28, %s4741_s28   ;;  %s3736_s27 = sphi %s3854_s27, %s4740_s27  }
   0x7   : > { %4730 = sst [smem:[#allocation10_spill]] %s3748_s30  ;;  %p36_p0 = scmp.ge.s32.totalorder %s35_s15, 7 }
   0x8   : > { %4731 = sst [smem:[#allocation11_spill]] %s3752_s14  ;;  %s38_s16 = sadd.s32 1, %s3748_s30 }
   0x9   : > { %p3003_p1 = scmp.ge.s32.totalorder %s3752_s14, 1  ;;  %p427_p2 = scmp.lt.s32.totalorder %s3752_s14, 22 }
   0xa   : > { %s4745_s15 = smov (%p36_p0, %s35_s15), 0  ;;  %s4747_s16 = smov (!%p36_p0, %s38_s16), %s3748_s30 }
   0xb   : > { %4732 = sst [smem:[#allocation12_spill]] %s4745_s15  ;;  %p428_p3 = pnand %p3003_p1, %p427_p2 }
   0xc   : > { %p40_p4 = scmp.ge.s32.totalorder %s4747_s16, 3  ;;  %p481_p5 = scmp.lt.s32.totalorder (!%p428_p3), %s3736_s27, 6 }
   0xd   : > { %431 = sbr.rel (%p428_p3) target bundleno = 3461 (0xd85), region = 72  ;;  %p496_p6 = scmp.lt.s32.totalorder (!%p428_p3), %s3740_s28, 2 }
   0xe   : > { %s4749_s16 = smov (%p40_p4, %s4747_s16), 0  ;;  %p501_p7 = scmp.eq.s32.totalorder (!%p428_p3), %s3740_s28, 0 }
   0xf   : > { %4733 = sst [smem:[#allocation13_spill]] %s4749_s16  ;;  %p502_p8 = scmp.eq.s32.totalorder (!%p428_p3), %s3736_s27, 0 }
  0x11   : > { %p503_p9 = pnand (!%p428_p3), %p502_p8, %p501_p7 }
  0x14   : > { %s482_s17 = scalar_select %p481_p5, %s3736_s27, 6 }
  0x15   : > { %s497_s18 = scalar_select %p496_p6, %s3740_s28, 2 }
  0x16   : > { %s3423_s19 = smul.u32 112, %s482_s17  ;;  %s3069_s20 = sshll.u32 %s482_s17, 5  ;;  %v513_v1 = vld [vmem:[%s4710_s2 + $0x10] sm:$0xff] (!%p503_p9)  ;;  %v511_v2 = vld [vmem:[%s4710_s2] sm:$0xff] (!%p503_p9)  ;;  %v3754_v3 = vmov (!%p503_p9), 0   ;;  %v514_v4 = vld [vmem:[%s4710_s2 + $0x18] sm:$0xff] (!%p503_p9)  ;;  %v633_v21 = vlaneseq (!%p503_p9) }
  0x17   : > { %s3898_s23 = scalar_lea.vmem %s4716_s8, %s3069_s20  ;;  %s3070_s24 = sshll.u32 %s482_s17, 4  ;;  %3498 = vset.pattern.permute.xlu1 (!%p503_p9), %v3754_v3  ;;  %3497 = vset.pattern.permute.xlu0 (!%p503_p9), %v3754_v3  ;;  %v512_v5 = vld [vmem:[%s4710_s2 + $0x8] sm:$0xff] (!%p503_p9)  ;;  %v515_v7 = vld [vmem:[%s4710_s2 + $0x20] sm:$0xff] (!%p503_p9)  ;;  %v518_v8 = vld [vmem:[%s4710_s2 + $0x38] sm:$0xff] (!%p503_p9)  ;;  %vm686_vm0 = vcmask (!%p503_p9), 8192   ;;  %v3755_v20 = vmov (!%p503_p9), 0.0  }
  0x18   : > { %s3903_s12 = scalar_lea.vmem %s4715_s7, %s3423_s19  ;;  %s3908_s30 = scalar_lea.vmem %s4717_s9, %s3070_s24  ;;  %541 = vperm.xlu1 (!%p503_p9), %3498, %v513_v1   ;;  %531 = vperm.xlu0 (!%p503_p9), %3497, %v511_v2   ;;  %v516_v6 = vld [vmem:[%s4710_s2 + $0x28] sm:$0xff] (!%p503_p9)  ;;  %v517_v9 = vld [vmem:[%s4710_s2 + $0x30] sm:$0xff] (!%p503_p9)  ;;  %v519_v11 = vld [vmem:[%s4710_s2 + $0x40] sm:$0xff] (!%p503_p9)  ;;  %687 = vst.msk [vmem:[#allocation6] sm:$0x1] (!%p503_p9), %vm686_vm0, %v3755_v20  ;;  %v634_v23 = vshrl.u32 (!%p503_p9), %v633_v21, 7 }
  0x19   : > { %s3071_s29 = sshll.u32 %s497_s18, 4  ;;  %506 = sbr.rel (%p503_p9) target bundleno = 185 (0xb9), region = 76  ;;  %v520_v10 = vld [vmem:[%s4710_s2 + $0x48] sm:$0xff] (!%p503_p9)  ;;  %v522_v12 = vld [vmem:[%s4710_s2 + $0x58] sm:$0xff] (!%p503_p9)  ;;  %v521_v13 = vld [vmem:[%s4710_s2 + $0x50] sm:$0xff] (!%p503_p9) }
  0x1a   : > { %s3913_s11 = scalar_lea.vmem %s4718_s10, %s3071_s29  ;;  %v524_v14 = vld [vmem:[%s4710_s2 + $0x68] sm:$0xff] (!%p503_p9)  ;;  %v523_v15 = vld [vmem:[%s4710_s2 + $0x60] sm:$0xff] (!%p503_p9)  ;;  %v526_v16 = vld [vmem:[%s4710_s2 + $0x78] sm:$0xff] (!%p503_p9)  ;;  %v635_v24 = vsub.s32 (!%p503_p9), 0, %v634_v23  ;;  %v3756_v30 = vmov (!%p503_p9), -1e+30  }
  0x1b   : > { %v525_v17 = vld [vmem:[%s4710_s2 + $0x70] sm:$0xff] (!%p503_p9)  ;;  %v507_v18 = vld [vmem:[%s4708_s0] sm:$0xff] (!%p503_p9)  ;;  %v508_v19 = vld [vmem:[%s4708_s0 + $0x8] sm:$0xff] (!%p503_p9) }
  0x1c   : > { %546 = vperm.xlu1 (!%p503_p9), %3498, %v514_v4   ;;  %536 = vperm.xlu0 (!%p503_p9), %3497, %v512_v5   ;;  %509 = vst [vmem:[#allocation2] sm:$0xff] (!%p503_p9), %v507_v18  ;;  %510 = vst [vmem:[#allocation2 + $0x8] sm:$0xff] (!%p503_p9), %v508_v19  ;;  %v528_v22 = vld [vmem:[%s4712_s4] sm:$0x1] (!%p503_p9) }
  0x1d   : > { %vm631_vm1 = vcmp.gt.f32.partialorder (!%p503_p9), %v528_v22, 0.5  ;;  %v3977_v27 = vld [vmem:[%s4711_s3] ss:$0 sm:$0xff] (!%p503_p9) }
  0x1e   : > { %v632_v25 = vsel (!%p503_p9), %vm631_vm1, 1, %v3754_v3 }
  0x1f   : > { %v3972_v26 = vrot.slane (!%p503_p9), %v632_v25, %v635_v24 }
  0x20   : > { %556 = vperm.xlu1 %3498, %v516_v6   ;;  %551 = vperm.xlu0 %3497, %v515_v7  }
  0x21   : > { %vm637_vm2 = vcmp.eq.s32.totalorder %v3972_v26, 1 }
  0x24   : > { %566 = vperm.xlu1 %3498, %v518_v8   ;;  %561 = vperm.xlu0 %3497, %v517_v9  }
  0x28   : > { %576 = vperm.xlu1 %3498, %v520_v10   ;;  %571 = vperm.xlu0 %3497, %v519_v11  }
  0x2c   : > { %586 = vperm.xlu1 %3498, %v522_v12   ;;  %581 = vperm.xlu0 %3497, %v521_v13  }
  0x30   : > { %596 = vperm.xlu1 %3498, %v524_v14   ;;  %591 = vperm.xlu0 %3497, %v523_v15  }
  0x34   : > { %606 = vperm.xlu1 %3498, %v526_v16   ;;  %601 = vperm.xlu0 %3497, %v525_v17  }
  0x97   : > { %v542_v28 = vpop.permute.xlu1 %541  ;;  %v532_v29 = vpop.permute.xlu0 %531 }
  0x98   : > { %vm617_vm3 = vcmp.eq.f32.partialorder %v542_v28, %v3977_v27  ;;  %vm615_vm4 = vcmp.eq.f32.partialorder %v532_v29, %v3977_v27 }
  0x99   : > { %vm640_vm5 = vmand %vm617_vm3, %vm637_vm2 }
  0x9a   : > { %v656_v31 = vsel %vm640_vm5, 0.0, %v3756_v30  ;;  %vm638_vm6 = vmand %vm615_vm4, %vm637_vm2 }
  0x9b   : > { %672 = vst [vmem:[#allocation4 + $0x10] sm:$0xff] %v656_v31  ;;  %v654_v32 = vsel %vm638_vm6, 0.0, %v3756_v30  ;;  %v547_v33 = vpop.permute.xlu1 %546  ;;  %v537_v34 = vpop.permute.xlu0 %536 }
  0x9c   : > { %670 = vst [vmem:[#allocation4] sm:$0xff] %v654_v32  ;;  %vm618_vm7 = vcmp.eq.f32.partialorder %v547_v33, %v3977_v27  ;;  %vm616_vm8 = vcmp.eq.f32.partialorder %v537_v34, %v3977_v27 }
  0x9d   : > { %vm641_vm9 = vmand %vm618_vm7, %vm637_vm2 }
  0x9e   : > { %v657_v35 = vsel %vm641_vm9, 0.0, %v3756_v30  ;;  %vm639_vm10 = vmand %vm616_vm8, %vm637_vm2 }
  0x9f   : > { %673 = vst [vmem:[#allocation4 + $0x18] sm:$0xff] %v657_v35  ;;  %v655_v36 = vsel %vm639_vm10, 0.0, %v3756_v30  ;;  %v557_v37 = vpop.permute.xlu1 %556  ;;  %v552_v38 = vpop.permute.xlu0 %551 }
  0xa0   : > { %671 = vst [vmem:[#allocation4 + $0x8] sm:$0xff] %v655_v36  ;;  %vm620_vm11 = vcmp.eq.f32.partialorder %v557_v37, %v3977_v27  ;;  %vm619_vm12 = vcmp.eq.f32.partialorder %v552_v38, %v3977_v27 }
  0xa1   : > { %vm643_vm13 = vmand %vm620_vm11, %vm637_vm2 }
  0xa2   : > { %v659_v39 = vsel %vm643_vm13, 0.0, %v3756_v30  ;;  %vm642_vm14 = vmand %vm619_vm12, %vm637_vm2 }
  0xa3   : > { %675 = vst [vmem:[#allocation4 + $0x28] sm:$0xff] %v659_v39  ;;  %v658_v40 = vsel %vm642_vm14, 0.0, %v3756_v30  ;;  %v567_v41 = vpop.permute.xlu1 %566  ;;  %v562_v42 = vpop.permute.xlu0 %561 }
  0xa4   : > { %674 = vst [vmem:[#allocation4 + $0x20] sm:$0xff] %v658_v40  ;;  %vm622_vm15 = vcmp.eq.f32.partialorder %v567_v41, %v3977_v27  ;;  %vm621_vm0 = vcmp.eq.f32.partialorder %v562_v42, %v3977_v27 }
  0xa5   : > { %vm645_vm1 = vmand %vm622_vm15, %vm637_vm2 }
  0xa6   : > { %v661_v43 = vsel %vm645_vm1, 0.0, %v3756_v30  ;;  %vm644_vm3 = vmand %vm621_vm0, %vm637_vm2 }
  0xa7   : > { %677 = vst [vmem:[#allocation4 + $0x38] sm:$0xff] %v661_v43  ;;  %v660_v44 = vsel %vm644_vm3, 0.0, %v3756_v30  ;;  %v577_v45 = vpop.permute.xlu1 %576  ;;  %v572_v46 = vpop.permute.xlu0 %571 }
  0xa8   : > { %676 = vst [vmem:[#allocation4 + $0x30] sm:$0xff] %v660_v44  ;;  %vm624_vm4 = vcmp.eq.f32.partialorder %v577_v45, %v3977_v27  ;;  %vm623_vm5 = vcmp.eq.f32.partialorder %v572_v46, %v3977_v27 }
  0xa9   : > { %vm647_vm6 = vmand %vm624_vm4, %vm637_vm2 }
  0xaa   : > { %v663_v47 = vsel %vm647_vm6, 0.0, %v3756_v30  ;;  %vm646_vm7 = vmand %vm623_vm5, %vm637_vm2 }
  0xab   : > { %679 = vst [vmem:[#allocation4 + $0x48] sm:$0xff] %v663_v47  ;;  %v662_v48 = vsel %vm646_vm7, 0.0, %v3756_v30  ;;  %v587_v49 = vpop.permute.xlu1 %586  ;;  %v582_v50 = vpop.permute.xlu0 %581 }
  0xac   : > { %678 = vst [vmem:[#allocation4 + $0x40] sm:$0xff] %v662_v48  ;;  %vm626_vm8 = vcmp.eq.f32.partialorder %v587_v49, %v3977_v27  ;;  %vm625_vm9 = vcmp.eq.f32.partialorder %v582_v50, %v3977_v27 }
  0xad   : > { %vm649_vm10 = vmand %vm626_vm8, %vm637_vm2 }
  0xae   : > { %v665_v51 = vsel %vm649_vm10, 0.0, %v3756_v30  ;;  %vm648_vm11 = vmand %vm625_vm9, %vm637_vm2 }
  0xaf   : > { %681 = vst [vmem:[#allocation4 + $0x58] sm:$0xff] %v665_v51  ;;  %v664_v52 = vsel %vm648_vm11, 0.0, %v3756_v30  ;;  %v597_v53 = vpop.permute.xlu1 %596  ;;  %v592_v54 = vpop.permute.xlu0 %591 }
  0xb0   : > { %680 = vst [vmem:[#allocation4 + $0x50] sm:$0xff] %v664_v52  ;;  %vm628_vm12 = vcmp.eq.f32.partialorder %v597_v53, %v3977_v27  ;;  %vm627_vm13 = vcmp.eq.f32.partialorder %v592_v54, %v3977_v27 }
  0xb1   : > { %vm651_vm14 = vmand %vm628_vm12, %vm637_vm2 }
  0xb2   : > { %v667_v55 = vsel %vm651_vm14, 0.0, %v3756_v30  ;;  %vm650_vm15 = vmand %vm627_vm13, %vm637_vm2 }
  0xb3   : > { %683 = vst [vmem:[#allocation4 + $0x68] sm:$0xff] %v667_v55  ;;  %v666_v56 = vsel %vm650_vm15, 0.0, %v3756_v30  ;;  %v607_v57 = vpop.permute.xlu1 %606  ;;  %v602_v58 = vpop.permute.xlu0 %601 }
  0xb4   : > { %682 = vst [vmem:[#allocation4 + $0x60] sm:$0xff] %v666_v56  ;;  %vm630_vm0 = vcmp.eq.f32.partialorder %v607_v57, %v3977_v27  ;;  %vm629_vm1 = vcmp.eq.f32.partialorder %v602_v58, %v3977_v27 }
  0xb5   : > { %vm653_vm3 = vmand %vm630_vm0, %vm637_vm2 }
  0xb6   : > { %v669_v59 = vsel %vm653_vm3, 0.0, %v3756_v30  ;;  %vm652_vm4 = vmand %vm629_vm1, %vm637_vm2 }
  0xb7   : > { %685 = vst [vmem:[#allocation4 + $0x78] sm:$0xff] %v669_v59  ;;  %v668_v60 = vsel %vm652_vm4, 0.0, %v3756_v30 }
  0xb8   : > { %684 = vst [vmem:[#allocation4 + $0x70] sm:$0xff] %v668_v60 }
  0xb9 PF: > { %v4045_v61 = vld [vmem:[%s3908_s30] sm:$0xff]  ;;  %v3757_v62 = vmov 2   ;;  %v3758_v63 = vmov 0   ;;  %v4052_v0 = vld [vmem:[%s3908_s30 + $0x8] sm:$0xff]  ;;  %v3759_v3 = vmov 1   ;;  %v3760_v4 = vmov 5  }
  0xba   : > { %3500 = vset.pattern.permute.xlu1 %v3757_v62  ;;  %3499 = vset.pattern.permute.xlu0 %v3758_v63  ;;  %v751_v1 = vld [vmem:[%s3898_s23] sm:$0xff]  ;;  %v752_v2 = vld [vmem:[%s3898_s23 + $0x8] sm:$0xff]  ;;  %v3761_v5 = vmov 3   ;;  %v3762_v6 = vmov 4   ;;  %v3763_v15 = vmov 6   ;;  %s3764_s21 = smov 3   ;;  %v689_v60 = vlaneseq }
  0xbb   : > { %797 = vperm.xlu1 %3500, %v4045_v61   ;;  %786 = vperm.xlu0 %3499, %v4045_v61   ;;  %v719_v9 = vld [vmem:[%s4709_s1] sm:$0xff]  ;;  %v720_v10 = vld [vmem:[%s4709_s1 + $0x8] sm:$0xff]  ;;  %s3765_s19 = smov 2   ;;  %s3766_s15 = smov 1   ;;  %vm938_vm2 = vcmask 130048   ;;  %v4121_v47 = vld [vmem:[%s3898_s23 + $0x10] sm:$0xff] }
  0xbc   : > { %v717_v7 = vld [vmem:[#allocation2] sm:$0xff]  ;;  %v718_v8 = vld [vmem:[#allocation2 + $0x8] sm:$0xff]  ;;  %s3767_s16 = smov 127   ;;  %s3768_s13 = smov 126   ;;  %v754_v48 = vld [vmem:[%s3898_s23 + $0x18] sm:$0xff]  ;;  %vm1606_vm5 = vcmask 64512  }
  0xbd   : > { %v4072_v11 = vadd.f32 %v719_v9, %v717_v7  ;;  %v4074_v12 = vadd.f32 %v720_v10, %v718_v8  ;;  %s3769_s29 = smov 125   ;;  %v737_v46 = vld [vmem:[%s3903_s12] sm:$0xff]  ;;  %vm3772_vm6 = vmmov 0   ;;  %p3058_p10 = scmp.ne.s32.totalorder %s3736_s27, 6 }
  0xbe   : > { %3175 = vmatprep.mubr.msk.f32.mxu1 %vm938_vm2, %v737_v46  ;;  %vm2710_vm7 = vcmask (!%p3058_p10), 1041408   ;;  %vm2799_vm8 = vcmask (!%p3058_p10), 15360   ;;  %p3060_p11 = scmp.ne.s32.totalorder (!%p3058_p10), %s3740_s28, 2 }
  0xbf   : > { %801 = vperm.xlu1 %3500, %v4052_v0   ;;  %791 = vperm.xlu0 %3499, %v4052_v0   ;;  %v759_v13 = vadd.f32 %v4074_v12, %v4072_v11 }
  0xc1   : > { %v760_v14 = vrot.slane %v759_v13, 4 }
  0xc3   : > { %3501 = vset.pattern.permute.xlu1 %v3758_v63  ;;  %814 = vperm.xlu0 %3499, %v751_v1   ;;  %v761_v16 = vadd.f32 %v760_v14, %v759_v13 }
  0xc4   : > { %819 = vperm.xlu1 %3501, %v752_v2  }
  0xc5   : > { %v762_v17 = vrot.slane %v761_v16, 2 }
  0xc7   : > { %3502 = vset.pattern.permute.xlu0 %v3759_v3  ;;  %v763_v18 = vadd.f32 %v762_v17, %v761_v16 }
  0xc8   : > { %3503 = vset.pattern.permute.xlu1 %v3759_v3  ;;  %833 = vperm.xlu0 %3502, %v751_v1  }
  0xc9   : > { %837 = vperm.xlu1 %3503, %v752_v2   ;;  %v764_v19 = vrot.slane %v763_v18, 1 }
  0xcb   : > { %v765_v20 = vadd.f32 %v764_v19, %v763_v18 }
  0xcc   : > { %3505 = vset.pattern.permute.xlu0 %v3757_v62 }
  0xcd   : > { %3504 = vset.pattern.permute.xlu1 %v3757_v62  ;;  %855 = vperm.xlu0 %3505, %v752_v2   ;;  %v767_v21 = vmul.f32 0.0625, %v765_v20 }
  0xce   : > { %851 = vperm.xlu1 %3504, %v751_v1  }
  0xcf   : > { %v768_v22 = vsub.f32 %v4072_v11, %v767_v21  ;;  %v769_v23 = vsub.f32 %v4074_v12, %v767_v21 }
  0xd1   : > { %3509 = vset.pattern.permute.xlu0 %v3760_v4  ;;  %v770_v24 = vmul.f32 %v768_v22, %v768_v22  ;;  %v771_v25 = vmul.f32 %v769_v23, %v769_v23 }
  0xd2   : > { %3506 = vset.pattern.permute.xlu1 %v3761_v5  ;;  %905 = vperm.xlu0 %3509, %v752_v2  }
  0xd3   : > { %865 = vperm.xlu1 %3506, %v751_v1   ;;  %v772_v26 = vadd.f32 %v771_v25, %v770_v24 }
  0xd5   : > { %v773_v27 = vrot.slane %v772_v26, 4 }
  0xd6   : > { %3510 = vset.pattern.permute.xlu0 %v3762_v6 }
  0xd7   : > { %869 = vperm.xlu1 %3506, %v752_v2   ;;  %883 = vperm.xlu0 %3510, %v751_v1   ;;  %v774_v28 = vadd.f32 %v773_v27, %v772_v26 }
  0xd9   : > { %v775_v29 = vrot.slane %v774_v28, 2 }
  0xdb   : > { %3507 = vset.pattern.permute.xlu1 %v3762_v6  ;;  %v776_v30 = vadd.f32 %v775_v29, %v774_v28 }
  0xdc   : > { %887 = vperm.xlu1 %3507, %v752_v2  }
  0xdd   : > { %v777_v31 = vrot.slane %v776_v30, 1 }
  0xdf   : > { %v778_v32 = vadd.f32 %v777_v31, %v776_v30 }
  0xe0   : > { %3508 = vset.pattern.permute.xlu1 %v3760_v4 }
  0xe1   : > { %901 = vperm.xlu1 %3508, %v751_v1   ;;  %v779_v33 = vmul.f32 0.0625, %v778_v32 }
  0xe3   : > { %v780_v34 = vadd.f32 1e-05, %v779_v33 }
  0xe5   : > { %3511 = vset.pattern.permute.xlu1 %v3763_v15  ;;  %3539 = vrsqrt.f32 %v780_v34 }
  0xe6   : > { %919 = vperm.xlu1 %3511, %v751_v1   ;;  %v4153_v1 = vshrl.u32 %v689_v60, 7 }
  0xe8   : > { %v699_v13 = vsub.s32 2, %v4153_v1  ;;  %v703_v14 = vsub.s32 3, %v4153_v1  ;;  %v707_v17 = vsub.s32 4, %v4153_v1  ;;  %v711_v25 = vsub.s32 5, %v4153_v1 }
  0xe9   : > { %v715_v31 = vsub.s32 6, %v4153_v1 }
  0xea   : > { %923 = vperm.xlu1 %3511, %v752_v2   ;;  %v695_v2 = vsub.s32 1, %v4153_v1 }
  0xee   : > { %3512 = vset.pattern.permute.xlu1 %v3762_v6 }
  0xef   : > { %v3540_v35 = vpop.eup %3539 }
  0xf0   : > { %v782_v36 = vmul.f32 %v3540_v35, %v768_v22  ;;  %v783_v40 = vmul.f32 %v3540_v35, %v769_v23 }
 0x13a   : > { %v798_v37 = vpop.permute.xlu1 %797  ;;  %v787_v38 = vpop.permute.xlu0 %786 }
 0x13b   : > { %v794_v39 = vmul.f32 %v787_v38, %v782_v36 }
 0x13d   : > { %v4084_v41 = vadd.f32 %v798_v37, %v794_v39 }
 0x13e   : > { %v792_v42 = vpop.permute.xlu0 %791  ;;  %v802_v44 = vpop.permute.xlu1 %801 }
 0x13f   : > { %v795_v43 = vmul.f32 %v792_v42, %v783_v40  ;;  %806 = vrot.lane.b32.xlu0 %v4084_v41, %s3764_s21 }
 0x141   : > { %v4088_v45 = vadd.f32 %v802_v44, %v795_v43 }
 0x142   : > { %v815_v52 = vpop.permute.xlu0 %814 }
 0x143   : > { %808 = vrot.lane.b32.xlu1 %v4088_v45, %s3764_s21  ;;  %826 = vrot.lane.b32.xlu0 %v4084_v41, %s3765_s19  ;;  %v820_v49 = vpop.permute.xlu1 %819 }
 0x147   : > { %828 = vrot.lane.b32.xlu1 %v4088_v45, %s3765_s19  ;;  %846 = vrot.lane.b32.xlu0 %v4088_v45, %s3766_s15  ;;  %v834_v54 = vpop.permute.xlu0 %833 }
 0x148   : > { %v838_v50 = vpop.permute.xlu1 %837 }
 0x14b   : > { %844 = vrot.lane.b32.xlu1 %v4084_v41, %s3766_s15  ;;  %876 = vrot.lane.b32.xlu0 %v4084_v41, %s3767_s16 }
 0x14c   : > { %v856_v57 = vpop.permute.xlu0 %855 }
 0x14d   : > { %v852_v51 = vpop.permute.xlu1 %851 }
 0x14f   : > { %878 = vrot.lane.b32.xlu1 %v4088_v45, %s3767_s16  ;;  %894 = vrot.lane.b32.xlu0 %v4084_v41, %s3768_s13 }
 0x151   : > { %v4149_v59 = vpop.permute.xlu0 %905 }
 0x152   : > { %v866_v53 = vpop.permute.xlu1 %865 }
 0x153   : > { %896 = vrot.lane.b32.xlu1 %v4088_v45, %s3768_s13  ;;  %912 = vrot.lane.b32.xlu0 %v4084_v41, %s3769_s29 }
 0x156   : > { %v870_v55 = vpop.permute.xlu1 %869 }
 0x157   : > { %914 = vrot.lane.b32.xlu1 %v4088_v45, %s3769_s29  ;;  %931 = vperm.xlu0 %3510, %v4045_v61  }
 0x15b   : > { %935 = vperm.xlu1 %3512, %v4052_v0   ;;  %3514 = vset.pattern.permute.xlu0 %v3759_v3  ;;  %v888_v56 = vpop.permute.xlu1 %887 }
 0x15c   : > { %1053 = vperm.xlu0 %3514, %v4052_v0  }
 0x15f   : > { %3513 = vset.pattern.permute.xlu1 %v3759_v3 }
 0x160   : > { %1049 = vperm.xlu1 %3513, %v4045_v61   ;;  %3516 = vset.pattern.permute.xlu0 %v3758_v63  ;;  %v4147_v58 = vpop.permute.xlu1 %901 }
 0x161   : > { %1076 = vperm.xlu0 %3516, %v4121_v47  }
 0x164   : > { %3515 = vset.pattern.permute.xlu1 %v3761_v5 }
 0x165   : > { %1059 = vperm.xlu1 %3515, %v4045_v61   ;;  %3519 = vset.pattern.permute.xlu0 %v3759_v3 }
 0x166   : > { %1099 = vperm.xlu0 %3519, %v754_v48  }
 0x169   : > { %1063 = vperm.xlu1 %3515, %v4052_v0  }
 0x16a   : > { %3521 = vset.pattern.permute.xlu0 %v3761_v5 }
 0x16b   : > { %1127 = vperm.xlu0 %3521, %v4121_v47  }
 0x16d   : > { %3517 = vset.pattern.permute.xlu1 %v3758_v63  ;;  %v884_v63 = vpop.permute.xlu0 %883 }
 0x16e   : > { %1081 = vperm.xlu1 %3517, %v754_v48  }
 0x16f   : > { %3524 = vset.pattern.permute.xlu0 %v3762_v6 }
 0x170   : > { %1149 = vperm.xlu0 %3524, %v754_v48  }
 0x172   : > { %3518 = vset.pattern.permute.xlu1 %v3759_v3 }
 0x173   : > { %1095 = vperm.xlu1 %3518, %v4121_v47  }
 0x174   : > { %3527 = vset.pattern.permute.xlu0 %v3763_v15 }
 0x175   : > { %1185 = vperm.xlu0 %3527, %v754_v48  }
 0x177   : > { %3520 = vset.pattern.permute.xlu1 %v3757_v62  ;;  %v4151_v62 = vpop.permute.xlu1 %919 }
 0x178   : > { %1113 = vperm.xlu1 %3520, %v4121_v47  }
 0x179   : > { %3528 = vset.pattern.permute.xlu0 %v3760_v4 }
 0x17b   : > { %v4156_v3 = vpop.permute.xlu1 %923 }
 0x17c   : > { %1117 = vperm.xlu1 %3520, %v754_v48  }
 0x180   : > { %3522 = vset.pattern.permute.xlu1 %v3761_v5  ;;  %v691_v5 = vsub.s32 0, %v4153_v1 }
 0x181   : > { %1131 = vperm.xlu1 %3522, %v754_v48  }
 0x185   : > { %3523 = vset.pattern.permute.xlu1 %v3762_v6  ;;  %v688_v6 = vld [vmem:[%s4713_s5] sm:$0x7f] }
 0x186   : > { %1145 = vperm.xlu1 %3523, %v4121_v47   ;;  %v4162_v7 = vrot.slane %v688_v6, %v695_v2  ;;  %v4166_v10 = vrot.slane %v688_v6, %v691_v5  ;;  %v4175_v23 = vrot.slane %v688_v6, %v699_v13  ;;  %v4177_v24 = vrot.slane %v688_v6, %v703_v14 }
 0x187   : > { %v4180_v28 = vrot.slane %v688_v6, %v707_v17  ;;  %v4187_v37 = vrot.slane %v688_v6, %v711_v25  ;;  %v4190_v46 = vrot.slane %v688_v6, %v715_v31 }
 0x188   : > { %v862_v36 = vmul.f32 %v4084_v41, %v4177_v24 }
 0x18a   : > { %3525 = vset.pattern.permute.xlu1 %v3760_v4 }
 0x18b   : > { %1167 = vperm.xlu1 %3525, %v754_v48   ;;  %v872_v48 = vmul.f32 %v866_v53, %v862_v36 }
 0x18f   : > { %3526 = vset.pattern.permute.xlu1 %v3763_v15 }
 0x190   : > { %1181 = vperm.xlu1 %3526, %v4121_v47  }
 0x194   : > { %3529 = vset.pattern.permute.xlu1 %v3760_v4 }
 0x1b1   : > { %v807_v4 = vpop.permute.xlu0 %806 }
 0x1b2   : > { %v810_v20 = vmul.f32 %v807_v4, %v4166_v10 }
 0x1b4   : > { %v822_v32 = vmul.f32 %v815_v52, %v810_v20 }
 0x1b5   : > { %v809_v8 = vpop.permute.xlu1 %808  ;;  %v827_v9 = vpop.permute.xlu0 %826 }
 0x1b6   : > { %v830_v16 = vmul.f32 %v827_v9, %v4162_v7  ;;  %v811_v21 = vmul.f32 %v809_v8, %v4166_v10 }
 0x1b8   : > { %v840_v26 = vmul.f32 %v834_v54, %v830_v16  ;;  %v823_v33 = vmul.f32 %v820_v49, %v811_v21  ;;  %v863_v54 = vmul.f32 %v4088_v45, %v4177_v24 }
 0x1b9   : > { %v829_v18 = vpop.permute.xlu1 %828  ;;  %v847_v19 = vpop.permute.xlu0 %846 }
 0x1ba   : > { %v831_v22 = vmul.f32 %v829_v18, %v4162_v7  ;;  %v849_v34 = vmul.f32 %v847_v19, %v4175_v23  ;;  %v842_v38 = vadd.f32 %v840_v26, %v822_v32  ;;  %v738_v26 = vld [vmem:[%s3903_s12 + $0x8] sm:$0xff] }
 0x1bc   : > { %v841_v27 = vmul.f32 %v838_v50, %v831_v22  ;;  %v859_v49 = vmul.f32 %v856_v57, %v849_v34 }
 0x1bd   : > { %v845_v29 = vpop.permute.xlu1 %844  ;;  %v877_v30 = vpop.permute.xlu0 %876 }
 0x1be   : > { %v848_v35 = vmul.f32 %v845_v29, %v4175_v23  ;;  %v843_v39 = vadd.f32 %v841_v27, %v823_v33  ;;  %v880_v42 = vmul.f32 %v877_v30, %v4180_v28 }
 0x1c0   : > { %v858_v40 = vmul.f32 %v852_v51, %v848_v35  ;;  %v861_v41 = vadd.f32 %v859_v49, %v843_v39  ;;  %v890_v2 = vmul.f32 %v884_v63, %v880_v42  ;;  %v873_v51 = vmul.f32 %v870_v55, %v863_v54 }
 0x1c1   : > { %v879_v43 = vpop.permute.xlu1 %878  ;;  %v895_v44 = vpop.permute.xlu0 %894 }
 0x1c2   : > { %v860_v50 = vadd.f32 %v858_v40, %v842_v38  ;;  %v881_v52 = vmul.f32 %v879_v43, %v4180_v28  ;;  %v898_v4 = vmul.f32 %v895_v44, %v4187_v37  ;;  %v875_v57 = vadd.f32 %v873_v51, %v861_v41 }
 0x1c4   : > { %v874_v60 = vadd.f32 %v872_v48, %v860_v50  ;;  %v891_v14 = vmul.f32 %v888_v56, %v881_v52  ;;  %v908_v16 = vmul.f32 %v4147_v58, %v898_v4 }
 0x1c5   : > { %v897_v8 = vpop.permute.xlu1 %896  ;;  %v913_v9 = vpop.permute.xlu0 %912 }
 0x1c6   : > { %v892_v13 = vadd.f32 %v890_v2, %v874_v60  ;;  %v899_v6 = vmul.f32 %v897_v8, %v4187_v37  ;;  %v916_v53 = vmul.f32 %v913_v9, %v4190_v46  ;;  %v893_v18 = vadd.f32 %v891_v14, %v875_v57 }
 0x1c8   : > { %v909_v45 = vmul.f32 %v4149_v59, %v899_v6  ;;  %v926_v63 = vmul.f32 %v4151_v62, %v916_v53  ;;  %v910_v19 = vadd.f32 %v908_v16, %v892_v13 }
 0x1c9   : > { %v915_v17 = vpop.permute.xlu1 %914 }
 0x1ca   : > { %v917_v55 = vmul.f32 %v915_v17, %v4190_v46  ;;  %v911_v56 = vadd.f32 %v909_v45, %v893_v18  ;;  %v928_v21 = vadd.f32 %v926_v63, %v910_v19  ;;  %v3770_v63 = vmov 7  }
 0x1cc   : > { %v927_v20 = vmul.f32 %v4156_v3, %v917_v55 }
 0x1ce   : > { %v929_v22 = vadd.f32 %v927_v20, %v911_v56 }
 0x1d0   : > { %v3347_v25 = vpack.c.bf16 %v929_v22, %v928_v21 }
 0x1d2   : > { %3348 = vmatprep.subr.bf16.mxu1 %v3347_v25 }
 0x1d3   : > { %3350 = vmatpush3.bf16.msra.mxu1 %v3347_v25 }
 0x1d6   : > { %3176 = vmatmul.mubr.msk.f32.vlgmr.msra.gmra.mrb[0].mxu1 %vm938_vm2, %v738_v26  ;;  %v932_v27 = vpop.permute.xlu0 %931 }
 0x1da   : > { %v936_v58 = vpop.permute.xlu1 %935 }
 0x1db   : > { %v1054_v53 = vpop.permute.xlu0 %1053 }
 0x1df   : > { %v1050_v8 = vpop.permute.xlu1 %1049 }
 0x1e0   : > { %v1077_v21 = vpop.permute.xlu0 %1076 }
 0x1e4   : > { %v1060_v9 = vpop.permute.xlu1 %1059 }
 0x1e5   : > { %v1100_v25 = vpop.permute.xlu0 %1099 }
 0x1e8   : > { %v1064_v45 = vpop.permute.xlu1 %1063 }
 0x1ed   : > { %v1082_v55 = vpop.permute.xlu1 %1081 }
 0x1f2   : > { %v1096_v19 = vpop.permute.xlu1 %1095 }
 0x1f7   : > { %v1114_v20 = vpop.permute.xlu1 %1113 }
 0x1fb   : > { %v1118_v56 = vpop.permute.xlu1 %1117 }
 0x200   : > { %v1132_v22 = vpop.permute.xlu1 %1131 }
 0x205   : > { %v1146_v26 = vpop.permute.xlu1 %1145 }
 0x2a9   : > { %v3177_v59 = vpop.f32.mrb[0].mxu1 }
 0x2aa   : > { %v1017_v29 = vadd.f32 %v3177_v59, %v936_v58  ;;  %v1011_v30 = vpop.f32.mrb[1].mxu1  ;;  %v1128_v58 = vpop.permute.xlu0 %1127 }
 0x2ab   : > { %v1012_v62 = vadd.f32 %v1011_v30, %v932_v27  ;;  %v1168_v59 = vpop.permute.xlu1 %1167 }
 0x2ac   : > { %v1021_v31 = vmax.f32 %v1017_v29, 0.0 }
 0x2ad   : > { %v1020_v32 = vmax.f32 %v1012_v62, 0.0 }
 0x2ae   : > { %v4206_v33 = vadd.f32 %v1021_v31, %v4074_v12  ;;  %v1150_v27 = vpop.permute.xlu0 %1149 }
 0x2af   : > { %v4209_v3 = vadd.f32 %v1020_v32, %v4072_v11 }
 0x2b1   : > { %v1024_v34 = vadd.f32 %v4206_v33, %v4209_v3 }
 0x2b2   : > { %v1186_v29 = vpop.permute.xlu0 %1185 }
 0x2b3   : > { %v1025_v35 = vrot.slane %v1024_v34, 4 }
 0x2b5   : > { %v1026_v36 = vadd.f32 %v1025_v35, %v1024_v34 }
 0x2b7   : > { %v1027_v38 = vrot.slane %v1026_v36, 2 }
 0x2b9   : > { %v1028_v39 = vadd.f32 %v1027_v38, %v1026_v36 }
 0x2bb   : > { %v1029_v40 = vrot.slane %v1028_v39, 1 }
 0x2bd   : > { %v1030_v42 = vadd.f32 %v1029_v40, %v1028_v39 }
 0x2bf   : > { %v1031_v43 = vmul.f32 0.0625, %v1030_v42 }
 0x2c1   : > { %v1032_v44 = vsub.f32 %v4209_v3, %v1031_v43  ;;  %v1033_v48 = vsub.f32 %v4206_v33, %v1031_v43 }
 0x2c3   : > { %v1034_v49 = vmul.f32 %v1032_v44, %v1032_v44  ;;  %v1035_v12 = vmul.f32 %v1033_v48, %v1033_v48 }
 0x2c5   : > { %v1036_v50 = vadd.f32 %v1035_v12, %v1034_v49 }
 0x2c7   : > { %v1037_v52 = vrot.slane %v1036_v50, 4 }
 0x2c9   : > { %v1038_v11 = vadd.f32 %v1037_v52, %v1036_v50 }
 0x2cb   : > { %v1039_v54 = vrot.slane %v1038_v11, 2 }
 0x2cd   : > { %v1040_v41 = vadd.f32 %v1039_v54, %v1038_v11 }
 0x2cf   : > { %v1041_v60 = vrot.slane %v1040_v41, 1 }
 0x2d1   : > { %v1042_v2 = vadd.f32 %v1041_v60, %v1040_v41 }
 0x2d3   : > { %v1043_v4 = vmul.f32 0.0625, %v1042_v2 }
 0x2d5   : > { %v1044_v51 = vadd.f32 1e-05, %v1043_v4 }
 0x2d7   : > { %3541 = vrsqrt.f32 %v1044_v51 }
 0x2e1   : > { %v3542_v13 = vpop.eup %3541 }
 0x2e2   : > { %v1046_v14 = vmul.f32 %v3542_v13, %v1032_v44  ;;  %v1047_v6 = vmul.f32 %v3542_v13, %v1033_v48 }
 0x2e4   : > { %v1056_v57 = vmul.f32 %v1050_v8, %v1046_v14  ;;  %v1057_v16 = vmul.f32 %v1054_v53, %v1047_v6 }
 0x2e6   : > { %v4215_v17 = vadd.f32 %v1060_v9, %v1056_v57  ;;  %v1067_v18 = vadd.f32 %v1064_v45, %v1057_v16 }
 0x2e8   : > { %1070 = vrot.lane.b32.xlu0 %v1067_v18, %s3764_s21  ;;  %1068 = vrot.lane.b32.xlu1 %v4215_v17, %s3764_s21  ;;  %v1125_v11 = vmul.f32 %v1067_v18, %v4177_v24  ;;  %v1124_v60 = vmul.f32 %v4215_v17, %v4177_v24 }
 0x2ea   : > { %v1135_v8 = vmul.f32 %v1132_v22, %v1125_v11  ;;  %v1134_v6 = vmul.f32 %v1128_v58, %v1124_v60  ;;  %v740_v58 = vld [vmem:[%s3903_s12 + $0x18] sm:$0xff] }
 0x2ec   : > { %1090 = vrot.lane.b32.xlu0 %v1067_v18, %s3765_s19  ;;  %1088 = vrot.lane.b32.xlu1 %v4215_v17, %s3765_s19 }
 0x2f0   : > { %1163 = vperm.xlu0 %3528, %v4121_v47   ;;  %1106 = vrot.lane.b32.xlu1 %v4215_v17, %s3766_s15  ;;  %v739_v47 = vld [vmem:[%s3903_s12 + $0x10] sm:$0xff] }
 0x2f1   : > { %3182 = vmatprep.mubr.msk.f32.mxu1 %vm938_vm2, %v739_v47 }
 0x2f4   : > { %1156 = vrot.lane.b32.xlu0 %v4215_v17, %s3768_s13  ;;  %1108 = vrot.lane.b32.xlu1 %v1067_v18, %s3766_s15 }
 0x2f8   : > { %1174 = vrot.lane.b32.xlu0 %v4215_v17, %s3769_s29  ;;  %1138 = vrot.lane.b32.xlu1 %v4215_v17, %s3767_s16 }
 0x2fc   : > { %1193 = vperm.xlu0 %3528, %v4045_v61   ;;  %1140 = vrot.lane.b32.xlu1 %v1067_v18, %s3767_s16 }
 0x300   : > { %1158 = vrot.lane.b32.xlu1 %v1067_v18, %s3768_s13  ;;  %3531 = vset.pattern.permute.xlu0 %v3763_v15 }
 0x301   : > { %1314 = vperm.xlu0 %3531, %v4052_v0  }
 0x304   : > { %1176 = vrot.lane.b32.xlu1 %v1067_v18, %s3769_s29 }
 0x308   : > { %1197 = vperm.xlu1 %3529, %v4052_v0  }
 0x30c   : > { %3530 = vset.pattern.permute.xlu1 %v3763_v15  ;;  %v1182_v15 = vpop.permute.xlu1 %1181 }
 0x30d   : > { %1310 = vperm.xlu1 %3530, %v4045_v61  }
 0x311   : > { %3532 = vset.pattern.permute.xlu1 %v3770_v63 }
 0x312   : > { %1320 = vperm.xlu1 %3532, %v4045_v61  }
 0x316   : > { %1324 = vperm.xlu1 %3532, %v4052_v0  }
 0x35a   : > { %v1069_v30 = vpop.permute.xlu1 %1068  ;;  %v1071_v62 = vpop.permute.xlu0 %1070 }
 0x35b   : > { %v1073_v36 = vmul.f32 %v1071_v62, %v4166_v10  ;;  %v1072_v39 = vmul.f32 %v1069_v30, %v4166_v10 }
 0x35d   : > { %v1085_v48 = vmul.f32 %v1082_v55, %v1073_v36  ;;  %v1084_v12 = vmul.f32 %v1077_v21, %v1072_v39 }
 0x35e   : > { %v1089_v31 = vpop.permute.xlu1 %1088  ;;  %v1091_v61 = vpop.permute.xlu0 %1090 }
 0x35f   : > { %v1093_v0 = vmul.f32 %v1091_v61, %v4162_v7  ;;  %v1092_v35 = vmul.f32 %v1089_v31, %v4162_v7 }
 0x361   : > { %v1103_v43 = vmul.f32 %v1100_v25, %v1093_v0  ;;  %v1102_v44 = vmul.f32 %v1096_v19, %v1092_v35 }
 0x362   : > { %v1107_v32 = vpop.permute.xlu1 %1106 }
 0x363   : > { %v1110_v40 = vmul.f32 %v1107_v32, %v4175_v23  ;;  %v1105_v54 = vadd.f32 %v1103_v43, %v1085_v48  ;;  %v1104_v10 = vadd.f32 %v1102_v44, %v1084_v12 }
 0x365   : > { %v1120_v50 = vmul.f32 %v1114_v20, %v1110_v40 }
 0x366   : > { %v1109_v34 = vpop.permute.xlu1 %1108 }
 0x367   : > { %v1111_v38 = vmul.f32 %v1109_v34, %v4175_v23  ;;  %v1122_v4 = vadd.f32 %v1120_v50, %v1104_v10 }
 0x369   : > { %v1121_v49 = vmul.f32 %v1118_v56, %v1111_v38  ;;  %v1136_v18 = vadd.f32 %v1134_v6, %v1122_v4 }
 0x36a   : > { %v1139_v42 = vpop.permute.xlu1 %1138 }
 0x36b   : > { %v1142_v23 = vmul.f32 %v1139_v42, %v4180_v28  ;;  %v1123_v2 = vadd.f32 %v1121_v49, %v1105_v54 }
 0x36d   : > { %v1152_v53 = vmul.f32 %v1146_v26, %v1142_v23  ;;  %v1137_v16 = vadd.f32 %v1135_v8, %v1123_v2 }
 0x36e   : > { %v1141_v52 = vpop.permute.xlu1 %1140 }
 0x36f   : > { %v1143_v7 = vmul.f32 %v1141_v52, %v4180_v28  ;;  %v1164_v41 = vpop.permute.xlu0 %1163  ;;  %v1154_v55 = vadd.f32 %v1152_v53, %v1136_v18  ;;  %v742_v18 = vld [vmem:[%s3903_s12 + $0x28] sm:$0xff] }
 0x371   : > { %v1153_v9 = vmul.f32 %v1150_v27, %v1143_v7  ;;  %v741_v27 = vld [vmem:[%s3903_s12 + $0x20] sm:$0xff] }
 0x372   : > { %v1159_v51 = vpop.permute.xlu1 %1158 }
 0x373   : > { %v1161_v13 = vmul.f32 %v1159_v51, %v4187_v37  ;;  %v1157_v14 = vpop.permute.xlu0 %1156  ;;  %v1155_v17 = vadd.f32 %v1153_v9, %v1137_v16 }
 0x374   : > { %v1160_v57 = vmul.f32 %v1157_v14, %v4187_v37 }
 0x375   : > { %v1171_v45 = vmul.f32 %v1168_v59, %v1161_v13  ;;  %v745_v59 = vld [vmem:[%s3903_s12 + $0x40] sm:$0xff] }
 0x376   : > { %v1170_v47 = vmul.f32 %v1164_v41, %v1160_v57  ;;  %v1177_v24 = vpop.permute.xlu1 %1176  ;;  %3189 = vmatprep.mubr.msk.f32.mxu0 %vm938_vm2, %v745_v59 }
 0x377   : > { %v1179_v28 = vmul.f32 %v1177_v24, %v4190_v46  ;;  %v1175_v63 = vpop.permute.xlu0 %1174  ;;  %v1173_v20 = vadd.f32 %v1171_v45, %v1155_v17  ;;  %v746_v45 = vld [vmem:[%s3903_s12 + $0x48] sm:$0xff] }
 0x378   : > { %v1178_v19 = vmul.f32 %v1175_v63, %v4190_v46  ;;  %v1172_v21 = vadd.f32 %v1170_v47, %v1154_v55  ;;  %v743_v47 = vld [vmem:[%s3903_s12 + $0x30] sm:$0xff] }
 0x379   : > { %v1189_v56 = vmul.f32 %v1186_v29, %v1179_v28 }
 0x37a   : > { %v1188_v22 = vmul.f32 %v1182_v15, %v1178_v19 }
 0x37b   : > { %v1191_v37 = vadd.f32 %v1189_v56, %v1173_v20  ;;  %v1194_v62 = vpop.permute.xlu0 %1193  ;;  %v744_v20 = vld [vmem:[%s3903_s12 + $0x38] sm:$0xff] }
 0x37c   : > { %v1190_v25 = vadd.f32 %v1188_v22, %v1172_v21 }
 0x37e   : > { %v3351_v26 = vpack.c.bf16 %v1191_v37, %v1190_v25 }
 0x380   : > { %3352 = vmatprep.subr.bf16.mxu1 %v3351_v26  ;;  %v1315_v51 = vpop.permute.xlu0 %1314 }
 0x381   : > { %3354 = vmatpush3.bf16.msra.mxu1 %v3351_v26 }
 0x384   : > { %3183 = vmatmul.mubr.msk.f32.vlgmr.msra.gmra.mrb[2].mxu1 %vm938_vm2, %v740_v58 }
 0x385   : > { %3196 = vmatprep.mubr.msk.f32.mxu1 %vm938_vm2, %v741_v27 }
 0x387   : > { %v1198_v30 = vpop.permute.xlu1 %1197 }
 0x38c   : > { %v1311_v23 = vpop.permute.xlu1 %1310 }
 0x391   : > { %v1321_v2 = vpop.permute.xlu1 %1320 }
 0x395   : > { %v1325_v6 = vpop.permute.xlu1 %1324 }
 0x457   : > { %v3184_v46 = vpop.f32.mrb[2].mxu1 }
 0x458   : > { %v1278_v29 = vadd.f32 %v3184_v46, %v1198_v30  ;;  %v1272_v31 = vpop.f32.mrb[3].mxu1 }
 0x459   : > { %v1273_v15 = vadd.f32 %v1272_v31, %v1194_v62 }
 0x45a   : > { %v1282_v32 = vmax.f32 %v1278_v29, 0.0 }
 0x45b   : > { %v1281_v61 = vmax.f32 %v1273_v15, 0.0 }
 0x45c   : > { %v4268_v34 = vadd.f32 %v1282_v32, %v4206_v33 }
 0x45d   : > { %v4271_v0 = vadd.f32 %v1281_v61, %v4209_v3 }
 0x45f   : > { %v1285_v35 = vadd.f32 %v4268_v34, %v4271_v0 }
 0x461   : > { %v1286_v36 = vrot.slane %v1285_v35, 4 }
 0x463   : > { %v1287_v38 = vadd.f32 %v1286_v36, %v1285_v35 }
 0x465   : > { %v1288_v39 = vrot.slane %v1287_v38, 2 }
 0x467   : > { %v1289_v40 = vadd.f32 %v1288_v39, %v1287_v38 }
 0x469   : > { %v1290_v42 = vrot.slane %v1289_v40, 1 }
 0x46b   : > { %v1291_v43 = vadd.f32 %v1290_v42, %v1289_v40 }
 0x46d   : > { %v1292_v44 = vmul.f32 0.0625, %v1291_v43 }
 0x46f   : > { %v1293_v48 = vsub.f32 %v4271_v0, %v1292_v44  ;;  %v1294_v49 = vsub.f32 %v4268_v34, %v1292_v44 }
 0x471   : > { %v1295_v12 = vmul.f32 %v1293_v48, %v1293_v48  ;;  %v1296_v33 = vmul.f32 %v1294_v49, %v1294_v49 }
 0x473   : > { %v1297_v50 = vadd.f32 %v1296_v33, %v1295_v12 }
 0x475   : > { %v1298_v52 = vrot.slane %v1297_v50, 4 }
 0x477   : > { %v1299_v3 = vadd.f32 %v1298_v52, %v1297_v50 }
 0x479   : > { %v1300_v11 = vrot.slane %v1299_v3, 2 }
 0x47b   : > { %v1301_v54 = vadd.f32 %v1300_v11, %v1299_v3 }
 0x47d   : > { %v1302_v7 = vrot.slane %v1301_v54, 1 }
 0x47f   : > { %v1303_v41 = vadd.f32 %v1302_v7, %v1301_v54  ;;  %v722_v7 = vld [vmem:[#allocation4 + $0x8] sm:$0xff] }
 0x481   : > { %v1304_v60 = vmul.f32 0.0625, %v1303_v41 }
 0x483   : > { %v1305_v10 = vadd.f32 1e-05, %v1304_v60 }
 0x485   : > { %3543 = vrsqrt.f32 %v1305_v10 }
 0x48f   : > { %v3544_v4 = vpop.eup %3543 }
 0x490   : > { %v1307_v8 = vmul.f32 %v3544_v4, %v1293_v48  ;;  %v1308_v9 = vmul.f32 %v3544_v4, %v1294_v49  ;;  %v721_v4 = vld [vmem:[#allocation4] sm:$0xff] }
 0x492   : > { %v1317_v13 = vmul.f32 %v1311_v23, %v1307_v8  ;;  %v1318_v14 = vmul.f32 %v1315_v51, %v1308_v9  ;;  %v723_v9 = vld [vmem:[#allocation4 + $0x10] sm:$0xff] }
 0x494   : > { %v1327_v53 = vadd.f32 %v1321_v2, %v1317_v13  ;;  %v1328_v57 = vadd.f32 %v1325_v6, %v1318_v14  ;;  %v724_v13 = vld [vmem:[#allocation4 + $0x18] sm:$0xff] }
 0x496   : > { %v3355_v16 = vpack.c.bf16 %v1328_v57, %v1327_v53 }
 0x498   : > { %3356 = vmatprep.subr.bf16.mxu0 %v3355_v16  ;;  %3360 = vmatprep.subr.bf16.mxu1 %v3355_v16 }
 0x499   : > { %3358 = vmatpush3.bf16.msra.mxu0 %v3355_v16  ;;  %3362 = vmatpush3.bf16.msra.mxu1 %v3355_v16 }
 0x49a   : > { %3364 = vmatprep.subr.bf16.mxu0 %v3355_v16 }
 0x49c   : > { %3190 = vmatmul.mubr.msk.f32.vlgmr.msra.gmra.mrb[0].mxu0 %vm938_vm2, %v746_v45  ;;  %3197 = vmatmul.mubr.msk.f32.vlgmr.msra.gmra.mrb[4].mxu1 %vm938_vm2, %v742_v18 }
 0x49d   : > { %3366 = vmatpush3.bf16.msra.mxu0 %v3355_v16  ;;  %3203 = vmatprep.mubr.msk.f32.mxu0 %vm938_vm2, %v743_v47 }
 0x4a0   : > { %3204 = vmatmul.mubr.msk.f32.vlgmr.msra.gmra.mrb[2].mxu0 %vm938_vm2, %v744_v20 }
 0x56f   : > { %v3191_v24 = vpop.f32.mrb[0].mxu0  ;;  %v3198_v17 = vpop.f32.mrb[4].mxu1 }
 0x570   : > { %v1411_v28 = vmul.f32 0.35355338, %v3191_v24  ;;  %v1401_v63 = vpop.f32.mrb[1].mxu0  ;;  %v1484_v55 = vpop.f32.mrb[5].mxu1  ;;  %3267 = vmatprep.subr.mxu1 %v3198_v17  ;;  %v725_v24 = vld [vmem:[#allocation4 + $0x20] sm:$0xff] }
 0x571   : > { %v1410_v19 = vmul.f32 0.35355338, %v1401_v63  ;;  %3206 = vmatprep.subr.mxu0 %v1484_v55  ;;  %3268 = vmatpush3.msra.mxu1 %v3198_v17  ;;  %v726_v17 = vld [vmem:[#allocation4 + $0x28] sm:$0xff] }
 0x572   : > { %2014 = vxpose.xlu1.b32.start.end [1/1] (short) %v1411_v28, 128  ;;  %3207 = vmatpush3.msra.mxu0 %v1484_v55 }
 0x573   : > { %1574 = vxpose.xlu0.b32.start.end [1/1] (short) %v1410_v19, 128  ;;  %v4317_v11 = vpop.f32.mrb[2].mxu0 }
 0x574   : > { %v4319_v54 = vpop.f32.mrb[3].mxu0 }
 0x5f2   : > { %v2030_v56 = vpop.trf.xlu1 }
 0x5f3   : > { %3269 = vmatprep.mubr.msk.f32.mxu1 %vm1606_vm5, %v2030_v56  ;;  %v1590_v21 = vpop.trf.xlu0 }
 0x5f4   : > { %3208 = vmatprep.mubr.msk.f32.mxu0 %vm1606_vm5, %v1590_v21 }
 0x5f6   : > { %v2031_v22 = vpop.trf.xlu1 }
 0x5f7   : > { %3270 = vmatmul.mubr.msk.f32.vlgmr.msra.gmra.mrb[6].mxu1 %vm1606_vm5, %v2031_v22  ;;  %v1591_v37 = vpop.trf.xlu0 }
 0x5f8   : > { %3209 = vmatmul.mubr.msk.f32.vlgmr.msra.gmra.mrb[4].mxu0 %vm1606_vm5, %v1591_v37  ;;  %v727_v37 = vld [vmem:[#allocation4 + $0x30] sm:$0xff] }
 0x5fa   : > { %v2032_v25 = vpop.trf.xlu1 }
 0x5fb   : > { %v1592_v26 = vpop.trf.xlu0  ;;  %3272 = vmatprep.mubr.msk.f32.mxu1 %vm1606_vm5, %v2032_v25  ;;  %v728_v25 = vld [vmem:[#allocation4 + $0x38] sm:$0xff] }
 0x5fc   : > { %3211 = vmatprep.mubr.msk.f32.mxu0 %vm1606_vm5, %v1592_v26 }
 0x5fe   : > { %v2033_v58 = vpop.trf.xlu1 }
 0x5ff   : > { %3273 = vmatmul.mubr.msk.f32.gmra.mrb[8].mxu1 %vm1606_vm5, %v2033_v58  ;;  %v1593_v59 = vpop.trf.xlu0 }
 0x600   : > { %3212 = vmatmul.mubr.msk.f32.gmra.mrb[6].mxu0 %vm1606_vm5, %v1593_v59 }
 0x602   : > { %v2034_v27 = vpop.trf.xlu1 }
 0x603   : > { %v1594_v30 = vpop.trf.xlu0  ;;  %3275 = vmatprep.mubr.msk.f32.mxu1 %vm1606_vm5, %v2034_v27 }
 0x604   : > { %3214 = vmatprep.mubr.msk.f32.mxu0 %vm1606_vm5, %v1594_v30 }
 0x606   : > { %v2035_v46 = vpop.trf.xlu1 }
 0x607   : > { %3276 = vmatmul.mubr.msk.f32.gmra.mrb[10].mxu1 %vm1606_vm5, %v2035_v46  ;;  %v1595_v62 = vpop.trf.xlu0 }
 0x608   : > { %3215 = vmatmul.mubr.msk.f32.gmra.mrb[8].mxu0 %vm1606_vm5, %v1595_v62 }
 0x60a   : > { %v2036_v29 = vpop.trf.xlu1 }
 0x60b   : > { %v1596_v31 = vpop.trf.xlu0  ;;  %3278 = vmatprep.mubr.msk.f32.mxu1 %vm1606_vm5, %v2036_v29 }
 0x60c   : > { %3217 = vmatprep.mubr.msk.f32.mxu0 %vm1606_vm5, %v1596_v31  ;;  %v729_v31 = vld [vmem:[#allocation4 + $0x40] sm:$0xff] }
 0x60e   : > { %v2037_v15 = vpop.trf.xlu1 }
 0x60f   : > { %3279 = vmatmul.mubr.msk.f32.gmra.mrb[12].mxu1 %vm1606_vm5, %v2037_v15  ;;  %v1597_v32 = vpop.trf.xlu0  ;;  %v730_v15 = vld [vmem:[#allocation4 + $0x48] sm:$0xff] }
 0x610   : > { %3218 = vmatmul.mubr.msk.f32.gmra.mrb[10].mxu0 %vm1606_vm5, %v1597_v32 }
 0x612   : > { %v2038_v61 = vpop.trf.xlu1 }
 0x613   : > { %v1598_v35 = vpop.trf.xlu0  ;;  %3281 = vmatprep.mubr.msk.f32.mxu1 %vm1606_vm5, %v2038_v61 }
 0x614   : > { %3220 = vmatprep.mubr.msk.f32.mxu0 %vm1606_vm5, %v1598_v35 }
 0x616   : > { %v2039_v36 = vpop.trf.xlu1 }
 0x617   : > { %3282 = vmatmul.mubr.msk.f32.gmra.mrb[14].mxu1 %vm1606_vm5, %v2039_v36  ;;  %v1599_v38 = vpop.trf.xlu0 }
 0x618   : > { %3221 = vmatmul.mubr.msk.f32.gmra.mrb[12].mxu0 %vm1606_vm5, %v1599_v38 }
 0x61a   : > { %v2040_v39 = vpop.trf.xlu1 }
 0x61b   : > { %v1600_v40 = vpop.trf.xlu0  ;;  %3284 = vmatprep.mubr.msk.f32.mxu1 %vm1606_vm5, %v2040_v39 }
 0x61c   : > { %3223 = vmatprep.mubr.msk.f32.mxu0 %vm1606_vm5, %v1600_v40 }
 0x61e   : > { %v2041_v42 = vpop.trf.xlu1 }
 0x61f   : > { %3285 = vmatmul.mubr.msk.f32.gmra.mrb[16].mxu1 %vm1606_vm5, %v2041_v42  ;;  %v1601_v43 = vpop.trf.xlu0 }
 0x620   : > { %3224 = vmatmul.mubr.msk.f32.gmra.mrb[14].mxu0 %vm1606_vm5, %v1601_v43  ;;  %v731_v43 = vld [vmem:[#allocation4 + $0x50] sm:$0xff] }
 0x622   : > { %v2042_v44 = vpop.trf.xlu1 }
 0x623   : > { %v1602_v48 = vpop.trf.xlu0  ;;  %3287 = vmatprep.mubr.msk.f32.mxu1 %vm1606_vm5, %v2042_v44  ;;  %v732_v44 = vld [vmem:[#allocation4 + $0x58] sm:$0xff] }
 0x624   : > { %3226 = vmatprep.mubr.msk.f32.mxu0 %vm1606_vm5, %v1602_v48 }
 0x626   : > { %v2043_v49 = vpop.trf.xlu1 }
 0x627   : > { %3288 = vmatmul.mubr.msk.f32.gmra.mrb[18].mxu1 %vm1606_vm5, %v2043_v49  ;;  %v1603_v12 = vpop.trf.xlu0 }
 0x628   : > { %3227 = vmatmul.mubr.msk.f32.gmra.mrb[16].mxu0 %vm1606_vm5, %v1603_v12 }
 0x62a   : > { %v2044_v33 = vpop.trf.xlu1 }
 0x62b   : > { %v1604_v50 = vpop.trf.xlu0  ;;  %3290 = vmatprep.mubr.msk.f32.mxu1 %vm1606_vm5, %v2044_v33 }
 0x62c   : > { %3229 = vmatprep.mubr.msk.f32.mxu0 %vm1606_vm5, %v1604_v50 }
 0x62e   : > { %v2045_v52 = vpop.trf.xlu1 }
 0x62f   : > { %v1605_v3 = vpop.trf.xlu0  ;;  %3291 = vmatmul.mubr.msk.f32.gmra.mrb[20].mxu1 %vm1606_vm5, %v2045_v52 }
 0x630   : > { %3230 = vmatmul.mubr.msk.f32.gmra.mrb[18].mxu0 %vm1606_vm5, %v1605_v3 }
 0x6ca   : > { %v3271_v41 = vpop.f32.mrb[6].mxu1 }
 0x6cb   : > { %v4321_v60 = vadd.f32 %v3271_v41, %v722_v7  ;;  %v3210_v10 = vpop.f32.mrb[4].mxu0  ;;  %v2160_v23 = vpop.f32.mrb[7].mxu1  ;;  %v733_v41 = vld [vmem:[#allocation4 + $0x60] sm:$0xff] }
 0x6cc   : > { %v4323_v2 = vadd.f32 %v3210_v10, %v722_v7  ;;  %v1721_v51 = vpop.f32.mrb[5].mxu0  ;;  %v4327_v8 = vadd.f32 %v2160_v23, %v721_v4  ;;  %v734_v10 = vld [vmem:[#allocation4 + $0x68] sm:$0xff] }
 0x6cd   : > { %2241 = vmax.xlane.f32.xlu0 %v4321_v60  ;;  %v4330_v6 = vadd.f32 %v1721_v51, %v721_v4 }
 0x6ce   : > { %1802 = vmax.xlane.f32.xlu1 %v4323_v2 }
 0x6d1   : > { %2239 = vmax.xlane.f32.xlu0 %v4327_v8 }
 0x6d2   : > { %v3274_v14 = vpop.f32.mrb[8].mxu1 }
 0x6d3   : > { %v2170_v53 = vpop.f32.mrb[9].mxu1  ;;  %v3213_v57 = vpop.f32.mrb[6].mxu0  ;;  %v4334_v18 = vadd.f32 %v3274_v14, %v724_v13 }
 0x6d4   : > { %v4332_v16 = vadd.f32 %v2170_v53, %v723_v9  ;;  %v1731_v45 = vpop.f32.mrb[7].mxu0  ;;  %v4342_v63 = vadd.f32 %v3213_v57, %v724_v13 }
 0x6d5   : > { %1800 = vmax.xlane.f32.xlu0 %v4330_v6  ;;  %v4338_v47 = vadd.f32 %v1731_v45, %v723_v9  ;;  %v736_v45 = vld [vmem:[#allocation4 + $0x78] sm:$0xff] }
 0x6d6   : > { %2243 = vmax.xlane.f32.xlu1 %v4332_v16 }
 0x6d9   : > { %2245 = vmax.xlane.f32.xlu0 %v4334_v18 }
 0x6da   : > { %v3277_v28 = vpop.f32.mrb[10].mxu1  ;;  %1804 = vmax.xlane.f32.xlu1 %v4338_v47 }
 0x6db   : > { %v2180_v55 = vpop.f32.mrb[11].mxu1  ;;  %v3216_v19 = vpop.f32.mrb[8].mxu0  ;;  %v4346_v21 = vadd.f32 %v3277_v28, %v726_v17 }
 0x6dc   : > { %v4344_v20 = vadd.f32 %v2180_v55, %v725_v24  ;;  %v1741_v56 = vpop.f32.mrb[9].mxu0  ;;  %v4354_v58 = vadd.f32 %v3216_v19, %v726_v17 }
 0x6dd   : > { %1806 = vmax.xlane.f32.xlu0 %v4342_v63  ;;  %v4350_v22 = vadd.f32 %v1741_v56, %v725_v24  ;;  %v735_v24 = vld [vmem:[#allocation4 + $0x70] sm:$0xff] }
 0x6de   : > { %2247 = vmax.xlane.f32.xlu1 %v4344_v20 }
 0x6e1   : > { %2249 = vmax.xlane.f32.xlu0 %v4346_v21 }
 0x6e2   : > { %v3280_v26 = vpop.f32.mrb[12].mxu1  ;;  %1808 = vmax.xlane.f32.xlu1 %v4350_v22 }
 0x6e3   : > { %v2190_v59 = vpop.f32.mrb[13].mxu1  ;;  %v3219_v27 = vpop.f32.mrb[10].mxu0  ;;  %v4358_v62 = vadd.f32 %v3280_v26, %v728_v25 }
 0x6e4   : > { %v4356_v30 = vadd.f32 %v2190_v59, %v727_v37  ;;  %v1751_v46 = vpop.f32.mrb[11].mxu0  ;;  %v4366_v61 = vadd.f32 %v3219_v27, %v728_v25 }
 0x6e5   : > { %1810 = vmax.xlane.f32.xlu0 %v4354_v58  ;;  %v4362_v29 = vadd.f32 %v1751_v46, %v727_v37 }
 0x6e6   : > { %2251 = vmax.xlane.f32.xlu1 %v4356_v30 }
 0x6e9   : > { %2253 = vmax.xlane.f32.xlu0 %v4358_v62 }
 0x6ea   : > { %v3283_v32 = vpop.f32.mrb[14].mxu1  ;;  %1812 = vmax.xlane.f32.xlu1 %v4362_v29 }
 0x6eb   : > { %v2200_v35 = vpop.f32.mrb[15].mxu1  ;;  %v3222_v36 = vpop.f32.mrb[12].mxu0  ;;  %v4370_v40 = vadd.f32 %v3283_v32, %v730_v15 }
 0x6ec   : > { %v4368_v38 = vadd.f32 %v2200_v35, %v729_v31  ;;  %v1761_v39 = vpop.f32.mrb[13].mxu0  ;;  %v4378_v49 = vadd.f32 %v3222_v36, %v730_v15 }
 0x6ed   : > { %1814 = vmax.xlane.f32.xlu0 %v4366_v61  ;;  %v4374_v42 = vadd.f32 %v1761_v39, %v729_v31 }
 0x6ee   : > { %2255 = vmax.xlane.f32.xlu1 %v4368_v38 }
 0x6f1   : > { %2257 = vmax.xlane.f32.xlu0 %v4370_v40 }
 0x6f2   : > { %v3286_v48 = vpop.f32.mrb[16].mxu1  ;;  %1816 = vmax.xlane.f32.xlu1 %v4374_v42 }
 0x6f3   : > { %v2210_v12 = vpop.f32.mrb[17].mxu1  ;;  %v3225_v33 = vpop.f32.mrb[14].mxu0  ;;  %v4382_v3 = vadd.f32 %v3286_v48, %v732_v44 }
 0x6f4   : > { %v4380_v50 = vadd.f32 %v2210_v12, %v731_v43  ;;  %v1771_v52 = vpop.f32.mrb[15].mxu0  ;;  %v4390_v4 = vadd.f32 %v3225_v33, %v732_v44 }
 0x6f5   : > { %1818 = vmax.xlane.f32.xlu0 %v4378_v49  ;;  %v4386_v7 = vadd.f32 %v1771_v52, %v731_v43 }
 0x6f6   : > { %2259 = vmax.xlane.f32.xlu1 %v4380_v50 }
 0x6f9   : > { %2261 = vmax.xlane.f32.xlu0 %v4382_v3 }
 0x6fa   : > { %v3289_v23 = vpop.f32.mrb[18].mxu1  ;;  %1820 = vmax.xlane.f32.xlu1 %v4386_v7 }
 0x6fb   : > { %v2220_v51 = vpop.f32.mrb[19].mxu1  ;;  %v3228_v9 = vpop.f32.mrb[16].mxu0  ;;  %v4394_v53 = vadd.f32 %v3289_v23, %v734_v10 }
 0x6fc   : > { %v4392_v13 = vadd.f32 %v2220_v51, %v733_v41  ;;  %v1781_v14 = vpop.f32.mrb[17].mxu0  ;;  %v4402_v28 = vadd.f32 %v3228_v9, %v734_v10 }
 0x6fd   : > { %1822 = vmax.xlane.f32.xlu0 %v4390_v4  ;;  %v4398_v57 = vadd.f32 %v1781_v14, %v733_v41 }
 0x6fe   : > { %2263 = vmax.xlane.f32.xlu1 %v4392_v13 }
 0x701   : > { %2265 = vmax.xlane.f32.xlu0 %v4394_v53 }
 0x702   : > { %1824 = vmax.xlane.f32.xlu1 %v4398_v57  ;;  %v3292_v17 = vpop.f32.mrb[20].mxu1 }
 0x703   : > { %v3231_v55 = vpop.f32.mrb[18].mxu0  ;;  %v2230_v19 = vpop.f32.mrb[21].mxu1  ;;  %v4412_v59 = vadd.f32 %v3292_v17, %v736_v45 }
 0x704   : > { %v1791_v56 = vpop.f32.mrb[19].mxu0  ;;  %v4404_v37 = vadd.f32 %v3231_v55, %v736_v45  ;;  %v4410_v26 = vadd.f32 %v2230_v19, %v735_v24 }
 0x705   : > { %v4406_v25 = vadd.f32 %v1791_v56, %v735_v24  ;;  %1826 = vmax.xlane.f32.xlu0 %v4402_v28 }
 0x707   : > { %1828 = vmax.xlane.f32.xlu1 %v4406_v25 }
 0x709   : > { %1830 = vmax.xlane.f32.xlu0 %v4404_v37 }
 0x70b   : > { %2267 = vmax.xlane.f32.xlu1 %v4410_v26 }
 0x70d   : > { %2269 = vmax.xlane.f32.xlu0 %v4412_v59 }
 0x75a   : > { %v2242_v27 = vpop.xlane.xlu0 %2241 }
 0x75b   : > { %v2272_v46 = vsub.f32 %v4321_v60, %v2242_v27  ;;  %v1803_v31 = vpop.xlane.xlu1 %1802 }
 0x75c   : > { %v1833_v15 = vsub.f32 %v4323_v2, %v1803_v31 }
 0x75d   : > { %v2289_v32 = vmul.f32 1.442695, %v2272_v46 }
 0x75e   : > { %v1850_v35 = vmul.f32 1.442695, %v1833_v15  ;;  %v2240_v36 = vpop.xlane.xlu0 %2239 }
 0x75f   : > { %3545 = vpow2.f32 %v2289_v32  ;;  %v2271_v39 = vsub.f32 %v4327_v8, %v2240_v36 }
 0x760   : > { %3547 = vpow2.f32 %v1850_v35 }
 0x761   : > { %v2287_v43 = vmul.f32 1.442695, %v2271_v39 }
 0x762   : > { %v1801_v44 = vpop.xlane.xlu0 %1800 }
 0x763   : > { %3549 = vpow2.f32 %v2287_v43  ;;  %v1832_v48 = vsub.f32 %v4330_v6, %v1801_v44  ;;  %v2244_v12 = vpop.xlane.xlu1 %2243 }
 0x764   : > { %v2273_v33 = vsub.f32 %v4332_v16, %v2244_v12 }
 0x765   : > { %v1848_v52 = vmul.f32 1.442695, %v1832_v48 }
 0x766   : > { %v2291_v60 = vmul.f32 1.442695, %v2273_v33  ;;  %v2246_v41 = vpop.xlane.xlu0 %2245 }
 0x767   : > { %3551 = vpow2.f32 %v1848_v52  ;;  %v2274_v2 = vsub.f32 %v4334_v18, %v2246_v41  ;;  %v1805_v10 = vpop.xlane.xlu1 %1804 }
 0x768   : > { %v1834_v23 = vsub.f32 %v4338_v47, %v1805_v10  ;;  %3553 = vpow2.f32 %v2291_v60 }
 0x769   : > { %v4424_v51 = vpop.eup %3545  ;;  %v2293_v8 = vmul.f32 1.442695, %v2274_v2 }
 0x76a   : > { %v1852_v9 = vmul.f32 1.442695, %v1834_v23  ;;  %2321 = vadd.xlane.f32.xlu0 %v4424_v51  ;;  %v1807_v6 = vpop.xlane.xlu0 %1806  ;;  %v4428_v45 = vpop.eup %3547 }
 0x76b   : > { %3555 = vpow2.f32 %v2293_v8  ;;  %v1835_v16 = vsub.f32 %v4342_v63, %v1807_v6  ;;  %v2248_v14 = vpop.xlane.xlu1 %2247 }
 0x76c   : > { %v2275_v24 = vsub.f32 %v4344_v20, %v2248_v14  ;;  %3557 = vpow2.f32 %v1852_v9 }
 0x76d   : > { %v4431_v18 = vpop.eup %3549  ;;  %v1854_v17 = vmul.f32 1.442695, %v1835_v16 }
 0x76e   : > { %v2295_v47 = vmul.f32 1.442695, %v2275_v24  ;;  %1882 = vadd.xlane.f32.xlu0 %v4428_v45  ;;  %2319 = vadd.xlane.f32.xlu1 %v4431_v18  ;;  %v2250_v55 = vpop.xlane.xlu0 %2249 }
 0x76f   : > { %3559 = vpow2.f32 %v1854_v17  ;;  %v2276_v19 = vsub.f32 %v4346_v21, %v2250_v55  ;;  %v1809_v56 = vpop.xlane.xlu1 %1808 }
 0x770   : > { %v1836_v63 = vsub.f32 %v4350_v22, %v1809_v56  ;;  %3561 = vpow2.f32 %v2295_v47 }
 0x771   : > { %v4437_v27 = vpop.eup %3551  ;;  %v2297_v46 = vmul.f32 1.442695, %v2276_v19 }
 0x772   : > { %v1856_v20 = vmul.f32 1.442695, %v1836_v63  ;;  %1880 = vadd.xlane.f32.xlu1 %v4437_v27  ;;  %v1811_v31 = vpop.xlane.xlu0 %1810  ;;  %v4441_v35 = vpop.eup %3553 }
 0x773   : > { %3563 = vpow2.f32 %v2297_v46  ;;  %v1837_v15 = vsub.f32 %v4354_v58, %v1811_v31  ;;  %v2252_v32 = vpop.xlane.xlu1 %2251 }
 0x774   : > { %v2277_v36 = vsub.f32 %v4356_v30, %v2252_v32  ;;  %3565 = vpow2.f32 %v1856_v20 }
 0x775   : > { %v4444_v21 = vpop.eup %3555  ;;  %v1858_v39 = vmul.f32 1.442695, %v1837_v15 }
 0x776   : > { %v2299_v22 = vmul.f32 1.442695, %v2277_v36  ;;  %2323 = vadd.xlane.f32.xlu1 %v4441_v35  ;;  %2325 = vadd.xlane.f32.xlu0 %v4444_v21  ;;  %v2254_v43 = vpop.xlane.xlu0 %2253  ;;  %v4449_v58 = vpop.eup %3557 }
 0x777   : > { %3567 = vpow2.f32 %v1858_v39  ;;  %v2278_v44 = vsub.f32 %v4358_v62, %v2254_v43  ;;  %v1813_v48 = vpop.xlane.xlu1 %1812 }
 0x778   : > { %v1838_v12 = vsub.f32 %v4362_v29, %v1813_v48  ;;  %3569 = vpow2.f32 %v2299_v22 }
 0x779   : > { %v4452_v33 = vpop.eup %3559  ;;  %v2301_v30 = vmul.f32 1.442695, %v2278_v44 }
 0x77a   : > { %v1860_v52 = vmul.f32 1.442695, %v1838_v12  ;;  %1884 = vadd.xlane.f32.xlu1 %v4449_v58  ;;  %1886 = vadd.xlane.f32.xlu0 %v4452_v33  ;;  %v1815_v60 = vpop.xlane.xlu0 %1814  ;;  %v4457_v62 = vpop.eup %3561 }
 0x77b   : > { %3571 = vpow2.f32 %v2301_v30  ;;  %v1839_v41 = vsub.f32 %v4366_v61, %v1815_v60  ;;  %v2256_v2 = vpop.xlane.xlu1 %2255 }
 0x77c   : > { %v2279_v10 = vsub.f32 %v4368_v38, %v2256_v2  ;;  %3573 = vpow2.f32 %v1860_v52 }
 0x77d   : > { %v4460_v23 = vpop.eup %3563  ;;  %v1862_v29 = vmul.f32 1.442695, %v1839_v41 }
 0x77e   : > { %v2303_v8 = vmul.f32 1.442695, %v2279_v10  ;;  %2327 = vadd.xlane.f32.xlu1 %v4457_v62  ;;  %2329 = vadd.xlane.f32.xlu0 %v4460_v23  ;;  %v2258_v9 = vpop.xlane.xlu0 %2257  ;;  %v4465_v61 = vpop.eup %3565 }
 0x77f   : > { %3575 = vpow2.f32 %v1862_v29  ;;  %v2280_v6 = vsub.f32 %v4370_v40, %v2258_v9  ;;  %v1817_v16 = vpop.xlane.xlu1 %1816 }
 0x780   : > { %v1840_v14 = vsub.f32 %v4374_v42, %v1817_v16  ;;  %3577 = vpow2.f32 %v2303_v8 }
 0x781   : > { %v4468_v24 = vpop.eup %3567  ;;  %v2305_v38 = vmul.f32 1.442695, %v2280_v6 }
 0x782   : > { %v1864_v17 = vmul.f32 1.442695, %v1840_v14  ;;  %1888 = vadd.xlane.f32.xlu1 %v4465_v61  ;;  %1890 = vadd.xlane.f32.xlu0 %v4468_v24  ;;  %v1819_v47 = vpop.xlane.xlu0 %1818  ;;  %v4473_v40 = vpop.eup %3569 }
 0x783   : > { %3579 = vpow2.f32 %v2305_v38  ;;  %v1841_v55 = vsub.f32 %v4378_v49, %v1819_v47  ;;  %v2260_v19 = vpop.xlane.xlu1 %2259 }
 0x784   : > { %v2281_v56 = vsub.f32 %v4380_v50, %v2260_v19  ;;  %3581 = vpow2.f32 %v1864_v17 }
 0x785   : > { %v4476_v63 = vpop.eup %3571  ;;  %v1866_v42 = vmul.f32 1.442695, %v1841_v55 }
 0x786   : > { %v2307_v46 = vmul.f32 1.442695, %v2281_v56  ;;  %2331 = vadd.xlane.f32.xlu1 %v4473_v40  ;;  %2333 = vadd.xlane.f32.xlu0 %v4476_v63  ;;  %v2262_v20 = vpop.xlane.xlu0 %2261  ;;  %v4481_v49 = vpop.eup %3573 }
 0x787   : > { %3583 = vpow2.f32 %v1866_v42  ;;  %v2282_v31 = vsub.f32 %v4382_v3, %v2262_v20  ;;  %v1821_v15 = vpop.xlane.xlu1 %1820  ;;  %v3771_v3 = vmov 0.0|0.0  }
 0x788   : > { %v1842_v32 = vsub.f32 %v4386_v7, %v1821_v15  ;;  %3585 = vpow2.f32 %v2307_v46  ;;  %3391 = vmatprep.subr.bf16.mxu1 %v3771_v3  ;;  %3367 = vmatprep.subr.bf16.mxu0 %v3771_v3 }
 0x789   : > { %v4484_v36 = vpop.eup %3575  ;;  %v2309_v50 = vmul.f32 1.442695, %v2282_v31 }
 0x78a   : > { %v1868_v39 = vmul.f32 1.442695, %v1842_v32  ;;  %1892 = vadd.xlane.f32.xlu1 %v4481_v49  ;;  %1894 = vadd.xlane.f32.xlu0 %v4484_v36  ;;  %v1823_v22 = vpop.xlane.xlu0 %1822  ;;  %v4491_v7 = vpop.eup %3577 }
 0x78b   : > { %3587 = vpow2.f32 %v2309_v50  ;;  %v1843_v43 = vsub.f32 %v4390_v4, %v1823_v22  ;;  %v2264_v44 = vpop.xlane.xlu1 %2263 }
 0x78c   : > { %v2283_v48 = vsub.f32 %v4392_v13, %v2264_v44  ;;  %3589 = vpow2.f32 %v1868_v39  ;;  %v3773_v44 = vmov 0.0  }
 0x78d   : > { %v4494_v12 = vpop.eup %3579  ;;  %v1870_v30 = vmul.f32 1.442695, %v1843_v43  ;;  %3264 = vmatprep.mubr.msk.f32.mxu0 %vm3772_vm6, %v3773_v44  ;;  %3325 = vmatprep.mubr.msk.f32.mxu1 %vm3772_vm6, %v3773_v44 }
 0x78e   : > { %v2311_v52 = vmul.f32 1.442695, %v2283_v48  ;;  %2335 = vadd.xlane.f32.xlu1 %v4491_v7  ;;  %2337 = vadd.xlane.f32.xlu0 %v4494_v12  ;;  %v2266_v4 = vpop.xlane.xlu0 %2265  ;;  %v4499_v2 = vpop.eup %3581  ;;  %v3774_v48 = vmov 8  }
 0x78f   : > { %3591 = vpow2.f32 %v1870_v30  ;;  %v2284_v60 = vsub.f32 %v4394_v53, %v2266_v4  ;;  %v1825_v41 = vpop.xlane.xlu1 %1824  ;;  %3533 = vset.pattern.permute.xlu1 %v3774_v48  ;;  %3534 = vset.pattern.permute.xlu0 %v3774_v48  ;;  %v4548_v30 = vld [vmem:[%s3908_s30] sm:$0xff]  ;;  %v3775_v4 = vmov 9  }
 0x790   : > { %v1844_v10 = vsub.f32 %v4398_v57, %v1825_v41  ;;  %3593 = vpow2.f32 %v2311_v52  ;;  %v4552_v52 = vld [vmem:[%s3908_s30 + $0x8] sm:$0xff] }
 0x791   : > { %v4502_v29 = vpop.eup %3583  ;;  %v2313_v13 = vmul.f32 1.442695, %v2284_v60 }
 0x792   : > { %v1872_v8 = vmul.f32 1.442695, %v1844_v10  ;;  %1896 = vadd.xlane.f32.xlu1 %v4499_v2  ;;  %1898 = vadd.xlane.f32.xlu0 %v4502_v29  ;;  %v1827_v9 = vpop.xlane.xlu0 %1826  ;;  %v4507_v16 = vpop.eup %3585 }
 0x793   : > { %3595 = vpow2.f32 %v2313_v13  ;;  %v1845_v6 = vsub.f32 %v4402_v28, %v1827_v9 }
 0x794   : > { %v1829_v53 = vpop.xlane.xlu1 %1828  ;;  %3597 = vpow2.f32 %v1872_v8 }
 0x795   : > { %v4509_v14 = vpop.eup %3587  ;;  %v1874_v38 = vmul.f32 1.442695, %v1845_v6  ;;  %v1846_v57 = vsub.f32 %v4406_v25, %v1829_v53 }
 0x796   : > { %2339 = vadd.xlane.f32.xlu1 %v4507_v16  ;;  %2341 = vadd.xlane.f32.xlu0 %v4509_v14  ;;  %v1831_v17 = vpop.xlane.xlu0 %1830  ;;  %v4515_v19 = vpop.eup %3589 }
 0x797   : > { %3599 = vpow2.f32 %v1874_v38  ;;  %v1876_v47 = vmul.f32 1.442695, %v1846_v57  ;;  %v1847_v55 = vsub.f32 %v4404_v37, %v1831_v17 }
 0x798   : > { %v2268_v28 = vpop.xlane.xlu1 %2267 }
 0x799   : > { %v4517_v56 = vpop.eup %3591  ;;  %v1878_v42 = vmul.f32 1.442695, %v1847_v55  ;;  %v2285_v46 = vsub.f32 %v4410_v26, %v2268_v28  ;;  %3601 = vpow2.f32 %v1876_v47 }
 0x79a   : > { %1900 = vadd.xlane.f32.xlu1 %v4515_v19  ;;  %1902 = vadd.xlane.f32.xlu0 %v4517_v56  ;;  %v2270_v25 = vpop.xlane.xlu0 %2269  ;;  %v4523_v15 = vpop.eup %3593 }
 0x79b   : > { %3603 = vpow2.f32 %v1878_v42  ;;  %v2315_v20 = vmul.f32 1.442695, %v2285_v46  ;;  %v2286_v31 = vsub.f32 %v4412_v59, %v2270_v25 }
 0x79d   : > { %v4525_v37 = vpop.eup %3595  ;;  %v2317_v32 = vmul.f32 1.442695, %v2286_v31  ;;  %3605 = vpow2.f32 %v2315_v20 }
 0x79e   : > { %2343 = vadd.xlane.f32.xlu1 %v4523_v15  ;;  %2345 = vadd.xlane.f32.xlu0 %v4525_v37  ;;  %v4529_v26 = vpop.eup %3597 }
 0x79f   : > { %3607 = vpow2.f32 %v2317_v32 }
 0x7a1   : > { %v4531_v50 = vpop.eup %3599 }
 0x7a2   : > { %1904 = vadd.xlane.f32.xlu1 %v4529_v26  ;;  %1906 = vadd.xlane.f32.xlu0 %v4531_v50 }
 0x7a3   : > { %v4535_v59 = vpop.eup %3601 }
 0x7a5   : > { %v4537_v39 = vpop.eup %3603 }
 0x7a6   : > { %1908 = vadd.xlane.f32.xlu1 %v4535_v59  ;;  %1910 = vadd.xlane.f32.xlu0 %v4537_v39 }
 0x7a7   : > { %v4541_v22 = vpop.eup %3605 }
 0x7a9   : > { %v4543_v43 = vpop.eup %3607 }
 0x7aa   : > { %2347 = vadd.xlane.f32.xlu1 %v4541_v22  ;;  %2349 = vadd.xlane.f32.xlu0 %v4543_v43 }
 0x7bb   : > { %2480 = vperm.xlu1 %3533, %v4548_v30  }
 0x7bf   : > { %3535 = vset.pattern.permute.xlu1 %v3775_v4 }
 0x7c0   : > { %2484 = vperm.xlu0 %3534, %v4552_v52   ;;  %2490 = vperm.xlu1 %3535, %v4548_v30  }
 0x7c4   : > { %2494 = vperm.xlu1 %3535, %v4552_v52  }
 0x7f7   : > { %v2322_v60 = vpop.xlane.xlu0 %2321 }
 0x7f8   : > { %3609 = vrcp.f32 %v2322_v60 }
 0x7fb   : > { %v2320_v41 = vpop.xlane.xlu1 %2319  ;;  %v1883_v10 = vpop.xlane.xlu0 %1882 }
 0x7fc   : > { %3611 = vrcp.f32 %v2320_v41 }
 0x7fd   : > { %3613 = vrcp.f32 %v1883_v10 }
 0x7ff   : > { %v1881_v13 = vpop.xlane.xlu1 %1880 }
 0x800   : > { %3615 = vrcp.f32 %v1881_v13 }
 0x802   : > { %v3610_v6 = vpop.eup %3609 }
 0x803   : > { %v2324_v8 = vpop.xlane.xlu1 %2323  ;;  %v2326_v9 = vpop.xlane.xlu0 %2325  ;;  %v2368_v47 = vmul.f32 %v3610_v6, %v4424_v51 }
 0x804   : > { %3617 = vrcp.f32 %v2324_v8 }
 0x805   : > { %3619 = vrcp.f32 %v2326_v9 }
 0x806   : > { %v3612_v53 = vpop.eup %3611 }
 0x807   : > { %v1885_v38 = vpop.xlane.xlu1 %1884  ;;  %v1887_v57 = vpop.xlane.xlu0 %1886  ;;  %v2367_v17 = vmul.f32 %v3612_v53, %v4431_v18 }
 0x808   : > { %v3614_v55 = vpop.eup %3613  ;;  %3621 = vrcp.f32 %v1885_v38 }
 0x809   : > { %3623 = vrcp.f32 %v1887_v57  ;;  %v3392_v28 = vpack.c.bf16 %v2368_v47, %v2367_v17  ;;  %v1929_v31 = vmul.f32 %v3614_v55, %v4428_v45 }
 0x80a   : > { %v3616_v42 = vpop.eup %3615 }
 0x80b   : > { %v2328_v46 = vpop.xlane.xlu1 %2327  ;;  %3393 = vmatpush3.bf16.xpose.msra.mxu1 %v3392_v28  ;;  %v2330_v25 = vpop.xlane.xlu0 %2329  ;;  %v1928_v20 = vmul.f32 %v3616_v42, %v4437_v27 }
 0x80c   : > { %3625 = vrcp.f32 %v2328_v46  ;;  %3394 = vmatprep.subr.bf16.mxu1 %v3771_v3 }
 0x80d   : > { %3627 = vrcp.f32 %v2330_v25  ;;  %v3368_v32 = vpack.c.bf16 %v1929_v31, %v1928_v20 }
 0x80e   : > { %v3618_v18 = vpop.eup %3617 }
 0x80f   : > { %v3620_v44 = vpop.eup %3619  ;;  %v1889_v51 = vpop.xlane.xlu1 %1888  ;;  %3369 = vmatpush3.bf16.xpose.msra.mxu0 %v3368_v32  ;;  %v2369_v4 = vmul.f32 %v3618_v18, %v4441_v35 }
 0x810   : > { %v1891_v48 = vpop.xlane.xlu0 %1890  ;;  %3629 = vrcp.f32 %v1889_v51  ;;  %v2370_v60 = vmul.f32 %v3620_v44, %v4444_v21  ;;  %3370 = vmatprep.subr.bf16.mxu0 %v3771_v3 }
 0x811   : > { %3631 = vrcp.f32 %v1891_v48 }
 0x812   : > { %v3622_v27 = vpop.eup %3621  ;;  %v3395_v45 = vpack.c.bf16 %v2370_v60, %v2369_v4 }
 0x813   : > { %v3624_v41 = vpop.eup %3623  ;;  %v2332_v10 = vpop.xlane.xlu1 %2331  ;;  %v1930_v8 = vmul.f32 %v3622_v27, %v4449_v58 }
 0x814   : > { %v2334_v13 = vpop.xlane.xlu0 %2333  ;;  %3633 = vrcp.f32 %v2332_v10  ;;  %3396 = vmatpush3.bf16.xpose.msra.mxu1 %v3395_v45  ;;  %v1931_v9 = vmul.f32 %v3624_v41, %v4452_v33 }
 0x815   : > { %3635 = vrcp.f32 %v2334_v13  ;;  %3397 = vmatprep.subr.bf16.mxu1 %v3771_v3 }
 0x816   : > { %v3626_v35 = vpop.eup %3625  ;;  %v3371_v6 = vpack.c.bf16 %v1931_v9, %v1930_v8 }
 0x817   : > { %v3628_v21 = vpop.eup %3627  ;;  %v1893_v53 = vpop.xlane.xlu1 %1892  ;;  %v2371_v57 = vmul.f32 %v3626_v35, %v4457_v62 }
 0x818   : > { %v1895_v38 = vpop.xlane.xlu0 %1894  ;;  %3637 = vrcp.f32 %v1893_v53  ;;  %3372 = vmatpush3.bf16.xpose.msra.mxu0 %v3371_v6  ;;  %v2372_v17 = vmul.f32 %v3628_v21, %v4460_v23 }
 0x819   : > { %3639 = vrcp.f32 %v1895_v38  ;;  %3373 = vmatprep.subr.bf16.mxu0 %v3771_v3 }
 0x81a   : > { %v3630_v58 = vpop.eup %3629  ;;  %v3398_v47 = vpack.c.bf16 %v2372_v17, %v2371_v57 }
 0x81b   : > { %v3632_v33 = vpop.eup %3631  ;;  %v2336_v55 = vpop.xlane.xlu1 %2335  ;;  %v1932_v42 = vmul.f32 %v3630_v58, %v4465_v61 }
 0x81c   : > { %v2338_v28 = vpop.xlane.xlu0 %2337  ;;  %3641 = vrcp.f32 %v2336_v55  ;;  %3399 = vmatpush3.bf16.xpose.msra.mxu1 %v3398_v47  ;;  %v1933_v46 = vmul.f32 %v3632_v33, %v4468_v24 }
 0x81d   : > { %3643 = vrcp.f32 %v2338_v28  ;;  %3400 = vmatprep.subr.bf16.mxu1 %v3771_v3 }
 0x81e   : > { %v3634_v62 = vpop.eup %3633  ;;  %v3374_v25 = vpack.c.bf16 %v1933_v46, %v1932_v42 }
 0x81f   : > { %v3636_v23 = vpop.eup %3635  ;;  %v1897_v20 = vpop.xlane.xlu1 %1896  ;;  %v2373_v32 = vmul.f32 %v3634_v62, %v4473_v40 }
 0x820   : > { %v1899_v31 = vpop.xlane.xlu0 %1898  ;;  %3645 = vrcp.f32 %v1897_v20  ;;  %3375 = vmatpush3.bf16.xpose.msra.mxu0 %v3374_v25  ;;  %v2374_v18 = vmul.f32 %v3636_v23, %v4476_v63 }
 0x821   : > { %3647 = vrcp.f32 %v1899_v31  ;;  %3376 = vmatprep.subr.bf16.mxu0 %v3771_v3 }
 0x822   : > { %v3638_v61 = vpop.eup %3637  ;;  %v3401_v44 = vpack.c.bf16 %v2374_v18, %v2373_v32 }
 0x823   : > { %v3640_v24 = vpop.eup %3639  ;;  %v2340_v51 = vpop.xlane.xlu1 %2339  ;;  %v1934_v4 = vmul.f32 %v3638_v61, %v4481_v49 }
 0x824   : > { %v2342_v48 = vpop.xlane.xlu0 %2341  ;;  %3649 = vrcp.f32 %v2340_v51  ;;  %3402 = vmatpush3.bf16.xpose.msra.mxu1 %v3401_v44  ;;  %v1935_v60 = vmul.f32 %v3640_v24, %v4484_v36 }
 0x825   : > { %3651 = vrcp.f32 %v2342_v48  ;;  %3403 = vmatprep.subr.bf16.mxu1 %v3771_v3 }
 0x826   : > { %v3642_v40 = vpop.eup %3641  ;;  %v3377_v27 = vpack.c.bf16 %v1935_v60, %v1934_v4 }
 0x827   : > { %v3644_v63 = vpop.eup %3643  ;;  %v1901_v45 = vpop.xlane.xlu1 %1900  ;;  %v2375_v10 = vmul.f32 %v3642_v40, %v4491_v7  ;;  %v747_v40 = vld [vmem:[%s3903_s12 + $0x50] sm:$0xff] }
 0x828   : > { %v1903_v41 = vpop.xlane.xlu0 %1902  ;;  %3653 = vrcp.f32 %v1901_v45  ;;  %3378 = vmatpush3.bf16.xpose.msra.mxu0 %v3377_v27  ;;  %v2376_v13 = vmul.f32 %v3644_v63, %v4494_v12 }
 0x829   : > { %3655 = vrcp.f32 %v1903_v41  ;;  %3379 = vmatprep.subr.bf16.mxu0 %v3771_v3 }
 0x82a   : > { %v3646_v49 = vpop.eup %3645  ;;  %v3404_v8 = vpack.c.bf16 %v2376_v13, %v2375_v10 }
 0x82b   : > { %v3648_v36 = vpop.eup %3647  ;;  %v2344_v9 = vpop.xlane.xlu1 %2343  ;;  %v1936_v6 = vmul.f32 %v3646_v49, %v4499_v2 }
 0x82c   : > { %v2346_v35 = vpop.xlane.xlu0 %2345  ;;  %3657 = vrcp.f32 %v2344_v9  ;;  %3405 = vmatpush3.bf16.xpose.msra.mxu1 %v3404_v8  ;;  %v1937_v21 = vmul.f32 %v3648_v36, %v4502_v29 }
 0x82d   : > { %3659 = vrcp.f32 %v2346_v35  ;;  %3406 = vmatprep.subr.bf16.mxu1 %v3771_v3 }
 0x82e   : > { %v3650_v7 = vpop.eup %3649  ;;  %v3380_v53 = vpack.c.bf16 %v1937_v21, %v1936_v6 }
 0x82f   : > { %v3652_v12 = vpop.eup %3651  ;;  %v1905_v38 = vpop.xlane.xlu1 %1904  ;;  %v2377_v17 = vmul.f32 %v3650_v7, %v4507_v16 }
 0x830   : > { %v1907_v57 = vpop.xlane.xlu0 %1906  ;;  %3661 = vrcp.f32 %v1905_v38  ;;  %3381 = vmatpush3.bf16.xpose.msra.mxu0 %v3380_v53  ;;  %v2378_v58 = vmul.f32 %v3652_v12, %v4509_v14 }
 0x831   : > { %3663 = vrcp.f32 %v1907_v57  ;;  %3382 = vmatprep.subr.bf16.mxu0 %v3771_v3 }
 0x832   : > { %v3654_v2 = vpop.eup %3653  ;;  %v3407_v47 = vpack.c.bf16 %v2378_v58, %v2377_v17 }
 0x833   : > { %v3656_v29 = vpop.eup %3655  ;;  %v1909_v33 = vpop.xlane.xlu1 %1908  ;;  %v1938_v28 = vmul.f32 %v3654_v2, %v4515_v19 }
 0x834   : > { %v1911_v55 = vpop.xlane.xlu0 %1910  ;;  %3665 = vrcp.f32 %v1909_v33  ;;  %3408 = vmatpush3.bf16.xpose.msra.mxu1 %v3407_v47  ;;  %v1939_v42 = vmul.f32 %v3656_v29, %v4517_v56 }
 0x835   : > { %3667 = vrcp.f32 %v1911_v55  ;;  %3409 = vmatprep.subr.bf16.mxu1 %v3771_v3 }
 0x836   : > { %v3658_v16 = vpop.eup %3657  ;;  %v3383_v46 = vpack.c.bf16 %v1939_v42, %v1938_v28 }
 0x837   : > { %v3660_v14 = vpop.eup %3659  ;;  %v2348_v62 = vpop.xlane.xlu1 %2347  ;;  %v2379_v23 = vmul.f32 %v3658_v16, %v4523_v15 }
 0x838   : > { %v2350_v25 = vpop.xlane.xlu0 %2349  ;;  %3669 = vrcp.f32 %v2348_v62  ;;  %3384 = vmatpush3.bf16.xpose.msra.mxu0 %v3383_v46  ;;  %v2380_v20 = vmul.f32 %v3660_v14, %v4525_v37 }
 0x839   : > { %3671 = vrcp.f32 %v2350_v25  ;;  %3385 = vmatprep.subr.bf16.mxu0 %v3771_v3  ;;  %v748_v25 = vld [vmem:[%s3903_s12 + $0x58] sm:$0xff] }
 0x83a   : > { %v3662_v19 = vpop.eup %3661  ;;  %v3410_v31 = vpack.c.bf16 %v2380_v20, %v2379_v23  ;;  %v749_v23 = vld [vmem:[%s3903_s12 + $0x60] sm:$0xff]  ;;  %v3777_v20 = vmov 11  }
 0x83b   : > { %v3664_v56 = vpop.eup %3663  ;;  %v1940_v32 = vmul.f32 %v3662_v19, %v4529_v26  ;;  %v2481_v58 = vpop.permute.xlu1 %2480  ;;  %3538 = vset.pattern.permute.xlu0 %v3777_v20 }
 0x83c   : > { %3411 = vmatpush3.bf16.xpose.msra.mxu1 %v3410_v31  ;;  %v1941_v18 = vmul.f32 %v3664_v56, %v4531_v50 }
 0x83d   : > { %3412 = vmatprep.subr.bf16.mxu1 %v3771_v3 }
 0x83e   : > { %v3666_v61 = vpop.eup %3665  ;;  %v3386_v44 = vpack.c.bf16 %v1941_v18, %v1940_v32 }
 0x83f   : > { %v3668_v15 = vpop.eup %3667  ;;  %v1942_v24 = vmul.f32 %v3666_v61, %v4535_v59  ;;  %v2491_v2 = vpop.permute.xlu1 %2490 }
 0x840   : > { %3387 = vmatpush3.bf16.xpose.msra.mxu0 %v3386_v44  ;;  %v1943_v51 = vmul.f32 %v3668_v15, %v4537_v39  ;;  %v2485_v29 = vpop.permute.xlu0 %2484 }
 0x841   : > { %3388 = vmatprep.subr.bf16.mxu0 %v3771_v3  ;;  %v3776_v3 = vmov 10  }
 0x842   : > { %v3670_v37 = vpop.eup %3669  ;;  %v3389_v50 = vpack.c.bf16 %v1943_v51, %v1942_v24  ;;  %3536 = vset.pattern.permute.xlu1 %v3776_v3  ;;  %v750_v24 = vld [vmem:[%s3903_s12 + $0x68] sm:$0xff]  ;;  %v3778_v3 = vmov (!%p3058_p10), 0  }
 0x843   : > { %v3672_v48 = vpop.eup %3671  ;;  %v2381_v26 = vmul.f32 %v3670_v37, %v4541_v22  ;;  %2500 = vperm.xlu1 %3536, %v4548_v30   ;;  %v2495_v16 = vpop.permute.xlu1 %2494  ;;  %3677 = vset.pattern.permute.xlu0 (!%p3058_p10), %v3778_v3 }
 0x844   : > { %v2382_v4 = vmul.f32 %v3672_v48, %v4543_v43 }
 0x846   : > { %v3413_v60 = vpack.c.bf16 %v2382_v4, %v2381_v26 }
 0x847   : > { %2504 = vperm.xlu1 %3536, %v4552_v52  }
 0x848   : > { %3390 = vmatpush3.bf16.xpose.msra.mxu0 %v3389_v50  ;;  %3414 = vmatpush3.bf16.xpose.msra.mxu1 %v3413_v60 }
 0x84b   : > { %3537 = vset.pattern.permute.xlu1 %v3777_v20 }
 0x84c   : > { %2591 = vperm.xlu1 %3537, %v4548_v30  }
 0x84f   : > { %3265 = vmatmul.mubr.f32.vlgmr.msra.gmra.mrb[20].mxu0 %v4319_v54  ;;  %3326 = vmatmul.mubr.f32.vlgmr.msra.gmra.mrb[22].mxu1 %v4317_v11 }
 0x850   : > { %3332 = vmatprep.mubr.msk.f32.mxu0 %vm938_vm2, %v747_v40  ;;  %2595 = vperm.xlu1 %3537, %v4552_v52   ;;  %v2687_v40 = vld [vmem:[%s3913_s11] sm:$0xff] (!%p3058_p10) }
 0x851   : > { %2691 = vperm.xlu0 (!%p3058_p10), %3677, %v2687_v40  }
 0x8c2   : > { %v2501_v19 = vpop.permute.xlu1 %2500 }
 0x8c6   : > { %v2505_v31 = vpop.permute.xlu1 %2504 }
 0x8cb   : > { %v2592_v51 = vpop.permute.xlu1 %2591 }
 0x8cf   : > { %v2596_v48 = vpop.permute.xlu1 %2595 }
 0x922   : > { %v2010_v59 = vpop.f32.mrb[20].mxu0  ;;  %v2449_v39 = vpop.f32.mrb[22].mxu1 }
 0x923   : > { %v4610_v22 = vadd.f32 %v2010_v59, %v4271_v0  ;;  %v4613_v43 = vadd.f32 %v2449_v39, %v4268_v34  ;;  %v3266_v54 = vpop.f32.mrb[21].mxu0  ;;  %v3327_v27 = vpop.f32.mrb[23].mxu1  ;;  %v2688_v59 = vld [vmem:[%s3913_s11 + $0x8] sm:$0xff] (!%p3058_p10)  ;;  %s3059_s11 = sshll.u32 (!%p3058_p10), %s3740_s28, 4 }
 0x924   : > { %2696 = vperm.xlu0 (!%p3058_p10), %3677, %v2688_v59   ;;  %v2692_v39 = vpop.permute.xlu0 (!%p3058_p10), %2691  ;;  %s2798_s12 = scalar_lea.vmem (!%p3058_p10), [#allocation3], %s3059_s11 }
 0x925   : > { %v2455_v11 = vadd.f32 %v4613_v43, %v4610_v22 }
 0x927   : > { %v2456_v63 = vrot.slane %v2455_v11, 4 }
 0x929   : > { %v2457_v45 = vadd.f32 %v2456_v63, %v2455_v11 }
 0x92b   : > { %v2458_v41 = vrot.slane %v2457_v45, 2 }
 0x92d   : > { %v2459_v10 = vadd.f32 %v2458_v41, %v2457_v45 }
 0x92f   : > { %v2460_v13 = vrot.slane %v2459_v10, 1 }
 0x931   : > { %v2461_v49 = vadd.f32 %v2460_v13, %v2459_v10  ;;  %v2708_v13 = vld [vmem:[%s4714_s6] sm:$0x3] (!%p3058_p10) }
 0x933   : > { %v2462_v8 = vmul.f32 0.0625, %v2461_v49 }
 0x935   : > { %v2464_v36 = vsub.f32 %v4613_v43, %v2462_v8  ;;  %v2463_v0 = vsub.f32 %v4610_v22, %v2462_v8 }
 0x937   : > { %v2466_v9 = vmul.f32 %v2464_v36, %v2464_v36  ;;  %v2465_v35 = vmul.f32 %v2463_v0, %v2463_v0 }
 0x939   : > { %v2467_v34 = vadd.f32 %v2466_v9, %v2465_v35 }
 0x93b   : > { %v2468_v6 = vrot.slane %v2467_v34, 4 }
 0x93d   : > { %v2469_v21 = vadd.f32 %v2468_v6, %v2467_v34 }
 0x93f   : > { %v2470_v7 = vrot.slane %v2469_v21, 2 }
 0x941   : > { %v2471_v53 = vadd.f32 %v2470_v7, %v2469_v21 }
 0x943   : > { %v2472_v12 = vrot.slane %v2471_v53, 1 }
 0x945   : > { %v2473_v38 = vadd.f32 %v2472_v12, %v2471_v53 }
 0x947   : > { %v2474_v57 = vmul.f32 0.0625, %v2473_v38 }
 0x949   : > { %v2475_v17 = vadd.f32 1e-05, %v2474_v57 }
 0x94b   : > { %3673 = vrsqrt.f32 %v2475_v17 }
 0x955   : > { %v3674_v47 = vpop.eup %3673 }
 0x956   : > { %v2477_v33 = vmul.f32 %v3674_v47, %v2463_v0  ;;  %v2478_v55 = vmul.f32 %v3674_v47, %v2464_v36 }
 0x958   : > { %v2487_v28 = vmul.f32 %v2481_v58, %v2477_v33  ;;  %v2488_v42 = vmul.f32 %v2485_v29, %v2478_v55 }
 0x95a   : > { %v2497_v46 = vadd.f32 %v2491_v2, %v2487_v28  ;;  %v2498_v14 = vadd.f32 %v2495_v16, %v2488_v42 }
 0x95c   : > { %v3415_v62 = vpack.c.bf16 %v2498_v14, %v2497_v46 }
 0x95e   : > { %3416 = vmatprep.subr.bf16.mxu0 %v3415_v62 }
 0x95f   : > { %3418 = vmatpush3.bf16.msra.mxu0 %v3415_v62 }
 0x962   : > { %3333 = vmatmul.mubr.msk.f32.vlgmr.msra.gmra.mrb[22].mxu0 %vm938_vm2, %v748_v25 }
 0x963   : > { %3339 = vmatprep.mubr.msk.f32.mxu0 %vm938_vm2, %v749_v23 }
 0x9a3   : > { %v2697_v54 = vpop.permute.xlu0 (!%p3058_p10), %2696 }
 0xa35   : > { %v3334_v56 = vpop.f32.mrb[22].mxu0 }
 0xa36   : > { %v2585_v32 = vadd.f32 %v3334_v56, %v2505_v31  ;;  %v2579_v18 = vpop.f32.mrb[23].mxu0 }
 0xa37   : > { %v2580_v61 = vadd.f32 %v2579_v18, %v2501_v19 }
 0xa38   : > { %v2589_v44 = vmax.f32 %v2585_v32, 0.0 }
 0xa39   : > { %v2588_v15 = vmax.f32 %v2580_v61, 0.0 }
 0xa3b   : > { %v3419_v37 = vpack.c.bf16 %v2589_v44, %v2588_v15 }
 0xa3d   : > { %3420 = vmatprep.subr.bf16.mxu0 %v3419_v37 }
 0xa3e   : > { %3422 = vmatpush3.bf16.msra.mxu0 %v3419_v37 }
 0xa41   : > { %3340 = vmatmul.mubr.msk.f32.vlgmr.msra.gmra.mrb[24].mxu0 %vm938_vm2, %v750_v24 }
 0xb14   : > { %v3341_v26 = vpop.f32.mrb[24].mxu0  ;;  %2686 = sbr.rel (%p3058_p10) target bundleno = 3426 (0xd62), region = 80 }
 0xb15   : > { %v2676_v30 = vadd.f32 %v3341_v26, %v2596_v48  ;;  %v2670_v4 = vpop.f32.mrb[25].mxu0 }
 0xb16   : > { %v2671_v52 = vadd.f32 %v2670_v4, %v2592_v51 }
 0xb17   : > { %v2680_v50 = vadd.f32 %v2676_v30, %v4613_v43 }
 0xb18   : > { %v2679_v60 = vadd.f32 %v2671_v52, %v4610_v22 }
 0xb19   : > { %2682 = vst [vmem:[#allocation2 + $0x8] sm:$0xff] %v2680_v50  ;;  %v2700_v43 = vmul.f32 (!%p3058_p10), %v2697_v54, %v2680_v50 }
 0xb1a   : > { %2681 = vst [vmem:[#allocation2] sm:$0xff] %v2679_v60  ;;  %3344 = vmatprep.mubr.f32.mxu0 (!%p3058_p10), %v2679_v60  ;;  %v2699_v27 = vmul.f32 (!%p3058_p10), %v2692_v39, %v2679_v60 }
 0xb1b   : > { %s4734_s24 = sld [smem:[#allocation14_spill]] (!%p3060_p11)  ;;  %v3779_v58 = vmov (!%p3060_p11), 0   ;;  %v2806_v55 = vld [vmem:[#allocation5] sm:$0x1] (!%p3060_p11)  ;;  %vm2902_vm9 = vcmask (!%p3060_p11), 8192  }
 0xb1c   : > { %v2701_v11 = vadd.f32 %v2700_v43, %v2699_v27  ;;  %3683 = vset.pattern.permute.xlu1 (!%p3060_p11), %v3779_v58  ;;  %3682 = vset.pattern.permute.xlu0 (!%p3060_p11), %v3779_v58 }
 0xb1e   : > { %v2702_v22 = vrot.slane %v2701_v11, 4 }
 0xb20   : > { %v2703_v63 = vadd.f32 %v2702_v22, %v2701_v11 }
 0xb21   : > { %v3061_v57 = vld [vmem:[%s4734_s24 + $0x10] sm:$0xff] (!%p3060_p11)  ;;  %v2824_v17 = vld [vmem:[%s4734_s24] sm:$0xff] (!%p3060_p11)  ;;  %v3062_v2 = vld [vmem:[%s4734_s24 + $0x18] sm:$0xff] (!%p3060_p11) }
 0xb22   : > { %v2704_v45 = vrot.slane %v2703_v63, 2  ;;  %2828 = vperm.xlu0 (!%p3060_p11), %3682, %v2824_v17   ;;  %v2825_v47 = vld [vmem:[%s4734_s24 + $0x8] sm:$0xff] (!%p3060_p11)  ;;  %v3063_v33 = vld [vmem:[%s4734_s24 + $0x20] sm:$0xff] (!%p3060_p11) }
 0xb23   : > { %v3064_v29 = vld [vmem:[%s4734_s24 + $0x28] sm:$0xff] (!%p3060_p11) }
 0xb24   : > { %v2705_v41 = vadd.f32 %v2704_v45, %v2703_v63 }
 0xb26   : > { %v2706_v10 = vrot.slane %v2705_v41, 1  ;;  %2833 = vperm.xlu0 (!%p3060_p11), %3682, %v2825_v47  }
 0xb28   : > { %v2707_v49 = vadd.f32 %v2706_v10, %v2705_v41 }
 0xb2a   : > { %v2709_v8 = vadd.f32 %v2708_v13, %v2707_v49  ;;  %2882 = vperm.xlu0 (!%p3060_p11), %3682, %v3063_v33  }
 0xb2c   : > { %v2711_v36 = vsel %vm2710_vm7, %v2709_v8, -inf }
 0xb2d   : > { %2712 = vmax.xlane.f32.xlu1 %v2711_v36 }
 0xb2e   : > { %2809 = vperm.xlu0 (!%p3060_p11), %3682, %v2806_v55  }
 0xba1   : > { %v2829_v23 = vpop.permute.xlu0 (!%p3060_p11), %2828 }
 0xba5   : > { %v2834_v18 = vpop.permute.xlu0 (!%p3060_p11), %2833 }
 0xbba   : > { %v2713_v0 = vpop.xlane.xlu1 %2712 }
 0xbbb   : > { %v2714_v9 = vsub.f32 %v2709_v8, %v2713_v0 }
 0xbbd   : > { %v2715_v35 = vmul.f32 1.442695, %v2714_v9 }
 0xbbf   : > { %3678 = vpow2.f32 %v2715_v35 }
 0xbc9   : > { %v3679_v34 = vpop.eup %3678 }
 0xbca   : > { %v2717_v6 = vsel %vm2710_vm7, %v3679_v34, 0.0 }
 0xbcb   : > { %2718 = vadd.xlane.f32.xlu1 %v2717_v6 }
 0xbdc   : > { %2855 = vperm.xlu1 (!%p3060_p11), %3683, %v3061_v57  }
 0xbe0   : > { %2860 = vperm.xlu1 (!%p3060_p11), %3683, %v3062_v2  }
 0xbe4   : > { %2887 = vperm.xlu1 (!%p3060_p11), %3683, %v3064_v29  }
 0xc58   : > { %v2719_v21 = vpop.xlane.xlu1 %2718 }
 0xc59   : > { %3680 = vrcp.f32 %v2719_v21 }
 0xc5c   : > { %v2856_v25 = vpop.permute.xlu1 (!%p3060_p11), %2855 }
 0xc60   : > { %v2861_v32 = vpop.permute.xlu1 (!%p3060_p11), %2860 }
 0xc63   : > { %v3681_v7 = vpop.eup %3680 }
 0xc64   : > { %v2721_v53 = vmul.f32 %v3681_v7, %v3679_v34  ;;  %v2888_v52 = vpop.permute.xlu1 (!%p3060_p11), %2887 }
 0xc66   : > { %3342 = vmatprep.subr.mxu0 %v2721_v53 }
 0xc67   : > { %3343 = vmatpush3.xpose.msra.mxu0 %v2721_v53 }
 0xc6a   : > { %3345 = vmatmul.mubr.f32.vlgmr.msra.gmra.mrb[0].mxu0 %v2680_v50  ;;  %v2883_v50 = vpop.permute.xlu0 (!%p3060_p11), %2882 }
 0xc6e   : > { %v2810_v49 = vpop.permute.xlu0 (!%p3060_p11), %2809 }
 0xc6f   : > { %v2815_v34 = vrot.slane (!%p3060_p11), %v2810_v49, %v691_v5 }
 0xd39   : > { %2805 = sbr.rel (%p3060_p11) target bundleno = 3426 (0xd62), region = 84 }
 0xd3d   : > { %v3346_v12 = vpop.f32.mrb[0].mxu0 }
 0xd3e   : > { %2801 = vst.msk [vmem:[%s2798_s12 + $0x8] sm:$0xff] %vm2799_vm8, %v3346_v12  ;;  %v2788_v38 = vpop.f32.mrb[1].mxu0  ;;  %v2876_v15 = vmax.f32 (!%p3060_p11), %v3346_v12, 0.0 }
 0xd3f   : > { %2800 = vst.msk [vmem:[%s2798_s12] sm:$0xff] %vm2799_vm8, %v2788_v38  ;;  %v2875_v37 = vmax.f32 (!%p3060_p11), %v2788_v38, 0.0 }
 0xd40   : > { %v2891_v60 = vmul.f32 %v2888_v52, %v2876_v15 }
 0xd41   : > { %v2890_v40 = vmul.f32 %v2883_v50, %v2875_v37 }
 0xd42   : > { %v2893_v39 = vsel %vm2799_vm8, %v2891_v60, 0.0 }
 0xd43   : > { %v2892_v54 = vsel %vm2799_vm8, %v2890_v40, 0.0 }
 0xd44   : > { %v2894_v11 = vadd.f32 %v2893_v39, %v2892_v54 }
 0xd46   : > { %v2820_v28 = vld [vmem:[#allocation3 + $0x10] sm:$0xff]  ;;  %v2817_v42 = vld [vmem:[#allocation3] sm:$0xff]  ;;  %v2821_v16 = vld [vmem:[#allocation3 + $0x18] sm:$0xff]  ;;  %v2895_v45 = vrot.slane %v2894_v11, 4 }
 0xd47   : > { %v2818_v46 = vld [vmem:[#allocation3 + $0x8] sm:$0xff]  ;;  %v2848_v14 = vmax.f32 %v2820_v28, 0.0  ;;  %v2822_v62 = vmax.f32 %v2817_v42, 0.0  ;;  %v2849_v20 = vmax.f32 %v2821_v16, 0.0 }
 0xd48   : > { %v2823_v19 = vmax.f32 %v2818_v46, 0.0  ;;  %v2896_v10 = vadd.f32 %v2895_v45, %v2894_v11 }
 0xd49   : > { %v2863_v31 = vmul.f32 %v2856_v25, %v2848_v14  ;;  %v2836_v56 = vmul.f32 %v2829_v23, %v2822_v62  ;;  %v2864_v61 = vmul.f32 %v2861_v32, %v2849_v20 }
 0xd4a   : > { %v2837_v44 = vmul.f32 %v2834_v18, %v2823_v19  ;;  %v2897_v8 = vrot.slane %v2896_v10, 2 }
 0xd4b   : > { %v2865_v24 = vsel %vm2799_vm8, %v2863_v31, 0.0  ;;  %v2838_v51 = vsel %vm2799_vm8, %v2836_v56, 0.0  ;;  %v2866_v48 = vsel %vm2799_vm8, %v2864_v61, 0.0 }
 0xd4c   : > { %v2839_v26 = vsel %vm2799_vm8, %v2837_v44, 0.0  ;;  %v2867_v30 = vadd.f32 %v2866_v48, %v2865_v24  ;;  %v2898_v9 = vadd.f32 %v2897_v8, %v2896_v10 }
 0xd4d   : > { %v2840_v4 = vadd.f32 %v2839_v26, %v2838_v51 }
 0xd4e   : > { %v2868_v3 = vrot.slane %v2867_v30, 4  ;;  %v2899_v6 = vrot.slane %v2898_v9, 1 }
 0xd4f   : > { %v2841_v59 = vrot.slane %v2840_v4, 4 }
 0xd50   : > { %v2869_v27 = vadd.f32 %v2868_v3, %v2867_v30  ;;  %v2900_v53 = vadd.f32 %v2899_v6, %v2898_v9 }
 0xd51   : > { %v2842_v43 = vadd.f32 %v2841_v59, %v2840_v4 }
 0xd52   : > { %v2870_v22 = vrot.slane %v2869_v27, 2 }
 0xd53   : > { %v2843_v63 = vrot.slane %v2842_v43, 2 }
 0xd54   : > { %v2871_v41 = vadd.f32 %v2870_v22, %v2869_v27 }
 0xd55   : > { %v2844_v13 = vadd.f32 %v2843_v63, %v2842_v43 }
 0xd56   : > { %v2872_v0 = vrot.slane %v2871_v41, 1 }
 0xd57   : > { %v2845_v36 = vrot.slane %v2844_v13, 1 }
 0xd58   : > { %v2873_v21 = vadd.f32 %v2872_v0, %v2871_v41 }
 0xd59   : > { %v2846_v35 = vadd.f32 %v2845_v36, %v2844_v13 }
 0xd5b   : > { %v2847_v7 = vadd.f32 %v2846_v35, %v2815_v34 }
 0xd5d   : > { %v2874_v12 = vadd.f32 %v2873_v21, %v2847_v7 }
 0xd5f   : > { %v2901_v38 = vadd.f32 %v2900_v53, %v2874_v12 }
 0xd61   : > { %2903 = vst.msk [vmem:[#allocation6] sm:$0x1] %vm2902_vm9, %v2901_v38 }
 0xd62 PF: > { %s4735_s29 = sld [smem:[#allocation11_spill]]  ;;  %s3780_s27 = smov [#allocation6]  }
 0xd63   : > { %s2911_s30 = sshll.u32 %s3780_s27, 4  ;;  %s2912_s30 = int_to_ptr.vmem [resolvable:$true] %s2911_s30 }
 0xd64   : > { %s3684_s11 = scalar_lea.vmem %s2912_s30, 16  ;;  %s3690_s12 = scalar_lea.vmem %s2912_s30, 32 }
 0xd65   : > { %p3685_p13 = scmp.ne.s32.totalorder %s2912_s30, %s3684_s11  ;;  %p3691_p2 = scmp.lt.s32.totalorder %s2912_s30, %s2912_s30 }
 0xd66   : > { %p3692_p3 = scmp.lt.s32.totalorder %s3690_s12, %s3684_s11 }
 0xd68   : > { %s4736_s23 = sadd.s32 4294967295, %s4735_s29   ;;  %p3693_p4 = por %p3692_p3, %p3691_p2 }
 0xd69   : > { %p4667_p12 = scmp.eq.s32.totalorder %s4736_s23, 20 }
 0xd6b   : > { %p3686_p0 = pnand %p3685_p13, %p4667_p12 }
 0xd6d   : > { %p3687_p1 = pneg %p3686_p0 }
 0xd6f   : > { %p3694_p5 = pnand %p3693_p4, %p3687_p1 }
 0xd71   : > { %3697 = shalt.err (!%p3694_p5)
}
 0xd72   : > { %s4738_s25 = sld [smem:[#allocation15_spill]] }
 0xd78   : > { %s3698_s26 = scalar_lea.hbm %s4738_s25, 16 }
 0xd79   : > { %p3699_p6 = scmp.ne.s32.totalorder %s4738_s25, %s3698_s26  ;;  %p3704_p9 = scmp.lt.u32.totalorder %s3698_s26, %s4738_s25 }
 0xd7b   : > { %p3700_p7 = pnand %p3699_p6, %p4667_p12 }
 0xd7d   : > { %p3701_p8 = pneg %p3700_p7 }
 0xd7f   : > { %p3706_p10 = pnand %p3704_p9, %p3701_p8 }
 0xd81   : > { %3709 = shalt.err (!%p3706_p10)
}
 0xd82   : > { %3425 = dma.vmem_to_hbm [thread:$0]  (%p4667_p12), %s2912_s30, 16, %s4738_s25, [#allocation7]  }
 0xd83   : > { %3731 = dma.done.wait (%p4667_p12), [#allocation7], 16  }
 0xd84   : > { %3733 = vsyncadd (%p4667_p12), [#allocation7], 4294967280 }
 0xd85 PF: > { %s4739_s16 = sld [smem:[#allocation11_spill]]  ;;  %s4740_s27 = sld [smem:[#allocation9_spill]] }
 0xd86   : > { %s4741_s28 = sld [smem:[#allocation10_spill]]  ;;  %s4742_s29 = sld [smem:[#allocation12_spill]] }
 0xd87   : > { %s4743_s30 = sld [smem:[#allocation13_spill]] }
 0xd8b   : > { %s26_s14 = sadd.s32 1, %s4739_s16  }
 0xd8c   : > { %p23_p11 = scmp.ge.s32.totalorder %s26_s14, 23  }
 0xd8e   :  { %25 = sbr.rel (!%p23_p11) target bundleno = 6 (0x6), region = 124 }
 0xd95   :  { %2924 = vsyncpa [#allocation7], 1 }
 0xd96   :  { %2926 = vsyncpa [#allocation7 + $0x1], 1 }

// kernel: qanet_v3_forward.3
= control target key start
LH: loop header
LB: loop body
LE: loop exit
PB: predicated region body
PF: predicated region fallthrough
CT: control target
= control target key end

     0   :  { %s4952_s18 = smov 0   ;;  %s6101_s0 = inlined_call_operand.vmem [shape: f32[2,24,128], index: 0, kind: input, shape index: {}]   ;;  %s6102_s1 = inlined_call_operand.vmem [shape: f32[2,16,128], index: 1, kind: input, shape index: {}]   ;;  %s6103_s2 = inlined_call_operand.vmem [shape: f32[2,128,1], index: 2, kind: input, shape index: {}]   ;;  %s6104_s3 = inlined_call_operand.vmem [shape: f32[2,1,128], index: 3, kind: input, shape index: {}]   ;;  %s6105_s4 = inlined_call_operand.vmem [shape: f32[2,1,128], index: 4, kind: input, shape index: {}]   ;;  %s6106_s5 = inlined_call_operand.vmem [shape: f32[2,7,128], index: 5, kind: input, shape index: {}]   ;;  %s6107_s6 = inlined_call_operand.vmem [shape: f32[2,24,24], index: 6, kind: input, shape index: {}]   ;;  %s6108_s7 = inlined_call_operand.vmem [shape: f32[2,24,1], index: 7, kind: input, shape index: {}]   ;;  %s6109_s8 = inlined_call_operand.vmem [shape: f32[2,24,24], index: 8, kind: input, shape index: {}]   ;;  %s6110_s9 = inlined_call_operand.vmem [shape: f32[2,24,1], index: 9, kind: input, shape index: {}]   ;;  %s6111_s10 = inlined_call_operand.vmem [shape: f32[16,24], index: 10, kind: input, shape index: {}]   ;;  %s6112_s11 = inlined_call_operand.vmem [shape: f32[16,1], index: 11, kind: input, shape index: {}]   ;;  %s6113_s12 = inlined_call_operand.vmem [shape: f32[9,16,16], index: 12, kind: input, shape index: {}]   ;;  %s6114_s13 = inlined_call_operand.vmem [shape: f32[4,16,7], index: 13, kind: input, shape index: {}]   ;;  %s6115_s14 = inlined_call_operand.vmem [shape: f32[16,18], index: 14, kind: input, shape index: {}]   ;;  %s6116_s15 = inlined_call_operand.vmem [shape: f32[2,16,128], index: 15, kind: output, shape index: {}]  }
   0x1 LB: > { %s3960_s19 = sadd.s32 4294967295, %s4842_s18   ;;  %p3964_p0 = scmp.ge.s32.totalorder %s4842_s18, 1  ;;  %s4842_s18 = sphi %s4952_s18, %s25_s18  }
   0x2   : > { %p482_p1 = scmp.lt.s32.totalorder %s4842_s18, 3 }
   0x4   : > { %p483_p2 = pnand %p3964_p0, %p482_p1 }
   0x5   : > { %p550_p3 = scmp.lt.s32.totalorder (!%p483_p2), %s3960_s19, 1  ;;  %v4844_v0 = vmov (!%p483_p2), 0.0|0.0   ;;  %vm4845_vm0 = vmmov (!%p483_p2), 0   ;;  %v4846_v1 = vmov (!%p483_p2), 0.0   ;;  %v586_v2 = vld [vmem:[%s6108_s7] sm:$0xff] (!%p483_p2)  ;;  %v4847_v3 = vmov (!%p483_p2), 0  }
   0x6   : > { %486 = sbr.rel (%p483_p2) target bundleno = 4198 (0x1066), region = 80  ;;  %4448 = vmatprep.subr.bf16.mxu0 (!%p483_p2), %v4844_v0  ;;  %4451 = vmatprep.subr.bf16.mxu1 (!%p483_p2), %v4844_v0  ;;  %v588_v4 = vld [vmem:[%s6108_s7 + $0x10] sm:$0xff] (!%p483_p2)  ;;  %v587_v5 = vld [vmem:[%s6108_s7 + $0x8] sm:$0xff] (!%p483_p2)  ;;  %v715_v6 = vld [vmem:[%s6110_s9] sm:$0xff] (!%p483_p2)  ;;  %vm604_vm1 = vcmask (!%p483_p2), 195584   ;;  %s4854_s27 = smov (!%p483_p2), 2  }
   0x7   : > { %4200 = vmatprep.mubr.msk.f32.mxu0 (!%p483_p2), %vm4845_vm0, %v4846_v1  ;;  %4215 = vmatprep.mubr.msk.f32.mxu1 (!%p483_p2), %vm4845_vm0, %v4846_v1  ;;  %v716_v10 = vld [vmem:[%s6110_s9 + $0x8] sm:$0xff] (!%p483_p2)  ;;  %v717_v11 = vld [vmem:[%s6110_s9 + $0x10] sm:$0xff] (!%p483_p2)  ;;  %v583_v13 = vld [vmem:[%s6107_s6] sm:$0xff] (!%p483_p2)  ;;  %s4855_s28 = smov (!%p483_p2), 3   ;;  %s4856_s29 = smov (!%p483_p2), 1   ;;  %vm1584_vm2 = vcmask (!%p483_p2), 130048  }
   0x8   : > { %4585 = vset.pattern.permute.xlu0 (!%p483_p2), %v4847_v3  ;;  %4586 = vset.pattern.permute.xlu1 (!%p483_p2), %v4847_v3  ;;  %v712_v14 = vld [vmem:[%s6109_s8] sm:$0xff] (!%p483_p2)  ;;  %v3985_v15 = vld [vmem:[%s6108_s7 + $0x18] sm:$0xff] (!%p483_p2)  ;;  %v584_v17 = vld [vmem:[%s6107_s6 + $0x8] sm:$0xff] (!%p483_p2)  ;;  %s4857_s30 = smov (!%p483_p2), 127   ;;  %s4859_s17 = smov (!%p483_p2), 125   ;;  %vm2774_vm3 = vcmask (!%p483_p2), 64512  }
   0x9   : > { %591 = vperm.xlu0 (!%p483_p2), %4585, %v586_v2   ;;  %601 = vperm.xlu1 (!%p483_p2), %4586, %v588_v4   ;;  %v3986_v16 = vld [vmem:[%s6108_s7 + $0x20] sm:$0xff] (!%p483_p2)  ;;  %v713_v18 = vld [vmem:[%s6109_s8 + $0x8] sm:$0xff] (!%p483_p2)  ;;  %v3997_v20 = vld [vmem:[%s6110_s9 + $0x18] sm:$0xff] (!%p483_p2) }
   0xa   : > { %v3987_v19 = vld [vmem:[%s6108_s7 + $0x28] sm:$0xff] (!%p483_p2)  ;;  %v585_v21 = vld [vmem:[%s6107_s6 + $0x10] sm:$0xff] (!%p483_p2)  ;;  %v3998_v23 = vld [vmem:[%s6110_s9 + $0x20] sm:$0xff] (!%p483_p2) }
   0xb   : > { %v714_v22 = vld [vmem:[%s6109_s8 + $0x10] sm:$0xff] (!%p483_p2)  ;;  %v3999_v24 = vld [vmem:[%s6110_s9 + $0x28] sm:$0xff] (!%p483_p2)  ;;  %v1090_v25 = vld [vmem:[%s6112_s11] sm:$0xff] (!%p483_p2) }
   0xc   : > { %v1091_v26 = vld [vmem:[%s6112_s11 + $0x8] sm:$0xff] (!%p483_p2)  ;;  %v5069_v27 = vld [vmem:[%s6115_s14] sm:$0xff] (!%p483_p2) }
   0xd   : > { %s6118_s19 = smov (!%p550_p3, %s3960_s19), 1  ;;  %596 = vperm.xlu0 %4585, %v587_v5   ;;  %720 = vperm.xlu1 %4586, %v715_v6   ;;  %v5074_v28 = vld [vmem:[%s6115_s14 + $0x8] sm:$0xff] }
   0xe   : > { %s4548_s24 = smul.u32 24, %s6118_s19  ;;  %s4058_s23 = sshll.u32 %s6118_s19, 4 }
   0xf   : > { %s559_s26 = scalar_lea.vmem %s6102_s1, %s4058_s23  ;;  %s3970_s20 = sshll.u32 %s6118_s19, 3 }
  0x10   : > { %s554_s16 = scalar_lea.vmem %s6101_s0, %s4548_s24  ;;  %s574_s24 = scalar_lea.vmem %s6106_s5, %s3970_s20 }
  0x11   : > { %v4986_v7 = vld [vmem:[%s554_s16] sm:$0xff]  ;;  %v4988_v8 = vld [vmem:[%s554_s16 + $0x8] sm:$0xff]  ;;  %v5000_v12 = vld [vmem:[%s554_s16 + $0x10] sm:$0xff]  ;;  %725 = vperm.xlu0 %4585, %v716_v10   ;;  %730 = vperm.xlu1 %4586, %v717_v11   ;;  %s4858_s16 = smov 126   ;;  %s570_s20 = scalar_lea.vmem %s6105_s4, %s6118_s19 }
  0x12   : > { %v4449_v9 = vpack.c.bf16 %v4988_v8, %v4986_v7 }
  0x14   : > { %4450 = vmatpush3.bf16.msra.mxu0 %v4449_v9  ;;  %4453 = vmatpush3.bf16.msra.mxu1 %v4449_v9 }
  0x15   : > { %4198 = vmatprep.subr.mxu0 %v4846_v1  ;;  %4213 = vmatprep.subr.mxu1 %v4846_v1 }
  0x16   : > { %844 = vperm.xlu0 %4585, %v3985_v15   ;;  %849 = vperm.xlu1 %4586, %v3986_v16  }
  0x18   : > { %4199 = vmatpush3.msra.mxu0 %v5000_v12  ;;  %4214 = vmatpush3.msra.mxu1 %v5000_v12 }
  0x19   : > { %4201 = vmatmul.mubr.msk.f32.vlgmr.msra.gmra.mrb[0].mxu0 %vm604_vm1, %v583_v13  ;;  %4216 = vmatmul.mubr.msk.f32.vlgmr.msra.gmra.mrb[0].mxu1 %vm604_vm1, %v712_v14 }
  0x1a   : > { %4203 = vmatprep.mubr.msk.f32.mxu0 %vm4845_vm0, %v4846_v1  ;;  %4218 = vmatprep.mubr.msk.f32.mxu1 %vm4845_vm0, %v4846_v1 }
  0x1b   : > { %4454 = vmatprep.subr.bf16.mxu0 %v4844_v0  ;;  %4457 = vmatprep.subr.bf16.mxu1 %v4844_v0 }
  0x1c   : > { %854 = vperm.xlu0 %4585, %v3987_v19   ;;  %974 = vperm.xlu1 %4586, %v3997_v20   ;;  %v3994_v19 = vld [vmem:[%s6109_s8 + $0x18] sm:$0xff]  ;;  %v3995_v20 = vld [vmem:[%s6109_s8 + $0x20] sm:$0xff] }
  0x1d   : > { %4204 = vmatmul.mubr.msk.f32.gmra.mrb[2].mxu0 %vm604_vm1, %v584_v17  ;;  %4219 = vmatmul.mubr.msk.f32.gmra.mrb[2].mxu1 %vm604_vm1, %v713_v18 }
  0x1e   : > { %4206 = vmatprep.mubr.msk.f32.mxu0 %vm4845_vm0, %v4846_v1  ;;  %4221 = vmatprep.mubr.msk.f32.mxu1 %vm4845_vm0, %v4846_v1 }
  0x20   : > { %979 = vperm.xlu0 %4585, %v3998_v23   ;;  %984 = vperm.xlu1 %4586, %v3999_v24   ;;  %v1088_v23 = vld [vmem:[%s6111_s10] sm:$0xff]  ;;  %v4848_v24 = vmov 4  }
  0x21   : > { %4207 = vmatmul.mubr.msk.f32.gmra.mrb[4].mxu0 %vm604_vm1, %v585_v21  ;;  %4222 = vmatmul.mubr.msk.f32.gmra.mrb[4].mxu1 %vm604_vm1, %v714_v22  ;;  %v3984_v21 = vld [vmem:[%s6107_s6 + $0x28] sm:$0xff] }
  0x22   : > { %4230 = vmatprep.mubr.msk.f32.mxu0 %vm4845_vm0, %v4846_v1  ;;  %4245 = vmatprep.mubr.msk.f32.mxu1 %vm4845_vm0, %v4846_v1  ;;  %v3996_v22 = vld [vmem:[%s6109_s8 + $0x28] sm:$0xff] }
  0x24   : > { %1094 = vperm.xlu0 %4585, %v1090_v25   ;;  %1099 = vperm.xlu1 %4586, %v1091_v26   ;;  %v5136_v25 = vld [vmem:[%s6114_s13] sm:$0xff]  ;;  %v5141_v26 = vld [vmem:[%s6114_s13 + $0x8] sm:$0xff] }
  0x28   : > { %1432 = vperm.xlu0 %4585, %v5069_v27   ;;  %1437 = vperm.xlu1 %4586, %v5074_v28  }
  0x2c   : > { %4588 = vset.pattern.permute.xlu1 %v4848_v24  ;;  %4587 = vset.pattern.permute.xlu0 %v4848_v24 }
  0x2d   : > { %1447 = vperm.xlu1 %4588, %v5074_v28   ;;  %1443 = vperm.xlu0 %4587, %v5069_v27  }
  0x31   : > { %4589 = vset.pattern.permute.xlu1 %v4847_v3  ;;  %4590 = vset.pattern.permute.xlu0 %v4847_v3 }
  0x32   : > { %1460 = vperm.xlu1 %4589, %v5136_v25   ;;  %1465 = vperm.xlu0 %4590, %v5141_v26  }
  0x88   : > { %v592_v29 = vpop.permute.xlu0 %591  ;;  %v602_v42 = vpop.permute.xlu1 %601 }
  0x8c   : > { %v597_v35 = vpop.permute.xlu0 %596  ;;  %v721_v56 = vpop.permute.xlu1 %720 }
  0x90   : > { %v726_v61 = vpop.permute.xlu0 %725  ;;  %v731_v9 = vpop.permute.xlu1 %730 }
  0xec   : > { %v680_v30 = vpop.f32.mrb[0].mxu0  ;;  %v808_v31 = vpop.f32.mrb[0].mxu1 }
  0xed   : > { %v681_v32 = vadd.f32 %v680_v30, %v592_v29  ;;  %v4202_v33 = vpop.f32.mrb[1].mxu0  ;;  %v4217_v34 = vpop.f32.mrb[1].mxu1  ;;  %v809_v57 = vadd.f32 %v808_v31, %v721_v56  ;;  %v4849_v29 = vmov 1   ;;  %v4850_v30 = vmov 2  }
  0xee   : > { %4591 = vset.pattern.permute.xlu1 %v4849_v29  ;;  %4592 = vset.pattern.permute.xlu0 %v4850_v30  ;;  %v4851_v31 = vmov 3  }
  0xef   : > { %v3976_v36 = vmul.f32 -1.442695, %v681_v32  ;;  %1479 = vperm.xlu1 %4591, %v5136_v25   ;;  %1497 = vperm.xlu0 %4592, %v5136_v25   ;;  %v845_v32 = vpop.permute.xlu0 %844 }
  0xf0   : > { %v685_v37 = vpop.f32.mrb[2].mxu0  ;;  %v813_v38 = vpop.f32.mrb[2].mxu1 }
  0xf1   : > { %4668 = vpow2.f32 %v3976_v36  ;;  %v686_v39 = vadd.f32 %v685_v37, %v597_v35  ;;  %v4205_v40 = vpop.f32.mrb[3].mxu0  ;;  %v4220_v41 = vpop.f32.mrb[3].mxu1  ;;  %v814_v63 = vadd.f32 %v813_v38, %v726_v61 }
  0xf2   : > { %v850_v38 = vpop.permute.xlu1 %849 }
  0xf3   : > { %v3977_v43 = vmul.f32 -1.442695, %v686_v39  ;;  %1483 = vperm.xlu1 %4591, %v5141_v26   ;;  %4595 = vset.pattern.permute.xlu0 %v4851_v31 }
  0xf4   : > { %v690_v44 = vpop.f32.mrb[4].mxu0  ;;  %v818_v45 = vpop.f32.mrb[4].mxu1  ;;  %1515 = vperm.xlu0 %4595, %v5141_v26  }
  0xf5   : > { %4670 = vpow2.f32 %v3977_v43  ;;  %v691_v46 = vadd.f32 %v690_v44, %v602_v42  ;;  %v4208_v47 = vpop.f32.mrb[5].mxu0  ;;  %v4223_v48 = vpop.f32.mrb[5].mxu1  ;;  %v819_v11 = vadd.f32 %v818_v45, %v731_v9 }
  0xf6   : > { %v855_v45 = vpop.permute.xlu0 %854 }
  0xf7   : > { %v3978_v49 = vmul.f32 -1.442695, %v691_v46  ;;  %4593 = vset.pattern.permute.xlu1 %v4850_v30 }
  0xf8   : > { %1501 = vperm.xlu1 %4593, %v5141_v26   ;;  %4596 = vset.pattern.permute.xlu0 %v4848_v24 }
  0xf9   : > { %4672 = vpow2.f32 %v3978_v49  ;;  %1529 = vperm.xlu0 %4596, %v5136_v25  }
  0xfb   : > { %v4669_v50 = vpop.eup %4668 }
  0xfc   : > { %v703_v51 = vadd.f32 1.0, %v4669_v50  ;;  %4594 = vset.pattern.permute.xlu1 %v4851_v31 }
  0xfd   : > { %1511 = vperm.xlu1 %4594, %v5136_v25  }
  0xfe   : > { %4674 = vrcp.f32 %v703_v51 }
  0xff   : > { %v4671_v52 = vpop.eup %4670 }
 0x100   : > { %v704_v53 = vadd.f32 1.0, %v4671_v52 }
 0x101   : > { %4597 = vset.pattern.permute.xlu1 %v4848_v24 }
 0x102   : > { %4676 = vrcp.f32 %v704_v53  ;;  %1533 = vperm.xlu1 %4597, %v5141_v26  }
 0x103   : > { %v4673_v54 = vpop.eup %4672 }
 0x104   : > { %v705_v55 = vadd.f32 1.0, %v4673_v54 }
 0x106   : > { %4678 = vrcp.f32 %v705_v55 }
 0x108   : > { %v4675_v58 = vpop.eup %4674 }
 0x109   : > { %v822_v59 = vmul.f32 %v4675_v58, %v809_v57  ;;  %v825_v60 = vsub.f32 1.0, %v4675_v58 }
 0x10b   : > { %v828_v62 = vmul.f32 %v825_v60, %v4986_v7 }
 0x10c   : > { %v4677_v2 = vpop.eup %4676 }
 0x10d   : > { %v5079_v4 = vadd.f32 %v828_v62, %v822_v59  ;;  %v823_v5 = vmul.f32 %v4677_v2, %v814_v63  ;;  %v826_v6 = vsub.f32 1.0, %v4677_v2  ;;  %v975_v59 = vpop.permute.xlu1 %974  ;;  %v980_v2 = vpop.permute.xlu0 %979 }
 0x10f   : > { %v829_v10 = vmul.f32 %v826_v6, %v4988_v8  ;;  %v3982_v8 = vld [vmem:[%s6107_s6 + $0x18] sm:$0xff] }
 0x110   : > { %v4679_v13 = vpop.eup %4678 }
 0x111   : > { %v5082_v14 = vadd.f32 %v829_v10, %v823_v5  ;;  %v824_v15 = vmul.f32 %v4679_v13, %v819_v11  ;;  %v827_v16 = vsub.f32 1.0, %v4679_v13 }
 0x113   : > { %v4455_v17 = vpack.c.bf16 %v5082_v14, %v5079_v4  ;;  %v830_v7 = vmul.f32 %v827_v16, %v5000_v12  ;;  %v3983_v12 = vld [vmem:[%s6107_s6 + $0x20] sm:$0xff] }
 0x115   : > { %v5087_v18 = vadd.f32 %v830_v7, %v824_v15  ;;  %4456 = vmatpush3.bf16.msra.mxu0 %v4455_v17  ;;  %4459 = vmatpush3.bf16.msra.mxu1 %v4455_v17  ;;  %v985_v15 = vpop.permute.xlu1 %984 }
 0x116   : > { %4228 = vmatprep.subr.mxu0 %v4846_v1  ;;  %4243 = vmatprep.subr.mxu1 %v4846_v1 }
 0x119   : > { %4229 = vmatpush3.msra.mxu0 %v5087_v18  ;;  %4244 = vmatpush3.msra.mxu1 %v5087_v18 }
 0x11a   : > { %4231 = vmatmul.mubr.msk.f32.vlgmr.msra.gmra.mrb[6].mxu0 %vm604_vm1, %v3982_v8  ;;  %4246 = vmatmul.mubr.msk.f32.vlgmr.msra.gmra.mrb[6].mxu1 %vm604_vm1, %v3994_v19 }
 0x11b   : > { %4233 = vmatprep.mubr.msk.f32.mxu0 %vm4845_vm0, %v4846_v1  ;;  %4248 = vmatprep.mubr.msk.f32.mxu1 %vm4845_vm0, %v4846_v1 }
 0x11e   : > { %4234 = vmatmul.mubr.msk.f32.gmra.mrb[8].mxu0 %vm604_vm1, %v3983_v12  ;;  %4249 = vmatmul.mubr.msk.f32.gmra.mrb[8].mxu1 %vm604_vm1, %v3995_v20 }
 0x11f   : > { %4236 = vmatprep.mubr.msk.f32.mxu0 %vm4845_vm0, %v4846_v1  ;;  %4251 = vmatprep.mubr.msk.f32.mxu1 %vm4845_vm0, %v4846_v1 }
 0x122   : > { %4237 = vmatmul.mubr.msk.f32.gmra.mrb[10].mxu0 %vm604_vm1, %v3984_v21  ;;  %4252 = vmatmul.mubr.msk.f32.gmra.mrb[10].mxu1 %vm604_vm1, %v3996_v22 }
 0x123   : > { %4260 = vmatprep.mubr.msk.f32.mxu0 %vm604_vm1, %v1088_v23  ;;  %v1100_v23 = vpop.permute.xlu1 %1099 }
 0x1ed   : > { %v932_v33 = vpop.f32.mrb[6].mxu0  ;;  %v1062_v34 = vpop.f32.mrb[6].mxu1 }
 0x1ee   : > { %v933_v35 = vadd.f32 %v932_v33, %v845_v32  ;;  %v4232_v36 = vpop.f32.mrb[7].mxu0  ;;  %v4247_v37 = vpop.f32.mrb[7].mxu1  ;;  %v1063_v60 = vadd.f32 %v1062_v34, %v975_v59 }
 0x1ef   : > { %v1095_v33 = vpop.permute.xlu0 %1094  ;;  %v1374_v36 = vld [vmem:[%s559_s26 + $0x8] sm:$0xff] }
 0x1f0   : > { %v3991_v39 = vmul.f32 -1.442695, %v933_v35 }
 0x1f1   : > { %v937_v40 = vpop.f32.mrb[8].mxu0  ;;  %v1067_v41 = vpop.f32.mrb[8].mxu1 }
 0x1f2   : > { %4680 = vpow2.f32 %v3991_v39  ;;  %v938_v42 = vadd.f32 %v937_v40, %v850_v38  ;;  %v4235_v43 = vpop.f32.mrb[9].mxu0  ;;  %v4250_v44 = vpop.f32.mrb[9].mxu1  ;;  %v1068_v6 = vadd.f32 %v1067_v41, %v980_v2  ;;  %v1373_v39 = vld [vmem:[%s559_s26] sm:$0xff] }
 0x1f4   : > { %v3992_v46 = vmul.f32 -1.442695, %v938_v42 }
 0x1f5   : > { %v942_v47 = vpop.f32.mrb[10].mxu0  ;;  %v1072_v48 = vpop.f32.mrb[10].mxu1 }
 0x1f6   : > { %4682 = vpow2.f32 %v3992_v46  ;;  %v943_v49 = vadd.f32 %v942_v47, %v855_v45  ;;  %v4238_v50 = vpop.f32.mrb[11].mxu0  ;;  %v4253_v51 = vpop.f32.mrb[11].mxu1  ;;  %v1073_v17 = vadd.f32 %v1072_v48, %v985_v15 }
 0x1f8   : > { %v3993_v52 = vmul.f32 -1.442695, %v943_v49 }
 0x1fa   : > { %4684 = vpow2.f32 %v3993_v52 }
 0x1fc   : > { %v4681_v53 = vpop.eup %4680 }
 0x1fd   : > { %v955_v54 = vadd.f32 1.0, %v4681_v53 }
 0x1ff   : > { %4686 = vrcp.f32 %v955_v54 }
 0x200   : > { %v4683_v55 = vpop.eup %4682 }
 0x201   : > { %v956_v56 = vadd.f32 1.0, %v4683_v55 }
 0x203   : > { %4688 = vrcp.f32 %v956_v56 }
 0x204   : > { %v4685_v57 = vpop.eup %4684 }
 0x205   : > { %v957_v58 = vadd.f32 1.0, %v4685_v57 }
 0x207   : > { %4690 = vrcp.f32 %v957_v58 }
 0x209   : > { %v4687_v61 = vpop.eup %4686 }
 0x20a   : > { %v1076_v62 = vmul.f32 %v4687_v61, %v1063_v60  ;;  %v1079_v63 = vsub.f32 1.0, %v4687_v61 }
 0x20c   : > { %v1082_v5 = vmul.f32 %v1079_v63, %v5079_v4  ;;  %v1089_v4 = vld [vmem:[%s6111_s10 + $0x8] sm:$0xff]  ;;  %v1433_v63 = vpop.permute.xlu0 %1432 }
 0x20d   : > { %v4689_v9 = vpop.eup %4688 }
 0x20e   : > { %v1085_v10 = vadd.f32 %v1082_v5, %v1076_v62  ;;  %v1077_v11 = vmul.f32 %v4689_v9, %v1068_v6  ;;  %v1080_v13 = vsub.f32 1.0, %v4689_v9  ;;  %v1438_v9 = vpop.permute.xlu1 %1437 }
 0x210   : > { %v1083_v16 = vmul.f32 %v1080_v13, %v5082_v14  ;;  %v4852_v14 = vmov 5  }
 0x211   : > { %v4691_v7 = vpop.eup %4690  ;;  %4598 = vset.pattern.permute.xlu1 %v4852_v14  ;;  %4599 = vset.pattern.permute.xlu0 %v4852_v14 }
 0x212   : > { %v1086_v8 = vadd.f32 %v1083_v16, %v1077_v11  ;;  %v1078_v19 = vmul.f32 %v4691_v7, %v1073_v17  ;;  %v1081_v12 = vsub.f32 1.0, %v4691_v7  ;;  %1547 = vperm.xlu1 %4598, %v5136_v25   ;;  %1551 = vperm.xlu0 %4599, %v5141_v26   ;;  %v1448_v15 = vpop.permute.xlu1 %1447  ;;  %v1375_v17 = vld [vmem:[%s6113_s12] sm:$0xff]  ;;  %v4860_v7 = vmov 8  }
 0x214   : > { %v4460_v20 = vpack.c.bf16 %v1086_v8, %v1085_v10  ;;  %v1084_v21 = vmul.f32 %v1081_v12, %v5087_v18  ;;  %v4853_v18 = vmov 6   ;;  %v1444_v10 = vpop.permute.xlu0 %1443  ;;  %v1395_v8 = vld [vmem:[%s6114_s13 + $0x10] sm:$0xff] }
 0x216   : > { %4461 = vmatprep.subr.bf16.mxu0 %v4460_v20  ;;  %v1087_v22 = vadd.f32 %v1084_v21, %v1078_v19  ;;  %4600 = vset.pattern.permute.xlu1 %v4853_v18  ;;  %v5237_v19 = vld [vmem:[%s6114_s13 + $0x18] sm:$0xff]  ;;  %v1461_v12 = vpop.permute.xlu1 %1460 }
 0x217   : > { %4463 = vmatpush3.bf16.msra.mxu0 %v4460_v20  ;;  %1565 = vperm.xlu1 %4600, %v5136_v25  }
 0x218   : > { %4258 = vmatprep.subr.mxu0 %v1087_v22  ;;  %4601 = vset.pattern.permute.xlu0 %v4860_v7 }
 0x21a   : > { %v1480_v20 = vpop.permute.xlu1 %1479 }
 0x21b   : > { %4259 = vmatpush3.msra.mxu0 %v1087_v22  ;;  %1569 = vperm.xlu1 %4600, %v5141_v26  }
 0x21c   : > { %4261 = vmatmul.mubr.msk.f32.vlgmr.msra.gmra.mrb[12].mxu0 %vm604_vm1, %v1089_v4  ;;  %v1466_v4 = vpop.permute.xlu0 %1465 }
 0x21d   : > { %4267 = vmatprep.mubr.msk.f32.mxu0 %vm1584_vm2, %v1375_v17 }
 0x21e   : > { %v1484_v21 = vpop.permute.xlu1 %1483 }
 0x21f   : > { %4602 = vset.pattern.permute.xlu1 %v4860_v7 }
 0x222   : > { %v1502_v22 = vpop.permute.xlu1 %1501 }
 0x2ef   : > { %v4262_v32 = vpop.f32.mrb[12].mxu0 }
 0x2f0   : > { %v1180_v34 = vadd.f32 %v4262_v32, %v1100_v23  ;;  %v1174_v35 = vpop.f32.mrb[13].mxu0  ;;  %v1512_v23 = vpop.permute.xlu1 %1511 }
 0x2f1   : > { %v1175_v37 = vadd.f32 %v1174_v35, %v1095_v33  ;;  %v1498_v32 = vpop.permute.xlu0 %1497 }
 0x2f2   : > { %v1184_v38 = vmax.f32 %v1180_v34, 0.0 }
 0x2f3   : > { %v1183_v40 = vmax.f32 %v1175_v37, 0.0 }
 0x2f4   : > { %v5182_v41 = vadd.f32 %v1374_v36, %v1184_v38  ;;  %v5258_v33 = vpop.permute.xlu1 %1533  ;;  %v1307_v38 = vlaneseq }
 0x2f5   : > { %v5184_v25 = vadd.f32 %v1373_v39, %v1183_v40  ;;  %v1516_v34 = vpop.permute.xlu0 %1515 }
 0x2f7   : > { %v1405_v26 = vadd.f32 %v5182_v41, %v5184_v25 }
 0x2f8   : > { %v5260_v35 = vpop.permute.xlu1 %1547 }
 0x2f9   : > { %v1406_v42 = vrot.slane %v1405_v26, 4  ;;  %v1530_v36 = vpop.permute.xlu0 %1529 }
 0x2fb   : > { %v1407_v43 = vadd.f32 %v1406_v42, %v1405_v26  ;;  %v5267_v26 = vshrl.u32 %v1307_v38, 7 }
 0x2fc   : > { %v5262_v37 = vpop.permute.xlu1 %1565 }
 0x2fd   : > { %v1408_v44 = vrot.slane %v1407_v43, 2  ;;  %v1552_v39 = vpop.permute.xlu0 %1551  ;;  %v1351_v42 = vsub.s32 1, %v5267_v26  ;;  %v1371_v38 = vsub.s32 6, %v5267_v26 }
 0x2ff   : > { %v1409_v45 = vadd.f32 %v1408_v44, %v1407_v43  ;;  %v1309_v43 = vsub.s32 0, %v5267_v26 }
 0x300   : > { %v5265_v40 = vpop.permute.xlu1 %1569 }
 0x301   : > { %v1410_v46 = vrot.slane %v1409_v45, 1 }
 0x303   : > { %v1411_v47 = vadd.f32 %v1410_v46, %v1409_v45  ;;  %v1344_v46 = vld [vmem:[%s574_s24] sm:$0x7f] }
 0x305   : > { %v1413_v48 = vmul.f32 0.0625, %v1411_v47  ;;  %v5274_v47 = vrot.slane %v1344_v46, %v1351_v42 }
 0x307   : > { %v1414_v49 = vsub.f32 %v5184_v25, %v1413_v48  ;;  %v1415_v50 = vsub.f32 %v5182_v41, %v1413_v48  ;;  %v5278_v48 = vrot.slane %v1344_v46, %v1309_v43 }
 0x309   : > { %v1416_v51 = vmul.f32 %v1414_v49, %v1414_v49  ;;  %v1417_v52 = vmul.f32 %v1415_v50, %v1415_v50 }
 0x30b   : > { %v1418_v53 = vadd.f32 %v1417_v52, %v1416_v51  ;;  %v1359_v51 = vsub.s32 3, %v5267_v26  ;;  %v1355_v52 = vsub.s32 2, %v5267_v26 }
 0x30d   : > { %v1419_v54 = vrot.slane %v1418_v53, 4 }
 0x30f   : > { %v1420_v55 = vadd.f32 %v1419_v54, %v1418_v53 }
 0x311   : > { %v1421_v56 = vrot.slane %v1420_v55, 2 }
 0x313   : > { %v1422_v57 = vadd.f32 %v1421_v56, %v1420_v55  ;;  %v1363_v55 = vsub.s32 4, %v5267_v26 }
 0x315   : > { %v1423_v58 = vrot.slane %v1422_v57, 1 }
 0x317   : > { %v1424_v59 = vadd.f32 %v1423_v58, %v1422_v57  ;;  %v5285_v58 = vrot.slane %v1344_v46, %v1359_v51  ;;  %v5305_v51 = vrot.slane %v1344_v46, %v1371_v38 }
 0x319   : > { %v1425_v60 = vmul.f32 0.0625, %v1424_v59  ;;  %v5287_v59 = vrot.slane %v1344_v46, %v1355_v52 }
 0x31b   : > { %v1426_v61 = vadd.f32 1e-05, %v1425_v60 }
 0x31d   : > { %4692 = vrsqrt.f32 %v1426_v61 }
 0x327   : > { %v4693_v62 = vpop.eup %4692 }
 0x328   : > { %v1429_v2 = vmul.f32 %v4693_v62, %v1415_v50  ;;  %v1428_v5 = vmul.f32 %v4693_v62, %v1414_v49  ;;  %v1367_v62 = vsub.s32 5, %v5267_v26 }
 0x32a   : > { %v1440_v6 = vmul.f32 %v1433_v63, %v1428_v5  ;;  %v1441_v11 = vmul.f32 %v1438_v9, %v1429_v2  ;;  %v5292_v5 = vrot.slane %v1344_v46, %v1363_v55  ;;  %v5298_v7 = vrot.slane %v1344_v46, %v1367_v62 }
 0x32c   : > { %v5190_v13 = vadd.f32 %v1444_v10, %v1440_v6  ;;  %v5196_v16 = vadd.f32 %v1448_v15, %v1441_v11 }
 0x32e   : > { %1472 = vrot.lane.b32.xlu0 %v5190_v13, %s4854_s27  ;;  %1452 = vrot.lane.b32.xlu1 %v5190_v13, %s4855_s28  ;;  %v1508_v10 = vmul.f32 %v5190_v13, %v5285_v58 }
 0x332   : > { %1492 = vrot.lane.b32.xlu0 %v5196_v16, %s4856_s29  ;;  %1454 = vrot.lane.b32.xlu1 %v5196_v16, %s4855_s28 }
 0x336   : > { %1522 = vrot.lane.b32.xlu0 %v5190_v13, %s4857_s30  ;;  %1474 = vrot.lane.b32.xlu1 %v5196_v16, %s4854_s27 }
 0x33a   : > { %1540 = vrot.lane.b32.xlu0 %v5190_v13, %s4858_s16  ;;  %1490 = vrot.lane.b32.xlu1 %v5190_v13, %s4856_s29 }
 0x33e   : > { %1558 = vrot.lane.b32.xlu0 %v5190_v13, %s4859_s17  ;;  %1524 = vrot.lane.b32.xlu1 %v5196_v16, %s4857_s30  ;;  %v1518_v13 = vmul.f32 %v1512_v23, %v1508_v10 }
 0x342   : > { %1542 = vrot.lane.b32.xlu1 %v5196_v16, %s4858_s16  ;;  %1577 = vperm.xlu0 %4601, %v5069_v27  }
 0x346   : > { %1560 = vrot.lane.b32.xlu1 %v5196_v16, %s4859_s17  ;;  %4604 = vset.pattern.permute.xlu0 %v4849_v29 }
 0x347   : > { %1699 = vperm.xlu0 %4604, %v5074_v28  }
 0x34a   : > { %1581 = vperm.xlu1 %4602, %v5074_v28  }
 0x34b   : > { %4606 = vset.pattern.permute.xlu0 %v4847_v3 }
 0x34c   : > { %1722 = vperm.xlu0 %4606, %v1395_v8  }
 0x34e   : > { %4603 = vset.pattern.permute.xlu1 %v4849_v29 }
 0x34f   : > { %1695 = vperm.xlu1 %4603, %v5069_v27  }
 0x350   : > { %4609 = vset.pattern.permute.xlu0 %v4849_v29 }
 0x351   : > { %1745 = vperm.xlu0 %4609, %v5237_v19  }
 0x353   : > { %4605 = vset.pattern.permute.xlu1 %v4852_v14 }
 0x354   : > { %1705 = vperm.xlu1 %4605, %v5069_v27  }
 0x355   : > { %4611 = vset.pattern.permute.xlu0 %v4851_v31 }
 0x356   : > { %1773 = vperm.xlu0 %4611, %v1395_v8  }
 0x358   : > { %1709 = vperm.xlu1 %4605, %v5074_v28  }
 0x35a   : > { %4614 = vset.pattern.permute.xlu0 %v4848_v24 }
 0x35b   : > { %1795 = vperm.xlu0 %4614, %v5237_v19  }
 0x35c   : > { %4607 = vset.pattern.permute.xlu1 %v4847_v3 }
 0x35d   : > { %1727 = vperm.xlu1 %4607, %v5237_v19  }
 0x35f   : > { %4615 = vset.pattern.permute.xlu0 %v4852_v14 }
 0x360   : > { %1809 = vperm.xlu0 %4615, %v1395_v8  }
 0x361   : > { %4608 = vset.pattern.permute.xlu1 %v4849_v29 }
 0x362   : > { %1741 = vperm.xlu1 %4608, %v1395_v8  }
 0x364   : > { %4618 = vset.pattern.permute.xlu0 %v4853_v18 }
 0x366   : > { %4610 = vset.pattern.permute.xlu1 %v4850_v30 }
 0x367   : > { %1759 = vperm.xlu1 %4610, %v1395_v8  }
 0x36b   : > { %1763 = vperm.xlu1 %4610, %v5237_v19  }
 0x36f   : > { %4612 = vset.pattern.permute.xlu1 %v4851_v31 }
 0x370   : > { %1777 = vperm.xlu1 %4612, %v5237_v19  }
 0x374   : > { %4613 = vset.pattern.permute.xlu1 %v4848_v24 }
 0x375   : > { %1791 = vperm.xlu1 %4613, %v1395_v8  }
 0x379   : > { %4616 = vset.pattern.permute.xlu1 %v4852_v14 }
 0x37a   : > { %1813 = vperm.xlu1 %4616, %v5237_v19  }
 0x37e   : > { %4617 = vset.pattern.permute.xlu1 %v4853_v18 }
 0x37f   : > { %1827 = vperm.xlu1 %4617, %v1395_v8  }
 0x3a0   : > { %v1473_v44 = vpop.permute.xlu0 %1472  ;;  %v1453_v45 = vpop.permute.xlu1 %1452 }
 0x3a1   : > { %v1476_v53 = vmul.f32 %v1473_v44, %v5274_v47  ;;  %v1456_v54 = vmul.f32 %v1453_v45, %v5278_v48 }
 0x3a3   : > { %v1486_v63 = vmul.f32 %v1480_v20, %v1476_v53  ;;  %v1468_v2 = vmul.f32 %v1461_v12, %v1456_v54 }
 0x3a4   : > { %v1493_v49 = vpop.permute.xlu0 %1492  ;;  %v1455_v50 = vpop.permute.xlu1 %1454 }
 0x3a5   : > { %v1457_v60 = vmul.f32 %v1455_v50, %v5278_v48  ;;  %v1495_v11 = vmul.f32 %v1493_v49, %v5287_v59  ;;  %v1488_v42 = vadd.f32 %v1486_v63, %v1468_v2 }
 0x3a7   : > { %v1469_v15 = vmul.f32 %v1466_v4, %v1457_v60  ;;  %v1505_v50 = vmul.f32 %v1502_v22, %v1495_v11 }
 0x3a8   : > { %v1523_v56 = vpop.permute.xlu0 %1522  ;;  %v1475_v57 = vpop.permute.xlu1 %1474 }
 0x3a9   : > { %v1477_v61 = vmul.f32 %v1475_v57, %v5274_v47  ;;  %v1526_v12 = vmul.f32 %v1523_v56, %v5292_v5 }
 0x3ab   : > { %v1487_v6 = vmul.f32 %v1484_v21, %v1477_v61  ;;  %v1509_v21 = vmul.f32 %v5196_v16, %v5285_v58  ;;  %v1536_v52 = vmul.f32 %v1530_v36, %v1526_v12 }
 0x3ac   : > { %v1491_v9 = vpop.permute.xlu1 %1490  ;;  %v1541_v8 = vpop.permute.xlu0 %1540 }
 0x3ad   : > { %v1494_v17 = vmul.f32 %v1491_v9, %v5287_v59  ;;  %v1489_v20 = vadd.f32 %v1487_v6, %v1469_v15  ;;  %v1544_v54 = vmul.f32 %v1541_v8, %v5298_v7  ;;  %v1519_v60 = vmul.f32 %v1516_v34, %v1509_v21 }
 0x3af   : > { %v1504_v44 = vmul.f32 %v1498_v32, %v1494_v17  ;;  %v1507_v53 = vadd.f32 %v1505_v50, %v1489_v20  ;;  %v1554_v22 = vmul.f32 %v5260_v35, %v1544_v54  ;;  %v1376_v35 = vld [vmem:[%s6113_s12 + $0x8] sm:$0xff] }
 0x3b0   : > { %v1525_v45 = vpop.permute.xlu1 %1524  ;;  %v1559_v57 = vpop.permute.xlu0 %1558 }
 0x3b1   : > { %v1506_v49 = vadd.f32 %v1504_v44, %v1488_v42  ;;  %v1527_v4 = vmul.f32 %v1525_v45, %v5292_v5  ;;  %v1562_v23 = vmul.f32 %v1559_v57, %v5305_v51  ;;  %v1521_v62 = vadd.f32 %v1519_v60, %v1507_v53 }
 0x3b3   : > { %v1520_v55 = vadd.f32 %v1518_v13, %v1506_v49  ;;  %v1537_v61 = vmul.f32 %v5258_v33, %v1527_v4  ;;  %v1572_v9 = vmul.f32 %v5262_v37, %v1562_v23 }
 0x3b4   : > { %v1543_v56 = vpop.permute.xlu1 %1542 }
 0x3b5   : > { %v1538_v32 = vadd.f32 %v1536_v52, %v1520_v55  ;;  %v1545_v16 = vmul.f32 %v1543_v56, %v5298_v7  ;;  %v1539_v2 = vadd.f32 %v1537_v61, %v1521_v62 }
 0x3b7   : > { %v1555_v46 = vmul.f32 %v1552_v39, %v1545_v16  ;;  %v1556_v36 = vadd.f32 %v1554_v22, %v1538_v32 }
 0x3b8   : > { %v1561_v63 = vpop.permute.xlu1 %1560 }
 0x3b9   : > { %v1563_v6 = vmul.f32 %v1561_v63, %v5305_v51  ;;  %v1557_v10 = vadd.f32 %v1555_v46, %v1539_v2  ;;  %v1574_v11 = vadd.f32 %v1572_v9, %v1556_v36 }
 0x3bb   : > { %v1573_v34 = vmul.f32 %v5265_v40, %v1563_v6 }
 0x3bd   : > { %v1575_v33 = vadd.f32 %v1573_v34, %v1557_v10 }
 0x3bf   : > { %v4464_v15 = vpack.c.bf16 %v1575_v33, %v1574_v11 }
 0x3c1   : > { %4465 = vmatprep.subr.bf16.mxu0 %v4464_v15  ;;  %v1578_v17 = vpop.permute.xlu0 %1577 }
 0x3c2   : > { %4467 = vmatpush3.bf16.msra.mxu0 %v4464_v15 }
 0x3c5   : > { %4268 = vmatmul.mubr.msk.f32.vlgmr.msra.gmra.mrb[14].mxu0 %vm1584_vm2, %v1376_v35  ;;  %v4861_v35 = vmov 9  }
 0x3c6   : > { %v1700_v9 = vpop.permute.xlu0 %1699  ;;  %4620 = vset.pattern.permute.xlu1 %v4861_v35 }
 0x3c9   : > { %v1582_v39 = vpop.permute.xlu1 %1581 }
 0x3ce   : > { %v1696_v46 = vpop.permute.xlu1 %1695 }
 0x3d3   : > { %v1706_v63 = vpop.permute.xlu1 %1705 }
 0x3d7   : > { %v1710_v11 = vpop.permute.xlu1 %1709 }
 0x498   : > { %v4269_v8 = vpop.f32.mrb[14].mxu0 }
 0x499   : > { %v1663_v38 = vadd.f32 %v4269_v8, %v1582_v39  ;;  %v1657_v42 = vpop.f32.mrb[15].mxu0  ;;  %v1397_v39 = vld [vmem:[%s6114_s13 + $0x20] sm:$0xff] }
 0x49a   : > { %v1658_v37 = vadd.f32 %v1657_v42, %v1578_v17  ;;  %v5377_v17 = vld [vmem:[%s6114_s13 + $0x28] sm:$0xff]  ;;  %v1723_v42 = vpop.permute.xlu0 %1722 }
 0x49b   : > { %v1667_v12 = vmax.f32 %v1663_v38, 0.0 }
 0x49c   : > { %v1666_v20 = vmax.f32 %v1658_v37, 0.0 }
 0x49d   : > { %v5320_v40 = vadd.f32 %v1667_v12, %v5182_v41 }
 0x49e   : > { %v5323_v44 = vadd.f32 %v1666_v20, %v5184_v25  ;;  %v1746_v12 = vpop.permute.xlu0 %1745 }
 0x4a0   : > { %v1670_v21 = vadd.f32 %v5320_v40, %v5323_v44 }
 0x4a2   : > { %v1671_v45 = vrot.slane %v1670_v21, 4 }
 0x4a4   : > { %v1672_v13 = vadd.f32 %v1671_v45, %v1670_v21  ;;  %v1774_v21 = vpop.permute.xlu0 %1773 }
 0x4a6   : > { %v1673_v50 = vrot.slane %v1672_v13, 2 }
 0x4a8   : > { %v1674_v49 = vadd.f32 %v1673_v50, %v1672_v13  ;;  %v1796_v13 = vpop.permute.xlu0 %1795 }
 0x4aa   : > { %v1675_v4 = vrot.slane %v1674_v49, 1 }
 0x4ac   : > { %v1676_v52 = vadd.f32 %v1675_v4, %v1674_v49  ;;  %v1810_v49 = vpop.permute.xlu0 %1809 }
 0x4ae   : > { %v1677_v53 = vmul.f32 0.0625, %v1676_v52 }
 0x4b0   : > { %v1679_v54 = vsub.f32 %v5320_v40, %v1677_v53  ;;  %v1678_v55 = vsub.f32 %v5323_v44, %v1677_v53 }
 0x4b2   : > { %v1680_v57 = vmul.f32 %v1678_v55, %v1678_v55  ;;  %v1681_v41 = vmul.f32 %v1679_v54, %v1679_v54 }
 0x4b4   : > { %v1682_v56 = vadd.f32 %v1681_v41, %v1680_v57 }
 0x4b6   : > { %v1683_v60 = vrot.slane %v1682_v56, 4 }
 0x4b8   : > { %v1684_v25 = vadd.f32 %v1683_v60, %v1682_v56 }
 0x4ba   : > { %v1685_v32 = vrot.slane %v1684_v25, 2 }
 0x4bc   : > { %v1686_v61 = vadd.f32 %v1685_v32, %v1684_v25 }
 0x4be   : > { %v1687_v16 = vrot.slane %v1686_v61, 1 }
 0x4c0   : > { %v1688_v22 = vadd.f32 %v1687_v16, %v1686_v61 }
 0x4c2   : > { %v1689_v23 = vmul.f32 0.0625, %v1688_v22 }
 0x4c4   : > { %v1690_v62 = vadd.f32 1e-05, %v1689_v23 }
 0x4c6   : > { %4694 = vrsqrt.f32 %v1690_v62 }
 0x4d0   : > { %v4695_v36 = vpop.eup %4694 }
 0x4d1   : > { %v1692_v2 = vmul.f32 %v4695_v36, %v1678_v55  ;;  %v1693_v6 = vmul.f32 %v4695_v36, %v1679_v54 }
 0x4d3   : > { %v1702_v10 = vmul.f32 %v1696_v46, %v1692_v2  ;;  %v1703_v34 = vmul.f32 %v1700_v9, %v1693_v6 }
 0x4d5   : > { %v5329_v33 = vadd.f32 %v1706_v63, %v1702_v10  ;;  %v5331_v15 = vadd.f32 %v1710_v11, %v1703_v34 }
 0x4d7   : > { %1716 = vrot.lane.b32.xlu0 %v5331_v15, %s4855_s28  ;;  %1714 = vrot.lane.b32.xlu1 %v5329_v33, %s4855_s28  ;;  %v1771_v6 = vmul.f32 %v5331_v15, %v5285_v58  ;;  %v1770_v11 = vmul.f32 %v5329_v33, %v5285_v58 }
 0x4db   : > { %1736 = vrot.lane.b32.xlu0 %v5331_v15, %s4854_s27  ;;  %1734 = vrot.lane.b32.xlu1 %v5329_v33, %s4854_s27 }
 0x4df   : > { %1831 = vperm.xlu0 %4618, %v5237_v19   ;;  %1752 = vrot.lane.b32.xlu1 %v5329_v33, %s4856_s29  ;;  %v1377_v19 = vld [vmem:[%s6113_s12 + $0x10] sm:$0xff] }
 0x4e0   : > { %4274 = vmatprep.mubr.msk.f32.mxu0 %vm1584_vm2, %v1377_v19 }
 0x4e3   : > { %1802 = vrot.lane.b32.xlu0 %v5329_v33, %s4858_s16  ;;  %1754 = vrot.lane.b32.xlu1 %v5331_v15, %s4856_s29 }
 0x4e4   : > { %4619 = vset.pattern.permute.xlu0 %v4861_v35 }
 0x4e7   : > { %1820 = vrot.lane.b32.xlu0 %v5329_v33, %s4859_s17  ;;  %1784 = vrot.lane.b32.xlu1 %v5329_v33, %s4857_s30 }
 0x4eb   : > { %1786 = vrot.lane.b32.xlu1 %v5331_v15, %s4857_s30  ;;  %1839 = vperm.xlu0 %4619, %v5069_v27  }
 0x4ef   : > { %1804 = vrot.lane.b32.xlu1 %v5331_v15, %s4858_s16  ;;  %4622 = vset.pattern.permute.xlu0 %v4850_v30 }
 0x4f0   : > { %1960 = vperm.xlu0 %4622, %v5074_v28  }
 0x4f3   : > { %1822 = vrot.lane.b32.xlu1 %v5331_v15, %s4859_s17 }
 0x4f4   : > { %4624 = vset.pattern.permute.xlu0 %v4847_v3 }
 0x4f5   : > { %1983 = vperm.xlu0 %4624, %v1397_v39  }
 0x4f7   : > { %1843 = vperm.xlu1 %4620, %v5074_v28  }
 0x4f9   : > { %4627 = vset.pattern.permute.xlu0 %v4849_v29 }
 0x4fa   : > { %2006 = vperm.xlu0 %4627, %v5377_v17  }
 0x4fb   : > { %4621 = vset.pattern.permute.xlu1 %v4850_v30 }
 0x4fc   : > { %1956 = vperm.xlu1 %4621, %v5069_v27  }
 0x4fe   : > { %4629 = vset.pattern.permute.xlu0 %v4851_v31 }
 0x4ff   : > { %2034 = vperm.xlu0 %4629, %v1397_v39  }
 0x500   : > { %4623 = vset.pattern.permute.xlu1 %v4853_v18 }
 0x501   : > { %1966 = vperm.xlu1 %4623, %v5069_v27   ;;  %v1728_v27 = vpop.permute.xlu1 %1727 }
 0x503   : > { %4632 = vset.pattern.permute.xlu0 %v4848_v24 }
 0x504   : > { %2056 = vperm.xlu0 %4632, %v5377_v17  }
 0x505   : > { %1970 = vperm.xlu1 %4623, %v5074_v28   ;;  %v1742_v28 = vpop.permute.xlu1 %1741 }
 0x508   : > { %4633 = vset.pattern.permute.xlu0 %v4852_v14 }
 0x509   : > { %4625 = vset.pattern.permute.xlu1 %v4847_v3  ;;  %2070 = vperm.xlu0 %4633, %v1397_v39   ;;  %v1760_v8 = vpop.permute.xlu1 %1759 }
 0x50a   : > { %1988 = vperm.xlu1 %4625, %v5377_v17  }
 0x50d   : > { %4636 = vset.pattern.permute.xlu0 %v4853_v18  ;;  %v1764_v38 = vpop.permute.xlu1 %1763 }
 0x50e   : > { %4626 = vset.pattern.permute.xlu1 %v4849_v29 }
 0x50f   : > { %2002 = vperm.xlu1 %4626, %v1397_v39  }
 0x511   : > { %v1778_v37 = vpop.permute.xlu1 %1777 }
 0x513   : > { %4628 = vset.pattern.permute.xlu1 %v4850_v30 }
 0x514   : > { %2020 = vperm.xlu1 %4628, %v1397_v39  }
 0x515   : > { %v1792_v20 = vpop.permute.xlu1 %1791 }
 0x518   : > { %2024 = vperm.xlu1 %4628, %v5377_v17  }
 0x519   : > { %v1814_v45 = vpop.permute.xlu1 %1813 }
 0x51c   : > { %4630 = vset.pattern.permute.xlu1 %v4851_v31 }
 0x51d   : > { %2038 = vperm.xlu1 %4630, %v5377_v17   ;;  %v1828_v50 = vpop.permute.xlu1 %1827 }
 0x521   : > { %4631 = vset.pattern.permute.xlu1 %v4848_v24 }
 0x522   : > { %2052 = vperm.xlu1 %4631, %v1397_v39  }
 0x526   : > { %4634 = vset.pattern.permute.xlu1 %v4852_v14 }
 0x527   : > { %2074 = vperm.xlu1 %4634, %v5377_v17  }
 0x52b   : > { %4635 = vset.pattern.permute.xlu1 %v4853_v18 }
 0x52c   : > { %2088 = vperm.xlu1 %4635, %v1397_v39  }
 0x549   : > { %v1715_v4 = vpop.permute.xlu1 %1714  ;;  %v1717_v52 = vpop.permute.xlu0 %1716 }
 0x54a   : > { %v1719_v60 = vmul.f32 %v1717_v52, %v5278_v48  ;;  %v1718_v32 = vmul.f32 %v1715_v4, %v5278_v48  ;;  %v1780_v4 = vmul.f32 %v1774_v21, %v1770_v11 }
 0x54c   : > { %v1731_v62 = vmul.f32 %v1728_v27, %v1719_v60  ;;  %v1730_v63 = vmul.f32 %v1723_v42, %v1718_v32 }
 0x54d   : > { %v1735_v53 = vpop.permute.xlu1 %1734  ;;  %v1737_v55 = vpop.permute.xlu0 %1736 }
 0x54e   : > { %v1739_v41 = vmul.f32 %v1737_v55, %v5274_v47  ;;  %v1738_v56 = vmul.f32 %v1735_v53, %v5274_v47 }
 0x550   : > { %v1749_v22 = vmul.f32 %v1746_v12, %v1739_v41  ;;  %v1748_v23 = vmul.f32 %v1742_v28, %v1738_v56 }
 0x551   : > { %v1753_v54 = vpop.permute.xlu1 %1752 }
 0x552   : > { %v1756_v61 = vmul.f32 %v1753_v54, %v5287_v59  ;;  %v1751_v9 = vadd.f32 %v1749_v22, %v1731_v62  ;;  %v1750_v19 = vadd.f32 %v1748_v23, %v1730_v63 }
 0x554   : > { %v1766_v36 = vmul.f32 %v1760_v8, %v1756_v61 }
 0x555   : > { %v1755_v57 = vpop.permute.xlu1 %1754 }
 0x556   : > { %v1757_v25 = vmul.f32 %v1755_v57, %v5287_v59  ;;  %v1768_v28 = vadd.f32 %v1766_v36, %v1750_v19 }
 0x558   : > { %v1767_v46 = vmul.f32 %v1764_v38, %v1757_v25  ;;  %v1781_v38 = vmul.f32 %v1778_v37, %v1771_v6  ;;  %v1782_v55 = vadd.f32 %v1780_v4, %v1768_v28 }
 0x559   : > { %v1785_v16 = vpop.permute.xlu1 %1784 }
 0x55a   : > { %v1788_v35 = vmul.f32 %v1785_v16, %v5292_v5  ;;  %v1769_v39 = vadd.f32 %v1767_v46, %v1751_v9 }
 0x55c   : > { %v1798_v15 = vmul.f32 %v1792_v20, %v1788_v35  ;;  %v1783_v53 = vadd.f32 %v1781_v38, %v1769_v39 }
 0x55d   : > { %v1787_v2 = vpop.permute.xlu1 %1786 }
 0x55e   : > { %v1789_v10 = vmul.f32 %v1787_v2, %v5292_v5  ;;  %v1832_v34 = vpop.permute.xlu0 %1831  ;;  %v1800_v25 = vadd.f32 %v1798_v15, %v1782_v55 }
 0x560   : > { %v1799_v42 = vmul.f32 %v1796_v13, %v1789_v10 }
 0x561   : > { %v1805_v27 = vpop.permute.xlu1 %1804 }
 0x562   : > { %v1807_v8 = vmul.f32 %v1805_v27, %v5298_v7  ;;  %v1803_v12 = vpop.permute.xlu0 %1802  ;;  %v1801_v41 = vadd.f32 %v1799_v42, %v1783_v53 }
 0x563   : > { %v1806_v52 = vmul.f32 %v1803_v12, %v5298_v7 }
 0x564   : > { %v1817_v54 = vmul.f32 %v1814_v45, %v1807_v8  ;;  %v1378_v45 = vld [vmem:[%s6113_s12 + $0x18] sm:$0xff] }
 0x565   : > { %v1816_v57 = vmul.f32 %v1810_v49, %v1806_v52  ;;  %v1823_v33 = vpop.permute.xlu1 %1822 }
 0x566   : > { %v1825_v56 = vmul.f32 %v1823_v33, %v5305_v51  ;;  %v1821_v60 = vpop.permute.xlu0 %1820  ;;  %v1819_v13 = vadd.f32 %v1817_v54, %v1801_v41 }
 0x567   : > { %v1824_v37 = vmul.f32 %v1821_v60, %v5305_v51  ;;  %v1818_v61 = vadd.f32 %v1816_v57, %v1800_v25 }
 0x568   : > { %v1835_v32 = vmul.f32 %v1832_v34, %v1825_v56 }
 0x569   : > { %v1834_v16 = vmul.f32 %v1828_v50, %v1824_v37 }
 0x56a   : > { %v1837_v21 = vadd.f32 %v1835_v32, %v1819_v13  ;;  %v1840_v23 = vpop.permute.xlu0 %1839 }
 0x56b   : > { %v1836_v20 = vadd.f32 %v1834_v16, %v1818_v61 }
 0x56d   : > { %v4468_v22 = vpack.c.bf16 %v1837_v21, %v1836_v20  ;;  %v4862_v20 = vmov 10  }
 0x56e   : > { %4638 = vset.pattern.permute.xlu1 %v4862_v20 }
 0x56f   : > { %4469 = vmatprep.subr.bf16.mxu0 %v4468_v22  ;;  %v1961_v37 = vpop.permute.xlu0 %1960 }
 0x570   : > { %4471 = vmatpush3.bf16.msra.mxu0 %v4468_v22  ;;  %v5464_v22 = vld [vmem:[%s6115_s14] sm:$0xff] }
 0x573   : > { %4275 = vmatmul.mubr.msk.f32.vlgmr.msra.gmra.mrb[16].mxu0 %vm1584_vm2, %v1378_v45  ;;  %v5470_v45 = vld [vmem:[%s6115_s14 + $0x8] sm:$0xff] }
 0x576   : > { %v1844_v49 = vpop.permute.xlu1 %1843 }
 0x57b   : > { %v1957_v33 = vpop.permute.xlu1 %1956 }
 0x580   : > { %v1967_v41 = vpop.permute.xlu1 %1966 }
 0x584   : > { %v1971_v61 = vpop.permute.xlu1 %1970 }
 0x646   : > { %v4276_v62 = vpop.f32.mrb[16].mxu0 }
 0x647   : > { %v1924_v46 = vadd.f32 %v4276_v62, %v1844_v49  ;;  %v1918_v63 = vpop.f32.mrb[17].mxu0  ;;  %v1399_v49 = vld [vmem:[%s6114_s13 + $0x30] sm:$0xff]  ;;  %v5485_v62 = vld [vmem:[%s6114_s13 + $0x38] sm:$0xff] }
 0x648   : > { %v1919_v36 = vadd.f32 %v1918_v63, %v1840_v23  ;;  %v4863_v23 = vmov 7  }
 0x649   : > { %v1928_v2 = vmax.f32 %v1924_v46, 0.0  ;;  %v1989_v46 = vpop.permute.xlu1 %1988 }
 0x64a   : > { %v1927_v6 = vmax.f32 %v1919_v36, 0.0  ;;  %v1984_v36 = vpop.permute.xlu0 %1983 }
 0x64b   : > { %v5419_v50 = vadd.f32 %v1928_v2, %v5320_v40 }
 0x64c   : > { %v5422_v9 = vadd.f32 %v1927_v6, %v5323_v44 }
 0x64d   : > { %v2003_v63 = vpop.permute.xlu1 %2002 }
 0x64e   : > { %v1931_v10 = vadd.f32 %v5419_v50, %v5422_v9  ;;  %v2007_v6 = vpop.permute.xlu0 %2006 }
 0x650   : > { %v1932_v34 = vrot.slane %v1931_v10, 4 }
 0x652   : > { %v1933_v11 = vadd.f32 %v1932_v34, %v1931_v10 }
 0x654   : > { %v1934_v19 = vrot.slane %v1933_v11, 2 }
 0x656   : > { %v1935_v35 = vadd.f32 %v1934_v19, %v1933_v11 }
 0x658   : > { %v1936_v39 = vrot.slane %v1935_v35, 1 }
 0x65a   : > { %v1937_v28 = vadd.f32 %v1936_v39, %v1935_v35 }
 0x65c   : > { %v1938_v27 = vmul.f32 0.0625, %v1937_v28 }
 0x65e   : > { %v1939_v38 = vsub.f32 %v5422_v9, %v1938_v27  ;;  %v1940_v42 = vsub.f32 %v5419_v50, %v1938_v27 }
 0x660   : > { %v1941_v8 = vmul.f32 %v1939_v38, %v1939_v38  ;;  %v1942_v40 = vmul.f32 %v1940_v42, %v1940_v42 }
 0x662   : > { %v1943_v12 = vadd.f32 %v1942_v40, %v1941_v8 }
 0x664   : > { %v1944_v4 = vrot.slane %v1943_v12, 4 }
 0x666   : > { %v1945_v44 = vadd.f32 %v1944_v4, %v1943_v12 }
 0x668   : > { %v1946_v15 = vrot.slane %v1945_v44, 2 }
 0x66a   : > { %v1947_v52 = vadd.f32 %v1946_v15, %v1945_v44 }
 0x66c   : > { %v1948_v53 = vrot.slane %v1947_v52, 1 }
 0x66e   : > { %v1949_v54 = vadd.f32 %v1948_v53, %v1947_v52 }
 0x670   : > { %v1950_v55 = vmul.f32 0.0625, %v1949_v54 }
 0x672   : > { %v1951_v57 = vadd.f32 1e-05, %v1950_v55 }
 0x674   : > { %4696 = vrsqrt.f32 %v1951_v57 }
 0x67e   : > { %v4697_v56 = vpop.eup %4696 }
 0x67f   : > { %v1953_v60 = vmul.f32 %v4697_v56, %v1939_v38  ;;  %v1954_v25 = vmul.f32 %v4697_v56, %v1940_v42 }
 0x681   : > { %v1963_v13 = vmul.f32 %v1957_v33, %v1953_v60  ;;  %v1964_v32 = vmul.f32 %v1961_v37, %v1954_v25 }
 0x683   : > { %v5428_v16 = vadd.f32 %v1967_v41, %v1963_v13  ;;  %v5430_v21 = vadd.f32 %v1971_v61, %v1964_v32 }
 0x685   : > { %1977 = vrot.lane.b32.xlu0 %v5430_v21, %s4855_s28  ;;  %1975 = vrot.lane.b32.xlu1 %v5428_v16, %s4855_s28  ;;  %v2032_v41 = vmul.f32 %v5430_v21, %v5285_v58  ;;  %v2031_v37 = vmul.f32 %v5428_v16, %v5285_v58 }
 0x689   : > { %1997 = vrot.lane.b32.xlu0 %v5430_v21, %s4854_s27  ;;  %1995 = vrot.lane.b32.xlu1 %v5428_v16, %s4854_s27 }
 0x68d   : > { %2092 = vperm.xlu0 %4636, %v5377_v17   ;;  %2013 = vrot.lane.b32.xlu1 %v5428_v16, %s4856_s29  ;;  %v1379_v17 = vld [vmem:[%s6113_s12 + $0x20] sm:$0xff] }
 0x68e   : > { %4281 = vmatprep.mubr.msk.f32.mxu1 %vm1584_vm2, %v1379_v17 }
 0x691   : > { %2063 = vrot.lane.b32.xlu0 %v5428_v16, %s4858_s16  ;;  %2015 = vrot.lane.b32.xlu1 %v5430_v21, %s4856_s29 }
 0x692   : > { %4637 = vset.pattern.permute.xlu0 %v4862_v20 }
 0x695   : > { %2081 = vrot.lane.b32.xlu0 %v5428_v16, %s4859_s17  ;;  %2045 = vrot.lane.b32.xlu1 %v5428_v16, %s4857_s30 }
 0x699   : > { %2047 = vrot.lane.b32.xlu1 %v5430_v21, %s4857_s30  ;;  %2100 = vperm.xlu0 %4637, %v5464_v22  }
 0x69d   : > { %2065 = vrot.lane.b32.xlu1 %v5430_v21, %s4858_s16  ;;  %4640 = vset.pattern.permute.xlu0 %v4851_v31 }
 0x69e   : > { %2221 = vperm.xlu0 %4640, %v5470_v45  }
 0x6a1   : > { %2083 = vrot.lane.b32.xlu1 %v5430_v21, %s4859_s17 }
 0x6a2   : > { %4642 = vset.pattern.permute.xlu0 %v4847_v3 }
 0x6a3   : > { %2244 = vperm.xlu0 %4642, %v1399_v49  }
 0x6a5   : > { %2104 = vperm.xlu1 %4638, %v5470_v45  }
 0x6a7   : > { %4645 = vset.pattern.permute.xlu0 %v4849_v29 }
 0x6a8   : > { %2267 = vperm.xlu0 %4645, %v5485_v62  }
 0x6a9   : > { %4639 = vset.pattern.permute.xlu1 %v4851_v31 }
 0x6aa   : > { %2217 = vperm.xlu1 %4639, %v5464_v22  }
 0x6ac   : > { %4647 = vset.pattern.permute.xlu0 %v4851_v31 }
 0x6ad   : > { %2295 = vperm.xlu0 %4647, %v1399_v49  }
 0x6ae   : > { %4641 = vset.pattern.permute.xlu1 %v4863_v23 }
 0x6af   : > { %2227 = vperm.xlu1 %4641, %v5464_v22  }
 0x6b1   : > { %4650 = vset.pattern.permute.xlu0 %v4848_v24 }
 0x6b2   : > { %2317 = vperm.xlu0 %4650, %v5485_v62  }
 0x6b3   : > { %2231 = vperm.xlu1 %4641, %v5470_v45  }
 0x6b6   : > { %4651 = vset.pattern.permute.xlu0 %v4852_v14 }
 0x6b7   : > { %4643 = vset.pattern.permute.xlu1 %v4847_v3  ;;  %2331 = vperm.xlu0 %4651, %v1399_v49  }
 0x6b8   : > { %2249 = vperm.xlu1 %4643, %v5485_v62  }
 0x6bb   : > { %4654 = vset.pattern.permute.xlu0 %v4853_v18 }
 0x6bc   : > { %4644 = vset.pattern.permute.xlu1 %v4849_v29  ;;  %v2021_v29 = vpop.permute.xlu1 %2020 }
 0x6bd   : > { %2263 = vperm.xlu1 %4644, %v1399_v49  }
 0x6c1   : > { %4646 = vset.pattern.permute.xlu1 %v4850_v30  ;;  %v2025_v30 = vpop.permute.xlu1 %2024 }
 0x6c2   : > { %2281 = vperm.xlu1 %4646, %v1399_v49  }
 0x6c5   : > { %v2039_v2 = vpop.permute.xlu1 %2038 }
 0x6c6   : > { %2285 = vperm.xlu1 %4646, %v5485_v62  }
 0x6c9   : > { %v2053_v10 = vpop.permute.xlu1 %2052 }
 0x6ca   : > { %4648 = vset.pattern.permute.xlu1 %v4851_v31  ;;  %v2035_v31 = vpop.permute.xlu0 %2034 }
 0x6cb   : > { %2299 = vperm.xlu1 %4648, %v5485_v62  }
 0x6cd   : > { %v2075_v34 = vpop.permute.xlu1 %2074 }
 0x6ce   : > { %v2057_v11 = vpop.permute.xlu0 %2056 }
 0x6cf   : > { %4649 = vset.pattern.permute.xlu1 %v4848_v24 }
 0x6d0   : > { %2313 = vperm.xlu1 %4649, %v1399_v49  }
 0x6d1   : > { %v2089_v19 = vpop.permute.xlu1 %2088 }
 0x6d2   : > { %v2071_v35 = vpop.permute.xlu0 %2070 }
 0x6d4   : > { %4652 = vset.pattern.permute.xlu1 %v4852_v14 }
 0x6d5   : > { %2335 = vperm.xlu1 %4652, %v5485_v62  }
 0x6d9   : > { %4653 = vset.pattern.permute.xlu1 %v4853_v18 }
 0x6da   : > { %2349 = vperm.xlu1 %4653, %v1399_v49   ;;  %v2042_v49 = vmul.f32 %v2039_v2, %v2032_v41 }
 0x6f7   : > { %v1976_v24 = vpop.permute.xlu1 %1975  ;;  %v1978_v39 = vpop.permute.xlu0 %1977 }
 0x6f8   : > { %v1980_v8 = vmul.f32 %v1978_v39, %v5278_v48  ;;  %v1979_v12 = vmul.f32 %v1976_v24, %v5278_v48 }
 0x6fa   : > { %v1992_v53 = vmul.f32 %v1989_v46, %v1980_v8  ;;  %v1991_v55 = vmul.f32 %v1984_v36, %v1979_v12 }
 0x6fb   : > { %v1996_v28 = vpop.permute.xlu1 %1995  ;;  %v1998_v27 = vpop.permute.xlu0 %1997 }
 0x6fc   : > { %v2000_v42 = vmul.f32 %v1998_v27, %v5274_v47  ;;  %v1999_v18 = vmul.f32 %v1996_v28, %v5274_v47 }
 0x6fe   : > { %v2010_v15 = vmul.f32 %v2007_v6, %v2000_v42  ;;  %v2009_v52 = vmul.f32 %v2003_v63, %v1999_v18 }
 0x6ff   : > { %v2014_v14 = vpop.permute.xlu1 %2013 }
 0x700   : > { %v2017_v4 = vmul.f32 %v2014_v14, %v5287_v59  ;;  %v2012_v56 = vadd.f32 %v2010_v15, %v1992_v53  ;;  %v2011_v13 = vadd.f32 %v2009_v52, %v1991_v55 }
 0x702   : > { %v2027_v57 = vmul.f32 %v2021_v29, %v2017_v4  ;;  %v2041_v29 = vmul.f32 %v2035_v31, %v2031_v37 }
 0x703   : > { %v2016_v38 = vpop.permute.xlu1 %2015 }
 0x704   : > { %v2018_v40 = vmul.f32 %v2016_v38, %v5287_v59  ;;  %v2029_v17 = vadd.f32 %v2027_v57, %v2011_v13 }
 0x706   : > { %v2028_v54 = vmul.f32 %v2025_v30, %v2018_v40  ;;  %v2043_v24 = vadd.f32 %v2041_v29, %v2029_v17 }
 0x707   : > { %v2046_v44 = vpop.permute.xlu1 %2045 }
 0x708   : > { %v2049_v32 = vmul.f32 %v2046_v44, %v5292_v5  ;;  %v2030_v61 = vadd.f32 %v2028_v54, %v2012_v56 }
 0x70a   : > { %v2059_v21 = vmul.f32 %v2053_v10, %v2049_v32  ;;  %v2044_v36 = vadd.f32 %v2042_v49, %v2030_v61 }
 0x70b   : > { %v2048_v33 = vpop.permute.xlu1 %2047 }
 0x70c   : > { %v2050_v60 = vmul.f32 %v2048_v33, %v5292_v5  ;;  %v2093_v25 = vpop.permute.xlu0 %2092  ;;  %v2061_v38 = vadd.f32 %v2059_v21, %v2043_v24 }
 0x70e   : > { %v2060_v23 = vmul.f32 %v2057_v11, %v2050_v60 }
 0x70f   : > { %v2066_v20 = vpop.permute.xlu1 %2065 }
 0x710   : > { %v2068_v46 = vmul.f32 %v2066_v20, %v5298_v7  ;;  %v2064_v63 = vpop.permute.xlu0 %2063  ;;  %v2062_v28 = vadd.f32 %v2060_v23, %v2044_v36 }
 0x711   : > { %v2067_v30 = vmul.f32 %v2064_v63, %v5298_v7 }
 0x712   : > { %v2078_v6 = vmul.f32 %v2075_v34, %v2068_v46  ;;  %v1380_v34 = vld [vmem:[%s6113_s12 + $0x28] sm:$0xff] }
 0x713   : > { %v2077_v39 = vmul.f32 %v2071_v35, %v2067_v30  ;;  %v2084_v16 = vpop.permute.xlu1 %2083 }
 0x714   : > { %v2086_v14 = vmul.f32 %v2084_v16, %v5305_v51  ;;  %v2082_v27 = vpop.permute.xlu0 %2081  ;;  %v2080_v11 = vadd.f32 %v2078_v6, %v2062_v28 }
 0x715   : > { %v2085_v2 = vmul.f32 %v2082_v27, %v5305_v51  ;;  %v2079_v18 = vadd.f32 %v2077_v39, %v2061_v38 }
 0x716   : > { %v2096_v42 = vmul.f32 %v2093_v25, %v2086_v14 }
 0x717   : > { %v2095_v8 = vmul.f32 %v2089_v19, %v2085_v2 }
 0x718   : > { %v2098_v31 = vadd.f32 %v2096_v42, %v2080_v11  ;;  %v2101_v12 = vpop.permute.xlu0 %2100  ;;  %v4864_v42 = vmov 11  }
 0x719   : > { %v2097_v10 = vadd.f32 %v2095_v8, %v2079_v18  ;;  %4656 = vset.pattern.permute.xlu1 %v4864_v42  ;;  %v4865_v18 = vmov 12   ;;  %v4866_v8 = vmov 13  }
 0x71b   : > { %v4472_v40 = vpack.c.bf16 %v2098_v31, %v2097_v10 }
 0x71d   : > { %4473 = vmatprep.subr.bf16.mxu1 %v4472_v40  ;;  %v2222_v28 = vpop.permute.xlu0 %2221 }
 0x71e   : > { %4475 = vmatpush3.bf16.msra.mxu1 %v4472_v40 }
 0x721   : > { %4282 = vmatmul.mubr.msk.f32.vlgmr.msra.gmra.mrb[12].mxu1 %vm1584_vm2, %v1380_v34 }
 0x724   : > { %v2105_v35 = vpop.permute.xlu1 %2104 }
 0x729   : > { %v2218_v36 = vpop.permute.xlu1 %2217 }
 0x72e   : > { %v2228_v6 = vpop.permute.xlu1 %2227 }
 0x732   : > { %v2232_v38 = vpop.permute.xlu1 %2231 }
 0x737   : > { %v2250_v31 = vpop.permute.xlu1 %2249 }
 0x73c   : > { %v2264_v10 = vpop.permute.xlu1 %2263 }
 0x741   : > { %v2282_v40 = vpop.permute.xlu1 %2281 }
 0x745   : > { %v2286_v34 = vpop.permute.xlu1 %2285 }
 0x7f4   : > { %v4283_v4 = vpop.f32.mrb[12].mxu1 }
 0x7f5   : > { %v2185_v44 = vadd.f32 %v4283_v4, %v2105_v35  ;;  %v2179_v15 = vpop.f32.mrb[13].mxu1  ;;  %v2245_v35 = vpop.permute.xlu0 %2244 }
 0x7f6   : > { %v2180_v52 = vadd.f32 %v2179_v15, %v2101_v12  ;;  %v2300_v12 = vpop.permute.xlu1 %2299 }
 0x7f7   : > { %v2189_v53 = vmax.f32 %v2185_v44, 0.0 }
 0x7f8   : > { %v2188_v54 = vmax.f32 %v2180_v52, 0.0 }
 0x7f9   : > { %v5527_v19 = vadd.f32 %v2189_v53, %v5419_v50  ;;  %v2268_v4 = vpop.permute.xlu0 %2267 }
 0x7fa   : > { %v5530_v55 = vadd.f32 %v2188_v54, %v5422_v9  ;;  %v2314_v44 = vpop.permute.xlu1 %2313 }
 0x7fc   : > { %v2192_v57 = vadd.f32 %v5527_v19, %v5530_v55 }
 0x7fd   : > { %v2296_v15 = vpop.permute.xlu0 %2295 }
 0x7fe   : > { %v2193_v33 = vrot.slane %v2192_v57, 4  ;;  %v2336_v52 = vpop.permute.xlu1 %2335 }
 0x800   : > { %v2194_v41 = vadd.f32 %v2193_v33, %v2192_v57 }
 0x801   : > { %v2318_v53 = vpop.permute.xlu0 %2317 }
 0x802   : > { %v2195_v56 = vrot.slane %v2194_v41, 2  ;;  %v2350_v54 = vpop.permute.xlu1 %2349 }
 0x804   : > { %v2196_v60 = vadd.f32 %v2195_v56, %v2194_v41 }
 0x805   : > { %v2332_v57 = vpop.permute.xlu0 %2331 }
 0x806   : > { %v2197_v25 = vrot.slane %v2196_v60, 1 }
 0x808   : > { %v2198_v37 = vadd.f32 %v2197_v25, %v2196_v60 }
 0x80a   : > { %v2199_v13 = vmul.f32 0.0625, %v2198_v37 }
 0x80c   : > { %v2200_v32 = vsub.f32 %v5530_v55, %v2199_v13  ;;  %v2201_v61 = vsub.f32 %v5527_v19, %v2199_v13 }
 0x80e   : > { %v2202_v17 = vmul.f32 %v2200_v32, %v2200_v32  ;;  %v2203_v50 = vmul.f32 %v2201_v61, %v2201_v61 }
 0x810   : > { %v2204_v20 = vadd.f32 %v2203_v50, %v2202_v17 }
 0x812   : > { %v2205_v49 = vrot.slane %v2204_v20, 4 }
 0x814   : > { %v2206_v9 = vadd.f32 %v2205_v49, %v2204_v20 }
 0x816   : > { %v2207_v23 = vrot.slane %v2206_v9, 2 }
 0x818   : > { %v2208_v46 = vadd.f32 %v2207_v23, %v2206_v9 }
 0x81a   : > { %v2209_v63 = vrot.slane %v2208_v46, 1 }
 0x81c   : > { %v2210_v29 = vadd.f32 %v2209_v63, %v2208_v46 }
 0x81e   : > { %v2211_v21 = vmul.f32 0.0625, %v2210_v29 }
 0x820   : > { %v2212_v30 = vadd.f32 1e-05, %v2211_v21 }
 0x822   : > { %4698 = vrsqrt.f32 %v2212_v30 }
 0x82c   : > { %v4699_v24 = vpop.eup %4698 }
 0x82d   : > { %v2214_v39 = vmul.f32 %v4699_v24, %v2200_v32  ;;  %v2215_v16 = vmul.f32 %v4699_v24, %v2201_v61 }
 0x82f   : > { %v2224_v14 = vmul.f32 %v2218_v36, %v2214_v39  ;;  %v2225_v27 = vmul.f32 %v2222_v28, %v2215_v16 }
 0x831   : > { %v5536_v2 = vadd.f32 %v2228_v6, %v2224_v14  ;;  %v5538_v11 = vadd.f32 %v2232_v38, %v2225_v27 }
 0x833   : > { %2238 = vrot.lane.b32.xlu0 %v5538_v11, %s4855_s28  ;;  %2236 = vrot.lane.b32.xlu1 %v5536_v2, %s4855_s28  ;;  %v2293_v21 = vmul.f32 %v5538_v11, %v5285_v58  ;;  %s567_s28 = scalar_lea.vmem %s6104_s3, %s6118_s19 }
 0x835   : > { %v2303_v28 = vmul.f32 %v2300_v12, %v2293_v21 }
 0x837   : > { %2258 = vrot.lane.b32.xlu0 %v5538_v11, %s4854_s27  ;;  %2256 = vrot.lane.b32.xlu1 %v5536_v2, %s4854_s27 }
 0x83b   : > { %2353 = vperm.xlu0 %4654, %v5485_v62   ;;  %2274 = vrot.lane.b32.xlu1 %v5536_v2, %s4856_s29  ;;  %v1381_v62 = vld [vmem:[%s6113_s12 + $0x30] sm:$0xff] }
 0x83c   : > { %4288 = vmatprep.mubr.msk.f32.mxu0 %vm1584_vm2, %v1381_v62 }
 0x83f   : > { %2324 = vrot.lane.b32.xlu0 %v5536_v2, %s4858_s16  ;;  %2276 = vrot.lane.b32.xlu1 %v5538_v11, %s4856_s29 }
 0x840   : > { %4655 = vset.pattern.permute.xlu0 %v4864_v42 }
 0x843   : > { %2342 = vrot.lane.b32.xlu0 %v5536_v2, %s4859_s17  ;;  %2306 = vrot.lane.b32.xlu1 %v5536_v2, %s4857_s30 }
 0x847   : > { %2308 = vrot.lane.b32.xlu1 %v5538_v11, %s4857_s30  ;;  %2361 = vperm.xlu0 %4655, %v5464_v22  }
 0x84b   : > { %2326 = vrot.lane.b32.xlu1 %v5538_v11, %s4858_s16  ;;  %4658 = vset.pattern.permute.xlu0 %v4865_v18  ;;  %s4059_s16 = sshll.u32 %s6118_s19, 7 }
 0x84c   : > { %2482 = vperm.xlu0 %4658, %v5470_v45   ;;  %s5637_s24 = scalar_lea.vmem %s6103_s2, %s4059_s16  ;;  %s579_s16 = scalar_lea.vmem %s6116_s15, %s4058_s23 }
 0x84f   : > { %2344 = vrot.lane.b32.xlu1 %v5538_v11, %s4859_s17 }
 0x853   : > { %2365 = vperm.xlu1 %4656, %v5470_v45  }
 0x857   : > { %4657 = vset.pattern.permute.xlu1 %v4865_v18 }
 0x858   : > { %2478 = vperm.xlu1 %4657, %v5464_v22  }
 0x85c   : > { %4659 = vset.pattern.permute.xlu1 %v4866_v8 }
 0x85d   : > { %2488 = vperm.xlu1 %4659, %v5464_v22  }
 0x861   : > { %2492 = vperm.xlu1 %4659, %v5470_v45  }
 0x8a5   : > { %v2237_v33 = vpop.permute.xlu1 %2236  ;;  %v2239_v41 = vpop.permute.xlu0 %2238 }
 0x8a6   : > { %v2241_v13 = vmul.f32 %v2239_v41, %v5278_v48  ;;  %v2240_v61 = vmul.f32 %v2237_v33, %v5278_v48  ;;  %v2292_v48 = vmul.f32 %v5536_v2, %v5285_v58 }
 0x8a8   : > { %v2253_v9 = vmul.f32 %v2250_v31, %v2241_v13  ;;  %v2252_v46 = vmul.f32 %v2245_v35, %v2240_v61  ;;  %v2302_v62 = vmul.f32 %v2296_v15, %v2292_v48 }
 0x8a9   : > { %v2257_v56 = vpop.permute.xlu1 %2256  ;;  %v2259_v22 = vpop.permute.xlu0 %2258 }
 0x8aa   : > { %v2261_v45 = vmul.f32 %v2259_v22, %v5274_v47  ;;  %v2260_v37 = vmul.f32 %v2257_v56, %v5274_v47 }
 0x8ac   : > { %v2271_v20 = vmul.f32 %v2268_v4, %v2261_v45  ;;  %v2270_v49 = vmul.f32 %v2264_v10, %v2260_v37 }
 0x8ad   : > { %v2275_v60 = vpop.permute.xlu1 %2274 }
 0x8ae   : > { %v2278_v17 = vmul.f32 %v2275_v60, %v5287_v59  ;;  %v2273_v47 = vadd.f32 %v2271_v20, %v2253_v9  ;;  %v2272_v6 = vadd.f32 %v2270_v49, %v2252_v46 }
 0x8b0   : > { %v2288_v63 = vmul.f32 %v2282_v40, %v2278_v17 }
 0x8b1   : > { %v2277_v25 = vpop.permute.xlu1 %2276 }
 0x8b2   : > { %v2279_v32 = vmul.f32 %v2277_v25, %v5287_v59  ;;  %v2290_v39 = vadd.f32 %v2288_v63, %v2272_v6 }
 0x8b4   : > { %v2289_v23 = vmul.f32 %v2286_v34, %v2279_v32  ;;  %v2304_v31 = vadd.f32 %v2302_v62, %v2290_v39 }
 0x8b5   : > { %v2307_v50 = vpop.permute.xlu1 %2306 }
 0x8b6   : > { %v2310_v59 = vmul.f32 %v2307_v50, %v5292_v5  ;;  %v2291_v24 = vadd.f32 %v2289_v23, %v2273_v47 }
 0x8b8   : > { %v2320_v11 = vmul.f32 %v2314_v44, %v2310_v59  ;;  %v2305_v18 = vadd.f32 %v2303_v28, %v2291_v24 }
 0x8b9   : > { %v2309_v29 = vpop.permute.xlu1 %2308 }
 0x8ba   : > { %v2311_v30 = vmul.f32 %v2309_v29, %v5292_v5  ;;  %v2354_v36 = vpop.permute.xlu0 %2353  ;;  %v2322_v34 = vadd.f32 %v2320_v11, %v2304_v31 }
 0x8bc   : > { %v2321_v14 = vmul.f32 %v2318_v53, %v2311_v30 }
 0x8bd   : > { %v2327_v16 = vpop.permute.xlu1 %2326 }
 0x8be   : > { %v2329_v27 = vmul.f32 %v2327_v16, %v5298_v7  ;;  %v2325_v38 = vpop.permute.xlu0 %2324  ;;  %v2323_v2 = vadd.f32 %v2321_v14, %v2305_v18 }
 0x8bf   : > { %v2328_v42 = vmul.f32 %v2325_v38, %v5298_v7  ;;  %v1382_v7 = vld [vmem:[%s6113_s12 + $0x38] sm:$0xff] }
 0x8c0   : > { %v2339_v8 = vmul.f32 %v2336_v52, %v2329_v27  ;;  %v1387_v52 = vld [vmem:[%s6113_s12 + $0x60] sm:$0xff] }
 0x8c1   : > { %v2338_v10 = vmul.f32 %v2332_v57, %v2328_v42  ;;  %v2345_v58 = vpop.permute.xlu1 %2344  ;;  %4295 = vmatprep.mubr.msk.f32.mxu1 %vm1584_vm2, %v1387_v52  ;;  %v1192_v52 = vld [vmem:[%s5637_s24 + $0x38] sm:$0xff] }
 0x8c2   : > { %v2347_v5 = vmul.f32 %v2345_v58, %v5305_v51  ;;  %v2343_v40 = vpop.permute.xlu0 %2342  ;;  %v2341_v12 = vadd.f32 %v2339_v8, %v2323_v2  ;;  %v1388_v58 = vld [vmem:[%s6113_s12 + $0x68] sm:$0xff] }
 0x8c3   : > { %v2346_v35 = vmul.f32 %v2343_v40, %v5305_v51  ;;  %v2340_v53 = vadd.f32 %v2338_v10, %v2322_v34  ;;  %v1383_v51 = vld [vmem:[%s6113_s12 + $0x40] sm:$0xff]  ;;  %v1384_v2 = vld [vmem:[%s6113_s12 + $0x48] sm:$0xff] }
 0x8c4   : > { %v2357_v4 = vmul.f32 %v2354_v36, %v2347_v5 }
 0x8c5   : > { %v2356_v33 = vmul.f32 %v2350_v54, %v2346_v35 }
 0x8c6   : > { %v2359_v15 = vadd.f32 %v2357_v4, %v2341_v12  ;;  %v2362_v57 = vpop.permute.xlu0 %2361  ;;  %v1385_v12 = vld [vmem:[%s6113_s12 + $0x50] sm:$0xff] }
 0x8c7   : > { %v2358_v44 = vadd.f32 %v2356_v33, %v2340_v53  ;;  %v1386_v53 = vld [vmem:[%s6113_s12 + $0x58] sm:$0xff] }
 0x8c9   : > { %v4476_v41 = vpack.c.bf16 %v2359_v15, %v2358_v44  ;;  %v1186_v15 = vld [vmem:[%s5637_s24 + $0x8] sm:$0xff]  ;;  %v1188_v44 = vld [vmem:[%s5637_s24 + $0x18] sm:$0xff] }
 0x8cb   : > { %4477 = vmatprep.subr.bf16.mxu0 %v4476_v41  ;;  %v2483_v27 = vpop.permute.xlu0 %2482 }
 0x8cc   : > { %4479 = vmatpush3.bf16.msra.mxu0 %v4476_v41  ;;  %v1190_v41 = vld [vmem:[%s5637_s24 + $0x28] sm:$0xff] }
 0x8cf   : > { %4289 = vmatmul.mubr.msk.f32.vlgmr.msra.gmra.mrb[18].mxu0 %vm1584_vm2, %v1382_v7  ;;  %v1185_v7 = vld [vmem:[%s5637_s24] sm:$0xff] }
 0x8d0   : > { %4302 = vmatprep.mubr.msk.f32.mxu0 %vm1584_vm2, %v1383_v51  ;;  %v1187_v51 = vld [vmem:[%s5637_s24 + $0x10] sm:$0xff] }
 0x8d2   : > { %v2366_v54 = vpop.permute.xlu1 %2365 }
 0x8d7   : > { %v2479_v16 = vpop.permute.xlu1 %2478 }
 0x8dc   : > { %v2489_v28 = vpop.permute.xlu1 %2488 }
 0x8e0   : > { %v2493_v18 = vpop.permute.xlu1 %2492 }
 0x9a2   : > { %v4290_v56 = vpop.f32.mrb[18].mxu0 }
 0x9a3   : > { %v2446_v60 = vadd.f32 %v4290_v56, %v2366_v54  ;;  %v2440_v22 = vpop.f32.mrb[19].mxu0  ;;  %v1194_v54 = vld [vmem:[%s5637_s24 + $0x48] sm:$0xff]  ;;  %v1196_v56 = vld [vmem:[%s5637_s24 + $0x58] sm:$0xff] }
 0x9a4   : > { %v2441_v25 = vadd.f32 %v2440_v22, %v2362_v57  ;;  %v1189_v57 = vld [vmem:[%s5637_s24 + $0x20] sm:$0xff]  ;;  %v1198_v22 = vld [vmem:[%s5637_s24 + $0x68] sm:$0xff] }
 0x9a5   : > { %v2450_v45 = vmax.f32 %v2446_v60, 0.0  ;;  %v1191_v60 = vld [vmem:[%s5637_s24 + $0x30] sm:$0xff] }
 0x9a6   : > { %v2449_v37 = vmax.f32 %v2441_v25, 0.0  ;;  %v1193_v25 = vld [vmem:[%s5637_s24 + $0x40] sm:$0xff] }
 0x9a7   : > { %v5604_v13 = vadd.f32 %v2450_v45, %v5527_v19  ;;  %v1200_v45 = vld [vmem:[%s5637_s24 + $0x78] sm:$0xff] }
 0x9a8   : > { %v5607_v32 = vadd.f32 %v2449_v37, %v5530_v55  ;;  %v1195_v37 = vld [vmem:[%s5637_s24 + $0x50] sm:$0xff] }
 0x9aa   : > { %v2453_v61 = vadd.f32 %v5604_v13, %v5607_v32 }
 0x9ac   : > { %v2454_v17 = vrot.slane %v2453_v61, 4 }
 0x9ae   : > { %v2455_v50 = vadd.f32 %v2454_v17, %v2453_v61  ;;  %v1197_v61 = vld [vmem:[%s5637_s24 + $0x60] sm:$0xff]  ;;  %v1199_v17 = vld [vmem:[%s5637_s24 + $0x70] sm:$0xff] }
 0x9b0   : > { %v2456_v20 = vrot.slane %v2455_v50, 2 }
 0x9b2   : > { %v2457_v49 = vadd.f32 %v2456_v20, %v2455_v50 }
 0x9b4   : > { %v2458_v9 = vrot.slane %v2457_v49, 1 }
 0x9b6   : > { %v2459_v23 = vadd.f32 %v2458_v9, %v2457_v49 }
 0x9b8   : > { %v2460_v46 = vmul.f32 0.0625, %v2459_v23 }
 0x9ba   : > { %v2462_v63 = vsub.f32 %v5604_v13, %v2460_v46  ;;  %v2461_v29 = vsub.f32 %v5607_v32, %v2460_v46 }
 0x9bc   : > { %v2463_v21 = vmul.f32 %v2461_v29, %v2461_v29  ;;  %v2464_v19 = vmul.f32 %v2462_v63, %v2462_v63 }
 0x9be   : > { %v2465_v47 = vadd.f32 %v2464_v19, %v2463_v21 }
 0x9c0   : > { %v2466_v30 = vrot.slane %v2465_v47, 4 }
 0x9c2   : > { %v2467_v55 = vadd.f32 %v2466_v30, %v2465_v47 }
 0x9c4   : > { %v2468_v36 = vrot.slane %v2467_v55, 2 }
 0x9c6   : > { %v2469_v48 = vadd.f32 %v2468_v36, %v2467_v55 }
 0x9c8   : > { %v2470_v6 = vrot.slane %v2469_v48, 1 }
 0x9ca   : > { %v2471_v59 = vadd.f32 %v2470_v6, %v2469_v48 }
 0x9cc   : > { %v2472_v24 = vmul.f32 0.0625, %v2471_v59 }
 0x9ce   : > { %v2473_v39 = vadd.f32 1e-05, %v2472_v24 }
 0x9d0   : > { %4700 = vrsqrt.f32 %v2473_v39 }
 0x9da   : > { %v4701_v14 = vpop.eup %4700 }
 0x9db   : > { %v2475_v38 = vmul.f32 %v4701_v14, %v2461_v29  ;;  %v2476_v62 = vmul.f32 %v4701_v14, %v2462_v63 }
 0x9dd   : > { %v2485_v11 = vmul.f32 %v2479_v16, %v2475_v38  ;;  %v2486_v42 = vmul.f32 %v2483_v27, %v2476_v62 }
 0x9df   : > { %v2495_v8 = vadd.f32 %v2489_v28, %v2485_v11  ;;  %v2496_v31 = vadd.f32 %v2493_v18, %v2486_v42 }
 0x9e1   : > { %v4480_v10 = vpack.c.bf16 %v2496_v31, %v2495_v8 }
 0x9e3   : > { %4481 = vmatprep.subr.bf16.mxu1 %v4480_v10  ;;  %4485 = vmatprep.subr.bf16.mxu0 %v4480_v10 }
 0x9e4   : > { %4483 = vmatpush3.bf16.msra.mxu1 %v4480_v10  ;;  %4487 = vmatpush3.bf16.msra.mxu0 %v4480_v10 }
 0x9e5   : > { %4489 = vmatprep.subr.bf16.mxu1 %v4480_v10 }
 0x9e7   : > { %4296 = vmatmul.mubr.msk.f32.vlgmr.msra.gmra.mrb[14].mxu1 %vm1584_vm2, %v1388_v58  ;;  %4303 = vmatmul.mubr.msk.f32.vlgmr.msra.gmra.mrb[20].mxu0 %vm1584_vm2, %v1384_v2 }
 0x9e8   : > { %4491 = vmatpush3.bf16.msra.mxu1 %v4480_v10  ;;  %4309 = vmatprep.mubr.msk.f32.mxu1 %vm1584_vm2, %v1385_v12 }
 0x9eb   : > { %4310 = vmatmul.mubr.msk.f32.vlgmr.msra.gmra.mrb[16].mxu1 %vm1584_vm2, %v1386_v53 }
 0xaba   : > { %v4297_v5 = vpop.f32.mrb[14].mxu1  ;;  %v4304_v4 = vpop.f32.mrb[20].mxu0 }
 0xabb   : > { %v2579_v40 = vmul.f32 0.35355338, %v4297_v5  ;;  %v2569_v34 = vpop.f32.mrb[15].mxu1  ;;  %v2652_v33 = vpop.f32.mrb[21].mxu0  ;;  %4373 = vmatprep.subr.mxu0 %v4304_v4 }
 0xabc   : > { %v2578_v35 = vmul.f32 0.35355338, %v2569_v34  ;;  %4312 = vmatprep.subr.mxu1 %v2652_v33  ;;  %4374 = vmatpush3.msra.mxu0 %v4304_v4 }
 0xabd   : > { %3182 = vxpose.xlu1.b32.start.end [1/1] (short) %v2579_v40, 128  ;;  %4313 = vmatpush3.msra.mxu1 %v2652_v33  ;;  %v1202_v40 = vld [vmem:[%s570_s20] sm:$0x1] }
 0xabe   : > { %2742 = vxpose.xlu0.b32.start.end [1/1] (short) %v2578_v35, 128  ;;  %4516 = vmatprep.subr.bf16.mxu0 %v4844_v0  ;;  %v5691_v2 = vpop.f32.mrb[16].mxu1  ;;  %vm1305_vm4 = vcmp.gt.f32.partialorder %v1202_v40, 0.5 }
 0xabf   : > { %4492 = vmatprep.subr.bf16.mxu1 %v4844_v0  ;;  %v5693_v5 = vpop.f32.mrb[17].mxu1  ;;  %v1306_v34 = vsel %vm1305_vm4, 1, %v4847_v3 }
 0xac0   : > { %v5706_v35 = vrot.slane %v1306_v34, %v1309_v43 }
 0xac2   : > { %vm1311_vm5 = vcmp.eq.s32.totalorder %v5706_v35, 1 }
 0xadb   : > { %4661 = vset.pattern.permute.xlu1 %v4847_v3 }
 0xae7   : > { %4660 = vset.pattern.permute.xlu0 %v4847_v3  ;;  %v4867_v3 = vmov -1e+30  }
 0xb17   : > { %1210 = vperm.xlu1 %4661, %v1186_v15  }
 0xb1b   : > { %1220 = vperm.xlu1 %4661, %v1188_v44  }
 0xb1f   : > { %1230 = vperm.xlu1 %4661, %v1190_v41  }
 0xb23   : > { %1205 = vperm.xlu0 %4660, %v1185_v7   ;;  %1240 = vperm.xlu1 %4661, %v1192_v52  }
 0xb27   : > { %1215 = vperm.xlu0 %4660, %v1187_v51   ;;  %1250 = vperm.xlu1 %4661, %v1194_v54  }
 0xb2b   : > { %1225 = vperm.xlu0 %4660, %v1189_v57   ;;  %1260 = vperm.xlu1 %4661, %v1196_v56  }
 0xb2f   : > { %1235 = vperm.xlu0 %4660, %v1191_v60   ;;  %1270 = vperm.xlu1 %4661, %v1198_v22  }
 0xb33   : > { %1245 = vperm.xlu0 %4660, %v1193_v25   ;;  %1280 = vperm.xlu1 %4661, %v1200_v45  }
 0xb37   : > { %1255 = vperm.xlu0 %4660, %v1195_v37  }
 0xb3b   : > { %1265 = vperm.xlu0 %4660, %v1197_v61  }
 0xb3d   : > { %v3198_v50 = vpop.trf.xlu1 }
 0xb3e   : > { %v2758_v20 = vpop.trf.xlu0  ;;  %4375 = vmatprep.mubr.msk.f32.mxu0 %vm2774_vm3, %v3198_v50 }
 0xb3f   : > { %4314 = vmatprep.mubr.msk.f32.mxu1 %vm2774_vm3, %v2758_v20  ;;  %1275 = vperm.xlu0 %4660, %v1199_v17  }
 0xb41   : > { %v3199_v49 = vpop.trf.xlu1 }
 0xb42   : > { %4376 = vmatmul.mubr.msk.f32.vlgmr.msra.gmra.mrb[22].mxu0 %vm2774_vm3, %v3199_v49  ;;  %v2759_v9 = vpop.trf.xlu0 }
 0xb43   : > { %4315 = vmatmul.mubr.msk.f32.vlgmr.msra.gmra.mrb[18].mxu1 %vm2774_vm3, %v2759_v9 }
 0xb45   : > { %v3200_v23 = vpop.trf.xlu1 }
 0xb46   : > { %v2760_v46 = vpop.trf.xlu0  ;;  %4378 = vmatprep.mubr.msk.f32.mxu0 %vm2774_vm3, %v3200_v23 }
 0xb47   : > { %4317 = vmatprep.mubr.msk.f32.mxu1 %vm2774_vm3, %v2760_v46 }
 0xb49   : > { %v3201_v63 = vpop.trf.xlu1 }
 0xb4a   : > { %4379 = vmatmul.mubr.msk.f32.gmra.mrb[24].mxu0 %vm2774_vm3, %v3201_v63  ;;  %v2761_v29 = vpop.trf.xlu0 }
 0xb4b   : > { %4318 = vmatmul.mubr.msk.f32.gmra.mrb[20].mxu1 %vm2774_vm3, %v2761_v29 }
 0xb4d   : > { %v3202_v21 = vpop.trf.xlu1 }
 0xb4e   : > { %v2762_v19 = vpop.trf.xlu0  ;;  %4381 = vmatprep.mubr.msk.f32.mxu0 %vm2774_vm3, %v3202_v21 }
 0xb4f   : > { %4320 = vmatprep.mubr.msk.f32.mxu1 %vm2774_vm3, %v2762_v19 }
 0xb51   : > { %v3203_v47 = vpop.trf.xlu1 }
 0xb52   : > { %4382 = vmatmul.mubr.msk.f32.gmra.mrb[26].mxu0 %vm2774_vm3, %v3203_v47  ;;  %v2763_v30 = vpop.trf.xlu0 }
 0xb53   : > { %4321 = vmatmul.mubr.msk.f32.gmra.mrb[22].mxu1 %vm2774_vm3, %v2763_v30 }
 0xb55   : > { %v3204_v55 = vpop.trf.xlu1 }
 0xb56   : > { %v2764_v36 = vpop.trf.xlu0  ;;  %4384 = vmatprep.mubr.msk.f32.mxu0 %vm2774_vm3, %v3204_v55 }
 0xb57   : > { %4323 = vmatprep.mubr.msk.f32.mxu1 %vm2774_vm3, %v2764_v36 }
 0xb59   : > { %v3205_v48 = vpop.trf.xlu1 }
 0xb5a   : > { %4385 = vmatmul.mubr.msk.f32.gmra.mrb[28].mxu0 %vm2774_vm3, %v3205_v48  ;;  %v2765_v6 = vpop.trf.xlu0 }
 0xb5b   : > { %4324 = vmatmul.mubr.msk.f32.gmra.mrb[24].mxu1 %vm2774_vm3, %v2765_v6 }
 0xb5d   : > { %v3206_v59 = vpop.trf.xlu1 }
 0xb5e   : > { %v2766_v24 = vpop.trf.xlu0  ;;  %4387 = vmatprep.mubr.msk.f32.mxu0 %vm2774_vm3, %v3206_v59 }
 0xb5f   : > { %4326 = vmatprep.mubr.msk.f32.mxu1 %vm2774_vm3, %v2766_v24 }
 0xb61   : > { %v3207_v39 = vpop.trf.xlu1 }
 0xb62   : > { %4388 = vmatmul.mubr.msk.f32.gmra.mrb[30].mxu0 %vm2774_vm3, %v3207_v39  ;;  %v2767_v16 = vpop.trf.xlu0 }
 0xb63   : > { %4327 = vmatmul.mubr.msk.f32.gmra.mrb[26].mxu1 %vm2774_vm3, %v2767_v16 }
 0xb65   : > { %v3208_v28 = vpop.trf.xlu1 }
 0xb66   : > { %v2768_v14 = vpop.trf.xlu0  ;;  %4390 = vmatprep.mubr.msk.f32.mxu0 %vm2774_vm3, %v3208_v28 }
 0xb67   : > { %4329 = vmatprep.mubr.msk.f32.mxu1 %vm2774_vm3, %v2768_v14 }
 0xb69   : > { %v3209_v27 = vpop.trf.xlu1 }
 0xb6a   : > { %4391 = vmatmul.mubr.msk.f32.gmra.mrb[32].mxu0 %vm2774_vm3, %v3209_v27  ;;  %v2769_v38 = vpop.trf.xlu0 }
 0xb6b   : > { %4330 = vmatmul.mubr.msk.f32.gmra.mrb[28].mxu1 %vm2774_vm3, %v2769_v38 }
 0xb6d   : > { %v3210_v62 = vpop.trf.xlu1 }
 0xb6e   : > { %v2770_v11 = vpop.trf.xlu0  ;;  %4393 = vmatprep.mubr.msk.f32.mxu0 %vm2774_vm3, %v3210_v62 }
 0xb6f   : > { %4332 = vmatprep.mubr.msk.f32.mxu1 %vm2774_vm3, %v2770_v11 }
 0xb71   : > { %v3211_v42 = vpop.trf.xlu1 }
 0xb72   : > { %4394 = vmatmul.mubr.msk.f32.gmra.mrb[34].mxu0 %vm2774_vm3, %v3211_v42  ;;  %v2771_v18 = vpop.trf.xlu0 }
 0xb73   : > { %4333 = vmatmul.mubr.msk.f32.gmra.mrb[30].mxu1 %vm2774_vm3, %v2771_v18 }
 0xb75   : > { %v3212_v8 = vpop.trf.xlu1 }
 0xb76   : > { %v2772_v31 = vpop.trf.xlu0  ;;  %4396 = vmatprep.mubr.msk.f32.mxu0 %vm2774_vm3, %v3212_v8 }
 0xb77   : > { %4335 = vmatprep.mubr.msk.f32.mxu1 %vm2774_vm3, %v2772_v31 }
 0xb79   : > { %v3213_v10 = vpop.trf.xlu1 }
 0xb7a   : > { %4397 = vmatmul.mubr.msk.f32.gmra.mrb[36].mxu0 %vm2774_vm3, %v3213_v10  ;;  %v2773_v58 = vpop.trf.xlu0 }
 0xb7b   : > { %4336 = vmatmul.mubr.msk.f32.gmra.mrb[32].mxu1 %vm2774_vm3, %v2773_v58  ;;  %4431 = vmatprep.mubr.msk.f32.mxu0 %vm4845_vm0, %v4846_v1 }
 0xb7c   : > { %4370 = vmatprep.mubr.msk.f32.mxu1 %vm4845_vm0, %v4846_v1  ;;  %v5708_v1 = vld [vmem:[%s567_s28] ss:$0 sm:$0xff] }
 0xb96   : > { %v1211_v12 = vpop.permute.xlu1 %1210 }
 0xb97   : > { %vm1290_vm6 = vcmp.eq.f32.partialorder %v1211_v12, %v5708_v1 }
 0xb98   : > { %vm1313_vm8 = vmand %vm1290_vm6, %vm1311_vm5 }
 0xb99   : > { %v1329_v26 = vsel %vm1313_vm8, 0.0, %v4867_v3 }
 0xb9a   : > { %v1221_v53 = vpop.permute.xlu1 %1220 }
 0xb9b   : > { %vm1292_vm10 = vcmp.eq.f32.partialorder %v1221_v53, %v5708_v1 }
 0xb9c   : > { %vm1315_vm12 = vmand %vm1292_vm10, %vm1311_vm5 }
 0xb9d   : > { %v1331_v60 = vsel %vm1315_vm12, 0.0, %v4867_v3 }
 0xb9e   : > { %v1231_v56 = vpop.permute.xlu1 %1230 }
 0xb9f   : > { %vm1294_vm14 = vcmp.eq.f32.partialorder %v1231_v56, %v5708_v1 }
 0xba0   : > { %vm1317_vm0 = vmand %vm1294_vm14, %vm1311_vm5 }
 0xba1   : > { %v1333_v46 = vsel %vm1317_vm0, 0.0, %v4867_v3 }
 0xba2   : > { %v1206_v4 = vpop.permute.xlu0 %1205  ;;  %v1241_v23 = vpop.permute.xlu1 %1240 }
 0xba3   : > { %vm1289_vm7 = vcmp.eq.f32.partialorder %v1206_v4, %v5708_v1  ;;  %vm1296_vm3 = vcmp.eq.f32.partialorder %v1241_v23, %v5708_v1 }
 0xba4   : > { %vm1312_vm9 = vmand %vm1289_vm7, %vm1311_vm5 }
 0xba5   : > { %v1328_v43 = vsel %vm1312_vm9, 0.0, %v4867_v3  ;;  %vm1319_vm6 = vmand %vm1296_vm3, %vm1311_vm5 }
 0xba6   : > { %v1216_v7 = vpop.permute.xlu0 %1215  ;;  %v1251_v59 = vpop.permute.xlu1 %1250  ;;  %v1335_v24 = vsel %vm1319_vm6, 0.0, %v4867_v3 }
 0xba7   : > { %vm1291_vm11 = vcmp.eq.f32.partialorder %v1216_v7, %v5708_v1  ;;  %vm1298_vm8 = vcmp.eq.f32.partialorder %v1251_v59, %v5708_v1 }
 0xba8   : > { %vm1314_vm13 = vmand %vm1291_vm11, %vm1311_vm5 }
 0xba9   : > { %v1330_v37 = vsel %vm1314_vm13, 0.0, %v4867_v3  ;;  %vm1321_vm10 = vmand %vm1298_vm8, %vm1311_vm5 }
 0xbaa   : > { %v1226_v17 = vpop.permute.xlu0 %1225  ;;  %v1261_v8 = vpop.permute.xlu1 %1260  ;;  %v1337_v31 = vsel %vm1321_vm10, 0.0, %v4867_v3 }
 0xbab   : > { %vm1293_vm15 = vcmp.eq.f32.partialorder %v1226_v17, %v5708_v1  ;;  %vm1300_vm12 = vcmp.eq.f32.partialorder %v1261_v8, %v5708_v1 }
 0xbac   : > { %vm1316_vm1 = vmand %vm1293_vm15, %vm1311_vm5 }
 0xbad   : > { %v1332_v19 = vsel %vm1316_vm1, 0.0, %v4867_v3  ;;  %vm1323_vm14 = vmand %vm1300_vm12, %vm1311_vm5 }
 0xbae   : > { %v1236_v30 = vpop.permute.xlu0 %1235 }
 0xbaf   : > { %vm1295_vm4 = vcmp.eq.f32.partialorder %v1236_v30, %v5708_v1 }
 0xbb0   : > { %vm1318_vm7 = vmand %vm1295_vm4, %vm1311_vm5 }
 0xbb1   : > { %v1334_v14 = vsel %vm1318_vm7, 0.0, %v4867_v3 }
 0xbb2   : > { %v1246_v38 = vpop.permute.xlu0 %1245 }
 0xbb3   : > { %vm1297_vm9 = vcmp.eq.f32.partialorder %v1246_v38, %v5708_v1 }
 0xbb4   : > { %vm1320_vm11 = vmand %vm1297_vm9, %vm1311_vm5 }
 0xbb5   : > { %v1336_v34 = vsel %vm1320_vm11, 0.0, %v4867_v3 }
 0xbb6   : > { %v1256_v4 = vpop.permute.xlu0 %1255 }
 0xbb7   : > { %vm1299_vm13 = vcmp.eq.f32.partialorder %v1256_v4, %v5708_v1 }
 0xbb8   : > { %vm1322_vm15 = vmand %vm1299_vm13, %vm1311_vm5 }
 0xc15   : > { %v4377_v33 = vpop.f32.mrb[22].mxu0 }
 0xc16   : > { %v5719_v15 = vadd.f32 %v4377_v33, %v1329_v26  ;;  %v4316_v44 = vpop.f32.mrb[18].mxu1  ;;  %v3328_v41 = vpop.f32.mrb[23].mxu0 }
 0xc17   : > { %v5722_v52 = vadd.f32 %v4316_v44, %v1329_v26  ;;  %v5724_v51 = vadd.f32 %v3328_v41, %v1328_v43  ;;  %v2889_v54 = vpop.f32.mrb[19].mxu1  ;;  %v1271_v44 = vpop.permute.xlu1 %1270  ;;  %v1339_v41 = vsel %vm1323_vm14, 0.0, %v4867_v3 }
 0xc18   : > { %3409 = vmax.xlane.f32.xlu0 %v5719_v15  ;;  %v5728_v57 = vadd.f32 %v2889_v54, %v1328_v43  ;;  %vm1302_vm0 = vcmp.eq.f32.partialorder %v1271_v44, %v5708_v1 }
 0xc19   : > { %2970 = vmax.xlane.f32.xlu1 %v5722_v52  ;;  %vm1325_vm3 = vmand %vm1302_vm0, %vm1311_vm5 }
 0xc1b   : > { %v1281_v23 = vpop.permute.xlu1 %1280 }
 0xc1c   : > { %3407 = vmax.xlane.f32.xlu0 %v5724_v51  ;;  %vm1304_vm6 = vcmp.eq.f32.partialorder %v1281_v23, %v5708_v1 }
 0xc1d   : > { %v4380_v22 = vpop.f32.mrb[24].mxu0  ;;  %vm1327_vm8 = vmand %vm1304_vm6, %vm1311_vm5 }
 0xc1e   : > { %v5737_v25 = vadd.f32 %v4380_v22, %v1331_v60  ;;  %v4319_v45 = vpop.f32.mrb[20].mxu1  ;;  %v3338_v61 = vpop.f32.mrb[25].mxu0 }
 0xc1f   : > { %v5741_v50 = vadd.f32 %v4319_v45, %v1331_v60  ;;  %v5743_v20 = vadd.f32 %v3338_v61, %v1330_v37  ;;  %v2899_v49 = vpop.f32.mrb[21].mxu1  ;;  %v1338_v60 = vsel %vm1322_vm15, 0.0, %v4867_v3  ;;  %v1266_v45 = vpop.permute.xlu0 %1265 }
 0xc20   : > { %2968 = vmax.xlane.f32.xlu0 %v5728_v57  ;;  %v5747_v9 = vadd.f32 %v2899_v49, %v1330_v37  ;;  %vm1301_vm1 = vcmp.eq.f32.partialorder %v1266_v45, %v5708_v1 }
 0xc21   : > { %3411 = vmax.xlane.f32.xlu1 %v5743_v20  ;;  %vm1324_vm4 = vmand %vm1301_vm1, %vm1311_vm5 }
 0xc22   : > { %v1340_v30 = vsel %vm1324_vm4, 0.0, %v4867_v3 }
 0xc24   : > { %3413 = vmax.xlane.f32.xlu0 %v5737_v25 }
 0xc25   : > { %v4383_v63 = vpop.f32.mrb[26].mxu0  ;;  %2972 = vmax.xlane.f32.xlu1 %v5747_v9 }
 0xc26   : > { %v5757_v29 = vadd.f32 %v4383_v63, %v1333_v46  ;;  %v4322_v21 = vpop.f32.mrb[22].mxu1  ;;  %v3348_v47 = vpop.f32.mrb[27].mxu0  ;;  %v1341_v63 = vsel %vm1325_vm3, 0.0, %v4867_v3 }
 0xc27   : > { %v5761_v55 = vadd.f32 %v4322_v21, %v1333_v46  ;;  %v5763_v36 = vadd.f32 %v3348_v47, %v1332_v19  ;;  %v2909_v48 = vpop.f32.mrb[23].mxu1  ;;  %v1276_v46 = vpop.permute.xlu0 %1275 }
 0xc28   : > { %v5766_v6 = vadd.f32 %v2909_v48, %v1332_v19  ;;  %2974 = vmax.xlane.f32.xlu0 %v5741_v50  ;;  %vm1303_vm7 = vcmp.eq.f32.partialorder %v1276_v46, %v5708_v1 }
 0xc29   : > { %3415 = vmax.xlane.f32.xlu1 %v5763_v36  ;;  %vm1326_vm9 = vmand %vm1303_vm7, %vm1311_vm5 }
 0xc2c   : > { %3417 = vmax.xlane.f32.xlu0 %v5757_v29 }
 0xc2d   : > { %v4386_v39 = vpop.f32.mrb[28].mxu0  ;;  %2976 = vmax.xlane.f32.xlu1 %v5766_v6 }
 0xc2e   : > { %v5777_v16 = vadd.f32 %v4386_v39, %v1335_v24  ;;  %v4325_v28 = vpop.f32.mrb[24].mxu1  ;;  %v3358_v27 = vpop.f32.mrb[29].mxu0 }
 0xc2f   : > { %v5781_v62 = vadd.f32 %v4325_v28, %v1335_v24  ;;  %v5783_v11 = vadd.f32 %v3358_v27, %v1334_v14  ;;  %v2919_v42 = vpop.f32.mrb[25].mxu1 }
 0xc30   : > { %v5786_v18 = vadd.f32 %v2919_v42, %v1334_v14  ;;  %2978 = vmax.xlane.f32.xlu0 %v5761_v55  ;;  %v1343_v14 = vsel %vm1327_vm8, 0.0, %v4867_v3  ;;  %v1342_v42 = vsel %vm1326_vm9, 0.0, %v4867_v3 }
 0xc31   : > { %3419 = vmax.xlane.f32.xlu1 %v5783_v11 }
 0xc34   : > { %3421 = vmax.xlane.f32.xlu0 %v5777_v16 }
 0xc35   : > { %v4389_v10 = vpop.f32.mrb[30].mxu0  ;;  %2980 = vmax.xlane.f32.xlu1 %v5786_v18 }
 0xc36   : > { %v5797_v58 = vadd.f32 %v4389_v10, %v1337_v31  ;;  %v4328_v40 = vpop.f32.mrb[26].mxu1  ;;  %v3368_v12 = vpop.f32.mrb[31].mxu0 }
 0xc37   : > { %v5801_v26 = vadd.f32 %v4328_v40, %v1337_v31  ;;  %v5803_v43 = vadd.f32 %v3368_v12, %v1336_v34  ;;  %v2929_v53 = vpop.f32.mrb[27].mxu1 }
 0xc38   : > { %v5806_v33 = vadd.f32 %v2929_v53, %v1336_v34  ;;  %2982 = vmax.xlane.f32.xlu0 %v5781_v62 }
 0xc39   : > { %3423 = vmax.xlane.f32.xlu1 %v5803_v43 }
 0xc3c   : > { %3425 = vmax.xlane.f32.xlu0 %v5797_v58 }
 0xc3d   : > { %v4392_v7 = vpop.f32.mrb[32].mxu0  ;;  %2984 = vmax.xlane.f32.xlu1 %v5806_v33 }
 0xc3e   : > { %v5817_v54 = vadd.f32 %v4392_v7, %v1339_v41  ;;  %v4331_v56 = vpop.f32.mrb[28].mxu1  ;;  %v3378_v22 = vpop.f32.mrb[33].mxu0 }
 0xc3f   : > { %v5821_v37 = vadd.f32 %v4331_v56, %v1339_v41  ;;  %v5823_v61 = vadd.f32 %v3378_v22, %v1338_v60  ;;  %v2939_v17 = vpop.f32.mrb[29].mxu1 }
 0xc40   : > { %v5826_v49 = vadd.f32 %v2939_v17, %v1338_v60  ;;  %2986 = vmax.xlane.f32.xlu0 %v5801_v26 }
 0xc41   : > { %3427 = vmax.xlane.f32.xlu1 %v5823_v61 }
 0xc44   : > { %3429 = vmax.xlane.f32.xlu0 %v5817_v54 }
 0xc45   : > { %v4395_v21 = vpop.f32.mrb[34].mxu0  ;;  %2988 = vmax.xlane.f32.xlu1 %v5826_v49 }
 0xc46   : > { %v5837_v19 = vadd.f32 %v4395_v21, %v1341_v63  ;;  %v4334_v47 = vpop.f32.mrb[30].mxu1  ;;  %v3388_v48 = vpop.f32.mrb[35].mxu0 }
 0xc47   : > { %v5841_v59 = vadd.f32 %v4334_v47, %v1341_v63  ;;  %v5843_v24 = vadd.f32 %v3388_v48, %v1340_v30  ;;  %v2949_v39 = vpop.f32.mrb[31].mxu1 }
 0xc48   : > { %v5846_v28 = vadd.f32 %v2949_v39, %v1340_v30  ;;  %2990 = vmax.xlane.f32.xlu0 %v5821_v37 }
 0xc49   : > { %3431 = vmax.xlane.f32.xlu1 %v5843_v24 }
 0xc4c   : > { %3433 = vmax.xlane.f32.xlu0 %v5837_v19 }
 0xc4d   : > { %v4398_v27 = vpop.f32.mrb[36].mxu0  ;;  %2992 = vmax.xlane.f32.xlu1 %v5846_v28 }
 0xc4e   : > { %v5857_v1 = vadd.f32 %v4398_v27, %v1343_v14  ;;  %v4337_v38 = vpop.f32.mrb[32].mxu1  ;;  %v3398_v8 = vpop.f32.mrb[37].mxu0 }
 0xc4f   : > { %v5860_v31 = vadd.f32 %v4337_v38, %v1343_v14  ;;  %v5862_v10 = vadd.f32 %v3398_v8, %v1342_v42  ;;  %v2959_v40 = vpop.f32.mrb[33].mxu1 }
 0xc50   : > { %v5864_v35 = vadd.f32 %v2959_v40, %v1342_v42  ;;  %2994 = vmax.xlane.f32.xlu0 %v5841_v59 }
 0xc52   : > { %2996 = vmax.xlane.f32.xlu1 %v5864_v35 }
 0xc54   : > { %2998 = vmax.xlane.f32.xlu0 %v5860_v31 }
 0xc56   : > { %3435 = vmax.xlane.f32.xlu1 %v5862_v10 }
 0xc58   : > { %3437 = vmax.xlane.f32.xlu0 %v5857_v1 }
 0xca5   : > { %v3410_v34 = vpop.xlane.xlu0 %3409 }
 0xca6   : > { %v3440_v3 = vsub.f32 %v5719_v15, %v3410_v34  ;;  %v2971_v12 = vpop.xlane.xlu1 %2970 }
 0xca7   : > { %v3001_v4 = vsub.f32 %v5722_v52, %v2971_v12 }
 0xca8   : > { %v3457_v53 = vmul.f32 1.442695, %v3440_v3 }
 0xca9   : > { %v3018_v44 = vmul.f32 1.442695, %v3001_v4  ;;  %v3408_v41 = vpop.xlane.xlu0 %3407 }
 0xcaa   : > { %4702 = vpow2.f32 %v3457_v53  ;;  %v3439_v7 = vsub.f32 %v5724_v51, %v3408_v41 }
 0xcab   : > { %4704 = vpow2.f32 %v3018_v44 }
 0xcac   : > { %v3455_v56 = vmul.f32 1.442695, %v3439_v7 }
 0xcad   : > { %v2969_v60 = vpop.xlane.xlu0 %2968 }
 0xcae   : > { %4706 = vpow2.f32 %v3455_v56  ;;  %v3000_v22 = vsub.f32 %v5728_v57, %v2969_v60  ;;  %v3412_v45 = vpop.xlane.xlu1 %3411 }
 0xcaf   : > { %v3441_v17 = vsub.f32 %v5743_v20, %v3412_v45 }
 0xcb0   : > { %v3016_v23 = vmul.f32 1.442695, %v3000_v22 }
 0xcb1   : > { %v3459_v15 = vmul.f32 1.442695, %v3441_v17  ;;  %v3414_v46 = vpop.xlane.xlu0 %3413 }
 0xcb2   : > { %4708 = vpow2.f32 %v3016_v23  ;;  %v3442_v52 = vsub.f32 %v5737_v25, %v3414_v46  ;;  %v2973_v63 = vpop.xlane.xlu1 %2972 }
 0xcb3   : > { %v3002_v21 = vsub.f32 %v5747_v9, %v2973_v63  ;;  %4710 = vpow2.f32 %v3459_v15 }
 0xcb4   : > { %v5878_v47 = vpop.eup %4702  ;;  %v3461_v51 = vmul.f32 1.442695, %v3442_v52 }
 0xcb5   : > { %v3020_v30 = vmul.f32 1.442695, %v3002_v21  ;;  %3489 = vadd.xlane.f32.xlu0 %v5878_v47  ;;  %v2975_v57 = vpop.xlane.xlu0 %2974  ;;  %v5882_v39 = vpop.eup %4704 }
 0xcb6   : > { %4712 = vpow2.f32 %v3461_v51  ;;  %v3003_v20 = vsub.f32 %v5741_v50, %v2975_v57  ;;  %v3416_v48 = vpop.xlane.xlu1 %3415 }
 0xcb7   : > { %v3443_v14 = vsub.f32 %v5763_v36, %v3416_v48  ;;  %4714 = vpow2.f32 %v3020_v30 }
 0xcb8   : > { %v5885_v25 = vpop.eup %4706  ;;  %v3022_v27 = vmul.f32 1.442695, %v3003_v20 }
 0xcb9   : > { %v3463_v9 = vmul.f32 1.442695, %v3443_v14  ;;  %3050 = vadd.xlane.f32.xlu0 %v5882_v39  ;;  %3487 = vadd.xlane.f32.xlu1 %v5885_v25  ;;  %v3418_v38 = vpop.xlane.xlu0 %3417 }
 0xcba   : > { %4716 = vpow2.f32 %v3022_v27  ;;  %v3444_v42 = vsub.f32 %v5757_v29, %v3418_v38  ;;  %v2977_v8 = vpop.xlane.xlu1 %2976 }
 0xcbb   : > { %v3004_v50 = vsub.f32 %v5766_v6, %v2977_v8  ;;  %4718 = vpow2.f32 %v3463_v9 }
 0xcbc   : > { %v5891_v40 = vpop.eup %4708  ;;  %v3465_v34 = vmul.f32 1.442695, %v3444_v42 }
 0xcbd   : > { %v3024_v36 = vmul.f32 1.442695, %v3004_v50  ;;  %3048 = vadd.xlane.f32.xlu1 %v5891_v40  ;;  %v2979_v3 = vpop.xlane.xlu0 %2978  ;;  %v5895_v53 = vpop.eup %4710 }
 0xcbe   : > { %4720 = vpow2.f32 %v3465_v34  ;;  %v3005_v12 = vsub.f32 %v5761_v55, %v2979_v3  ;;  %v3420_v4 = vpop.xlane.xlu1 %3419 }
 0xcbf   : > { %v3445_v44 = vsub.f32 %v5783_v11, %v3420_v4  ;;  %4722 = vpow2.f32 %v3024_v36 }
 0xcc0   : > { %v5898_v29 = vpop.eup %4712  ;;  %v3026_v41 = vmul.f32 1.442695, %v3005_v12 }
 0xcc1   : > { %v3467_v6 = vmul.f32 1.442695, %v3445_v44  ;;  %3491 = vadd.xlane.f32.xlu1 %v5895_v53  ;;  %3493 = vadd.xlane.f32.xlu0 %v5898_v29  ;;  %v3422_v7 = vpop.xlane.xlu0 %3421  ;;  %v5903_v55 = vpop.eup %4714 }
 0xcc2   : > { %4724 = vpow2.f32 %v3026_v41  ;;  %v3446_v56 = vsub.f32 %v5777_v16, %v3422_v7  ;;  %v2981_v60 = vpop.xlane.xlu1 %2980 }
 0xcc3   : > { %v3006_v22 = vsub.f32 %v5786_v18, %v2981_v60  ;;  %4726 = vpow2.f32 %v3467_v6 }
 0xcc4   : > { %v5906_v45 = vpop.eup %4716  ;;  %v3469_v11 = vmul.f32 1.442695, %v3446_v56 }
 0xcc5   : > { %v3028_v17 = vmul.f32 1.442695, %v3006_v22  ;;  %3052 = vadd.xlane.f32.xlu1 %v5903_v55  ;;  %3054 = vadd.xlane.f32.xlu0 %v5906_v45  ;;  %v2983_v23 = vpop.xlane.xlu0 %2982  ;;  %v5911_v16 = vpop.eup %4718 }
 0xcc6   : > { %4728 = vpow2.f32 %v3469_v11  ;;  %v3007_v15 = vsub.f32 %v5781_v62, %v2983_v23  ;;  %v3424_v46 = vpop.xlane.xlu1 %3423 }
 0xcc7   : > { %v3447_v52 = vsub.f32 %v5803_v43, %v3424_v46  ;;  %4730 = vpow2.f32 %v3028_v17 }
 0xcc8   : > { %v5914_v63 = vpop.eup %4720  ;;  %v3030_v18 = vmul.f32 1.442695, %v3007_v15 }
 0xcc9   : > { %v3471_v21 = vmul.f32 1.442695, %v3447_v52  ;;  %3495 = vadd.xlane.f32.xlu1 %v5911_v16  ;;  %3497 = vadd.xlane.f32.xlu0 %v5914_v63  ;;  %v3426_v51 = vpop.xlane.xlu0 %3425  ;;  %v5919_v62 = vpop.eup %4722 }
 0xcca   : > { %4732 = vpow2.f32 %v3030_v18  ;;  %v3448_v30 = vsub.f32 %v5797_v58, %v3426_v51  ;;  %v2985_v57 = vpop.xlane.xlu1 %2984 }
 0xccb   : > { %v3008_v20 = vsub.f32 %v5806_v33, %v2985_v57  ;;  %4734 = vpow2.f32 %v3471_v21 }
 0xccc   : > { %v5922_v48 = vpop.eup %4724  ;;  %v3473_v43 = vmul.f32 1.442695, %v3448_v30 }
 0xccd   : > { %v3032_v14 = vmul.f32 1.442695, %v3008_v20  ;;  %3056 = vadd.xlane.f32.xlu1 %v5919_v62  ;;  %3058 = vadd.xlane.f32.xlu0 %v5922_v48  ;;  %v2987_v27 = vpop.xlane.xlu0 %2986  ;;  %v5927_v58 = vpop.eup %4726 }
 0xcce   : > { %4736 = vpow2.f32 %v3473_v43  ;;  %v3009_v9 = vsub.f32 %v5801_v26, %v2987_v27  ;;  %v3428_v38 = vpop.xlane.xlu1 %3427 }
 0xccf   : > { %v3449_v42 = vsub.f32 %v5823_v61, %v3428_v38  ;;  %4738 = vpow2.f32 %v3032_v14 }
 0xcd0   : > { %v5930_v8 = vpop.eup %4728  ;;  %v3034_v33 = vmul.f32 1.442695, %v3009_v9 }
 0xcd1   : > { %v3475_v50 = vmul.f32 1.442695, %v3449_v42  ;;  %3499 = vadd.xlane.f32.xlu1 %v5927_v58  ;;  %3501 = vadd.xlane.f32.xlu0 %v5930_v8  ;;  %v3430_v34 = vpop.xlane.xlu0 %3429  ;;  %v5935_v26 = vpop.eup %4730 }
 0xcd2   : > { %4740 = vpow2.f32 %v3034_v33  ;;  %v3450_v36 = vsub.f32 %v5817_v54, %v3430_v34  ;;  %v2989_v3 = vpop.xlane.xlu1 %2988 }
 0xcd3   : > { %v3010_v12 = vsub.f32 %v5826_v49, %v2989_v3  ;;  %4742 = vpow2.f32 %v3475_v50 }
 0xcd4   : > { %v5938_v4 = vpop.eup %4732  ;;  %v3477_v61 = vmul.f32 1.442695, %v3450_v36 }
 0xcd5   : > { %v3036_v44 = vmul.f32 1.442695, %v3010_v12  ;;  %3060 = vadd.xlane.f32.xlu1 %v5935_v26  ;;  %3062 = vadd.xlane.f32.xlu0 %v5938_v4  ;;  %v2991_v41 = vpop.xlane.xlu0 %2990  ;;  %v5943_v54 = vpop.eup %4734 }
 0xcd6   : > { %4744 = vpow2.f32 %v3477_v61  ;;  %v3011_v6 = vsub.f32 %v5821_v37, %v2991_v41  ;;  %v3432_v7 = vpop.xlane.xlu1 %3431  ;;  %v4868_v41 = vmov 14  }
 0xcd7   : > { %v3451_v56 = vsub.f32 %v5843_v24, %v3432_v7  ;;  %4746 = vpow2.f32 %v3036_v44  ;;  %4662 = vset.pattern.permute.xlu1 %v4868_v41  ;;  %4663 = vset.pattern.permute.xlu0 %v4868_v41  ;;  %v6008_v7 = vld [vmem:[%s6115_s14 + $0x8] sm:$0xff] }
 0xcd8   : > { %v5946_v60 = vpop.eup %4736  ;;  %v3038_v49 = vmul.f32 1.442695, %v3011_v6  ;;  %v6002_v6 = vld [vmem:[%s6115_s14] sm:$0xff] }
 0xcd9   : > { %v3479_v22 = vmul.f32 1.442695, %v3451_v56  ;;  %3503 = vadd.xlane.f32.xlu1 %v5943_v54  ;;  %3505 = vadd.xlane.f32.xlu0 %v5946_v60  ;;  %v3434_v11 = vpop.xlane.xlu0 %3433  ;;  %v5951_v37 = vpop.eup %4738  ;;  %v4869_v56 = vmov 15  }
 0xcda   : > { %4748 = vpow2.f32 %v3038_v49  ;;  %v3452_v17 = vsub.f32 %v5837_v19, %v3434_v11  ;;  %v2993_v23 = vpop.xlane.xlu1 %2992 }
 0xcdb   : > { %v3012_v15 = vsub.f32 %v5846_v28, %v2993_v23  ;;  %4750 = vpow2.f32 %v3479_v22 }
 0xcdc   : > { %v5954_v46 = vpop.eup %4740  ;;  %v3481_v24 = vmul.f32 1.442695, %v3452_v17 }
 0xcdd   : > { %v3040_v52 = vmul.f32 1.442695, %v3012_v15  ;;  %3064 = vadd.xlane.f32.xlu1 %v5951_v37  ;;  %3066 = vadd.xlane.f32.xlu0 %v5954_v46  ;;  %v2995_v18 = vpop.xlane.xlu0 %2994  ;;  %v5959_v51 = vpop.eup %4742 }
 0xcde   : > { %4752 = vpow2.f32 %v3481_v24  ;;  %v3013_v21 = vsub.f32 %v5841_v59, %v2995_v18 }
 0xcdf   : > { %v2997_v19 = vpop.xlane.xlu1 %2996  ;;  %4754 = vpow2.f32 %v3040_v52 }
 0xce0   : > { %v5961_v30 = vpop.eup %4744  ;;  %v3042_v57 = vmul.f32 1.442695, %v3013_v21  ;;  %v3014_v28 = vsub.f32 %v5864_v35, %v2997_v19 }
 0xce1   : > { %3507 = vadd.xlane.f32.xlu1 %v5959_v51  ;;  %3509 = vadd.xlane.f32.xlu0 %v5961_v30  ;;  %v2999_v20 = vpop.xlane.xlu0 %2998  ;;  %v5967_v27 = vpop.eup %4746 }
 0xce2   : > { %4756 = vpow2.f32 %v3042_v57  ;;  %v3044_v43 = vmul.f32 1.442695, %v3014_v28  ;;  %v3015_v14 = vsub.f32 %v5860_v31, %v2999_v20 }
 0xce3   : > { %v3436_v59 = vpop.xlane.xlu1 %3435 }
 0xce4   : > { %v5969_v9 = vpop.eup %4748  ;;  %v3046_v38 = vmul.f32 1.442695, %v3015_v14  ;;  %v3453_v42 = vsub.f32 %v5862_v10, %v3436_v59  ;;  %4758 = vpow2.f32 %v3044_v43 }
 0xce5   : > { %3068 = vadd.xlane.f32.xlu1 %v5967_v27  ;;  %3070 = vadd.xlane.f32.xlu0 %v5969_v9  ;;  %v3438_v35 = vpop.xlane.xlu0 %3437  ;;  %v5975_v34 = vpop.eup %4750 }
 0xce6   : > { %4760 = vpow2.f32 %v3046_v38  ;;  %v3483_v33 = vmul.f32 1.442695, %v3453_v42  ;;  %v3454_v50 = vsub.f32 %v5857_v1, %v3438_v35 }
 0xce8   : > { %v5977_v31 = vpop.eup %4752  ;;  %v3485_v36 = vmul.f32 1.442695, %v3454_v50  ;;  %4762 = vpow2.f32 %v3483_v33 }
 0xce9   : > { %3511 = vadd.xlane.f32.xlu1 %v5975_v34  ;;  %3513 = vadd.xlane.f32.xlu0 %v5977_v31  ;;  %v5981_v10 = vpop.eup %4754 }
 0xcea   : > { %4764 = vpow2.f32 %v3485_v36 }
 0xcec   : > { %v5983_v3 = vpop.eup %4756 }
 0xced   : > { %3072 = vadd.xlane.f32.xlu1 %v5981_v10  ;;  %3074 = vadd.xlane.f32.xlu0 %v5983_v3 }
 0xcee   : > { %v5987_v1 = vpop.eup %4758 }
 0xcf0   : > { %v5989_v12 = vpop.eup %4760 }
 0xcf1   : > { %3076 = vadd.xlane.f32.xlu1 %v5987_v1  ;;  %3078 = vadd.xlane.f32.xlu0 %v5989_v12 }
 0xcf2   : > { %v5993_v61 = vpop.eup %4762 }
 0xcf4   : > { %v5995_v44 = vpop.eup %4764 }
 0xcf5   : > { %3515 = vadd.xlane.f32.xlu1 %v5993_v61  ;;  %3517 = vadd.xlane.f32.xlu0 %v5995_v44 }
 0xd06   : > { %3648 = vperm.xlu1 %4662, %v6002_v6  }
 0xd0a   : > { %4664 = vset.pattern.permute.xlu1 %v4869_v56 }
 0xd0b   : > { %3652 = vperm.xlu0 %4663, %v6008_v7   ;;  %3658 = vperm.xlu1 %4664, %v6002_v6  }
 0xd0f   : > { %3662 = vperm.xlu1 %4664, %v6008_v7  }
 0xd42   : > { %v3490_v49 = vpop.xlane.xlu0 %3489 }
 0xd43   : > { %4766 = vrcp.f32 %v3490_v49 }
 0xd46   : > { %v3488_v22 = vpop.xlane.xlu1 %3487  ;;  %v3051_v11 = vpop.xlane.xlu0 %3050 }
 0xd47   : > { %4768 = vrcp.f32 %v3488_v22 }
 0xd48   : > { %4770 = vrcp.f32 %v3051_v11 }
 0xd4a   : > { %v3049_v17 = vpop.xlane.xlu1 %3048 }
 0xd4b   : > { %4772 = vrcp.f32 %v3049_v17 }
 0xd4d   : > { %v4767_v24 = vpop.eup %4766 }
 0xd4e   : > { %v3492_v23 = vpop.xlane.xlu1 %3491  ;;  %v3494_v15 = vpop.xlane.xlu0 %3493  ;;  %v3536_v57 = vmul.f32 %v4767_v24, %v5878_v47 }
 0xd4f   : > { %4774 = vrcp.f32 %v3492_v23 }
 0xd50   : > { %4776 = vrcp.f32 %v3494_v15 }
 0xd51   : > { %v4769_v52 = vpop.eup %4768 }
 0xd52   : > { %v3053_v18 = vpop.xlane.xlu1 %3052  ;;  %v3055_v21 = vpop.xlane.xlu0 %3054  ;;  %v3535_v19 = vmul.f32 %v4769_v52, %v5885_v25 }
 0xd53   : > { %v4771_v28 = vpop.eup %4770  ;;  %4778 = vrcp.f32 %v3053_v18 }
 0xd54   : > { %4780 = vrcp.f32 %v3055_v21  ;;  %v4517_v20 = vpack.c.bf16 %v3536_v57, %v3535_v19  ;;  %v3097_v42 = vmul.f32 %v4771_v28, %v5882_v39 }
 0xd55   : > { %v4773_v43 = vpop.eup %4772 }
 0xd56   : > { %v3496_v14 = vpop.xlane.xlu1 %3495  ;;  %4518 = vmatpush3.bf16.xpose.msra.mxu0 %v4517_v20  ;;  %v3498_v59 = vpop.xlane.xlu0 %3497  ;;  %v3096_v38 = vmul.f32 %v4773_v43, %v5891_v40 }
 0xd57   : > { %4782 = vrcp.f32 %v3496_v14  ;;  %4519 = vmatprep.subr.bf16.mxu0 %v4844_v0 }
 0xd58   : > { %4784 = vrcp.f32 %v3498_v59  ;;  %v4493_v35 = vpack.c.bf16 %v3097_v42, %v3096_v38 }
 0xd59   : > { %v4775_v25 = vpop.eup %4774 }
 0xd5a   : > { %v4777_v33 = vpop.eup %4776  ;;  %v3057_v47 = vpop.xlane.xlu1 %3056  ;;  %4494 = vmatpush3.bf16.xpose.msra.mxu1 %v4493_v35  ;;  %v3537_v36 = vmul.f32 %v4775_v25, %v5895_v53 }
 0xd5b   : > { %v3059_v50 = vpop.xlane.xlu0 %3058  ;;  %4786 = vrcp.f32 %v3057_v47  ;;  %v3538_v41 = vmul.f32 %v4777_v33, %v5898_v29  ;;  %4495 = vmatprep.subr.bf16.mxu1 %v4844_v0 }
 0xd5c   : > { %4788 = vrcp.f32 %v3059_v50 }
 0xd5d   : > { %v4779_v40 = vpop.eup %4778  ;;  %v4520_v39 = vpack.c.bf16 %v3538_v41, %v3537_v36 }
 0xd5e   : > { %v4781_v56 = vpop.eup %4780  ;;  %v3500_v49 = vpop.xlane.xlu1 %3499  ;;  %v3098_v11 = vmul.f32 %v4779_v40, %v5903_v55 }
 0xd5f   : > { %v3502_v22 = vpop.xlane.xlu0 %3501  ;;  %4790 = vrcp.f32 %v3500_v49  ;;  %4521 = vmatpush3.bf16.xpose.msra.mxu0 %v4520_v39  ;;  %v3099_v17 = vmul.f32 %v4781_v56, %v5906_v45 }
 0xd60   : > { %4792 = vrcp.f32 %v3502_v22  ;;  %4522 = vmatprep.subr.bf16.mxu0 %v4844_v0 }
 0xd61   : > { %v4783_v53 = vpop.eup %4782  ;;  %v4496_v23 = vpack.c.bf16 %v3099_v17, %v3098_v11 }
 0xd62   : > { %v4785_v29 = vpop.eup %4784  ;;  %v3061_v15 = vpop.xlane.xlu1 %3060  ;;  %v3539_v52 = vmul.f32 %v4783_v53, %v5911_v16 }
 0xd63   : > { %v3063_v24 = vpop.xlane.xlu0 %3062  ;;  %4794 = vrcp.f32 %v3061_v15  ;;  %4497 = vmatpush3.bf16.xpose.msra.mxu1 %v4496_v23  ;;  %v3540_v18 = vmul.f32 %v4785_v29, %v5914_v63 }
 0xd64   : > { %4796 = vrcp.f32 %v3063_v24  ;;  %4498 = vmatprep.subr.bf16.mxu1 %v4844_v0 }
 0xd65   : > { %v4787_v55 = vpop.eup %4786  ;;  %v4523_v21 = vpack.c.bf16 %v3540_v18, %v3539_v52 }
 0xd66   : > { %v4789_v45 = vpop.eup %4788  ;;  %v3504_v19 = vpop.xlane.xlu1 %3503  ;;  %v3100_v28 = vmul.f32 %v4787_v55, %v5919_v62 }
 0xd67   : > { %v3506_v57 = vpop.xlane.xlu0 %3505  ;;  %4798 = vrcp.f32 %v3504_v19  ;;  %4524 = vmatpush3.bf16.xpose.msra.mxu0 %v4523_v21  ;;  %v3101_v20 = vmul.f32 %v4789_v45, %v5922_v48 }
 0xd68   : > { %4800 = vrcp.f32 %v3506_v57  ;;  %4525 = vmatprep.subr.bf16.mxu0 %v4844_v0 }
 0xd69   : > { %v4791_v16 = vpop.eup %4790  ;;  %v4499_v43 = vpack.c.bf16 %v3101_v20, %v3100_v28 }
 0xd6a   : > { %v4793_v63 = vpop.eup %4792  ;;  %v3065_v14 = vpop.xlane.xlu1 %3064  ;;  %v3541_v38 = vmul.f32 %v4791_v16, %v5927_v58 }
 0xd6b   : > { %v3067_v59 = vpop.xlane.xlu0 %3066  ;;  %4802 = vrcp.f32 %v3065_v14  ;;  %4500 = vmatpush3.bf16.xpose.msra.mxu1 %v4499_v43  ;;  %v3542_v42 = vmul.f32 %v4793_v63, %v5930_v8 }
 0xd6c   : > { %4804 = vrcp.f32 %v3067_v59  ;;  %4501 = vmatprep.subr.bf16.mxu1 %v4844_v0 }
 0xd6d   : > { %v4795_v62 = vpop.eup %4794  ;;  %v4526_v35 = vpack.c.bf16 %v3542_v42, %v3541_v38 }
 0xd6e   : > { %v4797_v48 = vpop.eup %4796  ;;  %v3508_v25 = vpop.xlane.xlu1 %3507  ;;  %v3102_v47 = vmul.f32 %v4795_v62, %v5935_v26 }
 0xd6f   : > { %v3510_v33 = vpop.xlane.xlu0 %3509  ;;  %4806 = vrcp.f32 %v3508_v25  ;;  %4527 = vmatpush3.bf16.xpose.msra.mxu0 %v4526_v35  ;;  %v3103_v50 = vmul.f32 %v4797_v48, %v5938_v4 }
 0xd70   : > { %4808 = vrcp.f32 %v3510_v33  ;;  %4528 = vmatprep.subr.bf16.mxu0 %v4844_v0 }
 0xd71   : > { %v4799_v58 = vpop.eup %4798  ;;  %v4502_v36 = vpack.c.bf16 %v3103_v50, %v3102_v47 }
 0xd72   : > { %v4801_v8 = vpop.eup %4800  ;;  %v3069_v41 = vpop.xlane.xlu1 %3068  ;;  %v3543_v39 = vmul.f32 %v4799_v58, %v5943_v54 }
 0xd73   : > { %v3071_v40 = vpop.xlane.xlu0 %3070  ;;  %4810 = vrcp.f32 %v3069_v41  ;;  %4503 = vmatpush3.bf16.xpose.msra.mxu1 %v4502_v36  ;;  %v3544_v56 = vmul.f32 %v4801_v8, %v5946_v60 }
 0xd74   : > { %4812 = vrcp.f32 %v3071_v40  ;;  %4504 = vmatprep.subr.bf16.mxu1 %v4844_v0 }
 0xd75   : > { %v4803_v26 = vpop.eup %4802  ;;  %v4529_v49 = vpack.c.bf16 %v3544_v56, %v3543_v39 }
 0xd76   : > { %v4805_v4 = vpop.eup %4804  ;;  %v3512_v22 = vpop.xlane.xlu1 %3511  ;;  %v3104_v17 = vmul.f32 %v4803_v26, %v5951_v37 }
 0xd77   : > { %v3514_v11 = vpop.xlane.xlu0 %3513  ;;  %4814 = vrcp.f32 %v3512_v22  ;;  %4530 = vmatpush3.bf16.xpose.msra.mxu0 %v4529_v49  ;;  %v3105_v53 = vmul.f32 %v4805_v4, %v5954_v46 }
 0xd78   : > { %4816 = vrcp.f32 %v3514_v11  ;;  %4531 = vmatprep.subr.bf16.mxu0 %v4844_v0 }
 0xd79   : > { %v4807_v54 = vpop.eup %4806  ;;  %v4505_v23 = vpack.c.bf16 %v3105_v53, %v3104_v17 }
 0xd7a   : > { %v4809_v60 = vpop.eup %4808  ;;  %v3073_v29 = vpop.xlane.xlu1 %3072  ;;  %v3545_v24 = vmul.f32 %v4807_v54, %v5959_v51 }
 0xd7b   : > { %v3075_v15 = vpop.xlane.xlu0 %3074  ;;  %4818 = vrcp.f32 %v3073_v29  ;;  %4506 = vmatpush3.bf16.xpose.msra.mxu1 %v4505_v23  ;;  %v3546_v52 = vmul.f32 %v4809_v60, %v5961_v30 }
 0xd7c   : > { %4820 = vrcp.f32 %v3075_v15  ;;  %4507 = vmatprep.subr.bf16.mxu1 %v4844_v0 }
 0xd7d   : > { %v4811_v37 = vpop.eup %4810  ;;  %v4532_v18 = vpack.c.bf16 %v3546_v52, %v3545_v24 }
 0xd7e   : > { %v4813_v46 = vpop.eup %4812  ;;  %v3077_v55 = vpop.xlane.xlu1 %3076  ;;  %v3106_v45 = vmul.f32 %v4811_v37, %v5967_v27 }
 0xd7f   : > { %v3079_v21 = vpop.xlane.xlu0 %3078  ;;  %4822 = vrcp.f32 %v3077_v55  ;;  %4533 = vmatpush3.bf16.xpose.msra.mxu0 %v4532_v18  ;;  %v3107_v19 = vmul.f32 %v4813_v46, %v5969_v9 }
 0xd80   : > { %4824 = vrcp.f32 %v3079_v21  ;;  %4534 = vmatprep.subr.bf16.mxu0 %v4844_v0 }
 0xd81   : > { %v4815_v51 = vpop.eup %4814  ;;  %v4508_v57 = vpack.c.bf16 %v3107_v19, %v3106_v45 }
 0xd82   : > { %v4817_v30 = vpop.eup %4816  ;;  %v3516_v28 = vpop.xlane.xlu1 %3515  ;;  %v3547_v16 = vmul.f32 %v4815_v51, %v5975_v34 }
 0xd83   : > { %v3518_v20 = vpop.xlane.xlu0 %3517  ;;  %4826 = vrcp.f32 %v3516_v28  ;;  %4509 = vmatpush3.bf16.xpose.msra.mxu1 %v4508_v57  ;;  %v3548_v43 = vmul.f32 %v4817_v30, %v5977_v31  ;;  %v1390_v30 = vld [vmem:[%s6113_s12 + $0x78] sm:$0xff]  ;;  %v1391_v28 = vld [vmem:[%s6113_s12 + $0x80] sm:$0xff] }
 0xd84   : > { %4828 = vrcp.f32 %v3518_v20  ;;  %4510 = vmatprep.subr.bf16.mxu1 %v4844_v0  ;;  %v4871_v20 = vmov 17  }
 0xd85   : > { %v4819_v27 = vpop.eup %4818  ;;  %v4535_v63 = vpack.c.bf16 %v3548_v43, %v3547_v16  ;;  %4667 = vset.pattern.permute.xlu0 %v4871_v20 }
 0xd86   : > { %v4821_v9 = vpop.eup %4820  ;;  %v3108_v14 = vmul.f32 %v4819_v27, %v5981_v10  ;;  %v3649_v15 = vpop.permute.xlu1 %3648 }
 0xd87   : > { %4536 = vmatpush3.bf16.xpose.msra.mxu0 %v4535_v63  ;;  %v3109_v59 = vmul.f32 %v4821_v9, %v5983_v3 }
 0xd88   : > { %4537 = vmatprep.subr.bf16.mxu0 %v4844_v0 }
 0xd89   : > { %v4823_v38 = vpop.eup %4822  ;;  %v4511_v42 = vpack.c.bf16 %v3109_v59, %v3108_v14 }
 0xd8a   : > { %v4825_v34 = vpop.eup %4824  ;;  %v3110_v62 = vmul.f32 %v4823_v38, %v5987_v1  ;;  %v4870_v1 = vmov 16   ;;  %v3659_v24 = vpop.permute.xlu1 %3658 }
 0xd8b   : > { %4512 = vmatpush3.bf16.xpose.msra.mxu1 %v4511_v42  ;;  %v3111_v35 = vmul.f32 %v4825_v34, %v5989_v12  ;;  %4665 = vset.pattern.permute.xlu1 %v4870_v1  ;;  %v3653_v37 = vpop.permute.xlu0 %3652  ;;  %v1392_v34 = vld [vmem:[%s6113_s12 + $0x88] sm:$0xff] }
 0xd8c   : > { %4513 = vmatprep.subr.bf16.mxu1 %v4844_v0  ;;  %v1389_v0 = vld [vmem:[%s6113_s12 + $0x70] sm:$0xff]  ;;  %3668 = vperm.xlu1 %4665, %v6002_v6  }
 0xd8d   : > { %v4827_v31 = vpop.eup %4826  ;;  %v4514_v33 = vpack.c.bf16 %v3111_v35, %v3110_v62 }
 0xd8e   : > { %v4829_v48 = vpop.eup %4828  ;;  %v3549_v25 = vmul.f32 %v4827_v31, %v5993_v61  ;;  %v3663_v45 = vpop.permute.xlu1 %3662 }
 0xd8f   : > { %v3550_v10 = vmul.f32 %v4829_v48, %v5995_v44 }
 0xd90   : > { %3672 = vperm.xlu1 %4665, %v6008_v7  }
 0xd91   : > { %v4538_v3 = vpack.c.bf16 %v3550_v10, %v3549_v25 }
 0xd93   : > { %4515 = vmatpush3.bf16.xpose.msra.mxu1 %v4514_v33  ;;  %4539 = vmatpush3.bf16.xpose.msra.mxu0 %v4538_v3 }
 0xd94   : > { %4666 = vset.pattern.permute.xlu1 %v4871_v20 }
 0xd95   : > { %3759 = vperm.xlu1 %4666, %v6002_v6  }
 0xd99   : > { %3763 = vperm.xlu1 %4666, %v6008_v7  }
 0xd9a   : > { %4371 = vmatmul.mubr.f32.vlgmr.msra.gmra.mrb[34].mxu1 %v5693_v5  ;;  %4432 = vmatmul.mubr.f32.vlgmr.msra.gmra.mrb[38].mxu0 %v5691_v2 }
 0xd9b   : > { %4438 = vmatprep.mubr.msk.f32.mxu1 %vm1584_vm2, %v1389_v0 }
 0xe0b   : > { %v3669_v16 = vpop.permute.xlu1 %3668 }
 0xe0f   : > { %v3673_v27 = vpop.permute.xlu1 %3672 }
 0xe14   : > { %v3760_v6 = vpop.permute.xlu1 %3759 }
 0xe18   : > { %v3764_v7 = vpop.permute.xlu1 %3763 }
 0xe6d   : > { %v3178_v12 = vpop.f32.mrb[34].mxu1  ;;  %v3617_v61 = vpop.f32.mrb[38].mxu0 }
 0xe6e   : > { %v6068_v44 = vadd.f32 %v3178_v12, %v5607_v32  ;;  %v6071_v5 = vadd.f32 %v3617_v61, %v5604_v13  ;;  %v4372_v2 = vpop.f32.mrb[35].mxu1  ;;  %v4433_v47 = vpop.f32.mrb[39].mxu0 }
 0xe70   : > { %v3623_v50 = vadd.f32 %v6071_v5, %v6068_v44 }
 0xe72   : > { %v3624_v58 = vrot.slane %v3623_v50, 4 }
 0xe74   : > { %v3625_v36 = vadd.f32 %v3624_v58, %v3623_v50 }
 0xe76   : > { %v3626_v8 = vrot.slane %v3625_v36, 2 }
 0xe78   : > { %v3627_v41 = vadd.f32 %v3626_v8, %v3625_v36 }
 0xe7a   : > { %v3628_v40 = vrot.slane %v3627_v41, 1 }
 0xe7c   : > { %v3629_v39 = vadd.f32 %v3628_v40, %v3627_v41 }
 0xe7e   : > { %v3630_v56 = vmul.f32 0.0625, %v3629_v39 }
 0xe80   : > { %v3632_v26 = vsub.f32 %v6071_v5, %v3630_v56  ;;  %v3631_v32 = vsub.f32 %v6068_v44, %v3630_v56 }
 0xe82   : > { %v3634_v49 = vmul.f32 %v3632_v26, %v3632_v26  ;;  %v3633_v4 = vmul.f32 %v3631_v32, %v3631_v32 }
 0xe84   : > { %v3635_v13 = vadd.f32 %v3634_v49, %v3633_v4 }
 0xe86   : > { %v3636_v22 = vrot.slane %v3635_v13, 4 }
 0xe88   : > { %v3637_v11 = vadd.f32 %v3636_v22, %v3635_v13 }
 0xe8a   : > { %v3638_v17 = vrot.slane %v3637_v11, 2 }
 0xe8c   : > { %v3639_v53 = vadd.f32 %v3638_v17, %v3637_v11 }
 0xe8e   : > { %v3640_v54 = vrot.slane %v3639_v53, 1 }
 0xe90   : > { %v3641_v23 = vadd.f32 %v3640_v54, %v3639_v53 }
 0xe92   : > { %v3642_v60 = vmul.f32 0.0625, %v3641_v23 }
 0xe94   : > { %v3643_v29 = vadd.f32 1e-05, %v3642_v60 }
 0xe96   : > { %4830 = vrsqrt.f32 %v3643_v29 }
 0xea0   : > { %v4831_v52 = vpop.eup %4830 }
 0xea1   : > { %v3645_v18 = vmul.f32 %v4831_v52, %v3631_v32  ;;  %v3646_v46 = vmul.f32 %v4831_v52, %v3632_v26 }
 0xea3   : > { %v3655_v55 = vmul.f32 %v3649_v15, %v3645_v18  ;;  %v3656_v21 = vmul.f32 %v3653_v37, %v3646_v46 }
 0xea5   : > { %v3665_v19 = vadd.f32 %v3659_v24, %v3655_v55  ;;  %v3666_v51 = vadd.f32 %v3663_v45, %v3656_v21 }
 0xea7   : > { %v4540_v57 = vpack.c.bf16 %v3666_v51, %v3665_v19 }
 0xea9   : > { %4541 = vmatprep.subr.bf16.mxu1 %v4540_v57 }
 0xeaa   : > { %4543 = vmatpush3.bf16.msra.mxu1 %v4540_v57 }
 0xead   : > { %4439 = vmatmul.mubr.msk.f32.vlgmr.msra.gmra.mrb[36].mxu1 %vm1584_vm2, %v1390_v30 }
 0xeae   : > { %4445 = vmatprep.mubr.msk.f32.mxu1 %vm1584_vm2, %v1391_v28 }
 0xf80   : > { %v4440_v43 = vpop.f32.mrb[36].mxu1 }
 0xf81   : > { %v3753_v63 = vadd.f32 %v4440_v43, %v3673_v27  ;;  %v3747_v9 = vpop.f32.mrb[37].mxu1 }
 0xf82   : > { %v3748_v14 = vadd.f32 %v3747_v9, %v3669_v16 }
 0xf83   : > { %v3757_v59 = vmax.f32 %v3753_v63, 0.0 }
 0xf84   : > { %v3756_v38 = vmax.f32 %v3748_v14, 0.0 }
 0xf86   : > { %v4544_v42 = vpack.c.bf16 %v3757_v59, %v3756_v38 }
 0xf88   : > { %4545 = vmatprep.subr.bf16.mxu1 %v4544_v42 }
 0xf89   : > { %4547 = vmatpush3.bf16.msra.mxu1 %v4544_v42 }
 0xf8c   : > { %4446 = vmatmul.mubr.msk.f32.vlgmr.msra.gmra.mrb[38].mxu1 %vm1584_vm2, %v1392_v34 }
0x105f   : > { %v4447_v31 = vpop.f32.mrb[38].mxu1 }
0x1060   : > { %v3844_v62 = vadd.f32 %v4447_v31, %v3764_v7  ;;  %v3838_v35 = vpop.f32.mrb[39].mxu1 }
0x1061   : > { %v3839_v48 = vadd.f32 %v3838_v35, %v3760_v6 }
0x1062   : > { %v3848_v25 = vadd.f32 %v3844_v62, %v6071_v5 }
0x1063   : > { %v3847_v10 = vadd.f32 %v3839_v48, %v6068_v44 }
0x1064   : > { %3850 = vst [vmem:[%s579_s16 + $0x8] sm:$0xff] %v3848_v25 }
0x1065   : > { %3849 = vst [vmem:[%s579_s16] sm:$0xff] %v3847_v10 }
0x1066 PF: > { %s25_s18 = sadd.s32 1, %s4842_s18  }
0x1067   : > { %p22_p4 = scmp.ge.s32.totalorder %s25_s18, 4  }
0x1069   :  { %24 = sbr.rel (!%p22_p4) target bundleno = 1 (0x1), region = 129 }

</bundles_post_ra>
